<compile_context>
chip_gen: v7x
topology: tpu7x:2x2x1
jax: 0.10.0
libtpu: 0.0.40
codegen_flags: <defaults>
</compile_context>

<pallas_src>
import jax
import jax.numpy as jnp
from jax import lax
from jax.experimental import pallas as pl
from jax.experimental.pallas import tpu as pltpu


def _round_up(x, m):
    return (x + m - 1) // m * m


def _basic_block_kernel(x_ref, w1_ref, s1_ref, b1_ref, w2_ref, s2_ref, b2_ref,
                        o_ref, xpad_ref, mid_ref):
    # x_ref   : (B, H, W, C)     bf16  unpadded NHWC input tile (B images / step)
    # w1_ref  : (9*C, C)         bf16  conv1 taps, rows ordered (kh, kw, cin)
    # s1_ref, b1_ref : (1, C)    f32   folded BN1 scale / bias
    # w2_ref  : (9*C, C)         bf16  conv2 taps
    # s2_ref, b2_ref : (1, C)    f32   folded BN2 scale / bias
    # o_ref   : (B, H, W, C)     bf16  block output (NHWC, lane-dense C)
    # xpad_ref: (B, H+2, WP, C)  bf16  VMEM scratch: zero-haloed padded input
    # mid_ref : (B, H+2, WP, C)  bf16  VMEM scratch: zero-haloed intermediate
    B, H, W, C = x_ref.shape
    WP = xpad_ref.shape[2]
    M = B * H * W

    # ---- zero ONLY the 1-wide halo that the conv reads (the interior is fully
    #      overwritten every step; columns beyond W+1 are never read) ----------
    def zero_halo(ref):
        ref[:, 0:1, :, :] = jnp.zeros((B, 1, WP, C), ref.dtype)
        ref[:, H + 1:H + 2, :, :] = jnp.zeros((B, 1, WP, C), ref.dtype)
        ref[:, 1:H + 1, 0:1, :] = jnp.zeros((B, H, 1, C), ref.dtype)
        ref[:, 1:H + 1, W + 1:W + 2, :] = jnp.zeros((B, H, 1, C), ref.dtype)

    zero_halo(xpad_ref)
    zero_halo(mid_ref)

    # Padding happens here, in VMEM (no wrapper-level jnp.pad HBM pass).
    xpad_ref[:, 1:H + 1, 1:W + 1, :] = x_ref[...]

    def im2col(ref):
        # 9 shifted (B, H, W, C) views -> (B*H*W, 9*C); taps kh-major, channels
        # minor, matching the (9*Cin, Cout) weight row ordering.
        taps = [ref[:, kh:kh + H, kw:kw + W, :]
                for kh in range(3) for kw in range(3)]
        return jnp.concatenate(taps, axis=-1).reshape(M, 9 * C)

    # ---- conv1 (3x3, pad=1) -> bn1 -> relu : one (M,9C)x(9C,C) MXU matmul -----
    y1 = jnp.dot(im2col(xpad_ref), w1_ref[...],
                 preferred_element_type=jnp.float32)
    y1 = jnp.maximum(y1 * s1_ref[...] + b1_ref[...], 0.0)

    # Intermediate stays in VMEM (no HBM writeback / re-read), halo already zero.
    mid_ref[:, 1:H + 1, 1:W + 1, :] = y1.reshape(B, H, W, C).astype(mid_ref.dtype)

    # ---- conv2 (3x3, pad=1) -> bn2 -> (+ identity) -> relu --------------------
    y2 = jnp.dot(im2col(mid_ref), w2_ref[...],
                 preferred_element_type=jnp.float32)
    identity = x_ref[...].reshape(M, C).astype(jnp.float32)
    y2 = y2 * s2_ref[...] + b2_ref[...] + identity
    o_ref[...] = jnp.maximum(y2, 0.0).reshape(B, H, W, C).astype(o_ref.dtype)


def basic_block_nhwc(x, params, *, batch_block=2):
    """One fused BasicBlock (stride=1, downsample=None).

    x: (N, H, W, C) NHWC bf16 -> (N, H, W, C) NHWC bf16.  Chained blocks stay in
    bf16 NHWC; layout / dtype conversion only happens at network boundaries.
    """
    N, H, W, C = x.shape
    b = max(1, min(batch_block, N))
    while N % b:
        b -= 1
    WP = _round_up(W + 2, 8)        # sublane-aligned padded-scratch width

    return pl.pallas_call(
        _basic_block_kernel,
        out_shape=jax.ShapeDtypeStruct((N, H, W, C), jnp.bfloat16),
        grid=(N // b,),
        in_specs=[
            pl.BlockSpec((b, H, W, C), lambda n: (n, 0, 0, 0)),
            pl.BlockSpec((9 * C, C), lambda n: (0, 0)),
            pl.BlockSpec((1, C), lambda n: (0, 0)),
            pl.BlockSpec((1, C), lambda n: (0, 0)),
            pl.BlockSpec((9 * C, C), lambda n: (0, 0)),
            pl.BlockSpec((1, C), lambda n: (0, 0)),
            pl.BlockSpec((1, C), lambda n: (0, 0)),
        ],
        out_specs=pl.BlockSpec((b, H, W, C), lambda n: (n, 0, 0, 0)),
        scratch_shapes=[pltpu.VMEM((b, H + 2, WP, C), jnp.bfloat16),
                        pltpu.VMEM((b, H + 2, WP, C), jnp.bfloat16)],
        compiler_params=pltpu.CompilerParams(
            dimension_semantics=("parallel",),
            # Per-step footprint is a few MiB at these shapes; stays well under
            # v7x's 64 MiB physical VMEM, above v5e's 16 MiB scoped default.
            vmem_limit_bytes=32 * 1024 * 1024),
    )(x.astype(jnp.bfloat16), params["w1"], params["s1"], params["b1"],
      params["w2"], params["s2"], params["b2"])


def resnet_layer_forward(x_nchw, layer_params, *, batch_block=2):
    """Chain of stride-1 BasicBlocks.  NCHW/f32 <-> NHWC/bf16 only at the edges."""
    x = jnp.transpose(x_nchw, (0, 2, 3, 1)).astype(jnp.bfloat16)
    for p in layer_params:
        x = basic_block_nhwc(x, p, batch_block=batch_block)
    return jnp.transpose(x.astype(jnp.float32), (0, 3, 1, 2))


def init_params(key, inplanes, planes, eps=1e-5):
    """Deterministic synthetic parameters (shapes from BasicBlock.__init__)."""
    assert inplanes == planes, "no-downsample BasicBlock requires inplanes == planes"
    ks = jax.random.split(key, 10)
    # PyTorch conv weights: (out, in, 3, 3), bias=False
    w1_oihw = jax.random.normal(ks[0], (planes, inplanes, 3, 3), jnp.float32) * 0.05
    w2_oihw = jax.random.normal(ks[1], (planes, planes, 3, 3), jnp.float32) * 0.05

    def bn_raw(k0, k1, k2, k3):
        g = jax.random.uniform(k0, (planes,), jnp.float32, 0.5, 1.5)
        b = jax.random.normal(k1, (planes,), jnp.float32) * 0.1
        m = jax.random.normal(k2, (planes,), jnp.float32) * 0.1
        v = jax.random.uniform(k3, (planes,), jnp.float32, 0.5, 1.5)
        return g, b, m, v

    g1, beta1, m1, v1 = bn_raw(ks[2], ks[3], ks[4], ks[5])
    g2, beta2, m2, v2 = bn_raw(ks[6], ks[7], ks[8], ks[9])

    def to_mat(w_oihw):  # (O,I,3,3) -> (3,3,I,O) -> (9*I, O), bf16 MXU operand
        o, i = w_oihw.shape[0], w_oihw.shape[1]
        return jnp.transpose(w_oihw, (2, 3, 1, 0)).reshape(9 * i, o).astype(jnp.bfloat16)

    def fold(g, b, m, v):  # eval-mode BN folded to per-channel scale/bias (f32)
        s = g / jnp.sqrt(v + eps)
        return s.reshape(1, -1), (b - m * s).reshape(1, -1)

    s1, fb1 = fold(g1, beta1, m1, v1)
    s2, fb2 = fold(g2, beta2, m2, v2)

    params = {"w1": to_mat(w1_oihw), "w2": to_mat(w2_oihw),
              "s1": s1, "b1": fb1, "s2": s2, "b2": fb2}
    raw = {"w1_oihw": w1_oihw, "w2_oihw": w2_oihw,
           "g1": g1, "beta1": beta1, "m1": m1, "v1": v1,
           "g2": g2, "beta2": beta2, "m2": m2, "v2": v2, "eps": eps}
    return params, raw


def reference_forward(x_nchw, raws):
    """Pure-JAX reference (lax conv, NHWC, eval-mode BN) mirroring the kernel's
    mixed precision: bf16 matmul operands, bf16 intermediate & inter-block
    activations, f32 accumulation/epilogue."""
    f32, bf16 = jnp.float32, jnp.bfloat16
    x = jnp.transpose(x_nchw, (0, 2, 3, 1)).astype(bf16).astype(f32)

    def conv(xx, w_oihw):
        w = jnp.transpose(w_oihw.astype(bf16).astype(f32), (2, 3, 1, 0))  # HWIO
        return lax.conv_general_dilated(
            xx, w, (1, 1), ((1, 1), (1, 1)),
            dimension_numbers=("NHWC", "HWIO", "NHWC"),
            precision=lax.Precision.HIGHEST)

    def bn(xx, g, b, m, v, eps):
        return (xx - m) / jnp.sqrt(v + eps) * g + b

    for raw in raws:
        eps = raw["eps"]
        out1 = jax.nn.relu(bn(conv(x, raw["w1_oihw"]),
                              raw["g1"], raw["beta1"], raw["m1"], raw["v1"], eps))
        out1 = out1.astype(bf16).astype(f32)   # kernel keeps intermediate in bf16
        out = jax.nn.relu(bn(conv(out1, raw["w2_oihw"]),
                             raw["g2"], raw["beta2"], raw["m2"], raw["v2"], eps) + x)
        x = out.astype(bf16).astype(f32)       # kernel emits bf16 NHWC between blocks
    return jnp.transpose(x, (0, 3, 1, 2))


if __name__ == "__main__":
    key = jax.random.PRNGKey(0)
    k_x, k_p1, k_p2 = jax.random.split(key, 3)

    # C=128 -> lane-dense channel layout; N=8 with 2 images per grid step ->
    # 4 parallel grid steps (pipeline + both v7x TensorCores), matmul M = 512.
    N, C, H, W = 8, 128, 16, 16
    x = jax.random.normal(k_x, (N, C, H, W), jnp.float32)

    p1, raw1 = init_params(k_p1, inplanes=C, planes=C)
    p2, raw2 = init_params(k_p2, inplanes=C, planes=C)
    layer_params = (p1, p2)

    fwd = jax.jit(lambda xx, ps: resnet_layer_forward(xx, ps, batch_block=2))
    out = jax.block_until_ready(fwd(x, layer_params))

    ref = reference_forward(x, (raw1, raw2))
    assert out.shape == (N, C, H, W)
    max_err = float(jnp.max(jnp.abs(out - ref)))
    assert jnp.allclose(out, ref, atol=2e-1, rtol=5e-2), max_err

    print("KERNEL_OK")
</pallas_src>

<mosaic_0001>
module attributes {stable_mosaic.version = 11 : i64} {
  func.func @_basic_block_kernel(%arg0: i32, %arg1: memref<2x16x16x128xbf16, #tpu.memory_space<vmem>>, %arg2: memref<1152x128xbf16, #tpu.memory_space<vmem>>, %arg3: memref<1x128xf32, #tpu.memory_space<vmem>>, %arg4: memref<1x128xf32, #tpu.memory_space<vmem>>, %arg5: memref<1152x128xbf16, #tpu.memory_space<vmem>>, %arg6: memref<1x128xf32, #tpu.memory_space<vmem>>, %arg7: memref<1x128xf32, #tpu.memory_space<vmem>>, %arg8: memref<2x16x16x128xbf16, #tpu.memory_space<vmem>>, %arg9: memref<2x18x24x128xbf16, #tpu.memory_space<vmem>>, %arg10: memref<2x18x24x128xbf16, #tpu.memory_space<vmem>>) attributes {dimension_semantics = [#tpu.dimension_semantics<parallel>], iteration_bounds = array<i64: 4>, scalar_prefetch = 0 : i64, scratch_operands = 2 : i64, tpu.core_type = #tpu.core_type<tc>, window_params = [{transform_indices = @transform_0, window_bounds = array<i64: 2, 16, 16, 128>}, {pipeline_mode = #tpu.pipeline_mode<synchronous>, transform_indices = @transform_1, window_bounds = array<i64: 1152, 128>}, {pipeline_mode = #tpu.pipeline_mode<synchronous>, transform_indices = @transform_2, window_bounds = array<i64: 1, 128>}, {pipeline_mode = #tpu.pipeline_mode<synchronous>, transform_indices = @transform_3, window_bounds = array<i64: 1, 128>}, {pipeline_mode = #tpu.pipeline_mode<synchronous>, transform_indices = @transform_4, window_bounds = array<i64: 1152, 128>}, {pipeline_mode = #tpu.pipeline_mode<synchronous>, transform_indices = @transform_5, window_bounds = array<i64: 1, 128>}, {pipeline_mode = #tpu.pipeline_mode<synchronous>, transform_indices = @transform_6, window_bounds = array<i64: 1, 128>}, {transform_indices = @transform_7, window_bounds = array<i64: 2, 16, 16, 128>}]} {
    %cst = arith.constant 0.000000e+00 : bf16
    %0 = vector.broadcast %cst : bf16 to vector<2x1x24x128xbf16>
    %c0 = arith.constant 0 : index
    %c0_0 = arith.constant 0 : index
    %c0_1 = arith.constant 0 : index
    %c0_2 = arith.constant 0 : index
    %1 = vector.load %arg9[%c0, %c0_0, %c0_1, %c0_2] : memref<2x18x24x128xbf16, #tpu.memory_space<vmem>>, vector<2x1x24x128xbf16>
    tpu.vector_store %arg9[%c0, %c0_0, %c0_1, %c0_2], %0 {strides = array<i32>} : memref<2x18x24x128xbf16, #tpu.memory_space<vmem>>, vector<2x1x24x128xbf16>,
    %cst_3 = arith.constant 0.000000e+00 : bf16
    %2 = vector.broadcast %cst_3 : bf16 to vector<2x1x24x128xbf16>
    %c0_4 = arith.constant 0 : index
    %c17 = arith.constant 17 : index
    %c0_5 = arith.constant 0 : index
    %c0_6 = arith.constant 0 : index
    %3 = vector.load %arg9[%c0_4, %c17, %c0_5, %c0_6] : memref<2x18x24x128xbf16, #tpu.memory_space<vmem>>, vector<2x1x24x128xbf16>
    tpu.vector_store %arg9[%c0_4, %c17, %c0_5, %c0_6], %2 {strides = array<i32>} : memref<2x18x24x128xbf16, #tpu.memory_space<vmem>>, vector<2x1x24x128xbf16>,
    %cst_7 = arith.constant 0.000000e+00 : bf16
    %4 = vector.broadcast %cst_7 : bf16 to vector<2x16x1x128xbf16>
    %c0_8 = arith.constant 0 : index
    %c1 = arith.constant 1 : index
    %c0_9 = arith.constant 0 : index
    %c0_10 = arith.constant 0 : index
    %5 = vector.load %arg9[%c0_8, %c1, %c0_9, %c0_10] : memref<2x18x24x128xbf16, #tpu.memory_space<vmem>>, vector<2x16x1x128xbf16>
    tpu.vector_store %arg9[%c0_8, %c1, %c0_9, %c0_10], %4 {strides = array<i32>} : memref<2x18x24x128xbf16, #tpu.memory_space<vmem>>, vector<2x16x1x128xbf16>,
    %cst_11 = arith.constant 0.000000e+00 : bf16
    %6 = vector.broadcast %cst_11 : bf16 to vector<2x16x1x128xbf16>
    %c0_12 = arith.constant 0 : index
    %c1_13 = arith.constant 1 : index
    %c17_14 = arith.constant 17 : index
    %c0_15 = arith.constant 0 : index
    %7 = vector.load %arg9[%c0_12, %c1_13, %c17_14, %c0_15] : memref<2x18x24x128xbf16, #tpu.memory_space<vmem>>, vector<2x16x1x128xbf16>
    tpu.vector_store %arg9[%c0_12, %c1_13, %c17_14, %c0_15], %6 {strides = array<i32>} : memref<2x18x24x128xbf16, #tpu.memory_space<vmem>>, vector<2x16x1x128xbf16>,
    %cst_16 = arith.constant 0.000000e+00 : bf16
    %8 = vector.broadcast %cst_16 : bf16 to vector<2x1x24x128xbf16>
    %c0_17 = arith.constant 0 : index
    %c0_18 = arith.constant 0 : index
    %c0_19 = arith.constant 0 : index
    %c0_20 = arith.constant 0 : index
    %9 = vector.load %arg10[%c0_17, %c0_18, %c0_19, %c0_20] : memref<2x18x24x128xbf16, #tpu.memory_space<vmem>>, vector<2x1x24x128xbf16>
    tpu.vector_store %arg10[%c0_17, %c0_18, %c0_19, %c0_20], %8 {strides = array<i32>} : memref<2x18x24x128xbf16, #tpu.memory_space<vmem>>, vector<2x1x24x128xbf16>,
    %cst_21 = arith.constant 0.000000e+00 : bf16
    %10 = vector.broadcast %cst_21 : bf16 to vector<2x1x24x128xbf16>
    %c0_22 = arith.constant 0 : index
    %c17_23 = arith.constant 17 : index
    %c0_24 = arith.constant 0 : index
    %c0_25 = arith.constant 0 : index
    %11 = vector.load %arg10[%c0_22, %c17_23, %c0_24, %c0_25] : memref<2x18x24x128xbf16, #tpu.memory_space<vmem>>, vector<2x1x24x128xbf16>
    tpu.vector_store %arg10[%c0_22, %c17_23, %c0_24, %c0_25], %10 {strides = array<i32>} : memref<2x18x24x128xbf16, #tpu.memory_space<vmem>>, vector<2x1x24x128xbf16>,
    %cst_26 = arith.constant 0.000000e+00 : bf16
    %12 = vector.broadcast %cst_26 : bf16 to vector<2x16x1x128xbf16>
    %c0_27 = arith.constant 0 : index
    %c1_28 = arith.constant 1 : index
    %c0_29 = arith.constant 0 : index
    %c0_30 = arith.constant 0 : index
    %13 = vector.load %arg10[%c0_27, %c1_28, %c0_29, %c0_30] : memref<2x18x24x128xbf16, #tpu.memory_space<vmem>>, vector<2x16x1x128xbf16>
    tpu.vector_store %arg10[%c0_27, %c1_28, %c0_29, %c0_30], %12 {strides = array<i32>} : memref<2x18x24x128xbf16, #tpu.memory_space<vmem>>, vector<2x16x1x128xbf16>,
    %cst_31 = arith.constant 0.000000e+00 : bf16
    %14 = vector.broadcast %cst_31 : bf16 to vector<2x16x1x128xbf16>
    %c0_32 = arith.constant 0 : index
    %c1_33 = arith.constant 1 : index
    %c17_34 = arith.constant 17 : index
    %c0_35 = arith.constant 0 : index
    %15 = vector.load %arg10[%c0_32, %c1_33, %c17_34, %c0_35] : memref<2x18x24x128xbf16, #tpu.memory_space<vmem>>, vector<2x16x1x128xbf16>
    tpu.vector_store %arg10[%c0_32, %c1_33, %c17_34, %c0_35], %14 {strides = array<i32>} : memref<2x18x24x128xbf16, #tpu.memory_space<vmem>>, vector<2x16x1x128xbf16>,
    %c0_36 = arith.constant 0 : index
    %c0_37 = arith.constant 0 : index
    %c0_38 = arith.constant 0 : index
    %c0_39 = arith.constant 0 : index
    %16 = vector.load %arg1[%c0_36, %c0_37, %c0_38, %c0_39] : memref<2x16x16x128xbf16, #tpu.memory_space<vmem>>, vector<2x16x16x128xbf16>
    %c0_40 = arith.constant 0 : index
    %c1_41 = arith.constant 1 : index
    %c1_42 = arith.constant 1 : index
    %c0_43 = arith.constant 0 : index
    %17 = vector.load %arg9[%c0_40, %c1_41, %c1_42, %c0_43] : memref<2x18x24x128xbf16, #tpu.memory_space<vmem>>, vector<2x16x16x128xbf16>
    tpu.vector_store %arg9[%c0_40, %c1_41, %c1_42, %c0_43], %16 {strides = array<i32>} : memref<2x18x24x128xbf16, #tpu.memory_space<vmem>>, vector<2x16x16x128xbf16>,
    %c0_44 = arith.constant 0 : index
    %c0_45 = arith.constant 0 : index
    %c0_46 = arith.constant 0 : index
    %c0_47 = arith.constant 0 : index
    %18 = vector.load %arg9[%c0_44, %c0_45, %c0_46, %c0_47] : memref<2x18x24x128xbf16, #tpu.memory_space<vmem>>, vector<2x16x16x128xbf16>
    %c0_48 = arith.constant 0 : index
    %c0_49 = arith.constant 0 : index
    %c1_50 = arith.constant 1 : index
    %c0_51 = arith.constant 0 : index
    %19 = vector.load %arg9[%c0_48, %c0_49, %c1_50, %c0_51] : memref<2x18x24x128xbf16, #tpu.memory_space<vmem>>, vector<2x16x16x128xbf16>
    %c0_52 = arith.constant 0 : index
    %c0_53 = arith.constant 0 : index
    %c2 = arith.constant 2 : index
    %c0_54 = arith.constant 0 : index
    %20 = vector.load %arg9[%c0_52, %c0_53, %c2, %c0_54] : memref<2x18x24x128xbf16, #tpu.memory_space<vmem>>, vector<2x16x16x128xbf16>
    %c0_55 = arith.constant 0 : index
    %c1_56 = arith.constant 1 : index
    %c0_57 = arith.constant 0 : index
    %c0_58 = arith.constant 0 : index
    %21 = vector.load %arg9[%c0_55, %c1_56, %c0_57, %c0_58] : memref<2x18x24x128xbf16, #tpu.memory_space<vmem>>, vector<2x16x16x128xbf16>
    %c0_59 = arith.constant 0 : index
    %c1_60 = arith.constant 1 : index
    %c1_61 = arith.constant 1 : index
    %c0_62 = arith.constant 0 : index
    %22 = vector.load %arg9[%c0_59, %c1_60, %c1_61, %c0_62] : memref<2x18x24x128xbf16, #tpu.memory_space<vmem>>, vector<2x16x16x128xbf16>
    %c0_63 = arith.constant 0 : index
    %c1_64 = arith.constant 1 : index
    %c2_65 = arith.constant 2 : index
    %c0_66 = arith.constant 0 : index
    %23 = vector.load %arg9[%c0_63, %c1_64, %c2_65, %c0_66] : memref<2x18x24x128xbf16, #tpu.memory_space<vmem>>, vector<2x16x16x128xbf16>
    %c0_67 = arith.constant 0 : index
    %c2_68 = arith.constant 2 : index
    %c0_69 = arith.constant 0 : index
    %c0_70 = arith.constant 0 : index
    %24 = vector.load %arg9[%c0_67, %c2_68, %c0_69, %c0_70] : memref<2x18x24x128xbf16, #tpu.memory_space<vmem>>, vector<2x16x16x128xbf16>
    %c0_71 = arith.constant 0 : index
    %c2_72 = arith.constant 2 : index
    %c1_73 = arith.constant 1 : index
    %c0_74 = arith.constant 0 : index
    %25 = vector.load %arg9[%c0_71, %c2_72, %c1_73, %c0_74] : memref<2x18x24x128xbf16, #tpu.memory_space<vmem>>, vector<2x16x16x128xbf16>
    %c0_75 = arith.constant 0 : index
    %c2_76 = arith.constant 2 : index
    %c2_77 = arith.constant 2 : index
    %c0_78 = arith.constant 0 : index
    %26 = vector.load %arg9[%c0_75, %c2_76, %c2_77, %c0_78] : memref<2x18x24x128xbf16, #tpu.memory_space<vmem>>, vector<2x16x16x128xbf16>
    %27 = tpu.concatenate %18, %19, %20, %21, %22, %23, %24, %25, %26 in 3 : vector<2x16x16x128xbf16>, vector<2x16x16x128xbf16>, vector<2x16x16x128xbf16>, vector<2x16x16x128xbf16>, vector<2x16x16x128xbf16>, vector<2x16x16x128xbf16>, vector<2x16x16x128xbf16>, vector<2x16x16x128xbf16>, vector<2x16x16x128xbf16> -> vector<2x16x16x1152xbf16>
    %28 = vector.shape_cast %27 : vector<2x16x16x1152xbf16> to vector<512x1152xbf16>
    %c0_79 = arith.constant 0 : index
    %c0_80 = arith.constant 0 : index
    %29 = vector.load %arg2[%c0_79, %c0_80] : memref<1152x128xbf16, #tpu.memory_space<vmem>>, vector<1152x128xbf16>
    %cst_81 = arith.constant dense<0.000000e+00> : vector<512x128xf32>
    %30 = tpu.matmul %28, %29, %cst_81 {dimension_numbers = #tpu.dot_dimension_numbers<[1], [0], [0], [1], [0, 0, 1, 1], [], []>} : vector<512x1152xbf16>, vector<1152x128xbf16>, vector<512x128xf32> -> vector<512x128xf32>
    %c0_82 = arith.constant 0 : index
    %c0_83 = arith.constant 0 : index
    %31 = vector.load %arg3[%c0_82, %c0_83] : memref<1x128xf32, #tpu.memory_space<vmem>>, vector<1x128xf32>
    %32 = vector.broadcast %31 : vector<1x128xf32> to vector<512x128xf32>
    %33 = arith.mulf %30, %32 : vector<512x128xf32>
    %c0_84 = arith.constant 0 : index
    %c0_85 = arith.constant 0 : index
    %34 = vector.load %arg4[%c0_84, %c0_85] : memref<1x128xf32, #tpu.memory_space<vmem>>, vector<1x128xf32>
    %35 = vector.broadcast %34 : vector<1x128xf32> to vector<512x128xf32>
    %36 = arith.addf %33, %35 : vector<512x128xf32>
    %cst_86 = arith.constant 0.000000e+00 : f32
    %37 = vector.broadcast %cst_86 : f32 to vector<512x128xf32>
    %38 = arith.maximumf %36, %37 : vector<512x128xf32>
    %39 = vector.shape_cast %38 : vector<512x128xf32> to vector<2x16x16x128xf32>
    %40 = arith.truncf %39 : vector<2x16x16x128xf32> to vector<2x16x16x128xbf16>
    %c0_87 = arith.constant 0 : index
    %c1_88 = arith.constant 1 : index
    %c1_89 = arith.constant 1 : index
    %c0_90 = arith.constant 0 : index
    %41 = vector.load %arg10[%c0_87, %c1_88, %c1_89, %c0_90] : memref<2x18x24x128xbf16, #tpu.memory_space<vmem>>, vector<2x16x16x128xbf16>
    tpu.vector_store %arg10[%c0_87, %c1_88, %c1_89, %c0_90], %40 {strides = array<i32>} : memref<2x18x24x128xbf16, #tpu.memory_space<vmem>>, vector<2x16x16x128xbf16>,
    %c0_91 = arith.constant 0 : index
    %c0_92 = arith.constant 0 : index
    %c0_93 = arith.constant 0 : index
    %c0_94 = arith.constant 0 : index
    %42 = vector.load %arg10[%c0_91, %c0_92, %c0_93, %c0_94] : memref<2x18x24x128xbf16, #tpu.memory_space<vmem>>, vector<2x16x16x128xbf16>
    %c0_95 = arith.constant 0 : index
    %c0_96 = arith.constant 0 : index
    %c1_97 = arith.constant 1 : index
    %c0_98 = arith.constant 0 : index
    %43 = vector.load %arg10[%c0_95, %c0_96, %c1_97, %c0_98] : memref<2x18x24x128xbf16, #tpu.memory_space<vmem>>, vector<2x16x16x128xbf16>
    %c0_99 = arith.constant 0 : index
    %c0_100 = arith.constant 0 : index
    %c2_101 = arith.constant 2 : index
    %c0_102 = arith.constant 0 : index
    %44 = vector.load %arg10[%c0_99, %c0_100, %c2_101, %c0_102] : memref<2x18x24x128xbf16, #tpu.memory_space<vmem>>, vector<2x16x16x128xbf16>
    %c0_103 = arith.constant 0 : index
    %c1_104 = arith.constant 1 : index
    %c0_105 = arith.constant 0 : index
    %c0_106 = arith.constant 0 : index
    %45 = vector.load %arg10[%c0_103, %c1_104, %c0_105, %c0_106] : memref<2x18x24x128xbf16, #tpu.memory_space<vmem>>, vector<2x16x16x128xbf16>
    %c0_107 = arith.constant 0 : index
    %c1_108 = arith.constant 1 : index
    %c1_109 = arith.constant 1 : index
    %c0_110 = arith.constant 0 : index
    %46 = vector.load %arg10[%c0_107, %c1_108, %c1_109, %c0_110] : memref<2x18x24x128xbf16, #tpu.memory_space<vmem>>, vector<2x16x16x128xbf16>
    %c0_111 = arith.constant 0 : index
    %c1_112 = arith.constant 1 : index
    %c2_113 = arith.constant 2 : index
    %c0_114 = arith.constant 0 : index
    %47 = vector.load %arg10[%c0_111, %c1_112, %c2_113, %c0_114] : memref<2x18x24x128xbf16, #tpu.memory_space<vmem>>, vector<2x16x16x128xbf16>
    %c0_115 = arith.constant 0 : index
    %c2_116 = arith.constant 2 : index
    %c0_117 = arith.constant 0 : index
    %c0_118 = arith.constant 0 : index
    %48 = vector.load %arg10[%c0_115, %c2_116, %c0_117, %c0_118] : memref<2x18x24x128xbf16, #tpu.memory_space<vmem>>, vector<2x16x16x128xbf16>
    %c0_119 = arith.constant 0 : index
    %c2_120 = arith.constant 2 : index
    %c1_121 = arith.constant 1 : index
    %c0_122 = arith.constant 0 : index
    %49 = vector.load %arg10[%c0_119, %c2_120, %c1_121, %c0_122] : memref<2x18x24x128xbf16, #tpu.memory_space<vmem>>, vector<2x16x16x128xbf16>
    %c0_123 = arith.constant 0 : index
    %c2_124 = arith.constant 2 : index
    %c2_125 = arith.constant 2 : index
    %c0_126 = arith.constant 0 : index
    %50 = vector.load %arg10[%c0_123, %c2_124, %c2_125, %c0_126] : memref<2x18x24x128xbf16, #tpu.memory_space<vmem>>, vector<2x16x16x128xbf16>
    %51 = tpu.concatenate %42, %43, %44, %45, %46, %47, %48, %49, %50 in 3 : vector<2x16x16x128xbf16>, vector<2x16x16x128xbf16>, vector<2x16x16x128xbf16>, vector<2x16x16x128xbf16>, vector<2x16x16x128xbf16>, vector<2x16x16x128xbf16>, vector<2x16x16x128xbf16>, vector<2x16x16x128xbf16>, vector<2x16x16x128xbf16> -> vector<2x16x16x1152xbf16>
    %52 = vector.shape_cast %51 : vector<2x16x16x1152xbf16> to vector<512x1152xbf16>
    %c0_127 = arith.constant 0 : index
    %c0_128 = arith.constant 0 : index
    %53 = vector.load %arg5[%c0_127, %c0_128] : memref<1152x128xbf16, #tpu.memory_space<vmem>>, vector<1152x128xbf16>
    %cst_129 = arith.constant dense<0.000000e+00> : vector<512x128xf32>
    %54 = tpu.matmul %52, %53, %cst_129 {dimension_numbers = #tpu.dot_dimension_numbers<[1], [0], [0], [1], [0, 0, 1, 1], [], []>} : vector<512x1152xbf16>, vector<1152x128xbf16>, vector<512x128xf32> -> vector<512x128xf32>
    %c0_130 = arith.constant 0 : index
    %c0_131 = arith.constant 0 : index
    %c0_132 = arith.constant 0 : index
    %c0_133 = arith.constant 0 : index
    %55 = vector.load %arg1[%c0_130, %c0_131, %c0_132, %c0_133] : memref<2x16x16x128xbf16, #tpu.memory_space<vmem>>, vector<2x16x16x128xbf16>
    %56 = vector.shape_cast %55 : vector<2x16x16x128xbf16> to vector<512x128xbf16>
    %57 = arith.extf %56 : vector<512x128xbf16> to vector<512x128xf32>
    %c0_134 = arith.constant 0 : index
    %c0_135 = arith.constant 0 : index
    %58 = vector.load %arg6[%c0_134, %c0_135] : memref<1x128xf32, #tpu.memory_space<vmem>>, vector<1x128xf32>
    %59 = vector.broadcast %58 : vector<1x128xf32> to vector<512x128xf32>
    %60 = arith.mulf %54, %59 : vector<512x128xf32>
    %c0_136 = arith.constant 0 : index
    %c0_137 = arith.constant 0 : index
    %61 = vector.load %arg7[%c0_136, %c0_137] : memref<1x128xf32, #tpu.memory_space<vmem>>, vector<1x128xf32>
    %62 = vector.broadcast %61 : vector<1x128xf32> to vector<512x128xf32>
    %63 = arith.addf %60, %62 : vector<512x128xf32>
    %64 = arith.addf %63, %57 : vector<512x128xf32>
    %cst_138 = arith.constant 0.000000e+00 : f32
    %65 = vector.broadcast %cst_138 : f32 to vector<512x128xf32>
    %66 = arith.maximumf %64, %65 : vector<512x128xf32>
    %67 = vector.shape_cast %66 : vector<512x128xf32> to vector<2x16x16x128xf32>
    %68 = arith.truncf %67 : vector<2x16x16x128xf32> to vector<2x16x16x128xbf16>
    %c0_139 = arith.constant 0 : index
    %c0_140 = arith.constant 0 : index
    %c0_141 = arith.constant 0 : index
    %c0_142 = arith.constant 0 : index
    %69 = vector.load %arg8[%c0_139, %c0_140, %c0_141, %c0_142] : memref<2x16x16x128xbf16, #tpu.memory_space<vmem>>, vector<2x16x16x128xbf16>
    tpu.vector_store %arg8[%c0_139, %c0_140, %c0_141, %c0_142], %68 {strides = array<i32>} : memref<2x16x16x128xbf16, #tpu.memory_space<vmem>>, vector<2x16x16x128xbf16>,
    return
  }
  func.func @transform_0(%arg0: i32) -> (i32, i32, i32, i32) {
    %c0_i32 = arith.constant 0 : i32
    %c0_i32_0 = arith.constant 0 : i32
    %c0_i32_1 = arith.constant 0 : i32
    %c0_i32_2 = arith.constant 0 : i32
    return %arg0, %c0_i32, %c0_i32_0, %c0_i32_1 : i32, i32, i32, i32
  }
  func.func @transform_1(%arg0: i32) -> (i32, i32) {
    %c0_i32 = arith.constant 0 : i32
    %c0_i32_0 = arith.constant 0 : i32
    %c0_i32_1 = arith.constant 0 : i32
    return %c0_i32, %c0_i32_0 : i32, i32
  }
  func.func @transform_2(%arg0: i32) -> (i32, i32) {
    %c0_i32 = arith.constant 0 : i32
    %c0_i32_0 = arith.constant 0 : i32
    %c0_i32_1 = arith.constant 0 : i32
    return %c0_i32, %c0_i32_0 : i32, i32
  }
  func.func @transform_3(%arg0: i32) -> (i32, i32) {
    %c0_i32 = arith.constant 0 : i32
    %c0_i32_0 = arith.constant 0 : i32
    %c0_i32_1 = arith.constant 0 : i32
    return %c0_i32, %c0_i32_0 : i32, i32
  }
  func.func @transform_4(%arg0: i32) -> (i32, i32) {
    %c0_i32 = arith.constant 0 : i32
    %c0_i32_0 = arith.constant 0 : i32
    %c0_i32_1 = arith.constant 0 : i32
    return %c0_i32, %c0_i32_0 : i32, i32
  }
  func.func @transform_5(%arg0: i32) -> (i32, i32) {
    %c0_i32 = arith.constant 0 : i32
    %c0_i32_0 = arith.constant 0 : i32
    %c0_i32_1 = arith.constant 0 : i32
    return %c0_i32, %c0_i32_0 : i32, i32
  }
  func.func @transform_6(%arg0: i32) -> (i32, i32) {
    %c0_i32 = arith.constant 0 : i32
    %c0_i32_0 = arith.constant 0 : i32
    %c0_i32_1 = arith.constant 0 : i32
    return %c0_i32, %c0_i32_0 : i32, i32
  }
  func.func @transform_7(%arg0: i32) -> (i32, i32, i32, i32) {
    %c0_i32 = arith.constant 0 : i32
    %c0_i32_0 = arith.constant 0 : i32
    %c0_i32_1 = arith.constant 0 : i32
    %c0_i32_2 = arith.constant 0 : i32
    return %arg0, %c0_i32, %c0_i32_0, %c0_i32_1 : i32, i32, i32, i32
  }
}

</mosaic_0001>

<bundles_post_ra>
// kernel: _lambda_.2
= control target key start
LH: loop header
LB: loop body
LE: loop exit
PB: predicated region body
PF: predicated region fallthrough
CT: control target
= control target key end

     0   :  { %s17417_s24 = smov 0   ;;  %s21073_s0 = inlined_call_operand.vmem [shape: bf16[8,16,16,128], index: 0, kind: input, shape index: {}]   ;;  %s21074_s1 = inlined_call_operand.vmem [shape: bf16[1152,128], index: 1, kind: input, shape index: {}]   ;;  %s21075_s2 = inlined_call_operand.vmem [shape: f32[1,128], index: 2, kind: input, shape index: {}]   ;;  %s21076_s3 = inlined_call_operand.vmem [shape: f32[1,128], index: 3, kind: input, shape index: {}]   ;;  %s21077_s4 = inlined_call_operand.vmem [shape: bf16[1152,128], index: 4, kind: input, shape index: {}]   ;;  %s21078_s5 = inlined_call_operand.vmem [shape: f32[1,128], index: 5, kind: input, shape index: {}]   ;;  %s21079_s6 = inlined_call_operand.vmem [shape: f32[1,128], index: 6, kind: input, shape index: {}]   ;;  %s21080_s7 = inlined_call_operand.vmem [shape: bf16[8,16,16,128], index: 7, kind: output, shape index: {}]  }
   0x1 LB: > { %s14057_s25 = sadd.s32 4294967295, %s17374_s24   ;;  %p14061_p0 = scmp.ge.s32.totalorder %s17374_s24, 1  ;;  %s17374_s24 = sphi %s17417_s24, %s17_s24  }
   0x2   : > { %p239_p1 = scmp.lt.s32.totalorder %s17374_s24, 5 }
   0x4   : > { %p240_p2 = pnand %p14061_p0, %p239_p1 }
   0x6   : > { %243 = sbr.rel (%p240_p2) target bundleno = 2392 (0x958), region = 48 }
   0xd   : > { %v16435_v0 = vld [vmem:[%s21074_s1] sm:$0xff]   ;;  %v21081_v1 = vmov 0   ;;  %v16436_v2 = vld [vmem:[%s21074_s1 + $0x8] sm:$0xff]   ;;  %s14062_s30 = sshll.u32 %s14057_s25, 1  ;;  %v16437_v3 = vld [vmem:[%s21074_s1 + $0x10] sm:$0xff]   ;;  %vm302_vm0 = vcmask 1040384  }
   0xe   : > { %5384 = vmatprep.subr.bf16.mxu0 %v21081_v1  ;;  %288 = vst [vmem:[#allocation2] sm:$0xf] %v21081_v1  ;;  %289 = vst [vmem:[#allocation2 + $0x4] sm:$0xf] %v21081_v1  ;;  %p274_p3 = scmp.lt.s32.totalorder %s14062_s30, 7  ;;  %v16438_v4 = vld [vmem:[%s21074_s1 + $0x18] sm:$0xff]  }
   0xf   : > { %290 = vst [vmem:[#allocation2 + $0x8] sm:$0xf] %v21081_v1  ;;  %291 = vst [vmem:[#allocation2 + $0xd8] sm:$0xf] %v21081_v1  ;;  %5385 = vmatpush1.bf16.msra.mxu0 %v16435_v0  ;;  %v16439_v5 = vld [vmem:[%s21074_s1 + $0x20] sm:$0xff]   ;;  %v16440_v8 = vld [vmem:[%s21074_s1 + $0x28] sm:$0xff]  }
  0x10   : > { %292 = vst [vmem:[#allocation2 + $0xdc] sm:$0xf] %v21081_v1  ;;  %293 = vst [vmem:[#allocation2 + $0xe0] sm:$0xf] %v21081_v1  ;;  %5386 = vmatprep.subr.bf16.mxu0 %v21081_v1  ;;  %s21312_s30 = smov (!%p274_p3, %s14062_s30), 7  ;;  %vm1411_vm5 = vcmask 1043456  }
  0x11   : > { %295 = vst [vmem:[#allocation2 + $0xcc] sm:$0xf] %v21081_v1  ;;  %296 = vst [vmem:[#allocation2 + $0xd0] sm:$0xf] %v21081_v1  ;;  %s14922_s14 = sshll.u32 %s21312_s30, 7  ;;  %v16441_v23 = vld [vmem:[%s21074_s1 + $0x30] sm:$0xff]  }
  0x12   : > { %297 = vst [vmem:[#allocation2 + $0xd4] sm:$0xf] %v21081_v1  ;;  %298 = vst [vmem:[#allocation2 + $0x1a4] sm:$0xf] %v21081_v1  ;;  %vm2310_vm1 = vsmask.f32 7424  ;;  %s17484_s19 = scalar_lea.vmem %s21073_s0, %s14922_s14  ;;  %s20795_s9 = scalar_lea.vmem %s21080_s7, %s14922_s14 }
  0x13   : > { %299 = vst [vmem:[#allocation2 + $0x1a8] sm:$0xf] %v21081_v1  ;;  %300 = vst [vmem:[#allocation2 + $0x1ac] sm:$0xf] %v21081_v1  ;;  %5387 = vmatpush1.bf16.msra.mxu0 %v16436_v2  ;;  %vm303_vm2 = vsmask.f32 256 }
  0x14   : > { %499 = vst [vmem:[#allocation3] sm:$0xf] %v21081_v1  ;;  %500 = vst [vmem:[#allocation3 + $0x4] sm:$0xf] %v21081_v1  ;;  %5388 = vmatprep.subr.bf16.mxu0 %v21081_v1  ;;  %v305_v15 = vld [vmem:[#allocation2 + $0xc] sm:$0x1] }
  0x15   : > { %501 = vst [vmem:[#allocation3 + $0x8] sm:$0xf] %v21081_v1  ;;  %502 = vst [vmem:[#allocation3 + $0xd8] sm:$0xf] %v21081_v1  ;;  %v1637_v6 = vld [vmem:[#allocation2] sm:$0xf] }
  0x16   : > { %503 = vst [vmem:[#allocation3 + $0xdc] sm:$0xf] %v21081_v1  ;;  %504 = vst [vmem:[#allocation3 + $0xe0] sm:$0xf] %v21081_v1  ;;  %v1638_v7 = vld [vmem:[#allocation2 + $0x4] sm:$0xf] }
  0x17   : > { %506 = vst [vmem:[#allocation3 + $0xcc] sm:$0xf] %v21081_v1  ;;  %507 = vst [vmem:[#allocation3 + $0xd0] sm:$0xf] %v21081_v1  ;;  %5389 = vmatpush1.bf16.msra.mxu0 %v16437_v3  ;;  %v17477_v9 = vcombine.low %v1637_v6, %v1638_v7  ;;  %vm401_vm4 = vsmask.f32 7938 }
  0x18   : > { %508 = vst [vmem:[#allocation3 + $0xd4] sm:$0xf] %v21081_v1  ;;  %509 = vst [vmem:[#allocation3 + $0x1a4] sm:$0xf] %v21081_v1  ;;  %5390 = vmatprep.subr.bf16.mxu0 %v21081_v1  ;;  %v403_v17 = vld [vmem:[#allocation2 + $0x14] sm:$0x1] }
  0x19   : > { %510 = vst [vmem:[#allocation3 + $0x1a8] sm:$0xf] %v21081_v1  ;;  %511 = vst [vmem:[#allocation3 + $0x1ac] sm:$0xf] %v21081_v1  ;;  %v2312_v11 = vshrl.u32 %v17477_v9, 16  ;;  %v2314_v12 = vshll.u32 %v17477_v9, 16 }
  0x1a   : > { %v16452_v10 = vld [vmem:[#allocation2 + $0x8] ss:$0 sps:$4 sm:$0x11]   ;;  %vm17491_vm3 = vmand %vm302_vm0, %vm303_vm2  ;;  %v705_v21 = vld [vmem:[%s17484_s19] sm:$0xf]  ;;  %v21132_v38 = vmov 0 }
  0x1b   : > { %5391 = vmatpush1.bf16.msra.mxu0 %v16438_v4  ;;  %v2319_v13 = vshll.u32 %v16452_v10, 16  ;;  %v306_v16 = vsel %vm17491_vm3, 0, %v305_v15  ;;  %v2316_v18 = vrot.slane %v2314_v12, 1  ;;  %vm17499_vm6 = vmand %vm302_vm0, %vm401_vm4  ;;  %v706_v22 = vld [vmem:[%s17484_s19 + $0x4] sm:$0xf]  ;;  %v772_v25 = vshrl.u32 %v705_v21, 16 }
  0x1c   : > { %5392 = vmatprep.subr.bf16.mxu0 %v21081_v1  ;;  %307 = vst [vmem:[#allocation2 + $0xc] sm:$0x1] %v306_v16  ;;  %v404_v24 = vsel %vm17499_vm6, 0, %v403_v17  ;;  %vm769_vm7 = vsmask.f32 4368  ;;  %v775_v26 = vshll.u32 %v705_v21, 16  ;;  %vm17519_vm8 = vmand %vm1411_vm5, %vm401_vm4 }
  0x1d   : > { %v2321_v19 = vrot.slane %v2319_v13, 1  ;;  %v2317_v27 = vor.u32 %v2316_v18, %v2312_v11  ;;  %405 = vst [vmem:[#allocation2 + $0x14] sm:$0x1] %v404_v24  ;;  %v780_v28 = vshrl.u32 %v706_v22, 16  ;;  %v783_v29 = vshll.u32 %v706_v22, 16  ;;  %v16442_v42 = vld [vmem:[%s21074_s1 + $0x38] sm:$0xff]   ;;  %vm17529_vm9 = vmor %vm303_vm2, %vm769_vm7 }
  0x1e   : > { %v308_v30 = vld [vmem:[#allocation2 + $0x18] sm:$0x1]  ;;  %v406_v31 = vld [vmem:[#allocation2 + $0x20] sm:$0x1]  ;;  %v774_v32 = vrot.slane %v772_v25, 7  ;;  %v21133_v38 = vsel %vm17519_vm8, 4294967295, %v21132_v38 }
  0x1f   : > { %5393 = vmatpush1.bf16.msra.mxu0 %v16439_v5  ;;  %v309_v33 = vsel %vm17491_vm3, 0, %v308_v30  ;;  %v407_v34 = vsel %vm17499_vm6, 0, %v406_v31  ;;  %v707_v35 = vld [vmem:[%s17484_s19 + $0x8] sm:$0xf]  ;;  %v2322_v36 = vsel %vm2310_vm1, %v2317_v27, %v2321_v19  ;;  %v782_v37 = vrot.slane %v780_v28, 7  ;;  %21134 = vst [vmem:[#allocation4_spill] sm:$0xff] %v21133_v38 }
  0x20   : > { %5394 = vmatprep.subr.bf16.mxu0 %v21081_v1  ;;  %310 = vst [vmem:[#allocation2 + $0x18] sm:$0x1] %v309_v33  ;;  %408 = vst [vmem:[#allocation2 + $0x20] sm:$0x1] %v407_v34  ;;  %v708_v39 = vld [vmem:[%s17484_s19 + $0xc] sm:$0xf]  ;;  %5416 = vmatprep.mubr.bf16.mxu0 %v2322_v36  ;;  %v777_v44 = vor.u32 %v775_v26, %v774_v32 }
  0x21   : > { %v789_v40 = vshrl.u32 %v707_v35, 16  ;;  %v792_v41 = vshll.u32 %v707_v35, 16  ;;  %v21135_v43 = vmov 0  ;;  %v778_v45 = vrot.slane %v774_v32, 4  ;;  %v311_v51 = vld [vmem:[#allocation2 + $0x24] sm:$0x1] }
  0x22   : > { %v21136_v43 = vsel %vm17529_vm9, 4294967295, %v21135_v43  ;;  %v797_v46 = vshrl.u32 %v708_v39, 16  ;;  %v800_v47 = vshll.u32 %v708_v39, 16  ;;  %v785_v48 = vor.u32 %v783_v29, %v782_v37  ;;  %v409_v55 = vld [vmem:[#allocation2 + $0x2c] sm:$0x1]  ;;  %v16443_v62 = vld [vmem:[%s21074_s1 + $0x40] sm:$0xff]  }
  0x23   : > { %5395 = vmatpush1.bf16.msra.mxu0 %v16440_v8  ;;  %21137 = vst [vmem:[#allocation5_spill] sm:$0xff] %v21136_v43  ;;  %v787_v49 = vrot.slane %v782_v37, 4  ;;  %v791_v50 = vrot.slane %v789_v40, 7  ;;  %v1413_v52 = vld [vmem:[#allocation2 + $0xc] sm:$0xf]  ;;  %v312_v54 = vsel %vm17491_vm3, 0, %v311_v51 }
  0x24   : > { %5396 = vmatprep.subr.bf16.mxu0 %v21081_v1  ;;  %v799_v53 = vrot.slane %v797_v46, 7  ;;  %v786_v56 = vsel %vm17529_vm9, %v778_v45, %v785_v48  ;;  %v1414_v57 = vsel %vm17519_vm8, %v777_v44, %v1413_v52  ;;  %313 = vst [vmem:[#allocation2 + $0x24] sm:$0x1] %v312_v54  ;;  %v709_v60 = vld [vmem:[%s17484_s19 + $0x10] sm:$0xf]  ;;  %v410_v3 = vsel %vm17499_vm6, 0, %v409_v55 }
  0x25   : > { %v794_v58 = vor.u32 %v792_v41, %v791_v50  ;;  %v795_v59 = vrot.slane %v791_v50, 4  ;;  %v710_v61 = vld [vmem:[%s17484_s19 + $0x14] sm:$0xf]  ;;  %1415 = vst [vmem:[#allocation2 + $0xc] sm:$0xf] %v1414_v57  ;;  %v806_v4 = vshrl.u32 %v709_v60, 16 }
  0x26   : > { %1416 = vst [vmem:[#allocation2 + $0x10] sm:$0xf] %v786_v56  ;;  %v1417_v63 = vld [vmem:[#allocation2 + $0x14] sm:$0x1]  ;;  %v802_v0 = vor.u32 %v800_v47, %v799_v53  ;;  %v804_v2 = vrot.slane %v799_v53, 4  ;;  %v809_v6 = vshll.u32 %v709_v60, 16 }
  0x27   : > { %5397 = vmatpush1.bf16.msra.mxu0 %v16441_v23  ;;  %v1418_v5 = vsel %vm17491_vm3, %v787_v49, %v1417_v63  ;;  %411 = vst [vmem:[#allocation2 + $0x2c] sm:$0x1] %v410_v3  ;;  %v814_v7 = vshrl.u32 %v710_v61, 16  ;;  %v817_v8 = vshll.u32 %v710_v61, 16  ;;  %v314_v10 = vld [vmem:[#allocation2 + $0x30] sm:$0x1] }
  0x28   : > { %5398 = vmatprep.subr.bf16.mxu0 %v21081_v1  ;;  %1419 = vst [vmem:[#allocation2 + $0x14] sm:$0x1] %v1418_v5  ;;  %v803_v11 = vsel %vm17529_vm9, %v795_v59, %v802_v0  ;;  %v1420_v12 = vld [vmem:[#allocation2 + $0x18] sm:$0xf]  ;;  %v1424_v13 = vld [vmem:[#allocation2 + $0x20] sm:$0x1] }
  0x29   : > { %v808_v15 = vrot.slane %v806_v4, 7  ;;  %v315_v16 = vsel %vm17491_vm3, 0, %v314_v10  ;;  %v1421_v17 = vsel %vm17519_vm8, %v794_v58, %v1420_v12  ;;  %1423 = vst [vmem:[#allocation2 + $0x1c] sm:$0xf] %v803_v11  ;;  %v1425_v18 = vsel %vm17491_vm3, %v804_v2, %v1424_v13  ;;  %v412_v21 = vld [vmem:[#allocation2 + $0x38] sm:$0x1] }
  0x2a   : > { %v816_v19 = vrot.slane %v814_v7, 7  ;;  %316 = vst [vmem:[#allocation2 + $0x30] sm:$0x1] %v315_v16  ;;  %v711_v22 = vld [vmem:[%s17484_s19 + $0x18] sm:$0xf]  ;;  %v16444_v23 = vld [vmem:[%s21074_s1 + $0x48] sm:$0xff]  }
  0x2b   : > { %5399 = vmatpush1.bf16.msra.mxu0 %v16442_v42  ;;  %1422 = vst [vmem:[#allocation2 + $0x18] sm:$0xf] %v1421_v17  ;;  %1426 = vst [vmem:[#allocation2 + $0x20] sm:$0x1] %v1425_v18  ;;  %v811_v24 = vor.u32 %v809_v6, %v808_v15  ;;  %v812_v25 = vrot.slane %v808_v15, 4  ;;  %v413_v26 = vsel %vm17499_vm6, 0, %v412_v21 }
  0x2c   : > { %5400 = vmatprep.subr.bf16.mxu0 %v21081_v1  ;;  %v712_v27 = vld [vmem:[%s17484_s19 + $0x1c] sm:$0xf]  ;;  %v823_v28 = vshrl.u32 %v711_v22, 16  ;;  %v819_v29 = vor.u32 %v817_v8, %v816_v19  ;;  %v821_v30 = vrot.slane %v816_v19, 4  ;;  %414 = vst [vmem:[#allocation2 + $0x38] sm:$0x1] %v413_v26 }
  0x2d   : > { %v826_v31 = vshll.u32 %v711_v22, 16  ;;  %v831_v32 = vshrl.u32 %v712_v27, 16  ;;  %v1427_v33 = vld [vmem:[#allocation2 + $0x24] sm:$0xf]  ;;  %v834_v35 = vshll.u32 %v712_v27, 16  ;;  %v16445_v42 = vld [vmem:[%s21074_s1 + $0x50] sm:$0xff]  }
  0x2e   : > { %v825_v34 = vrot.slane %v823_v28, 7  ;;  %v1639_v36 = vld [vmem:[#allocation2 + $0xc] sm:$0xf]  ;;  %v1640_v37 = vld [vmem:[#allocation2 + $0x10] sm:$0xf]  ;;  %v820_v39 = vsel %vm17529_vm9, %v812_v25, %v819_v29  ;;  %v1428_v40 = vsel %vm17519_vm8, %v811_v24, %v1427_v33  ;;  %v16446_v57 = vld [vmem:[%s21074_s1 + $0x58] sm:$0xff]  }
  0x2f   : > { %5401 = vmatpush1.bf16.msra.mxu0 %v16443_v62  ;;  %v833_v41 = vrot.slane %v831_v32, 7  ;;  %1429 = vst [vmem:[#allocation2 + $0x24] sm:$0xf] %v1428_v40  ;;  %1430 = vst [vmem:[#allocation2 + $0x28] sm:$0xf] %v820_v39  ;;  %v17576_v51 = vcombine.low %v1639_v36, %v1640_v37  ;;  %v16447_v5 = vld [vmem:[%s21074_s1 + $0x60] sm:$0xff]  }
  0x30   : > { %5402 = vmatprep.subr.bf16.mxu0 %v21081_v1  ;;  %v1431_v44 = vld [vmem:[#allocation2 + $0x2c] sm:$0x1]  ;;  %v828_v45 = vor.u32 %v826_v31, %v825_v34  ;;  %v829_v46 = vrot.slane %v825_v34, 4  ;;  %v317_v47 = vld [vmem:[#allocation2 + $0x3c] sm:$0x1]  ;;  %v16449_v29 = vld [vmem:[%s21074_s1 + $0x70] sm:$0xff]  }
  0x31   : > { %v1432_v48 = vsel %vm17491_vm3, %v821_v30, %v1431_v44  ;;  %v836_v49 = vor.u32 %v834_v35, %v833_v41  ;;  %v838_v50 = vrot.slane %v833_v41, 4  ;;  %v1434_v52 = vld [vmem:[#allocation2 + $0x30] sm:$0xf]  ;;  %v16455_v53 = vld [vmem:[#allocation2 + $0x14] ss:$0 sps:$4 sm:$0x11]  }
  0x32   : > { %1433 = vst [vmem:[#allocation2 + $0x2c] sm:$0x1] %v1432_v48  ;;  %v1435_v55 = vsel %vm17519_vm8, %v828_v45, %v1434_v52  ;;  %v318_v56 = vsel %vm17491_vm3, 0, %v317_v47  ;;  %v1642_v58 = vld [vmem:[#allocation2 + $0x1c] sm:$0xf]  ;;  %v2326_v0 = vshll.u32 %v17576_v51, 16 }
  0x33   : > { %5403 = vmatpush1.bf16.msra.mxu0 %v16444_v23  ;;  %v837_v54 = vsel %vm17529_vm9, %v829_v46, %v836_v49  ;;  %1436 = vst [vmem:[#allocation2 + $0x30] sm:$0xf] %v1435_v55  ;;  %v1438_v59 = vld [vmem:[#allocation2 + $0x38] sm:$0x1]  ;;  %319 = vst [vmem:[#allocation2 + $0x3c] sm:$0x1] %v318_v56 }
  0x34   : > { %5404 = vmatprep.subr.bf16.mxu0 %v21081_v1  ;;  %1437 = vst [vmem:[#allocation2 + $0x34] sm:$0xf] %v837_v54  ;;  %v1641_v60 = vld [vmem:[#allocation2 + $0x18] sm:$0xf]  ;;  %v1439_v61 = vsel %vm17491_vm3, %v838_v50, %v1438_v59  ;;  %v415_v62 = vld [vmem:[#allocation2 + $0x44] sm:$0x1] }
  0x35   : > { %v713_v63 = vld [vmem:[%s17484_s19 + $0x20] sm:$0xf]  ;;  %1440 = vst [vmem:[#allocation2 + $0x38] sm:$0x1] %v1439_v61  ;;  %v2331_v2 = vshll.u32 %v16455_v53, 16  ;;  %v416_v3 = vsel %vm17499_vm6, 0, %v415_v62  ;;  %v17597_v6 = vcombine.low %v1641_v60, %v1642_v58 }
  0x36   : > { %v840_v4 = vshrl.u32 %v713_v63, 16  ;;  %417 = vst [vmem:[#allocation2 + $0x44] sm:$0x1] %v416_v3  ;;  %v2324_v8 = vshrl.u32 %v17576_v51, 16  ;;  %v2328_v10 = vrot.slane %v2326_v0, 1  ;;  %v843_v12 = vshll.u32 %v713_v63, 16 }
  0x37   : > { %5405 = vmatpush1.bf16.msra.mxu0 %v16445_v42  ;;  %v16457_v11 = vld [vmem:[#allocation2 + $0x20] ss:$0 sps:$4 sm:$0x11]   ;;  %v16448_v13 = vld [vmem:[%s21074_s1 + $0x68] sm:$0xff]   ;;  %v2333_v15 = vrot.slane %v2331_v2, 1  ;;  %v2336_v17 = vshrl.u32 %v17597_v6, 16 }
  0x38   : > { %5406 = vmatprep.subr.bf16.mxu0 %v21081_v1  ;;  %v842_v7 = vrot.slane %v840_v4, 7  ;;  %v714_v16 = vld [vmem:[%s17484_s19 + $0x24] sm:$0xf]  ;;  %v2338_v18 = vshll.u32 %v17597_v6, 16  ;;  %v320_v22 = vld [vmem:[#allocation2 + $0x48] sm:$0x1]  ;;  %v2329_v25 = vor.u32 %v2328_v10, %v2324_v8 }
  0x39   : > { %v418_v23 = vld [vmem:[#allocation2 + $0x50] sm:$0x1]  ;;  %v715_v24 = vld [vmem:[%s17484_s19 + $0x28] sm:$0xf]  ;;  %v2343_v26 = vshll.u32 %v16457_v11, 16  ;;  %v848_v27 = vshrl.u32 %v714_v16, 16 }
  0x3a   : > { %v845_v19 = vor.u32 %v843_v12, %v842_v7  ;;  %v1441_v21 = vld [vmem:[#allocation2 + $0x3c] sm:$0xf]  ;;  %v716_v28 = vld [vmem:[%s17484_s19 + $0x2c] sm:$0xf]  ;;  %v846_v30 = vrot.slane %v842_v7, 4  ;;  %v851_v31 = vshll.u32 %v714_v16, 16  ;;  %v17626_v45 = vsel %vm2310_vm1, %v2329_v25, %v2333_v15 }
  0x3b   : > { %5407 = vmatpush1.bf16.msra.mxu0 %v16446_v57  ;;  %v321_v33 = vsel %vm17491_vm3, 0, %v320_v22  ;;  %v850_v34 = vrot.slane %v848_v27, 7  ;;  %v419_v36 = vsel %vm17499_vm6, 0, %v418_v23  ;;  %v17620_v37 = vrot.slane %v2338_v18, 1  ;;  %v323_v42 = vld [vmem:[#allocation2 + $0x54] sm:$0x1] }
  0x3c   : > { %5408 = vmatprep.subr.bf16.mxu0 %v21081_v1  ;;  %v1442_v32 = vsel %vm17519_vm8, %v845_v19, %v1441_v21  ;;  %322 = vst [vmem:[#allocation2 + $0x48] sm:$0x1] %v321_v33  ;;  %420 = vst [vmem:[#allocation2 + $0x50] sm:$0x1] %v419_v36  ;;  %v857_v39 = vshrl.u32 %v715_v24, 16  ;;  %v860_v40 = vshll.u32 %v715_v24, 16 }
  0x3d   : > { %1443 = vst [vmem:[#allocation2 + $0x3c] sm:$0xf] %v1442_v32  ;;  %v1445_v35 = vld [vmem:[#allocation2 + $0x44] sm:$0x1]  ;;  %v865_v41 = vshrl.u32 %v716_v28, 16  ;;  %v16450_v44 = vld [vmem:[%s21074_s1 + $0x78] sm:$0xff]   ;;  %v853_v48 = vor.u32 %v851_v31, %v850_v34 }
  0x3e   : > { %v1643_v46 = vld [vmem:[#allocation2 + $0x24] sm:$0xf]  ;;  %v1644_v47 = vld [vmem:[#allocation2 + $0x28] sm:$0xf]  ;;  %v855_v49 = vrot.slane %v850_v34, 4  ;;  %v868_v50 = vshll.u32 %v716_v28, 16 }
  0x3f   : > { %5409 = vmatpush1.bf16.msra.mxu0 %v16447_v5  ;;  %v421_v52 = vld [vmem:[#allocation2 + $0x5c] sm:$0x1]  ;;  %v717_v53 = vld [vmem:[%s17484_s19 + $0x30] sm:$0xf]  ;;  %v859_v54 = vrot.slane %v857_v39, 7  ;;  %v867_v55 = vrot.slane %v865_v41, 7  ;;  %v854_v60 = vsel %vm17529_vm9, %v846_v30, %v853_v48  ;;  %v17646_v16 = vcombine.low %v1643_v46, %v1644_v47 }
  0x40   : > { %5410 = vmatprep.subr.bf16.mxu0 %v21081_v1  ;;  %v324_v56 = vsel %vm17491_vm3, 0, %v323_v42  ;;  %v422_v57 = vsel %vm17499_vm6, 0, %v421_v52  ;;  %v718_v58 = vld [vmem:[%s17484_s19 + $0x34] sm:$0xf]  ;;  %v17634_v59 = vrot.slane %v2343_v26, 1  ;;  %v1446_v61 = vsel %vm17491_vm3, %v855_v49, %v1445_v35  ;;  %v16453_v15 = vld [vmem:[%s21074_s1 + $0x80] sm:$0xff]  }
  0x41   : > { %325 = vst [vmem:[#allocation2 + $0x54] sm:$0x1] %v324_v56  ;;  %423 = vst [vmem:[#allocation2 + $0x5c] sm:$0x1] %v422_v57  ;;  %v874_v62 = vshrl.u32 %v717_v53, 16  ;;  %v862_v2 = vor.u32 %v860_v40, %v859_v54  ;;  %v863_v3 = vrot.slane %v859_v54, 4  ;;  %v870_v4 = vor.u32 %v868_v50, %v867_v55 }
  0x42   : > { %v326_v63 = vld [vmem:[#allocation2 + $0x60] sm:$0x1]  ;;  %v424_v0 = vld [vmem:[#allocation2 + $0x68] sm:$0x1]  ;;  %1444 = vst [vmem:[#allocation2 + $0x40] sm:$0xf] %v854_v60  ;;  %v2341_v41 = vor.u32 %v17620_v37, %v2336_v17 }
  0x43   : > { %5411 = vmatpush1.bf16.msra.mxu0 %v16448_v13  ;;  %1447 = vst [vmem:[#allocation2 + $0x44] sm:$0x1] %v1446_v61  ;;  %v872_v5 = vrot.slane %v867_v55, 4  ;;  %v719_v7 = vld [vmem:[%s17484_s19 + $0x38] sm:$0xf]  ;;  %v876_v10 = vrot.slane %v874_v62, 7  ;;  %v871_v18 = vsel %vm17529_vm9, %v863_v3, %v870_v4 }
  0x44   : > { %5412 = vmatprep.subr.bf16.mxu0 %v21081_v1  ;;  %v720_v8 = vld [vmem:[%s17484_s19 + $0x3c] sm:$0xf]  ;;  %v877_v11 = vshll.u32 %v717_v53, 16  ;;  %v882_v12 = vshrl.u32 %v718_v58, 16  ;;  %v885_v13 = vshll.u32 %v718_v58, 16  ;;  %v327_v21 = vsel %vm17491_vm3, 0, %v326_v63 }
  0x45   : > { %v1448_v19 = vld [vmem:[#allocation2 + $0x48] sm:$0xf]  ;;  %v425_v22 = vsel %vm17499_vm6, 0, %v424_v0  ;;  %1451 = vst [vmem:[#allocation2 + $0x4c] sm:$0xf] %v871_v18  ;;  %v880_v26 = vrot.slane %v876_v10, 4 }
  0x46   : > { %v1449_v23 = vsel %vm17519_vm8, %v862_v2, %v1448_v19  ;;  %v1452_v24 = vld [vmem:[#allocation2 + $0x50] sm:$0x1]  ;;  %v879_v25 = vor.u32 %v877_v11, %v876_v10  ;;  %v884_v27 = vrot.slane %v882_v12, 7  ;;  %328 = vst [vmem:[#allocation2 + $0x60] sm:$0x1] %v327_v21  ;;  %v894_v30 = vshll.u32 %v719_v7, 16 }
  0x47   : > { %5413 = vmatpush1.bf16.msra.mxu0 %v16449_v29  ;;  %426 = vst [vmem:[#allocation2 + $0x68] sm:$0x1] %v425_v22  ;;  %1450 = vst [vmem:[#allocation2 + $0x48] sm:$0xf] %v1449_v23  ;;  %v1453_v28 = vsel %vm17491_vm3, %v872_v5, %v1452_v24  ;;  %v891_v29 = vshrl.u32 %v719_v7, 16  ;;  %v899_v31 = vshrl.u32 %v720_v8, 16  ;;  %v2346_v7 = vsel %vm2310_vm1, %v2341_v41, %v17634_v59 }
  0x48   : > { %5414 = vmatprep.subr.bf16.mxu0 %v21081_v1  ;;  %v329_v32 = vld [vmem:[#allocation2 + $0x6c] sm:$0x1]  ;;  %v1645_v33 = vld [vmem:[#allocation2 + $0x30] sm:$0xf]  ;;  %1454 = vst [vmem:[#allocation2 + $0x50] sm:$0x1] %v1453_v28  ;;  %v887_v34 = vor.u32 %v885_v13, %v884_v27 }
  0x49   : > { %v889_v35 = vrot.slane %v884_v27, 4  ;;  %v902_v36 = vshll.u32 %v720_v8, 16  ;;  %v330_v39 = vsel %vm17491_vm3, 0, %v329_v32  ;;  %v427_v40 = vld [vmem:[#allocation2 + $0x74] sm:$0x1]  ;;  %v893_v47 = vrot.slane %v891_v29, 7 }
  0x4a   : > { %v16460_v42 = vld [vmem:[#allocation2 + $0x2c] ss:$0 sps:$4 sm:$0x11]   ;;  %v1459_v46 = vld [vmem:[#allocation2 + $0x5c] sm:$0x1]  ;;  %v901_v48 = vrot.slane %v899_v31, 7 }
  0x4b   : > { %5415 = vmatpush1.bf16.msra.mxu0 %v16450_v44  ;;  %v1455_v44 = vld [vmem:[#allocation2 + $0x54] sm:$0xf]  ;;  %331 = vst [vmem:[#allocation2 + $0x6c] sm:$0x1] %v330_v39  ;;  %v16458_v49 = vld [vmem:[%s21074_s1 + $0x88] sm:$0xff]   ;;  %v1460_v37 = vsel %vm17491_vm3, %v889_v35, %v1459_v46  ;;  %v428_v52 = vsel %vm17499_vm6, 0, %v427_v40  ;;  %v896_v53 = vor.u32 %v894_v30, %v893_v47 }
  0x4c   : > { %5673 = vmatprep.subr.bf16.mxu0 %v21081_v1  ;;  %v1646_v50 = vld [vmem:[#allocation2 + $0x34] sm:$0xf]  ;;  %v1456_v17 = vsel %vm17519_vm8, %v879_v25, %v1455_v44  ;;  %1461 = vst [vmem:[#allocation2 + $0x5c] sm:$0x1] %v1460_v37  ;;  %v897_v54 = vrot.slane %v893_v47, 4  ;;  %v904_v55 = vor.u32 %v902_v36, %v901_v48  ;;  %v906_v57 = vrot.slane %v901_v48, 4 }
  0x4d   : > { %1457 = vst [vmem:[#allocation2 + $0x54] sm:$0xf] %v1456_v17  ;;  %429 = vst [vmem:[#allocation2 + $0x74] sm:$0x1] %v428_v52  ;;  %v721_v56 = vld [vmem:[%s17484_s19 + $0x40] sm:$0xf]  ;;  %v17680_v60 = vcombine.low %v1645_v33, %v1646_v50 }
  0x4e   : > { %5417 = vmatmul.mubr.bf16.vlgmr.msra.gmra.mrb[0].mxu0 %v17477_v9  ;;  %v888_v9 = vsel %vm17529_vm9, %v880_v26, %v887_v34  ;;  %v908_v58 = vshrl.u32 %v721_v56, 16  ;;  %v16462_v61 = vld [vmem:[#allocation2 + $0x38] ss:$0 sps:$4 sm:$0x11]   ;;  %v16463_v62 = vld [vmem:[%s21074_s1 + $0x90] sm:$0xff]   ;;  %v905_v63 = vsel %vm17529_vm9, %v897_v54, %v904_v55  ;;  %v2348_v2 = vshrl.u32 %v17646_v16, 16 }
  0x4f   : > { %5674 = vmatpush1.bf16.msra.mxu0 %v16453_v15  ;;  %5424 = vmatprep.mubr.bf16.mxu0 %v17626_v45  ;;  %v2350_v45 = vshll.u32 %v17646_v16, 16  ;;  %1458 = vst [vmem:[#allocation2 + $0x58] sm:$0xf] %v888_v9  ;;  %v722_v0 = vld [vmem:[%s17484_s19 + $0x44] sm:$0xf]  ;;  %v911_v5 = vshll.u32 %v721_v56, 16 }
  0x50   : > { %5675 = vmatprep.subr.bf16.mxu0 %v21081_v1  ;;  %v1462_v3 = vld [vmem:[#allocation2 + $0x60] sm:$0xf]  ;;  %1465 = vst [vmem:[#allocation2 + $0x64] sm:$0xf] %v905_v63  ;;  %v1466_v4 = vld [vmem:[#allocation2 + $0x68] sm:$0x1] }
  0x51   : > { %v2352_v8 = vrot.slane %v2350_v45, 1  ;;  %v2355_v10 = vshll.u32 %v16460_v42, 16  ;;  %v1463_v11 = vsel %vm17519_vm8, %v896_v53, %v1462_v3  ;;  %v332_v12 = vld [vmem:[#allocation2 + $0x78] sm:$0x1]  ;;  %v1467_v13 = vsel %vm17491_vm3, %v906_v57, %v1466_v4  ;;  %v1647_v22 = vld [vmem:[#allocation2 + $0x3c] sm:$0xf] }
  0x52   : > { %1464 = vst [vmem:[#allocation2 + $0x60] sm:$0xf] %v1463_v11  ;;  %v910_v15 = vrot.slane %v908_v58, 7  ;;  %v916_v18 = vshrl.u32 %v722_v0, 16  ;;  %v2362_v19 = vshll.u32 %v17680_v60, 16  ;;  %v333_v21 = vsel %vm17491_vm3, 0, %v332_v12 }
  0x53   : > { %5676 = vmatpush1.bf16.msra.mxu0 %v16458_v49  ;;  %1468 = vst [vmem:[#allocation2 + $0x68] sm:$0x1] %v1467_v13  ;;  %v1469_v59 = vld [vmem:[#allocation2 + $0x6c] sm:$0xf]  ;;  %v1648_v23 = vld [vmem:[#allocation2 + $0x40] sm:$0xf]  ;;  %v2353_v27 = vor.u32 %v2352_v8, %v2348_v2 }
  0x54   : > { %5677 = vmatprep.subr.bf16.mxu0 %v21081_v1  ;;  %v16468_v24 = vld [vmem:[%s21074_s1 + $0x98] sm:$0xff]   ;;  %v913_v25 = vor.u32 %v911_v5, %v910_v15  ;;  %v919_v26 = vshll.u32 %v722_v0, 16  ;;  %334 = vst [vmem:[#allocation2 + $0x78] sm:$0x1] %v333_v21  ;;  %v2367_v28 = vshll.u32 %v16462_v61, 16  ;;  %v914_v29 = vrot.slane %v910_v15, 4 }
  0x55   : > { %v918_v30 = vrot.slane %v916_v18, 7  ;;  %v430_v32 = vld [vmem:[#allocation2 + $0x80] sm:$0x1]  ;;  %v2360_v33 = vshrl.u32 %v17680_v60, 16  ;;  %v2364_v34 = vrot.slane %v2362_v19, 1  ;;  %v17707_v35 = vcombine.low %v1647_v22, %v1648_v23  ;;  %v16478_v52 = vld [vmem:[%s21074_s1 + $0xa8] sm:$0xff]  }
  0x56   : > { %5425 = vmatmul.mubr.bf16.gmra.mrb[4].mxu0 %v17576_v51  ;;  %v2357_v51 = vrot.slane %v2355_v10, 1  ;;  %v1470_v31 = vsel %vm17519_vm8, %v913_v25, %v1469_v59  ;;  %v16473_v36 = vld [vmem:[%s21074_s1 + $0xa0] sm:$0xff]   ;;  %v1473_v39 = vld [vmem:[#allocation2 + $0x74] sm:$0x1]  ;;  %v431_v42 = vsel %vm17499_vm6, 0, %v430_v32  ;;  %v2369_v48 = vrot.slane %v2367_v28, 1 }
  0x57   : > { %5432 = vmatprep.mubr.bf16.mxu0 %v2346_v7  ;;  %5678 = vmatpush1.bf16.msra.mxu0 %v16463_v62  ;;  %1471 = vst [vmem:[#allocation2 + $0x6c] sm:$0xf] %v1470_v31  ;;  %v921_v40 = vor.u32 %v919_v26, %v918_v30  ;;  %v923_v41 = vrot.slane %v918_v30, 4  ;;  %v723_v44 = vld [vmem:[%s17484_s19 + $0x48] sm:$0xf]  ;;  %v2374_v45 = vshll.u32 %v17707_v35, 16  ;;  %v2365_v57 = vor.u32 %v2364_v34, %v2360_v33 }
  0x58   : > { %5679 = vmatprep.subr.bf16.mxu0 %v21081_v1  ;;  %v724_v46 = vld [vmem:[%s17484_s19 + $0x4c] sm:$0xf]  ;;  %v2358_v47 = vsel %vm2310_vm1, %v2353_v27, %v2357_v51  ;;  %432 = vst [vmem:[#allocation2 + $0x80] sm:$0x1] %v431_v42  ;;  %v925_v49 = vshrl.u32 %v723_v44, 16  ;;  %v928_v37 = vshll.u32 %v723_v44, 16 }
  0x59   : > { %v17718_v50 = vld [vmem:[#allocation2 + $0x44] ss:$0 sps:$4 sm:$0x11]   ;;  %v922_v9 = vsel %vm17529_vm9, %v914_v29, %v921_v40  ;;  %v1474_v17 = vsel %vm17491_vm3, %v923_v41, %v1473_v39  ;;  %v1650_v53 = vld [vmem:[#allocation2 + $0x4c] sm:$0xf]  ;;  %v933_v55 = vshrl.u32 %v724_v46, 16  ;;  %v2370_v15 = vsel %vm2310_vm1, %v2365_v57, %v2369_v48 }
  0x5a   : > { %1472 = vst [vmem:[#allocation2 + $0x70] sm:$0xf] %v922_v9  ;;  %1475 = vst [vmem:[#allocation2 + $0x74] sm:$0x1] %v1474_v17  ;;  %v927_v54 = vrot.slane %v925_v49, 7  ;;  %v936_v56 = vshll.u32 %v724_v46, 16 }
  0x5b   : > { %5680 = vmatpush1.bf16.msra.mxu0 %v16468_v24  ;;  %v1649_v58 = vld [vmem:[#allocation2 + $0x48] sm:$0xf]  ;;  %v1476_v61 = vld [vmem:[#allocation2 + $0x78] sm:$0xf]  ;;  %v935_v0 = vrot.slane %v933_v55, 7  ;;  %v2372_v2 = vshrl.u32 %v17707_v35, 16 }
  0x5c   : > { %5681 = vmatprep.subr.bf16.mxu0 %v21081_v1  ;;  %v930_v62 = vor.u32 %v928_v37, %v927_v54  ;;  %v931_v63 = vrot.slane %v927_v54, 4  ;;  %v2379_v3 = vshll.u32 %v17718_v50, 16  ;;  %v16483_v5 = vld [vmem:[%s21074_s1 + $0xb0] sm:$0xff]   ;;  %v2376_v7 = vrot.slane %v2374_v45, 1  ;;  %v433_v12 = vld [vmem:[#allocation2 + $0x8c] sm:$0x1] }
  0x5d   : > { %v938_v8 = vor.u32 %v936_v56, %v935_v0  ;;  %v940_v10 = vrot.slane %v935_v0, 4  ;;  %v725_v13 = vld [vmem:[%s17484_s19 + $0x50] sm:$0xf]  ;;  %v17741_v18 = vcombine.low %v1649_v58, %v1650_v53  ;;  %v1651_v19 = vld [vmem:[#allocation2 + $0x54] sm:$0xf]  ;;  %v434_v21 = vsel %vm17499_vm6, 0, %v433_v12 }
  0x5e   : > { %5433 = vmatmul.mubr.bf16.gmra.mrb[8].mxu0 %v17597_v6  ;;  %v335_v6 = vld [vmem:[#allocation2 + $0x84] sm:$0x1]  ;;  %v1477_v11 = vsel %vm17519_vm8, %v930_v62, %v1476_v61  ;;  %v726_v22 = vld [vmem:[%s17484_s19 + $0x54] sm:$0xf]  ;;  %v942_v23 = vshrl.u32 %v725_v13, 16  ;;  %v945_v26 = vshll.u32 %v725_v13, 16 }
  0x5f   : > { %5440 = vmatprep.mubr.bf16.mxu0 %v2358_v47  ;;  %5682 = vmatpush1.bf16.msra.mxu0 %v16473_v36  ;;  %v336_v4 = vsel %vm17491_vm3, 0, %v335_v6  ;;  %1478 = vst [vmem:[#allocation2 + $0x78] sm:$0xf] %v1477_v11  ;;  %v1480_v59 = vld [vmem:[#allocation2 + $0x80] sm:$0x1]  ;;  %v939_v24 = vsel %vm17529_vm9, %v931_v63, %v938_v8  ;;  %v950_v27 = vshrl.u32 %v726_v22, 16  ;;  %v2377_v47 = vor.u32 %v2376_v7, %v2372_v2 }
  0x60   : > { %5683 = vmatprep.subr.bf16.mxu0 %v21081_v1  ;;  %337 = vst [vmem:[#allocation2 + $0x84] sm:$0x1] %v336_v4  ;;  %v1481_v25 = vsel %vm17491_vm3, %v940_v10, %v1480_v59  ;;  %435 = vst [vmem:[#allocation2 + $0x8c] sm:$0x1] %v434_v21  ;;  %v338_v51 = vld [vmem:[#allocation2 + $0x90] sm:$0x1] }
  0x61   : > { %v436_v28 = vld [vmem:[#allocation2 + $0x98] sm:$0x1]  ;;  %1479 = vst [vmem:[#allocation2 + $0x7c] sm:$0xf] %v939_v24  ;;  %1482 = vst [vmem:[#allocation2 + $0x80] sm:$0x1] %v1481_v25 }
  0x62   : > { %v1652_v29 = vld [vmem:[#allocation2 + $0x58] sm:$0xf]  ;;  %v944_v30 = vrot.slane %v942_v23, 7  ;;  %v953_v31 = vshll.u32 %v726_v22, 16  ;;  %v952_v34 = vrot.slane %v950_v27, 7  ;;  %v339_v36 = vsel %vm17491_vm3, 0, %v338_v51 }
  0x63   : > { %5684 = vmatpush1.bf16.msra.mxu0 %v16478_v52  ;;  %v16488_v32 = vld [vmem:[%s21074_s1 + $0xb8] sm:$0xff]   ;;  %v16467_v33 = vld [vmem:[#allocation2 + $0x50] ss:$0 sps:$4 sm:$0x11]   ;;  %v437_v39 = vsel %vm17499_vm6, 0, %v436_v28  ;;  %v2386_v40 = vshll.u32 %v17741_v18, 16  ;;  %v17762_v48 = vcombine.low %v1651_v19, %v1652_v29 }
  0x64   : > { %5685 = vmatprep.subr.bf16.mxu0 %v21081_v1  ;;  %v947_v41 = vor.u32 %v945_v26, %v944_v30  ;;  %v948_v42 = vrot.slane %v944_v30, 4  ;;  %340 = vst [vmem:[#allocation2 + $0x90] sm:$0x1] %v339_v36  ;;  %438 = vst [vmem:[#allocation2 + $0x98] sm:$0x1] %v437_v39  ;;  %v955_v50 = vor.u32 %v953_v31, %v952_v34  ;;  %v957_v9 = vrot.slane %v952_v34, 4 }
  0x65   : > { %v727_v44 = vld [vmem:[%s17484_s19 + $0x58] sm:$0xf]  ;;  %v728_v46 = vld [vmem:[%s17484_s19 + $0x5c] sm:$0xf]  ;;  %v2384_v53 = vshrl.u32 %v17741_v18, 16  ;;  %v2391_v54 = vshll.u32 %v16467_v33, 16 }
  0x66   : > { %5441 = vmatmul.mubr.bf16.gmra.mrb[12].mxu0 %v17646_v16  ;;  %v2381_v16 = vrot.slane %v2379_v3, 1  ;;  %v16470_v49 = vld [vmem:[#allocation2 + $0x5c] ss:$0 sps:$4 sm:$0x11]   ;;  %v959_v37 = vshrl.u32 %v727_v44, 16  ;;  %v962_v52 = vshll.u32 %v727_v44, 16  ;;  %v956_v55 = vsel %vm17529_vm9, %v948_v42, %v955_v50 }
  0x67   : > { %5448 = vmatprep.mubr.bf16.mxu0 %v2370_v15  ;;  %5686 = vmatpush1.bf16.msra.mxu0 %v16483_v5  ;;  %v1483_v17 = vld [vmem:[#allocation2 + $0x84] sm:$0xf]  ;;  %v967_v45 = vshrl.u32 %v728_v46, 16  ;;  %v2388_v58 = vrot.slane %v2386_v40, 1  ;;  %1486 = vst [vmem:[#allocation2 + $0x88] sm:$0xf] %v956_v55 }
  0x68   : > { %5687 = vmatprep.subr.bf16.mxu0 %v21081_v1  ;;  %v1484_v56 = vsel %vm17519_vm8, %v947_v41, %v1483_v17  ;;  %v16493_v57 = vld [vmem:[%s21074_s1 + $0xc0] sm:$0xff]   ;;  %v1487_v61 = vld [vmem:[#allocation2 + $0x8c] sm:$0x1]  ;;  %v961_v62 = vrot.slane %v959_v37, 7  ;;  %v970_v0 = vshll.u32 %v728_v46, 16  ;;  %v2382_v6 = vsel %vm2310_vm1, %v2377_v47, %v2381_v16  ;;  %v16503_v42 = vld [vmem:[%s21074_s1 + $0xd0] sm:$0xff]  }
  0x69   : > { %1485 = vst [vmem:[#allocation2 + $0x84] sm:$0xf] %v1484_v56  ;;  %v969_v63 = vrot.slane %v967_v45, 7  ;;  %v2398_v2 = vshll.u32 %v17762_v48, 16  ;;  %v1488_v3 = vsel %vm17491_vm3, %v957_v9, %v1487_v61  ;;  %v341_v4 = vld [vmem:[#allocation2 + $0x9c] sm:$0x1]  ;;  %v2389_v21 = vor.u32 %v2388_v58, %v2384_v53 }
  0x6a   : > { %v2403_v5 = vshll.u32 %v16470_v49, 16  ;;  %v1654_v7 = vld [vmem:[#allocation2 + $0x64] sm:$0xf]  ;;  %1489 = vst [vmem:[#allocation2 + $0x8c] sm:$0x1] %v1488_v3  ;;  %v964_v8 = vor.u32 %v962_v52, %v961_v62  ;;  %v965_v10 = vrot.slane %v961_v62, 4 }
  0x6b   : > { %5688 = vmatpush1.bf16.msra.mxu0 %v16488_v32  ;;  %v972_v11 = vor.u32 %v970_v0, %v969_v63  ;;  %v439_v12 = vld [vmem:[#allocation2 + $0xa4] sm:$0x1]  ;;  %v974_v13 = vrot.slane %v969_v63, 4  ;;  %v1490_v15 = vld [vmem:[#allocation2 + $0x90] sm:$0xf]  ;;  %v342_v59 = vsel %vm17491_vm3, 0, %v341_v4 }
  0x6c   : > { %5689 = vmatprep.subr.bf16.mxu0 %v21081_v1  ;;  %v1494_v19 = vld [vmem:[#allocation2 + $0x98] sm:$0x1]  ;;  %v2393_v22 = vrot.slane %v2391_v54, 1  ;;  %v1653_v23 = vld [vmem:[#allocation2 + $0x60] sm:$0xf]  ;;  %v1491_v26 = vsel %vm17519_vm8, %v964_v8, %v1490_v15  ;;  %v440_v51 = vsel %vm17499_vm6, 0, %v439_v12 }
  0x6d   : > { %v973_v24 = vsel %vm17529_vm9, %v965_v10, %v972_v11  ;;  %343 = vst [vmem:[#allocation2 + $0x9c] sm:$0x1] %v342_v59  ;;  %v729_v25 = vld [vmem:[%s17484_s19 + $0x60] sm:$0xf]  ;;  %v1495_v27 = vsel %vm17491_vm3, %v974_v13, %v1494_v19  ;;  %v730_v28 = vld [vmem:[%s17484_s19 + $0x64] sm:$0xf]  ;;  %v17796_v39 = vcombine.low %v1653_v23, %v1654_v7 }
  0x6e   : > { %5449 = vmatmul.mubr.bf16.gmra.mrb[16].mxu0 %v17680_v60  ;;  %v16498_v60 = vld [vmem:[%s21074_s1 + $0xc8] sm:$0xff]   ;;  %1493 = vst [vmem:[#allocation2 + $0x94] sm:$0xf] %v973_v24  ;;  %v976_v29 = vshrl.u32 %v729_v25, 16  ;;  %v2396_v31 = vshrl.u32 %v17762_v48, 16  ;;  %v2400_v32 = vrot.slane %v2398_v2, 1  ;;  %v2394_v49 = vsel %vm2310_vm1, %v2389_v21, %v2393_v22 }
  0x6f   : > { %5456 = vmatprep.mubr.bf16.mxu0 %v2382_v6  ;;  %5690 = vmatpush1.bf16.msra.mxu0 %v16493_v57  ;;  %v344_v30 = vld [vmem:[#allocation2 + $0xa8] sm:$0x1]  ;;  %1492 = vst [vmem:[#allocation2 + $0x90] sm:$0xf] %v1491_v26  ;;  %1496 = vst [vmem:[#allocation2 + $0x98] sm:$0x1] %v1495_v27 }
  0x70   : > { %5691 = vmatprep.subr.bf16.mxu0 %v21081_v1  ;;  %441 = vst [vmem:[#allocation2 + $0xa4] sm:$0x1] %v440_v51  ;;  %v979_v33 = vshll.u32 %v729_v25, 16  ;;  %v984_v34 = vshrl.u32 %v730_v28, 16  ;;  %v2405_v36 = vrot.slane %v2403_v5, 1  ;;  %v978_v40 = vrot.slane %v976_v29, 7 }
  0x71   : > { %v987_v41 = vshll.u32 %v730_v28, 16  ;;  %v345_v46 = vsel %vm17491_vm3, 0, %v344_v30  ;;  %v442_v47 = vld [vmem:[#allocation2 + $0xb0] sm:$0x1]  ;;  %v731_v16 = vld [vmem:[%s17484_s19 + $0x68] sm:$0xf]  ;;  %v2401_v57 = vor.u32 %v2400_v32, %v2396_v31 }
  0x72   : > { %v986_v44 = vrot.slane %v984_v34, 7  ;;  %v16472_v50 = vld [vmem:[#allocation2 + $0x68] ss:$0 sps:$4 sm:$0x11]   ;;  %v981_v9 = vor.u32 %v979_v33, %v978_v40  ;;  %v982_v17 = vrot.slane %v978_v40, 4  ;;  %v2410_v45 = vshll.u32 %v17796_v39, 16 }
  0x73   : > { %5692 = vmatpush1.bf16.msra.mxu0 %v16498_v60  ;;  %346 = vst [vmem:[#allocation2 + $0xa8] sm:$0x1] %v345_v46  ;;  %v732_v52 = vld [vmem:[%s17484_s19 + $0x6c] sm:$0xf]  ;;  %v443_v55 = vsel %vm17499_vm6, 0, %v442_v47  ;;  %v993_v56 = vshrl.u32 %v731_v16, 16  ;;  %v2406_v15 = vsel %vm2310_vm1, %v2401_v57, %v2405_v36 }
  0x74   : > { %5693 = vmatprep.subr.bf16.mxu0 %v21081_v1  ;;  %v989_v37 = vor.u32 %v987_v41, %v986_v44  ;;  %v991_v53 = vrot.slane %v986_v44, 4  ;;  %v1497_v54 = vld [vmem:[#allocation2 + $0x9c] sm:$0xf]  ;;  %v1655_v58 = vld [vmem:[#allocation2 + $0x6c] sm:$0xf]  ;;  %v996_v63 = vshll.u32 %v731_v16, 16 }
  0x75   : > { %v1498_v62 = vsel %vm17519_vm8, %v981_v9, %v1497_v54  ;;  %444 = vst [vmem:[#allocation2 + $0xb0] sm:$0x1] %v443_v55  ;;  %v1656_v0 = vld [vmem:[#allocation2 + $0x70] sm:$0xf]  ;;  %v995_v6 = vrot.slane %v993_v56, 7  ;;  %v2415_v2 = vshll.u32 %v16472_v50, 16 }
  0x76   : > { %5457 = vmatmul.mubr.bf16.gmra.mrb[20].mxu0 %v17707_v35  ;;  %v990_v61 = vsel %vm17529_vm9, %v982_v17, %v989_v37  ;;  %v2408_v35 = vshrl.u32 %v17796_v39, 16  ;;  %1499 = vst [vmem:[#allocation2 + $0x9c] sm:$0xf] %v1498_v62  ;;  %v1001_v4 = vshrl.u32 %v732_v52, 16  ;;  %v347_v5 = vld [vmem:[#allocation2 + $0xb4] sm:$0x1]  ;;  %v17821_v19 = vcombine.low %v1655_v58, %v1656_v0 }
  0x77   : > { %5464 = vmatprep.mubr.bf16.mxu0 %v2394_v49  ;;  %5694 = vmatpush1.bf16.msra.mxu0 %v16503_v42  ;;  %1500 = vst [vmem:[#allocation2 + $0xa0] sm:$0xf] %v990_v61  ;;  %v1501_v3 = vld [vmem:[#allocation2 + $0xa4] sm:$0x1]  ;;  %v2412_v7 = vrot.slane %v2410_v45, 1  ;;  %v998_v10 = vor.u32 %v996_v63, %v995_v6  ;;  %v1004_v11 = vshll.u32 %v732_v52, 16 }
  0x78   : > { %5695 = vmatprep.subr.bf16.mxu0 %v21081_v1  ;;  %v1502_v8 = vsel %vm17491_vm3, %v991_v53, %v1501_v3  ;;  %v445_v12 = vld [vmem:[#allocation2 + $0xbc] sm:$0x1]  ;;  %v733_v13 = vld [vmem:[%s17484_s19 + $0x70] sm:$0xf]  ;;  %v999_v21 = vrot.slane %v995_v6, 4  ;;  %v1003_v23 = vrot.slane %v1001_v4, 7 }
  0x79   : > { %v16475_v59 = vld [vmem:[#allocation2 + $0x74] ss:$0 sps:$4 sm:$0x11]   ;;  %1503 = vst [vmem:[#allocation2 + $0xa4] sm:$0x1] %v1502_v8  ;;  %v348_v25 = vsel %vm17491_vm3, 0, %v347_v5  ;;  %v2413_v34 = vor.u32 %v2412_v7, %v2408_v35 }
  0x7a   : > { %v1504_v22 = vld [vmem:[#allocation2 + $0xa8] sm:$0xf]  ;;  %v446_v60 = vsel %vm17499_vm6, 0, %v445_v12  ;;  %v734_v26 = vld [vmem:[%s17484_s19 + $0x74] sm:$0xf]  ;;  %v1010_v27 = vshrl.u32 %v733_v13, 16  ;;  %v1006_v28 = vor.u32 %v1004_v11, %v1003_v23 }
  0x7b   : > { %v1505_v24 = vsel %vm17519_vm8, %v998_v10, %v1504_v22  ;;  %349 = vst [vmem:[#allocation2 + $0xb4] sm:$0x1] %v348_v25  ;;  %447 = vst [vmem:[#allocation2 + $0xbc] sm:$0x1] %v446_v60  ;;  %v1013_v51 = vshll.u32 %v733_v13, 16  ;;  %v1008_v29 = vrot.slane %v1003_v23, 4 }
  0x7c   : > { %1506 = vst [vmem:[#allocation2 + $0xa8] sm:$0xf] %v1505_v24  ;;  %v1508_v30 = vld [vmem:[#allocation2 + $0xb0] sm:$0x1]  ;;  %v1018_v31 = vshrl.u32 %v734_v26, 16  ;;  %v1021_v32 = vshll.u32 %v734_v26, 16 }
  0x7d   : > { %v16508_v33 = vld [vmem:[%s21074_s1 + $0xd8] sm:$0xff]   ;;  %v2417_v36 = vrot.slane %v2415_v2, 1  ;;  %v2422_v40 = vshll.u32 %v17821_v19, 16  ;;  %v1012_v42 = vrot.slane %v1010_v27, 7  ;;  %v2427_v44 = vshll.u32 %v16475_v59, 16 }
  0x7e   : > { %5465 = vmatmul.mubr.bf16.gmra.mrb[24].mxu0 %v17741_v18  ;;  %v1657_v41 = vld [vmem:[#allocation2 + $0x78] sm:$0xf]  ;;  %v1658_v46 = vld [vmem:[#allocation2 + $0x7c] sm:$0xf]  ;;  %v1007_v18 = vsel %vm17529_vm9, %v999_v21, %v1006_v28  ;;  %v1509_v47 = vsel %vm17491_vm3, %v1008_v29, %v1508_v30  ;;  %v1020_v16 = vrot.slane %v1018_v31, 7  ;;  %v2420_v17 = vshrl.u32 %v17821_v19, 16 }
  0x7f   : > { %5472 = vmatprep.mubr.bf16.mxu0 %v2406_v15  ;;  %5696 = vmatpush1.bf16.msra.mxu0 %v16508_v33  ;;  %1507 = vst [vmem:[#allocation2 + $0xac] sm:$0xf] %v1007_v18  ;;  %1510 = vst [vmem:[#allocation2 + $0xb0] sm:$0x1] %v1509_v47  ;;  %v1015_v49 = vor.u32 %v1013_v51, %v1012_v42  ;;  %v1016_v50 = vrot.slane %v1012_v42, 4  ;;  %v2424_v37 = vrot.slane %v2422_v40, 1 }
  0x80   : > { %5697 = vmatprep.subr.bf16.mxu0 %v21081_v1  ;;  %v1023_v9 = vor.u32 %v1021_v32, %v1020_v16  ;;  %v17841_v52 = vcombine.low %v1657_v41, %v1658_v46  ;;  %v1025_v45 = vrot.slane %v1020_v16, 4  ;;  %v2418_v53 = vsel %vm2310_vm1, %v2413_v34, %v2417_v36  ;;  %v1659_v55 = vld [vmem:[#allocation2 + $0x84] sm:$0xf]  ;;  %v1660_v58 = vld [vmem:[#allocation2 + $0x88] sm:$0xf] }
  0x81   : > { %v2429_v54 = vrot.slane %v2427_v44, 1  ;;  %v353_v63 = vld [vmem:[#allocation2 + $0xe4] sm:$0x1]  ;;  %v16477_v35 = vld [vmem:[#allocation2 + $0x80] ss:$0 sps:$4 sm:$0x11]   ;;  %v2425_v3 = vor.u32 %v2424_v37, %v2420_v17  ;;  %v17858_v8 = vcombine.low %v1659_v55, %v1660_v58 }
  0x82   : > { %v1024_v56 = vsel %vm17529_vm9, %v1016_v50, %v1023_v9  ;;  %v1511_v57 = vld [vmem:[#allocation2 + $0xb4] sm:$0xf]  ;;  %v1515_v62 = vld [vmem:[#allocation2 + $0xbc] sm:$0x1]  ;;  %v354_v6 = vsel %vm17491_vm3, 0, %v353_v63  ;;  %v2434_v4 = vshll.u32 %v17841_v52, 16 }
  0x83   : > { %v1512_v61 = vsel %vm17519_vm8, %v1015_v49, %v1511_v57  ;;  %1514 = vst [vmem:[#allocation2 + $0xb8] sm:$0xf] %v1024_v56  ;;  %v1516_v0 = vsel %vm17491_vm3, %v1025_v45, %v1515_v62  ;;  %v451_v2 = vld [vmem:[#allocation2 + $0xec] sm:$0x1]  ;;  %355 = vst [vmem:[#allocation2 + $0xe4] sm:$0x1] %v354_v6  ;;  %v2430_v26 = vsel %vm2310_vm1, %v2425_v3, %v2429_v54 }
  0x84   : > { %1513 = vst [vmem:[#allocation2 + $0xb4] sm:$0xf] %v1512_v61  ;;  %1517 = vst [vmem:[#allocation2 + $0xbc] sm:$0x1] %v1516_v0  ;;  %v452_v5 = vsel %vm17499_vm6, 0, %v451_v2  ;;  %v2432_v13 = vshrl.u32 %v17841_v52, 16 }
  0x85   : > { %v737_v7 = vld [vmem:[%s17484_s19 + $0x80] sm:$0xf]  ;;  %v16480_v10 = vld [vmem:[#allocation2 + $0x8c] ss:$0 sps:$4 sm:$0x11]   ;;  %v2439_v22 = vshll.u32 %v16477_v35, 16 }
  0x86   : > { %5473 = vmatmul.mubr.bf16.gmra.mrb[28].mxu0 %v17762_v48  ;;  %v738_v48 = vld [vmem:[%s17484_s19 + $0x84] sm:$0xf]  ;;  %453 = vst [vmem:[#allocation2 + $0xec] sm:$0x1] %v452_v5  ;;  %v1044_v11 = vshrl.u32 %v737_v7, 16  ;;  %v1047_v12 = vshll.u32 %v737_v7, 16 }
  0x87   : > { %5480 = vmatprep.mubr.bf16.mxu0 %v2418_v53  ;;  %v1662_v15 = vld [vmem:[#allocation2 + $0x94] sm:$0xf]  ;;  %v1052_v59 = vshrl.u32 %v738_v48, 16  ;;  %v356_v21 = vld [vmem:[#allocation2 + $0xf0] sm:$0x1]  ;;  %v1055_v24 = vshll.u32 %v738_v48, 16 }
  0x88   : > { %v1046_v23 = vrot.slane %v1044_v11, 7  ;;  %v357_v25 = vsel %vm17491_vm3, 0, %v356_v21  ;;  %v454_v60 = vld [vmem:[#allocation2 + $0xf8] sm:$0x1]  ;;  %v2436_v27 = vrot.slane %v2434_v4, 1  ;;  %v2446_v30 = vshll.u32 %v17858_v8, 16 }
  0x89   : > { %v1661_v51 = vld [vmem:[#allocation2 + $0x90] sm:$0xf]  ;;  %v1054_v28 = vrot.slane %v1052_v59, 7  ;;  %358 = vst [vmem:[#allocation2 + $0xf0] sm:$0x1] %v357_v25  ;;  %v455_v33 = vsel %vm17499_vm6, 0, %v454_v60 }
  0x8a   : > { %v739_v29 = vld [vmem:[%s17484_s19 + $0x88] sm:$0xf]  ;;  %v1049_v31 = vor.u32 %v1047_v12, %v1046_v23  ;;  %v1050_v32 = vrot.slane %v1046_v23, 4  ;;  %v740_v34 = vld [vmem:[%s17484_s19 + $0x8c] sm:$0xf]  ;;  %v2441_v41 = vrot.slane %v2439_v22, 1  ;;  %v17870_v44 = vcombine.low %v1661_v51, %v1662_v15 }
  0x8b   : > { %v1057_v36 = vor.u32 %v1055_v24, %v1054_v28  ;;  %v1059_v40 = vrot.slane %v1054_v28, 4  ;;  %456 = vst [vmem:[#allocation2 + $0xf8] sm:$0x1] %v455_v33  ;;  %v2451_v42 = vshll.u32 %v16480_v10, 16  ;;  %v1061_v46 = vshrl.u32 %v739_v29, 16  ;;  %v16513_v45 = vld [vmem:[%s21074_s1 + $0xe0] sm:$0xff]  }
  0x8c   : > { %v1525_v47 = vld [vmem:[#allocation2 + $0xe4] sm:$0xf]  ;;  %v1064_v49 = vshll.u32 %v739_v29, 16  ;;  %v1069_v50 = vshrl.u32 %v740_v34, 16  ;;  %v2437_v9 = vor.u32 %v2436_v27, %v2432_v13  ;;  %v2444_v17 = vshrl.u32 %v17858_v8, 16  ;;  %5698 = vmatpush1.bf16.msra.mxu0 %v16513_v45 }
  0x8d   : > { %v1058_v18 = vsel %vm17529_vm9, %v1050_v32, %v1057_v36  ;;  %v1529_v16 = vld [vmem:[#allocation2 + $0xec] sm:$0x1]  ;;  %v2448_v37 = vrot.slane %v2446_v30, 1  ;;  %v1063_v54 = vrot.slane %v1061_v46, 7  ;;  %v359_v56 = vld [vmem:[#allocation2 + $0xfc] sm:$0x1]  ;;  %5699 = vmatprep.subr.bf16.mxu0 %v21081_v1 }
  0x8e   : > { %5481 = vmatmul.mubr.bf16.gmra.mrb[32].mxu0 %v17796_v39  ;;  %v1526_v39 = vsel %vm17519_vm8, %v1049_v31, %v1525_v47  ;;  %1528 = vst [vmem:[#allocation2 + $0xe8] sm:$0xf] %v1058_v18  ;;  %v1530_v53 = vsel %vm17491_vm3, %v1059_v40, %v1529_v16  ;;  %v1071_v55 = vrot.slane %v1069_v50, 7  ;;  %v2453_v57 = vrot.slane %v2451_v42, 1  ;;  %v457_v3 = vld [vmem:[#allocation2 + $0x104] sm:$0x1] }
  0x8f   : > { %5488 = vmatprep.mubr.bf16.mxu0 %v2430_v26  ;;  %1527 = vst [vmem:[#allocation2 + $0xe4] sm:$0xf] %v1526_v39  ;;  %v2458_v58 = vshll.u32 %v17870_v44, 16  ;;  %1531 = vst [vmem:[#allocation2 + $0xec] sm:$0x1] %v1530_v53  ;;  %v1072_v61 = vshll.u32 %v740_v34, 16  ;;  %v1066_v0 = vor.u32 %v1064_v49, %v1063_v54  ;;  %v2442_v5 = vsel %vm2310_vm1, %v2437_v9, %v2441_v41 }
  0x90   : > { %v1532_v62 = vld [vmem:[#allocation2 + $0xf0] sm:$0xf]  ;;  %v360_v63 = vsel %vm17491_vm3, 0, %v359_v56  ;;  %v16482_v35 = vld [vmem:[#allocation2 + $0x98] ss:$0 sps:$4 sm:$0x11]   ;;  %v2449_v25 = vor.u32 %v2448_v37, %v2444_v17 }
  0x91   : > { %v1067_v6 = vrot.slane %v1063_v54, 4  ;;  %v1076_v2 = vrot.slane %v1071_v55, 4  ;;  %361 = vst [vmem:[#allocation2 + $0xfc] sm:$0x1] %v360_v63  ;;  %v741_v4 = vld [vmem:[%s17484_s19 + $0x90] sm:$0xf]  ;;  %v1074_v7 = vor.u32 %v1072_v61, %v1071_v55  ;;  %v1533_v15 = vsel %vm17519_vm8, %v1066_v0, %v1532_v62 }
  0x92   : > { %v1536_v48 = vld [vmem:[#allocation2 + $0xf8] sm:$0x1]  ;;  %v458_v10 = vsel %vm17499_vm6, 0, %v457_v3  ;;  %v742_v11 = vld [vmem:[%s17484_s19 + $0x94] sm:$0xf]  ;;  %v1078_v12 = vshrl.u32 %v741_v4, 16  ;;  %v2454_v9 = vsel %vm2310_vm1, %v2449_v25, %v2453_v57 }
  0x93   : > { %v1663_v13 = vld [vmem:[#allocation2 + $0x9c] sm:$0xf]  ;;  %v1537_v59 = vsel %vm17491_vm3, %v1076_v2, %v1536_v48  ;;  %459 = vst [vmem:[#allocation2 + $0x104] sm:$0x1] %v458_v10  ;;  %v1081_v21 = vshll.u32 %v741_v4, 16  ;;  %v1086_v22 = vshrl.u32 %v742_v11, 16  ;;  %v1075_v60 = vsel %vm17529_vm9, %v1067_v6, %v1074_v7 }
  0x94   : > { %v362_v23 = vld [vmem:[#allocation2 + $0x108] sm:$0x1]  ;;  %v460_v24 = vld [vmem:[#allocation2 + $0x110] sm:$0x1]  ;;  %1534 = vst [vmem:[#allocation2 + $0xf0] sm:$0xf] %v1533_v15 }
  0x95   : > { %1538 = vst [vmem:[#allocation2 + $0xf8] sm:$0x1] %v1537_v59  ;;  %v1080_v26 = vrot.slane %v1078_v12, 7  ;;  %v1089_v27 = vshll.u32 %v742_v11, 16  ;;  %v743_v51 = vld [vmem:[%s17484_s19 + $0x98] sm:$0xf] }
  0x96   : > { %5489 = vmatmul.mubr.bf16.gmra.mrb[36].mxu0 %v17821_v19  ;;  %v744_v28 = vld [vmem:[%s17484_s19 + $0x9c] sm:$0xf]  ;;  %v1664_v29 = vld [vmem:[#allocation2 + $0xa0] sm:$0xf]  ;;  %1535 = vst [vmem:[#allocation2 + $0xf4] sm:$0xf] %v1075_v60 }
  0x97   : > { %5496 = vmatprep.mubr.bf16.mxu0 %v2442_v5  ;;  %v1088_v30 = vrot.slane %v1086_v22, 7  ;;  %v363_v31 = vsel %vm17491_vm3, 0, %v362_v23  ;;  %v461_v19 = vsel %vm17499_vm6, 0, %v460_v24  ;;  %v1095_v32 = vshrl.u32 %v743_v51, 16  ;;  %v1665_v63 = vld [vmem:[#allocation2 + $0xa8] sm:$0xf] }
  0x98   : > { %v1083_v33 = vor.u32 %v1081_v21, %v1080_v26  ;;  %v1084_v34 = vrot.slane %v1080_v26, 4  ;;  %364 = vst [vmem:[#allocation2 + $0x108] sm:$0x1] %v363_v31  ;;  %462 = vst [vmem:[#allocation2 + $0x110] sm:$0x1] %v461_v19  ;;  %v1098_v36 = vshll.u32 %v743_v51, 16  ;;  %v17904_v18 = vcombine.low %v1663_v13, %v1664_v29 }
  0x99   : > { %v1103_v40 = vshrl.u32 %v744_v28, 16  ;;  %v2463_v41 = vshll.u32 %v16482_v35, 16  ;;  %v1091_v42 = vor.u32 %v1089_v27, %v1088_v30  ;;  %v1093_v46 = vrot.slane %v1088_v30, 4  ;;  %v1539_v47 = vld [vmem:[#allocation2 + $0xfc] sm:$0xf]  ;;  %v16518_v21 = vld [vmem:[%s21074_s1 + $0xe8] sm:$0xff]  }
  0x9a   : > { %v1097_v16 = vrot.slane %v1095_v32, 7  ;;  %v1106_v50 = vshll.u32 %v744_v28, 16  ;;  %v2456_v17 = vshrl.u32 %v17870_v44, 16  ;;  %v2460_v37 = vrot.slane %v2458_v58, 1  ;;  %v1543_v53 = vld [vmem:[#allocation2 + $0x104] sm:$0x1]  ;;  %5700 = vmatpush1.bf16.msra.mxu0 %v16518_v21 }
  0x9b   : > { %v1105_v49 = vrot.slane %v1103_v40, 7  ;;  %v1092_v39 = vsel %vm17529_vm9, %v1084_v34, %v1091_v42  ;;  %v1540_v45 = vsel %vm17519_vm8, %v1083_v33, %v1539_v47  ;;  %v2465_v61 = vrot.slane %v2463_v41, 1  ;;  %v16485_v62 = vld [vmem:[#allocation2 + $0xa4] ss:$0 sps:$4 sm:$0x11]   ;;  %5701 = vmatprep.subr.bf16.mxu0 %v21081_v1 }
  0x9c   : > { %1542 = vst [vmem:[#allocation2 + $0x100] sm:$0xf] %v1092_v39  ;;  %v1100_v54 = vor.u32 %v1098_v36, %v1097_v16  ;;  %v1101_v55 = vrot.slane %v1097_v16, 4  ;;  %1541 = vst [vmem:[#allocation2 + $0xfc] sm:$0xf] %v1540_v45  ;;  %v1544_v57 = vsel %vm17491_vm3, %v1093_v46, %v1543_v53  ;;  %v2470_v58 = vshll.u32 %v17904_v18, 16 }
  0x9d   : > { %v1108_v56 = vor.u32 %v1106_v50, %v1105_v49  ;;  %v1666_v35 = vld [vmem:[#allocation2 + $0xac] sm:$0xf]  ;;  %1545 = vst [vmem:[#allocation2 + $0x104] sm:$0x1] %v1544_v57  ;;  %v1110_v6 = vrot.slane %v1105_v49, 4  ;;  %v2461_v5 = vor.u32 %v2460_v37, %v2456_v17  ;;  %v2468_v12 = vshrl.u32 %v17904_v18, 16 }
  0x9e   : > { %5497 = vmatmul.mubr.bf16.gmra.mrb[40].mxu0 %v17841_v52  ;;  %v365_v4 = vld [vmem:[#allocation2 + $0x114] sm:$0x1]  ;;  %v463_v10 = vld [vmem:[#allocation2 + $0x11c] sm:$0x1]  ;;  %v745_v11 = vld [vmem:[%s17484_s19 + $0xa0] sm:$0xf]  ;;  %v17932_v27 = vcombine.low %v1665_v63, %v1666_v35 }
  0x9f   : > { %v1109_v0 = vsel %vm17529_vm9, %v1101_v55, %v1108_v56  ;;  %5504 = vmatprep.mubr.bf16.mxu0 %v2454_v9  ;;  %v1546_v2 = vld [vmem:[#allocation2 + $0x108] sm:$0xf]  ;;  %v1550_v3 = vld [vmem:[#allocation2 + $0x110] sm:$0x1]  ;;  %v366_v48 = vsel %vm17491_vm3, 0, %v365_v4  ;;  %v464_v15 = vsel %vm17499_vm6, 0, %v463_v10  ;;  %v2466_v30 = vsel %vm2310_vm1, %v2461_v5, %v2465_v61 }
  0xa0   : > { %1549 = vst [vmem:[#allocation2 + $0x10c] sm:$0xf] %v1109_v0  ;;  %v1547_v52 = vsel %vm17519_vm8, %v1100_v54, %v1546_v2  ;;  %v1551_v7 = vsel %vm17491_vm3, %v1110_v6, %v1550_v3  ;;  %v16487_v13 = vld [vmem:[#allocation2 + $0xb0] ss:$0 sps:$4 sm:$0x11]   ;;  %v2475_v22 = vshll.u32 %v16485_v62, 16 }
  0xa1   : > { %1548 = vst [vmem:[#allocation2 + $0x108] sm:$0xf] %v1547_v52  ;;  %1552 = vst [vmem:[#allocation2 + $0x110] sm:$0x1] %v1551_v7  ;;  %v746_v59 = vld [vmem:[%s17484_s19 + $0xa4] sm:$0xf] }
  0xa2   : > { %367 = vst [vmem:[#allocation2 + $0x114] sm:$0x1] %v366_v48  ;;  %465 = vst [vmem:[#allocation2 + $0x11c] sm:$0x1] %v464_v15  ;;  %v1112_v23 = vshrl.u32 %v745_v11, 16  ;;  %v1115_v24 = vshll.u32 %v745_v11, 16 }
  0xa3   : > { %v1120_v25 = vshrl.u32 %v746_v59, 16  ;;  %v368_v60 = vld [vmem:[#allocation2 + $0x120] sm:$0x1]  ;;  %v2472_v26 = vrot.slane %v2470_v58, 1  ;;  %v1668_v51 = vld [vmem:[#allocation2 + $0xb8] sm:$0xf] }
  0xa4   : > { %v1123_v28 = vshll.u32 %v746_v59, 16  ;;  %v369_v29 = vsel %vm17491_vm3, 0, %v368_v60  ;;  %v1667_v31 = vld [vmem:[#allocation2 + $0xb4] sm:$0xf]  ;;  %v1114_v19 = vrot.slane %v1112_v23, 7  ;;  %v2482_v42 = vshll.u32 %v17932_v27, 16 }
  0xa5   : > { %v1122_v32 = vrot.slane %v1120_v25, 7  ;;  %370 = vst [vmem:[#allocation2 + $0x120] sm:$0x1] %v369_v29  ;;  %v466_v33 = vld [vmem:[#allocation2 + $0x128] sm:$0x1]  ;;  %v2487_v46 = vshll.u32 %v16487_v13, 16  ;;  %v17942_v47 = vcombine.low %v1667_v31, %v1668_v51  ;;  %v2473_v50 = vor.u32 %v2472_v26, %v2468_v12 }
  0xa6   : > { %v467_v34 = vsel %vm17499_vm6, 0, %v466_v33  ;;  %5505 = vmatmul.mubr.bf16.gmra.mrb[44].mxu0 %v17858_v8  ;;  %v1117_v36 = vor.u32 %v1115_v24, %v1114_v19  ;;  %v1118_v40 = vrot.slane %v1114_v19, 4  ;;  %v747_v16 = vld [vmem:[%s17484_s19 + $0xa8] sm:$0xf]  ;;  %v748_v49 = vld [vmem:[%s17484_s19 + $0xac] sm:$0xf] }
  0xa7   : > { %v1125_v41 = vor.u32 %v1123_v28, %v1122_v32  ;;  %468 = vst [vmem:[#allocation2 + $0x128] sm:$0x1] %v467_v34  ;;  %5512 = vmatprep.mubr.bf16.mxu0 %v2466_v30  ;;  %v2477_v9 = vrot.slane %v2475_v22, 1  ;;  %v1127_v37 = vrot.slane %v1122_v32, 4  ;;  %v1129_v53 = vshrl.u32 %v747_v16, 16 }
  0xa8   : > { %v1132_v54 = vshll.u32 %v747_v16, 16  ;;  %v1137_v55 = vshrl.u32 %v748_v49, 16  ;;  %v1140_v56 = vshll.u32 %v748_v49, 16  ;;  %v2480_v61 = vshrl.u32 %v17932_v27, 16  ;;  %v1669_v3 = vld [vmem:[#allocation2 + $0xd8] sm:$0xf] }
  0xa9   : > { %v1126_v17 = vsel %vm17529_vm9, %v1118_v40, %v1125_v41  ;;  %v1553_v39 = vld [vmem:[#allocation2 + $0x114] sm:$0xf]  ;;  %v1557_v45 = vld [vmem:[#allocation2 + $0x11c] sm:$0x1]  ;;  %v2484_v62 = vrot.slane %v2482_v42, 1  ;;  %v2489_v57 = vrot.slane %v2487_v46, 1  ;;  %v2478_v63 = vsel %vm2310_vm1, %v2473_v50, %v2477_v9 }
  0xaa   : > { %v1554_v8 = vsel %vm17519_vm8, %v1117_v36, %v1553_v39  ;;  %1556 = vst [vmem:[#allocation2 + $0x118] sm:$0xf] %v1126_v17  ;;  %v2494_v58 = vshll.u32 %v17942_v47, 16  ;;  %v17953_v35 = vld [vmem:[#allocation2 + $0xbc] ss:$0 sps:$4 sm:$0x11]   ;;  %v1558_v0 = vsel %vm17491_vm3, %v1127_v37, %v1557_v45 }
  0xab   : > { %1555 = vst [vmem:[#allocation2 + $0x114] sm:$0xf] %v1554_v8  ;;  %v1131_v6 = vrot.slane %v1129_v53, 7  ;;  %v1139_v2 = vrot.slane %v1137_v55, 7  ;;  %v1670_v4 = vld [vmem:[#allocation2 + $0xdc] sm:$0xf]  ;;  %v2485_v59 = vor.u32 %v2484_v62, %v2480_v61 }
  0xac   : > { %1559 = vst [vmem:[#allocation2 + $0x11c] sm:$0x1] %v1558_v0  ;;  %v1560_v5 = vld [vmem:[#allocation2 + $0x120] sm:$0xf]  ;;  %v371_v7 = vld [vmem:[#allocation2 + $0x12c] sm:$0x1]  ;;  %v17975_v33 = vcombine.low %v1669_v3, %v1670_v4 }
  0xad   : > { %v1134_v48 = vor.u32 %v1132_v54, %v1131_v6  ;;  %v1135_v10 = vrot.slane %v1131_v6, 4  ;;  %v1142_v11 = vor.u32 %v1140_v56, %v1139_v2  ;;  %v1144_v12 = vrot.slane %v1139_v2, 4  ;;  %v469_v13 = vld [vmem:[#allocation2 + $0x134] sm:$0x1]  ;;  %v749_v15 = vld [vmem:[%s17484_s19 + $0xb0] sm:$0xf] }
  0xae   : > { %v1564_v52 = vld [vmem:[#allocation2 + $0x128] sm:$0x1]  ;;  %5513 = vmatmul.mubr.bf16.gmra.mrb[48].mxu0 %v17870_v44  ;;  %v372_v21 = vsel %vm17491_vm3, 0, %v371_v7  ;;  %v470_v22 = vsel %vm17499_vm6, 0, %v469_v13  ;;  %v750_v23 = vld [vmem:[%s17484_s19 + $0xb4] sm:$0xf]  ;;  %v2490_v50 = vsel %vm2310_vm1, %v2485_v59, %v2489_v57 }
  0xaf   : > { %5520 = vmatprep.mubr.bf16.mxu0 %v2478_v63  ;;  %v1146_v24 = vshrl.u32 %v749_v15, 16  ;;  %v16523_v44 = vld [vmem:[%s21074_s1 + $0xf0] sm:$0xff]   ;;  %v1143_v25 = vsel %vm17529_vm9, %v1135_v10, %v1142_v11  ;;  %v1561_v60 = vsel %vm17519_vm8, %v1134_v48, %v1560_v5  ;;  %v1565_v26 = vsel %vm17491_vm3, %v1144_v12, %v1564_v52  ;;  %373 = vst [vmem:[#allocation2 + $0x12c] sm:$0x1] %v372_v21  ;;  %v374_v28 = vld [vmem:[#allocation2 + $0x138] sm:$0x1] }
  0xb0   : > { %471 = vst [vmem:[#allocation2 + $0x134] sm:$0x1] %v470_v22  ;;  %v1149_v51 = vshll.u32 %v749_v15, 16  ;;  %v2492_v29 = vshrl.u32 %v17942_v47, 16  ;;  %1562 = vst [vmem:[#allocation2 + $0x120] sm:$0xf] %v1561_v60  ;;  %5702 = vmatpush1.bf16.msra.mxu0 %v16523_v44 }
  0xb1   : > { %1563 = vst [vmem:[#allocation2 + $0x124] sm:$0xf] %v1143_v25  ;;  %1566 = vst [vmem:[#allocation2 + $0x128] sm:$0x1] %v1565_v26  ;;  %v1148_v30 = vrot.slane %v1146_v24, 7  ;;  %v1154_v31 = vshrl.u32 %v750_v23, 16  ;;  %5703 = vmatprep.subr.bf16.mxu0 %v21081_v1 }
  0xb2   : > { %v1157_v19 = vshll.u32 %v750_v23, 16  ;;  %v2499_v32 = vshll.u32 %v17953_v35, 16  ;;  %v375_v34 = vsel %vm17491_vm3, 0, %v374_v28  ;;  %v472_v36 = vld [vmem:[#allocation2 + $0x140] sm:$0x1]  ;;  %v2496_v41 = vrot.slane %v2494_v58, 1 }
  0xb3   : > { %v751_v40 = vld [vmem:[%s17484_s19 + $0xb8] sm:$0xf]  ;;  %v1152_v42 = vrot.slane %v1148_v30, 4  ;;  %v1156_v46 = vrot.slane %v1154_v31, 7  ;;  %376 = vst [vmem:[#allocation2 + $0x138] sm:$0x1] %v375_v34  ;;  %v1151_v17 = vor.u32 %v1149_v51, %v1148_v30 }
  0xb4   : > { %v473_v16 = vsel %vm17499_vm6, 0, %v472_v36  ;;  %v752_v49 = vld [vmem:[%s17484_s19 + $0xbc] sm:$0xf]  ;;  %v16492_v9 = vld [vmem:[#allocation2 + $0xe0] ss:$0 sps:$4 sm:$0x11]   ;;  %v2497_v56 = vor.u32 %v2496_v41, %v2492_v29 }
  0xb5   : > { %474 = vst [vmem:[#allocation2 + $0x140] sm:$0x1] %v473_v16  ;;  %v1159_v37 = vor.u32 %v1157_v19, %v1156_v46  ;;  %v1161_v39 = vrot.slane %v1156_v46, 4  ;;  %v1163_v8 = vshrl.u32 %v751_v40, 16  ;;  %v2506_v45 = vshll.u32 %v17975_v33, 16 }
  0xb6   : > { %5521 = vmatmul.mubr.bf16.gmra.mrb[52].mxu0 %v17904_v18  ;;  %v1166_v53 = vshll.u32 %v751_v40, 16  ;;  %v1171_v54 = vshrl.u32 %v752_v49, 16  ;;  %v1174_v55 = vshll.u32 %v752_v49, 16  ;;  %v2501_v61 = vrot.slane %v2499_v32, 1  ;;  %v1567_v57 = vld [vmem:[#allocation2 + $0x12c] sm:$0xf] }
  0xb7   : > { %5528 = vmatprep.mubr.bf16.mxu0 %v2490_v50  ;;  %v1160_v62 = vsel %vm17529_vm9, %v1152_v42, %v1159_v37  ;;  %v1571_v58 = vld [vmem:[#allocation2 + $0x134] sm:$0x1]  ;;  %v1165_v63 = vrot.slane %v1163_v8, 7  ;;  %v1671_v35 = vld [vmem:[#allocation2 + $0xe4] sm:$0xf]  ;;  %v1568_v6 = vsel %vm17519_vm8, %v1151_v17, %v1567_v57  ;;  %v2504_v3 = vshrl.u32 %v17975_v33, 16 }
  0xb8   : > { %v1672_v0 = vld [vmem:[#allocation2 + $0xe8] sm:$0xf]  ;;  %1570 = vst [vmem:[#allocation2 + $0x130] sm:$0xf] %v1160_v62  ;;  %v1572_v18 = vsel %vm17491_vm3, %v1161_v39, %v1571_v58  ;;  %v1173_v2 = vrot.slane %v1171_v54, 7  ;;  %v2511_v4 = vshll.u32 %v16492_v9, 16  ;;  %v2502_v13 = vsel %vm2310_vm1, %v2497_v56, %v2501_v61 }
  0xb9   : > { %1569 = vst [vmem:[#allocation2 + $0x12c] sm:$0xf] %v1568_v6  ;;  %1573 = vst [vmem:[#allocation2 + $0x134] sm:$0x1] %v1572_v18  ;;  %v1168_v5 = vor.u32 %v1166_v53, %v1165_v63  ;;  %v1169_v52 = vrot.slane %v1165_v63, 4  ;;  %v2508_v7 = vrot.slane %v2506_v45, 1  ;;  %v17995_v15 = vcombine.low %v1671_v35, %v1672_v0 }
  0xba   : > { %v1176_v48 = vor.u32 %v1174_v55, %v1173_v2  ;;  %v1178_v10 = vrot.slane %v1173_v2, 4  ;;  %v1574_v11 = vld [vmem:[#allocation2 + $0x138] sm:$0xf]  ;;  %v377_v12 = vld [vmem:[#allocation2 + $0x144] sm:$0x1]  ;;  %v2513_v19 = vrot.slane %v2511_v4, 1 }
  0xbb   : > { %v16495_v59 = vld [vmem:[#allocation2 + $0xec] ss:$0 sps:$4 sm:$0x11]   ;;  %v1673_v21 = vld [vmem:[#allocation2 + $0xf0] sm:$0xf]  ;;  %v1575_v44 = vsel %vm17519_vm8, %v1168_v5, %v1574_v11  ;;  %v378_v60 = vsel %vm17491_vm3, 0, %v377_v12  ;;  %v2509_v31 = vor.u32 %v2508_v7, %v2504_v3 }
  0xbc   : > { %v1674_v22 = vld [vmem:[#allocation2 + $0xf4] sm:$0xf]  ;;  %v1578_v23 = vld [vmem:[#allocation2 + $0x140] sm:$0x1]  ;;  %v1177_v24 = vsel %vm17529_vm9, %v1169_v52, %v1176_v48  ;;  %v475_v26 = vld [vmem:[#allocation2 + $0x14c] sm:$0x1] }
  0xbd   : > { %v1579_v25 = vsel %vm17491_vm3, %v1178_v10, %v1578_v23  ;;  %v753_v51 = vld [vmem:[%s17484_s19 + $0xc0] sm:$0xf]  ;;  %1576 = vst [vmem:[#allocation2 + $0x138] sm:$0xf] %v1575_v44  ;;  %1577 = vst [vmem:[#allocation2 + $0x13c] sm:$0xf] %v1177_v24  ;;  %v18014_v42 = vcombine.low %v1673_v21, %v1674_v22  ;;  %v2514_v8 = vsel %vm2310_vm1, %v2509_v31, %v2513_v19 }
  0xbe   : > { %1580 = vst [vmem:[#allocation2 + $0x140] sm:$0x1] %v1579_v25  ;;  %379 = vst [vmem:[#allocation2 + $0x144] sm:$0x1] %v378_v60  ;;  %v476_v28 = vsel %vm17499_vm6, 0, %v475_v26  ;;  %v1180_v30 = vshrl.u32 %v753_v51, 16  ;;  %5529 = vmatmul.mubr.bf16.gmra.mrb[56].mxu0 %v17932_v27 }
  0xbf   : > { %v754_v29 = vld [vmem:[%s17484_s19 + $0xc4] sm:$0xf]  ;;  %477 = vst [vmem:[#allocation2 + $0x14c] sm:$0x1] %v476_v28  ;;  %v380_v36 = vld [vmem:[#allocation2 + $0x150] sm:$0x1]  ;;  %5536 = vmatprep.mubr.bf16.mxu0 %v2502_v13 }
  0xc0   : > { %v1188_v32 = vshrl.u32 %v754_v29, 16  ;;  %v1191_v34 = vshll.u32 %v754_v29, 16  ;;  %v16528_v40 = vld [vmem:[%s21074_s1 + $0xf8] sm:$0xff]   ;;  %v2518_v41 = vshll.u32 %v17995_v15, 16  ;;  %v1182_v46 = vrot.slane %v1180_v30, 7 }
  0xc1   : > { %v381_v27 = vsel %vm17491_vm3, 0, %v380_v36  ;;  %v478_v16 = vld [vmem:[#allocation2 + $0x158] sm:$0x1]  ;;  %v1183_v49 = vshll.u32 %v753_v51, 16  ;;  %5704 = vmatpush1.bf16.msra.mxu0 %v16528_v40  ;;  %v2523_v17 = vshll.u32 %v16495_v59, 16  ;;  %v2516_v56 = vshrl.u32 %v17995_v15, 16 }
  0xc2   : > { %v1190_v50 = vrot.slane %v1188_v32, 7  ;;  %382 = vst [vmem:[#allocation2 + $0x150] sm:$0x1] %v381_v27  ;;  %v479_v9 = vsel %vm17499_vm6, 0, %v478_v16  ;;  %v1186_v37 = vrot.slane %v1182_v46, 4  ;;  %5962 = vmatprep.subr.bf16.mxu0 %v21081_v1  ;;  %v2520_v61 = vrot.slane %v2518_v41, 1 }
  0xc3   : > { %480 = vst [vmem:[#allocation2 + $0x158] sm:$0x1] %v479_v9  ;;  %v755_v39 = vld [vmem:[%s17484_s19 + $0xc8] sm:$0xf]  ;;  %v756_v54 = vld [vmem:[%s17484_s19 + $0xcc] sm:$0xf]  ;;  %v1185_v58 = vor.u32 %v1183_v49, %v1182_v46 }
  0xc4   : > { %v16497_v45 = vld [vmem:[#allocation2 + $0xf8] ss:$0 sps:$4 sm:$0x11]   ;;  %v1193_v53 = vor.u32 %v1191_v34, %v1190_v50  ;;  %v1197_v55 = vshrl.u32 %v755_v39, 16  ;;  %v2530_v62 = vshll.u32 %v18014_v42, 16  ;;  %v1205_v57 = vshrl.u32 %v756_v54, 16 }
  0xc5   : > { %v1195_v35 = vrot.slane %v1190_v50, 4  ;;  %v1200_v0 = vshll.u32 %v755_v39, 16  ;;  %v2525_v6 = vrot.slane %v2523_v17, 1  ;;  %v1675_v18 = vld [vmem:[#allocation2 + $0xfc] sm:$0xf]  ;;  %v1208_v7 = vshll.u32 %v756_v54, 16 }
  0xc6   : > { %v1194_v63 = vsel %vm17529_vm9, %v1186_v37, %v1193_v53  ;;  %v1676_v2 = vld [vmem:[#allocation2 + $0x100] sm:$0xf]  ;;  %v1199_v3 = vrot.slane %v1197_v55, 7  ;;  %5537 = vmatmul.mubr.bf16.gmra.mrb[60].mxu0 %v17942_v47  ;;  %v1581_v4 = vld [vmem:[#allocation2 + $0x144] sm:$0xf]  ;;  %v1207_v52 = vrot.slane %v1205_v57, 7  ;;  %v2521_v48 = vor.u32 %v2520_v61, %v2516_v56 }
  0xc7   : > { %1584 = vst [vmem:[#allocation2 + $0x148] sm:$0xf] %v1194_v63  ;;  %v1585_v5 = vld [vmem:[#allocation2 + $0x14c] sm:$0x1]  ;;  %5544 = vmatprep.mubr.bf16.mxu0 %v2514_v8  ;;  %v2528_v10 = vshrl.u32 %v18014_v42, 16  ;;  %v2532_v11 = vrot.slane %v2530_v62, 1  ;;  %v1582_v59 = vsel %vm17519_vm8, %v1185_v58, %v1581_v4  ;;  %v18034_v23 = vcombine.low %v1675_v18, %v1676_v2 }
  0xc8   : > { %v2535_v12 = vshll.u32 %v16497_v45, 16  ;;  %v1586_v21 = vsel %vm17491_vm3, %v1195_v35, %v1585_v5  ;;  %v1202_v22 = vor.u32 %v1200_v0, %v1199_v3  ;;  %v1203_v47 = vrot.slane %v1199_v3, 4  ;;  %1583 = vst [vmem:[#allocation2 + $0x144] sm:$0xf] %v1582_v59  ;;  %v383_v25 = vld [vmem:[#allocation2 + $0x15c] sm:$0x1] }
  0xc9   : > { %v1588_v13 = vld [vmem:[#allocation2 + $0x150] sm:$0xf]  ;;  %1587 = vst [vmem:[#allocation2 + $0x14c] sm:$0x1] %v1586_v21  ;;  %v1210_v24 = vor.u32 %v1208_v7, %v1207_v52  ;;  %v481_v60 = vld [vmem:[#allocation2 + $0x164] sm:$0x1]  ;;  %v2526_v31 = vsel %vm2310_vm1, %v2521_v48, %v2525_v6  ;;  %v2533_v50 = vor.u32 %v2532_v11, %v2528_v10 }
  0xca   : > { %v1592_v44 = vld [vmem:[#allocation2 + $0x158] sm:$0x1]  ;;  %v1212_v26 = vrot.slane %v1207_v52, 4  ;;  %v1589_v51 = vsel %vm17519_vm8, %v1202_v22, %v1588_v13  ;;  %v384_v28 = vsel %vm17491_vm3, 0, %v383_v25  ;;  %v482_v29 = vsel %vm17499_vm6, 0, %v481_v60 }
  0xcb   : > { %v757_v30 = vld [vmem:[%s17484_s19 + $0xd0] sm:$0xf]  ;;  %v1211_v19 = vsel %vm17529_vm9, %v1203_v47, %v1210_v24  ;;  %1590 = vst [vmem:[#allocation2 + $0x150] sm:$0xf] %v1589_v51  ;;  %385 = vst [vmem:[#allocation2 + $0x15c] sm:$0x1] %v384_v28 }
  0xcc   : > { %483 = vst [vmem:[#allocation2 + $0x164] sm:$0x1] %v482_v29  ;;  %v758_v32 = vld [vmem:[%s17484_s19 + $0xd4] sm:$0xf]  ;;  %v1214_v34 = vshrl.u32 %v757_v30, 16  ;;  %v1217_v36 = vshll.u32 %v757_v30, 16  ;;  %v1593_v46 = vsel %vm17491_vm3, %v1212_v26, %v1592_v44 }
  0xcd   : > { %v386_v40 = vld [vmem:[#allocation2 + $0x168] sm:$0x1]  ;;  %v16500_v41 = vld [vmem:[#allocation2 + $0x104] ss:$0 sps:$4 sm:$0x11]   ;;  %v1222_v27 = vshrl.u32 %v758_v32, 16 }
  0xce   : > { %1591 = vst [vmem:[#allocation2 + $0x154] sm:$0xf] %v1211_v19  ;;  %v1225_v16 = vshll.u32 %v758_v32, 16  ;;  %v387_v49 = vsel %vm17491_vm3, 0, %v386_v40  ;;  %v2537_v9 = vrot.slane %v2535_v12, 1  ;;  %v1216_v17 = vrot.slane %v1214_v34, 7  ;;  %5545 = vmatmul.mubr.bf16.gmra.mrb[64].mxu0 %v17975_v33 }
  0xcf   : > { %1594 = vst [vmem:[#allocation2 + $0x158] sm:$0x1] %v1593_v46  ;;  %388 = vst [vmem:[#allocation2 + $0x168] sm:$0x1] %v387_v49  ;;  %v484_v37 = vld [vmem:[#allocation2 + $0x170] sm:$0x1]  ;;  %5552 = vmatprep.mubr.bf16.mxu0 %v2526_v31 }
  0xd0   : > { %v759_v39 = vld [vmem:[%s17484_s19 + $0xd8] sm:$0xf]  ;;  %v2542_v8 = vshll.u32 %v18034_v23, 16  ;;  %v1224_v45 = vrot.slane %v1222_v27, 7  ;;  %v485_v53 = vsel %vm17499_vm6, 0, %v484_v37  ;;  %v1219_v61 = vor.u32 %v1217_v36, %v1216_v17 }
  0xd1   : > { %v760_v54 = vld [vmem:[%s17484_s19 + $0xdc] sm:$0xf]  ;;  %v1231_v55 = vshrl.u32 %v759_v39, 16  ;;  %v1678_v56 = vld [vmem:[#allocation2 + $0x10c] sm:$0xf]  ;;  %v1220_v62 = vrot.slane %v1216_v17, 4  ;;  %v2538_v3 = vsel %vm2310_vm1, %v2533_v50, %v2537_v9 }
  0xd2   : > { %486 = vst [vmem:[#allocation2 + $0x170] sm:$0x1] %v485_v53  ;;  %v1234_v57 = vshll.u32 %v759_v39, 16  ;;  %v1239_v58 = vshrl.u32 %v760_v54, 16  ;;  %v1227_v63 = vor.u32 %v1225_v16, %v1224_v45  ;;  %v1229_v35 = vrot.slane %v1224_v45, 4 }
  0xd3   : > { %v1233_v0 = vrot.slane %v1231_v55, 7  ;;  %v1242_v6 = vshll.u32 %v760_v54, 16  ;;  %v2547_v33 = vshll.u32 %v16500_v41, 16  ;;  %v1677_v18 = vld [vmem:[#allocation2 + $0x108] sm:$0xf]  ;;  %v2540_v7 = vshrl.u32 %v18034_v23, 16 }
  0xd4   : > { %v1241_v2 = vrot.slane %v1239_v58, 7  ;;  %v1228_v4 = vsel %vm17529_vm9, %v1220_v62, %v1227_v63  ;;  %v1595_v5 = vld [vmem:[#allocation2 + $0x15c] sm:$0xf]  ;;  %v1599_v52 = vld [vmem:[#allocation2 + $0x164] sm:$0x1]  ;;  %v2544_v48 = vrot.slane %v2542_v8, 1  ;;  %v18063_v12 = vcombine.low %v1677_v18, %v1678_v56 }
  0xd5   : > { %v1596_v10 = vsel %vm17519_vm8, %v1219_v61, %v1595_v5  ;;  %1598 = vst [vmem:[#allocation2 + $0x160] sm:$0xf] %v1228_v4  ;;  %v1236_v11 = vor.u32 %v1234_v57, %v1233_v0  ;;  %v1600_v13 = vsel %vm17491_vm3, %v1229_v35, %v1599_v52  ;;  %v1237_v59 = vrot.slane %v1233_v0, 4  ;;  %v16502_v44 = vld [vmem:[#allocation2 + $0x110] ss:$0 sps:$4 sm:$0x11]  }
  0xd6   : > { %1597 = vst [vmem:[#allocation2 + $0x15c] sm:$0xf] %v1596_v10  ;;  %v1244_v21 = vor.u32 %v1242_v6, %v1241_v2  ;;  %v2549_v22 = vrot.slane %v2547_v33, 1  ;;  %1601 = vst [vmem:[#allocation2 + $0x164] sm:$0x1] %v1600_v13  ;;  %v1246_v47 = vrot.slane %v1241_v2, 4  ;;  %5553 = vmatmul.mubr.bf16.gmra.mrb[68].mxu0 %v17995_v15  ;;  %v2545_v15 = vor.u32 %v2544_v48, %v2540_v7 }
  0xd7   : > { %v1602_v24 = vld [vmem:[#allocation2 + $0x168] sm:$0xf]  ;;  %v1679_v25 = vld [vmem:[#allocation2 + $0x114] sm:$0xf]  ;;  %v1680_v60 = vld [vmem:[#allocation2 + $0x118] sm:$0xf]  ;;  %5560 = vmatprep.mubr.bf16.mxu0 %v2538_v3 }
  0xd8   : > { %v1245_v26 = vsel %vm17529_vm9, %v1237_v59, %v1244_v21  ;;  %v1603_v28 = vsel %vm17519_vm8, %v1236_v11, %v1602_v24  ;;  %v389_v30 = vld [vmem:[#allocation2 + $0x174] sm:$0x1]  ;;  %v487_v31 = vld [vmem:[#allocation2 + $0x17c] sm:$0x1]  ;;  %v761_v19 = vld [vmem:[%s17484_s19 + $0xe0] sm:$0xf]  ;;  %v18081_v16 = vcombine.low %v1679_v25, %v1680_v60  ;;  %v2550_v45 = vsel %vm2310_vm1, %v2545_v15, %v2549_v22 }
  0xd9   : > { %v1606_v51 = vld [vmem:[#allocation2 + $0x170] sm:$0x1]  ;;  %1605 = vst [vmem:[#allocation2 + $0x16c] sm:$0xf] %v1245_v26  ;;  %v2554_v32 = vshll.u32 %v18063_v12, 16  ;;  %v390_v34 = vsel %vm17491_vm3, 0, %v389_v30 }
  0xda   : > { %v1607_v29 = vsel %vm17491_vm3, %v1246_v47, %v1606_v51  ;;  %1604 = vst [vmem:[#allocation2 + $0x168] sm:$0xf] %v1603_v28  ;;  %v488_v36 = vsel %vm17499_vm6, 0, %v487_v31  ;;  %v762_v40 = vld [vmem:[%s17484_s19 + $0xe4] sm:$0xf]  ;;  %v1248_v41 = vshrl.u32 %v761_v19, 16 }
  0xdb   : > { %1608 = vst [vmem:[#allocation2 + $0x170] sm:$0x1] %v1607_v29  ;;  %391 = vst [vmem:[#allocation2 + $0x174] sm:$0x1] %v390_v34  ;;  %v1256_v46 = vshrl.u32 %v762_v40, 16  ;;  %v1251_v49 = vshll.u32 %v761_v19, 16 }
  0xdc   : > { %489 = vst [vmem:[#allocation2 + $0x17c] sm:$0x1] %v488_v36  ;;  %v392_v27 = vld [vmem:[#allocation2 + $0x180] sm:$0x1]  ;;  %v1259_v50 = vshll.u32 %v762_v40, 16  ;;  %v1250_v37 = vrot.slane %v1248_v41, 7 }
  0xdd   : > { %v393_v9 = vsel %vm17491_vm3, 0, %v392_v27  ;;  %v490_v17 = vld [vmem:[#allocation2 + $0x188] sm:$0x1]  ;;  %v1258_v39 = vrot.slane %v1256_v46, 7  ;;  %v2552_v53 = vshrl.u32 %v18063_v12, 16  ;;  %v2556_v54 = vrot.slane %v2554_v32, 1 }
  0xde   : > { %394 = vst [vmem:[#allocation2 + $0x180] sm:$0x1] %v393_v9  ;;  %v491_v8 = vsel %vm17499_vm6, 0, %v490_v17  ;;  %v2559_v55 = vshll.u32 %v16502_v44, 16  ;;  %v1254_v56 = vrot.slane %v1250_v37, 4  ;;  %5561 = vmatmul.mubr.bf16.gmra.mrb[72].mxu0 %v18014_v42  ;;  %v2566_v63 = vshll.u32 %v18081_v16, 16 }
  0xdf   : > { %492 = vst [vmem:[#allocation2 + $0x188] sm:$0x1] %v491_v8  ;;  %v1261_v61 = vor.u32 %v1259_v50, %v1258_v39  ;;  %v763_v62 = vld [vmem:[%s17484_s19 + $0xe8] sm:$0xf]  ;;  %v764_v57 = vld [vmem:[%s17484_s19 + $0xec] sm:$0xf]  ;;  %v1253_v35 = vor.u32 %v1251_v49, %v1250_v37  ;;  %5568 = vmatprep.mubr.bf16.mxu0 %v2550_v45  ;;  %v2557_v3 = vor.u32 %v2556_v54, %v2552_v53 }
  0xe0   : > { %v16505_v58 = vld [vmem:[#allocation2 + $0x11c] ss:$0 sps:$4 sm:$0x11]   ;;  %v1265_v0 = vshrl.u32 %v763_v62, 16  ;;  %v1263_v33 = vrot.slane %v1258_v39, 4  ;;  %v1268_v18 = vshll.u32 %v763_v62, 16 }
  0xe1   : > { %v1262_v6 = vsel %vm17529_vm9, %v1254_v56, %v1261_v61  ;;  %v1273_v2 = vshrl.u32 %v764_v57, 16  ;;  %v2561_v4 = vrot.slane %v2559_v55, 1  ;;  %v1681_v5 = vld [vmem:[#allocation2 + $0x120] sm:$0xf]  ;;  %v1682_v52 = vld [vmem:[#allocation2 + $0x124] sm:$0xf] }
  0xe2   : > { %1612 = vst [vmem:[#allocation2 + $0x178] sm:$0xf] %v1262_v6  ;;  %v1267_v7 = vrot.slane %v1265_v0, 7  ;;  %v1609_v48 = vld [vmem:[#allocation2 + $0x174] sm:$0xf]  ;;  %v1276_v11 = vshll.u32 %v764_v57, 16  ;;  %v18101_v26 = vcombine.low %v1681_v5, %v1682_v52 }
  0xe3   : > { %v1613_v42 = vld [vmem:[#allocation2 + $0x17c] sm:$0x1]  ;;  %v1275_v10 = vrot.slane %v1273_v2, 7  ;;  %v2564_v13 = vshrl.u32 %v18081_v16, 16  ;;  %v2568_v59 = vrot.slane %v2566_v63, 1  ;;  %v2571_v21 = vshll.u32 %v16505_v58, 16 }
  0xe4   : > { %v1610_v47 = vsel %vm17519_vm8, %v1253_v35, %v1609_v48  ;;  %v1614_v24 = vsel %vm17491_vm3, %v1263_v33, %v1613_v42  ;;  %v1270_v44 = vor.u32 %v1268_v18, %v1267_v7  ;;  %v1271_v25 = vrot.slane %v1267_v7, 4  ;;  %v395_v29 = vld [vmem:[#allocation2 + $0x18c] sm:$0x1]  ;;  %v493_v15 = vld [vmem:[#allocation2 + $0x194] sm:$0x1] }
  0xe5   : > { %v1616_v22 = vld [vmem:[#allocation2 + $0x180] sm:$0xf]  ;;  %v2562_v60 = vsel %vm2310_vm1, %v2557_v3, %v2561_v4  ;;  %1611 = vst [vmem:[#allocation2 + $0x174] sm:$0xf] %v1610_v47  ;;  %1615 = vst [vmem:[#allocation2 + $0x17c] sm:$0x1] %v1614_v24  ;;  %v1278_v51 = vor.u32 %v1276_v11, %v1275_v10  ;;  %v2569_v9 = vor.u32 %v2568_v59, %v2564_v13 }
  0xe6   : > { %v1620_v28 = vld [vmem:[#allocation2 + $0x188] sm:$0x1]  ;;  %v1280_v30 = vrot.slane %v1275_v10, 4  ;;  %v1617_v31 = vsel %vm17519_vm8, %v1270_v44, %v1616_v22  ;;  %v396_v19 = vsel %vm17491_vm3, 0, %v395_v29  ;;  %v765_v32 = vld [vmem:[%s17484_s19 + $0xf0] sm:$0xf]  ;;  %5569 = vmatmul.mubr.bf16.gmra.mrb[76].mxu0 %v18034_v23 }
  0xe7   : > { %v1279_v34 = vsel %vm17529_vm9, %v1271_v25, %v1278_v51  ;;  %1618 = vst [vmem:[#allocation2 + $0x180] sm:$0xf] %v1617_v31  ;;  %397 = vst [vmem:[#allocation2 + $0x18c] sm:$0x1] %v396_v19  ;;  %v494_v36 = vsel %vm17499_vm6, 0, %v493_v15  ;;  %v1282_v41 = vshrl.u32 %v765_v32, 16  ;;  %5576 = vmatprep.mubr.bf16.mxu0 %v2562_v60 }
  0xe8   : > { %v766_v40 = vld [vmem:[%s17484_s19 + $0xf4] sm:$0xf]  ;;  %v16507_v46 = vld [vmem:[#allocation2 + $0x128] ss:$0 sps:$4 sm:$0x11]   ;;  %v1621_v27 = vsel %vm17491_vm3, %v1280_v30, %v1620_v28  ;;  %v1285_v49 = vshll.u32 %v765_v32, 16 }
  0xe9   : > { %1619 = vst [vmem:[#allocation2 + $0x184] sm:$0xf] %v1279_v34  ;;  %495 = vst [vmem:[#allocation2 + $0x194] sm:$0x1] %v494_v36  ;;  %v1290_v50 = vshrl.u32 %v766_v40, 16  ;;  %v1293_v23 = vshll.u32 %v766_v40, 16 }
  0xea   : > { %v2573_v17 = vrot.slane %v2571_v21, 1  ;;  %v2578_v37 = vshll.u32 %v18101_v26, 16  ;;  %v1684_v39 = vld [vmem:[#allocation2 + $0x130] sm:$0xf]  ;;  %1622 = vst [vmem:[#allocation2 + $0x188] sm:$0x1] %v1621_v27 }
  0xeb   : > { %v1284_v8 = vrot.slane %v1282_v41, 7  ;;  %v1683_v45 = vld [vmem:[#allocation2 + $0x12c] sm:$0xf]  ;;  %v1292_v53 = vrot.slane %v1290_v50, 7  ;;  %v2583_v56 = vshll.u32 %v16507_v46, 16  ;;  %v2576_v57 = vshrl.u32 %v18101_v26, 16 }
  0xec   : > { %v2574_v62 = vsel %vm2310_vm1, %v2569_v9, %v2573_v17  ;;  %v2580_v58 = vrot.slane %v2578_v37, 1  ;;  %v14091_v63 = vcombine.low %v1683_v45, %v1684_v39  ;;  %v16510_v3 = vld [vmem:[#allocation2 + $0x134] ss:$0 sps:$4 sm:$0x11]   ;;  %v1685_v52 = vld [vmem:[#allocation2 + $0x138] sm:$0xf] }
  0xed   : > { %v1287_v54 = vor.u32 %v1285_v49, %v1284_v8  ;;  %v1288_v55 = vrot.slane %v1284_v8, 4  ;;  %v1295_v61 = vor.u32 %v1293_v23, %v1292_v53  ;;  %v1297_v0 = vrot.slane %v1292_v53, 4  ;;  %v1686_v7 = vld [vmem:[#allocation2 + $0x13c] sm:$0xf]  ;;  %v1687_v24 = vld [vmem:[#allocation2 + $0x144] sm:$0xf] }
  0xee   : > { %v1623_v6 = vld [vmem:[#allocation2 + $0x18c] sm:$0xf]  ;;  %5577 = vmatmul.mubr.bf16.gmra.mrb[80].mxu0 %v18063_v12  ;;  %v2585_v18 = vrot.slane %v2583_v56, 1  ;;  %v2581_v2 = vor.u32 %v2580_v58, %v2576_v57  ;;  %v2590_v4 = vshll.u32 %v14091_v63, 16  ;;  %v2588_v42 = vshrl.u32 %v14091_v63, 16 }
  0xef   : > { %v1296_v35 = vsel %vm17529_vm9, %v1288_v55, %v1295_v61  ;;  %v1624_v33 = vsel %vm17519_vm8, %v1287_v54, %v1623_v6  ;;  %5584 = vmatprep.mubr.bf16.mxu0 %v2574_v62  ;;  %v2595_v11 = vshll.u32 %v16510_v3, 16  ;;  %v14092_v13 = vcombine.low %v1685_v52, %v1686_v7  ;;  %v16512_v22 = vld [vmem:[#allocation2 + $0x140] ss:$0 sps:$4 sm:$0x11]   ;;  %v1688_v44 = vld [vmem:[#allocation2 + $0x148] sm:$0xf] }
  0xf0   : > { %1626 = vst [vmem:[#allocation2 + $0x190] sm:$0xf] %v1296_v35  ;;  %1625 = vst [vmem:[#allocation2 + $0x18c] sm:$0xf] %v1624_v33  ;;  %v1627_v5 = vld [vmem:[#allocation2 + $0x194] sm:$0x1]  ;;  %v2586_v12 = vsel %vm2310_vm1, %v2581_v2, %v2585_v18  ;;  %v14093_v29 = vcombine.low %v1687_v24, %v1688_v44 }
  0xf1   : > { %v1628_v48 = vsel %vm17491_vm3, %v1297_v0, %v1627_v5  ;;  %v2592_v10 = vrot.slane %v2590_v4, 1  ;;  %v2597_v21 = vrot.slane %v2595_v11, 1  ;;  %v2602_v47 = vshll.u32 %v14092_v13, 16  ;;  %v16515_v30 = vld [vmem:[#allocation2 + $0x14c] ss:$0 sps:$4 sm:$0x11]  }
  0xf2   : > { %1629 = vst [vmem:[#allocation2 + $0x194] sm:$0x1] %v1628_v48  ;;  %v2600_v25 = vshrl.u32 %v14092_v13, 16  ;;  %v2607_v28 = vshll.u32 %v16512_v22, 16  ;;  %v1689_v31 = vld [vmem:[#allocation2 + $0x150] sm:$0xf] }
  0xf3   : > { %v2593_v59 = vor.u32 %v2592_v10, %v2588_v42  ;;  %v2604_v51 = vrot.slane %v2602_v47, 1  ;;  %v1690_v19 = vld [vmem:[#allocation2 + $0x154] sm:$0xf]  ;;  %v2614_v32 = vshll.u32 %v14093_v29, 16  ;;  %v2619_v34 = vshll.u32 %v16515_v30, 16 }
  0xf4   : > { %v2609_v15 = vrot.slane %v2607_v28, 1  ;;  %v14094_v36 = vcombine.low %v1689_v31, %v1690_v19  ;;  %v2612_v41 = vshrl.u32 %v14093_v29, 16  ;;  %v16517_v49 = vld [vmem:[#allocation2 + $0x158] ss:$0 sps:$4 sm:$0x11]   ;;  %vm2823_vm10 = vcmask 1046528  }
  0xf5   : > { %v2598_v60 = vsel %vm2310_vm1, %v2593_v59, %v2597_v21  ;;  %v2616_v46 = vrot.slane %v2614_v32, 1  ;;  %v2621_v27 = vrot.slane %v2619_v34, 1  ;;  %v1691_v23 = vld [vmem:[#allocation2 + $0x15c] sm:$0xf]  ;;  %v2631_v39 = vshll.u32 %v16517_v49, 16 }
  0xf6   : > { %5585 = vmatmul.mubr.bf16.gmra.mrb[84].mxu0 %v18081_v16  ;;  %v2605_v16 = vor.u32 %v2604_v51, %v2600_v25  ;;  %v2626_v50 = vshll.u32 %v14094_v36, 16  ;;  %v2624_v17 = vshrl.u32 %v14094_v36, 16  ;;  %v16520_v53 = vld [vmem:[#allocation2 + $0x164] ss:$0 sps:$4 sm:$0x11]  }
  0xf7   : > { %5592 = vmatprep.mubr.bf16.mxu0 %v2586_v12  ;;  %v2617_v9 = vor.u32 %v2616_v46, %v2612_v41  ;;  %v2633_v55 = vrot.slane %v2631_v39, 1  ;;  %v1693_v56 = vld [vmem:[#allocation2 + $0x168] sm:$0xf]  ;;  %v1694_v61 = vld [vmem:[#allocation2 + $0x16c] sm:$0xf] }
  0xf8   : > { %v2610_v40 = vsel %vm2310_vm1, %v2605_v16, %v2609_v15  ;;  %v2628_v37 = vrot.slane %v2626_v50, 1  ;;  %v14096_v35 = vcombine.low %v1693_v56, %v1694_v61  ;;  %v16522_v33 = vld [vmem:[#allocation2 + $0x170] ss:$0 sps:$4 sm:$0x11]   ;;  %v1695_v2 = vld [vmem:[#allocation2 + $0x174] sm:$0xf] }
  0xf9   : > { %v2622_v45 = vsel %vm2310_vm1, %v2617_v9, %v2621_v27  ;;  %v1696_v3 = vld [vmem:[#allocation2 + $0x178] sm:$0xf]  ;;  %v2655_v7 = vshll.u32 %v16522_v33, 16  ;;  %v16525_v12 = vld [vmem:[#allocation2 + $0x17c] ss:$0 sps:$4 sm:$0x11]  }
  0xfa   : > { %v2629_v62 = vor.u32 %v2628_v37, %v2624_v17  ;;  %v2650_v18 = vshll.u32 %v14096_v35, 16  ;;  %v2648_v5 = vshrl.u32 %v14096_v35, 16  ;;  %v14097_v48 = vcombine.low %v1695_v2, %v1696_v3  ;;  %v1698_v59 = vld [vmem:[#allocation2 + $0x184] sm:$0xf]  ;;  %v1700_v30 = vld [vmem:[#allocation2 + $0x190] sm:$0xf] }
  0xfb   : > { %v2657_v11 = vrot.slane %v2655_v7, 1  ;;  %v2667_v24 = vshll.u32 %v16525_v12, 16  ;;  %v16527_v51 = vld [vmem:[#allocation2 + $0x188] ss:$0 sps:$4 sm:$0x11]  }
  0xfc   : > { %v2634_v0 = vsel %vm2310_vm1, %v2629_v62, %v2633_v55  ;;  %v2652_v52 = vrot.slane %v2650_v18, 1  ;;  %v2662_v10 = vshll.u32 %v14097_v48, 16  ;;  %v2660_v22 = vshrl.u32 %v14097_v48, 16  ;;  %v350_v27 = vld [vmem:[#allocation2 + $0xc0] sm:$0x1] }
  0xfd   : > { %v2679_v15 = vshll.u32 %v16527_v51, 16  ;;  %v351_v50 = vsel %vm17491_vm3, 0, %v350_v27  ;;  %v735_v9 = vld [vmem:[%s17484_s19 + $0x78] sm:$0xf]  ;;  %v736_v17 = vld [vmem:[%s17484_s19 + $0x7c] sm:$0xf] }
  0xfe   : > { %5593 = vmatmul.mubr.bf16.gmra.mrb[88].mxu0 %v18101_v26  ;;  %v1692_v26 = vld [vmem:[#allocation2 + $0x160] sm:$0xf]  ;;  %v2653_v21 = vor.u32 %v2652_v52, %v2648_v5  ;;  %v2664_v47 = vrot.slane %v2662_v10, 1  ;;  %352 = vst [vmem:[#allocation2 + $0xc0] sm:$0x1] %v351_v50  ;;  %v1027_v39 = vshrl.u32 %v735_v9, 16 }
  0xff   : > { %5600 = vmatprep.mubr.bf16.mxu0 %v2598_v60  ;;  %v14095_v8 = vcombine.low %v1691_v23, %v1692_v26  ;;  %v2669_v60 = vrot.slane %v2667_v24, 1  ;;  %v2681_v41 = vrot.slane %v2679_v15, 1  ;;  %v1030_v55 = vshll.u32 %v735_v9, 16  ;;  %v1765_v33 = vld [vmem:[#allocation2 + $0xc] sm:$0xf]  ;;  %v16562_v27 = vld [vmem:[%s21074_s1 + $0x120] sm:$0xff]  }
 0x100   : > { %v2658_v25 = vsel %vm2310_vm1, %v2653_v21, %v2657_v11  ;;  %v2665_v31 = vor.u32 %v2664_v47, %v2660_v22  ;;  %v1038_v61 = vshll.u32 %v736_v17, 16  ;;  %v1766_v18 = vld [vmem:[#allocation2 + $0x10] sm:$0xf]  ;;  %v1733_v2 = vld [vmem:[#allocation2] sm:$0xe] }
 0x101   : > { %v2638_v54 = vshll.u32 %v14095_v8, 16  ;;  %v2636_v57 = vshrl.u32 %v14095_v8, 16  ;;  %v17155_v3 = vld [vmem:[#allocation2 + $0x4] sm:$0xf]  ;;  %v18149_v5 = vcombine.low %v1765_v33, %v1766_v18  ;;  %v1768_v12 = vld [vmem:[#allocation2 + $0x1c] sm:$0xf] }
 0x102   : > { %v2670_v34 = vsel %vm2310_vm1, %v2665_v31, %v2669_v60  ;;  %v17156_v52 = vld [vmem:[#allocation2 + $0x8] ss:$0 sps:$4 sm:$0x11]   ;;  %v1734_v10 = vld [vmem:[#allocation2 + $0xc] sm:$0xe]  ;;  %v16534_v11 = vld [vmem:[%s21074_s1 + $0x100] sm:$0xff]  }
 0x103   : > { %v2640_v58 = vrot.slane %v2638_v54, 1  ;;  %v2825_v7 = vrot.slane %v17156_v52, 1  ;;  %v17157_v21 = vld [vmem:[#allocation2 + $0x10] sm:$0xf]  ;;  %v1770_v60 = vld [vmem:[#allocation2 + $0x28] sm:$0xf] }
 0x104   : > { %v14133_v22 = vcombine.low %v1734_v10, %v17157_v21  ;;  %v17158_v47 = vld [vmem:[#allocation2 + $0x14] ss:$0 sps:$4 sm:$0x11]   ;;  %v1735_v51 = vld [vmem:[#allocation2 + $0x18] sm:$0xe]  ;;  %v16597_v21 = vld [vmem:[%s21074_s1 + $0x148] sm:$0xff]  }
 0x105   : > { %v2641_v4 = vor.u32 %v2640_v58, %v2636_v57  ;;  %v1518_v57 = vld [vmem:[#allocation2 + $0xc0] sm:$0xf]  ;;  %v2828_v24 = vrot.slane %v17158_v47, 1  ;;  %v17162_v9 = vld [vmem:[#allocation2 + $0x2c] ss:$0 sps:$4 sm:$0x11]  }
 0x106   : > { %5601 = vmatmul.mubr.bf16.gmra.mrb[92].mxu0 %v14091_v63  ;;  %v2643_v63 = vshll.u32 %v16520_v53, 16  ;;  %v1029_v53 = vrot.slane %v1027_v39, 7  ;;  %v17160_v15 = vld [vmem:[#allocation2 + $0x20] ss:$0 sps:$4 sm:$0x11]   ;;  %v16583_v18 = vld [vmem:[%s21074_s1 + $0x138] sm:$0xff]  }
 0x107   : > { %5608 = vmatprep.mubr.bf16.mxu0 %v2610_v40  ;;  %v1738_v33 = vld [vmem:[#allocation2 + $0x3c] sm:$0xe]  ;;  %v17165_v52 = vld [vmem:[#allocation2 + $0x40] sm:$0xf] }
 0x108   : > { %v2645_v6 = vrot.slane %v2643_v63, 1  ;;  %v1033_v62 = vrot.slane %v1029_v53, 4  ;;  %v1032_v58 = vor.u32 %v1030_v55, %v1029_v53  ;;  %v16569_v53 = vld [vmem:[%s21074_s1 + $0x128] sm:$0xff]  }
 0x10a   : > { %v2646_v42 = vsel %vm2310_vm1, %v2641_v4, %v2645_v6  ;;  %v1519_v6 = vsel %vm17519_vm8, %v1032_v58, %v1518_v57  ;;  %v14132_v4 = vcombine.low %v1733_v2, %v17155_v3  ;;  %v17164_v58 = vld [vmem:[#allocation2 + $0x38] ss:$0 sps:$4 sm:$0x11]   ;;  %v16590_v2 = vld [vmem:[%s21074_s1 + $0x140] sm:$0xff]  }
 0x10b   : > { %1520 = vst [vmem:[#allocation2 + $0xc0] sm:$0xf] %v1519_v6 }
 0x10e   : > { %5609 = vmatmul.mubr.bf16.gmra.mrb[96].mxu0 %v14092_v13  ;;  %v1697_v13 = vld [vmem:[#allocation2 + $0x180] sm:$0xf] }
 0x10f   : > { %5616 = vmatprep.mubr.bf16.mxu0 %v2622_v45  ;;  %v14098_v44 = vcombine.low %v1697_v13, %v1698_v59 }
 0x111   : > { %v2674_v28 = vshll.u32 %v14098_v44, 16  ;;  %v2672_v19 = vshrl.u32 %v14098_v44, 16 }
 0x113   : > { %v2676_v16 = vrot.slane %v2674_v28, 1  ;;  %v16541_v28 = vld [vmem:[%s21074_s1 + $0x108] sm:$0xff]  }
 0x115   : > { %v2677_v46 = vor.u32 %v2676_v16, %v2672_v19  ;;  %v17159_v19 = vld [vmem:[#allocation2 + $0x1c] sm:$0xf] }
 0x116   : > { %5617 = vmatmul.mubr.bf16.gmra.mrb[100].mxu0 %v14093_v29  ;;  %v1699_v29 = vld [vmem:[#allocation2 + $0x18c] sm:$0xf]  ;;  %v14134_v16 = vcombine.low %v1735_v51, %v17159_v19  ;;  %v18227_v51 = vld [vmem:[#allocation2 + $0x64] sm:$0xf]  ;;  %v1740_v19 = vld [vmem:[#allocation2 + $0x54] sm:$0xe] }
 0x117   : > { %5624 = vmatprep.mubr.bf16.mxu0 %v2634_v0  ;;  %v14099_v32 = vcombine.low %v1699_v29, %v1700_v30  ;;  %v2682_v37 = vsel %vm2310_vm1, %v2677_v46, %v2681_v41  ;;  %v16548_v29 = vld [vmem:[%s21074_s1 + $0x110] sm:$0xff]   ;;  %v1736_v41 = vld [vmem:[#allocation2 + $0x24] sm:$0xe]  ;;  %v16555_v46 = vld [vmem:[%s21074_s1 + $0x118] sm:$0xff]  }
 0x119   : > { %v2686_v40 = vshll.u32 %v14099_v32, 16  ;;  %v2684_v49 = vshrl.u32 %v14099_v32, 16 }
 0x11b   : > { %v2688_v23 = vrot.slane %v2686_v40, 1  ;;  %v2830_v40 = vrot.slane %v14134_v16, 1  ;;  %v17169_v16 = vld [vmem:[#allocation2 + $0x58] sm:$0xf] }
 0x11d   : > { %v2689_v54 = vor.u32 %v2688_v23, %v2684_v49  ;;  %v17161_v23 = vld [vmem:[#allocation2 + $0x28] sm:$0xf] }
 0x11e   : > { %5625 = vmatmul.mubr.bf16.gmra.mrb[104].mxu0 %v14094_v36  ;;  %v16530_v36 = vld [vmem:[#allocation2 + $0x194] ss:$0 sps:$4 sm:$0x11]  }
 0x11f   : > { %5632 = vmatprep.mubr.bf16.mxu0 %v2646_v42  ;;  %v2691_v26 = vshll.u32 %v16530_v36, 16  ;;  %v1767_v42 = vld [vmem:[#allocation2 + $0x18] sm:$0xf]  ;;  %v1772_v36 = vld [vmem:[#allocation2 + $0x34] sm:$0xf] }
 0x120   : > { %v18156_v59 = vcombine.low %v1767_v42, %v1768_v12  ;;  %v1777_v12 = vld [vmem:[#allocation2 + $0x54] sm:$0xf] }
 0x121   : > { %v2693_v45 = vrot.slane %v2691_v26, 1  ;;  %v14135_v26 = vcombine.low %v1736_v41, %v17161_v23  ;;  %v1741_v23 = vld [vmem:[#allocation2 + $0x60] sm:$0xe] }
 0x123   : > { %v2833_v39 = vrot.slane %v14135_v26, 1  ;;  %v17171_v26 = vld [vmem:[#allocation2 + $0x64] sm:$0xf] }
 0x126   : > { %5633 = vmatmul.mubr.bf16.gmra.mrb[108].mxu0 %v14095_v8  ;;  %v1035_v8 = vshrl.u32 %v736_v17, 16  ;;  %v2834_v17 = vrot.slane %v17162_v9, 1  ;;  %v14140_v9 = vcombine.low %v1741_v23, %v17171_v26  ;;  %v17179_v23 = vld [vmem:[#allocation2 + $0x94] sm:$0xf] }
 0x127   : > { %5640 = vmatprep.mubr.bf16.mxu0 %v2658_v25  ;;  %v2827_v25 = vrot.slane %v14133_v22, 1  ;;  %v16604_v22 = vld [vmem:[%s21074_s1 + $0x150] sm:$0xff]  }
 0x128   : > { %v18141_v56 = vrot.slane %v1035_v8, 7  ;;  %v18183_v8 = vld [vmem:[#allocation2 + $0x40] sm:$0xf]  ;;  %v2835_v55 = vsel %vm2823_vm10, %v2833_v39, %v2834_v17  ;;  %v2848_v39 = vrot.slane %v14140_v9, 1 }
 0x129   : > { %v2829_v30 = vsel %vm2823_vm10, %v2827_v25, %v2828_v24 }
 0x12a   : > { %v1040_v63 = vor.u32 %v1038_v61, %v18141_v56 }
 0x12c   : > { %v1041_v0 = vsel %vm17529_vm9, %v1033_v62, %v1040_v63  ;;  %v17163_v62 = vld [vmem:[#allocation2 + $0x34] sm:$0xf]  ;;  %v2837_v63 = vrot.slane %v17164_v58, 1 }
 0x12d   : > { %1521 = vst [vmem:[#allocation2 + $0xc4] sm:$0xf] %v1041_v0  ;;  %v18197_v0 = vld [vmem:[#allocation2 + $0x4c] sm:$0xf] }
 0x12e   : > { %5641 = vmatmul.mubr.bf16.gmra.mrb[112].mxu0 %v14096_v35  ;;  %v2694_v35 = vsel %vm2310_vm1, %v2689_v54, %v2693_v45  ;;  %v1737_v45 = vld [vmem:[#allocation2 + $0x30] sm:$0xe] }
 0x12f   : > { %5648 = vmatprep.mubr.bf16.mxu0 %v2670_v34  ;;  %v1771_v34 = vld [vmem:[#allocation2 + $0x30] sm:$0xf]  ;;  %v14136_v57 = vcombine.low %v1737_v45, %v17163_v62  ;;  %v17172_v45 = vld [vmem:[#allocation2 + $0x68] ss:$0 sps:$4 sm:$0x11]  }
 0x130   : > { %v18179_v50 = vcombine.low %v1771_v34, %v1772_v36  ;;  %v16576_v54 = vld [vmem:[%s21074_s1 + $0x130] sm:$0xff]   ;;  %v1742_v62 = vld [vmem:[#allocation2 + $0x6c] sm:$0xe] }
 0x131   : > { %v2836_v6 = vrot.slane %v14136_v57, 1 }
 0x133   : > { %v2838_v3 = vsel %vm2823_vm10, %v2836_v6, %v2837_v63  ;;  %v17173_v63 = vld [vmem:[#allocation2 + $0x70] sm:$0xf]  ;;  %v16618_v6 = vld [vmem:[%s21074_s1 + $0x160] sm:$0xff]  }
 0x136   : > { %5649 = vmatmul.mubr.bf16.gmra.mrb[116].mxu0 %v14097_v48  ;;  %v2824_v48 = vrot.slane %v14132_v4, 1 }
 0x137   : > { %5656 = vmatprep.mubr.bf16.mxu0 %v2682_v37  ;;  %v1773_v37 = vld [vmem:[#allocation2 + $0x3c] sm:$0xf] }
 0x138   : > { %v2826_v13 = vsel %vm2823_vm10, %v2824_v48, %v2825_v7  ;;  %v18194_v61 = vcombine.low %v1773_v37, %v18183_v8  ;;  %v14137_v7 = vcombine.low %v1738_v33, %v17165_v52  ;;  %v17166_v48 = vld [vmem:[#allocation2 + $0x44] ss:$0 sps:$4 sm:$0x11]   ;;  %v18257_v52 = vld [vmem:[#allocation2 + $0x88] sm:$0xf] }
 0x139   : > { %v2840_v42 = vrot.slane %v17166_v48, 1 }
 0x13a   : > { %v2839_v10 = vrot.slane %v14137_v7, 1  ;;  %v1743_v7 = vld [vmem:[#allocation2 + $0x78] sm:$0xe] }
 0x13c   : > { %v2841_v47 = vsel %vm2823_vm10, %v2839_v10, %v2840_v42 }
 0x13e   : > { %5657 = vmatmul.mubr.bf16.gmra.mrb[120].mxu0 %v14098_v44  ;;  %v1769_v44 = vld [vmem:[#allocation2 + $0x24] sm:$0xf] }
 0x13f   : > { %5664 = vmatprep.mubr.bf16.mxu0 %v2694_v35  ;;  %v18167_v31 = vcombine.low %v1769_v44, %v1770_v60  ;;  %v1775_v35 = vld [vmem:[#allocation2 + $0x48] sm:$0xf]  ;;  %v17167_v44 = vld [vmem:[#allocation2 + $0x4c] sm:$0xf]  ;;  %v1779_v60 = vld [vmem:[#allocation2 + $0x60] sm:$0xf] }
 0x140   : > { %v18209_v4 = vcombine.low %v1775_v35, %v18197_v0  ;;  %v18233_v34 = vcombine.low %v1779_v60, %v18227_v51  ;;  %v14141_v35 = vcombine.low %v1742_v62, %v17173_v63  ;;  %v17181_v63 = vld [vmem:[#allocation2 + $0xa0] sm:$0xf] }
 0x142   : > { %v2851_v33 = vrot.slane %v14141_v35, 1 }
 0x146   : > { %5665 = vmatmul.mubr.bf16.gmra.mrb[124].mxu0 %v14099_v32  ;;  %v2831_v32 = vrot.slane %v17160_v15, 1  ;;  %v14139_v15 = vcombine.low %v1740_v19, %v17169_v16  ;;  %v16625_v19 = vld [vmem:[%s21074_s1 + $0x168] sm:$0xff]  }
 0x147   : > { %5705 = vmatprep.mubr.bf16.mxu0 %v18149_v5 }
 0x148   : > { %v2832_v49 = vsel %vm2823_vm10, %v2830_v40, %v2831_v32  ;;  %v2845_v36 = vrot.slane %v14139_v15, 1  ;;  %v17170_v40 = vld [vmem:[#allocation2 + $0x5c] ss:$0 sps:$4 sm:$0x11]  }
 0x149   : > { %v2846_v41 = vrot.slane %v17170_v40, 1  ;;  %v17178_v15 = vld [vmem:[#allocation2 + $0x8c] ss:$0 sps:$4 sm:$0x11]   ;;  %v18275_v40 = vld [vmem:[#allocation2 + $0xa0] sm:$0xf] }
 0x14b   : > { %v2847_v17 = vsel %vm2823_vm10, %v2845_v36, %v2846_v41  ;;  %v1789_v36 = vld [vmem:[#allocation2 + $0x9c] sm:$0xf]  ;;  %v1745_v41 = vld [vmem:[#allocation2 + $0x90] sm:$0xe] }
 0x14c   : > { %v14144_v26 = vcombine.low %v1745_v41, %v17179_v23 }
 0x14e   : > { %5706 = vmatmul.mubr.bf16.vlgmr.msra.gmra.mrb[0].mxu0 %v2826_v13  ;;  %v1739_v13 = vld [vmem:[#allocation2 + $0x48] sm:$0xe]  ;;  %v2860_v9 = vrot.slane %v14144_v26, 1 }
 0x14f   : > { %5963 = vmatpush1.bf16.msra.mxu0 %v16534_v11  ;;  %5713 = vmatprep.mubr.bf16.mxu0 %v18156_v59  ;;  %v18213_v11 = vld [vmem:[#allocation2 + $0x58] sm:$0xf]  ;;  %v14138_v25 = vcombine.low %v1739_v13, %v17167_v44  ;;  %v18265_v44 = vld [vmem:[#allocation2 + $0x94] sm:$0xf] }
 0x150   : > { %5964 = vmatprep.subr.bf16.mxu0 %v21081_v1  ;;  %v18224_v24 = vcombine.low %v1777_v12, %v18213_v11  ;;  %v17175_v12 = vld [vmem:[#allocation2 + $0x7c] sm:$0xf] }
 0x151   : > { %v14142_v10 = vcombine.low %v1743_v7, %v17175_v12  ;;  %v18293_v7 = vld [vmem:[#allocation2 + $0xb8] sm:$0xf] }
 0x152   : > { %v398_v12 = vld [vmem:[#allocation2 + $0x198] sm:$0x1] }
 0x153   : > { %5965 = vmatpush1.bf16.msra.mxu0 %v16541_v28  ;;  %v2842_v28 = vrot.slane %v14138_v25, 1  ;;  %v2854_v13 = vrot.slane %v14142_v10, 1  ;;  %v1744_v25 = vld [vmem:[#allocation2 + $0x84] sm:$0xe]  ;;  %v399_v10 = vsel %vm17491_vm3, 0, %v398_v12 }
 0x154   : > { %5966 = vmatprep.subr.bf16.mxu0 %v21081_v1  ;;  %400 = vst [vmem:[#allocation2 + $0x198] sm:$0x1] %v399_v10  ;;  %v1797_v10 = vld [vmem:[#allocation2 + $0xe4] sm:$0xf] }
 0x156   : > { %5714 = vmatmul.mubr.bf16.gmra.mrb[4].mxu0 %v2829_v30 }
 0x157   : > { %5721 = vmatprep.mubr.bf16.mxu0 %v18167_v31  ;;  %5967 = vmatpush1.bf16.msra.mxu0 %v16548_v29  ;;  %v17168_v29 = vld [vmem:[#allocation2 + $0x50] ss:$0 sps:$4 sm:$0x11]  }
 0x158   : > { %5968 = vmatprep.subr.bf16.mxu0 %v21081_v1  ;;  %v2843_v30 = vrot.slane %v17168_v29, 1  ;;  %v17177_v29 = vld [vmem:[#allocation2 + $0x88] sm:$0xf] }
 0x15a   : > { %v2844_v32 = vsel %vm2823_vm10, %v2842_v28, %v2843_v30  ;;  %v14143_v30 = vcombine.low %v1744_v25, %v17177_v29  ;;  %v767_v25 = vld [vmem:[%s17484_s19 + $0xf8] sm:$0xf] }
 0x15b   : > { %5969 = vmatpush1.bf16.msra.mxu0 %v16555_v46  ;;  %v16611_v46 = vld [vmem:[%s21074_s1 + $0x158] sm:$0xff]   ;;  %v1299_v29 = vshrl.u32 %v767_v25, 16  ;;  %v1302_v23 = vshll.u32 %v767_v25, 16 }
 0x15c   : > { %5970 = vmatprep.subr.bf16.mxu0 %v21081_v1  ;;  %v2857_v16 = vrot.slane %v14143_v30, 1 }
 0x15d   : > { %v1301_v41 = vrot.slane %v1299_v29, 7 }
 0x15e   : > { %5722 = vmatmul.mubr.bf16.gmra.mrb[8].mxu0 %v2832_v49  ;;  %v18239_v49 = vld [vmem:[#allocation2 + $0x70] sm:$0xf] }
 0x15f   : > { %5729 = vmatprep.mubr.bf16.mxu0 %v18179_v50  ;;  %5971 = vmatpush1.bf16.msra.mxu0 %v16562_v27  ;;  %v1781_v27 = vld [vmem:[#allocation2 + $0x6c] sm:$0xf] }
 0x160   : > { %5972 = vmatprep.subr.bf16.mxu0 %v21081_v1  ;;  %v18244_v37 = vcombine.low %v1781_v27, %v18239_v49  ;;  %v18280_v27 = vcombine.low %v1789_v36, %v18275_v40  ;;  %v1748_v36 = vld [vmem:[#allocation2 + $0xb4] sm:$0xe] }
 0x163   : > { %5973 = vmatpush1.bf16.msra.mxu0 %v16569_v53  ;;  %v2849_v53 = vrot.slane %v17172_v45, 1  ;;  %v1791_v45 = vld [vmem:[#allocation2 + $0xa8] sm:$0xf] }
 0x164   : > { %5974 = vmatprep.subr.bf16.mxu0 %v21081_v1 }
 0x165   : > { %v2850_v57 = vsel %vm2823_vm10, %v2848_v39, %v2849_v53  ;;  %v18283_v53 = vld [vmem:[#allocation2 + $0xac] sm:$0xf] }
 0x166   : > { %5730 = vmatmul.mubr.bf16.gmra.mrb[12].mxu0 %v2835_v55  ;;  %v18247_v55 = vld [vmem:[#allocation2 + $0x7c] sm:$0xf] }
 0x167   : > { %5737 = vmatprep.mubr.bf16.mxu0 %v18194_v61  ;;  %5975 = vmatpush1.bf16.msra.mxu0 %v16576_v54  ;;  %v1783_v54 = vld [vmem:[#allocation2 + $0x78] sm:$0xf] }
 0x168   : > { %5976 = vmatprep.subr.bf16.mxu0 %v21081_v1  ;;  %v18251_v58 = vcombine.low %v1783_v54, %v18247_v55  ;;  %v1746_v54 = vld [vmem:[#allocation2 + $0x9c] sm:$0xe] }
 0x169   : > { %v14145_v35 = vcombine.low %v1746_v54, %v17181_v63 }
 0x16b   : > { %5977 = vmatpush1.bf16.msra.mxu0 %v16583_v18  ;;  %v17174_v18 = vld [vmem:[#allocation2 + $0x74] ss:$0 sps:$4 sm:$0x11]  }
 0x16c   : > { %5978 = vmatprep.subr.bf16.mxu0 %v21081_v1 }
 0x16e   : > { %5738 = vmatmul.mubr.bf16.gmra.mrb[16].mxu0 %v2838_v3  ;;  %v1785_v3 = vld [vmem:[#allocation2 + $0x84] sm:$0xf] }
 0x16f   : > { %5745 = vmatprep.mubr.bf16.mxu0 %v18209_v4  ;;  %5979 = vmatpush1.bf16.msra.mxu0 %v16590_v2  ;;  %v2852_v2 = vrot.slane %v17174_v18, 1  ;;  %v18262_v42 = vcombine.low %v1785_v3, %v18257_v52  ;;  %v17182_v18 = vld [vmem:[#allocation2 + $0xa4] ss:$0 sps:$4 sm:$0x11]   ;;  %v1793_v3 = vld [vmem:[#allocation2 + $0xb4] sm:$0xf] }
 0x170   : > { %5980 = vmatprep.subr.bf16.mxu0 %v21081_v1 }
 0x171   : > { %v2853_v48 = vsel %vm2823_vm10, %v2851_v33, %v2852_v2  ;;  %v2863_v33 = vrot.slane %v14145_v35, 1  ;;  %v2864_v2 = vrot.slane %v17182_v18, 1  ;;  %v17185_v35 = vld [vmem:[#allocation2 + $0xb8] sm:$0xf] }
 0x173   : > { %5981 = vmatpush1.bf16.msra.mxu0 %v16597_v21  ;;  %v17176_v21 = vld [vmem:[#allocation2 + $0x80] ss:$0 sps:$4 sm:$0x11]  }
 0x174   : > { %5982 = vmatprep.subr.bf16.mxu0 %v21081_v1 }
 0x176   : > { %5746 = vmatmul.mubr.bf16.gmra.mrb[20].mxu0 %v2841_v47  ;;  %v1787_v47 = vld [vmem:[#allocation2 + $0x90] sm:$0xf] }
 0x177   : > { %5753 = vmatprep.mubr.bf16.mxu0 %v18224_v24  ;;  %5983 = vmatpush1.bf16.msra.mxu0 %v16604_v22  ;;  %v2855_v22 = vrot.slane %v17176_v21, 1  ;;  %v18269_v28 = vcombine.low %v1787_v47, %v18265_v44  ;;  %v18300_v21 = vcombine.low %v1793_v3, %v18293_v7 }
 0x178   : > { %5984 = vmatprep.subr.bf16.mxu0 %v21081_v1 }
 0x179   : > { %v2856_v60 = vsel %vm2823_vm10, %v2854_v13, %v2855_v22  ;;  %v2865_v13 = vsel %vm2823_vm10, %v2863_v33, %v2864_v2  ;;  %v17183_v22 = vld [vmem:[#allocation2 + $0xac] sm:$0xf]  ;;  %v16639_v2 = vld [vmem:[%s21074_s1 + $0x178] sm:$0xff]  }
 0x17b   : > { %5985 = vmatpush1.bf16.msra.mxu0 %v16611_v46 }
 0x17c   : > { %5986 = vmatprep.subr.bf16.mxu0 %v21081_v1 }
 0x17e   : > { %5754 = vmatmul.mubr.bf16.gmra.mrb[24].mxu0 %v2844_v32  ;;  %v2858_v32 = vrot.slane %v17178_v15, 1 }
 0x17f   : > { %5761 = vmatprep.mubr.bf16.mxu0 %v18233_v34  ;;  %5987 = vmatpush1.bf16.msra.mxu0 %v16618_v6  ;;  %v16632_v6 = vld [vmem:[%s21074_s1 + $0x170] sm:$0xff]  }
 0x180   : > { %5988 = vmatprep.subr.bf16.mxu0 %v21081_v1  ;;  %v2859_v46 = vsel %vm2823_vm10, %v2857_v16, %v2858_v32  ;;  %v1795_v32 = vld [vmem:[#allocation2 + $0xc0] sm:$0xf] }
 0x183   : > { %5989 = vmatpush1.bf16.msra.mxu0 %v16625_v19  ;;  %v17184_v19 = vld [vmem:[#allocation2 + $0xb0] ss:$0 sps:$4 sm:$0x11]  }
 0x184   : > { %5990 = vmatprep.subr.bf16.mxu0 %v21081_v1  ;;  %v2867_v16 = vrot.slane %v17184_v19, 1  ;;  %v17188_v19 = vld [vmem:[#allocation2 + $0xe0] ss:$0 sps:$4 sm:$0x11]  }
 0x186   : > { %5762 = vmatmul.mubr.bf16.gmra.mrb[28].mxu0 %v2847_v17  ;;  %v17180_v17 = vld [vmem:[#allocation2 + $0x98] ss:$0 sps:$4 sm:$0x11]  }
 0x187   : > { %5769 = vmatprep.mubr.bf16.mxu0 %v18244_v37  ;;  %v2861_v39 = vrot.slane %v17180_v17, 1  ;;  %5991 = vmatpush1.bf16.msra.mxu0 %v16632_v6  ;;  %v1305_v17 = vrot.slane %v1301_v41, 4  ;;  %v14147_v6 = vcombine.low %v1748_v36, %v17185_v35  ;;  %v1750_v36 = vld [vmem:[#allocation2 + $0xe4] sm:$0xe]  ;;  %v1802_v35 = vld [vmem:[#allocation2 + $0x100] sm:$0xf] }
 0x188   : > { %5992 = vmatprep.subr.bf16.mxu0 %v21081_v1 }
 0x189   : > { %v2862_v62 = vsel %vm2823_vm10, %v2860_v9, %v2861_v39  ;;  %v1630_v39 = vld [vmem:[#allocation2 + $0x198] sm:$0xf]  ;;  %v2869_v3 = vrot.slane %v14147_v6, 1  ;;  %v1751_v6 = vld [vmem:[#allocation2 + $0xf0] sm:$0xe] }
 0x18b   : > { %5993 = vmatpush1.bf16.msra.mxu0 %v16639_v2  ;;  %v17191_v2 = vld [vmem:[#allocation2 + $0xf4] sm:$0xf] }
 0x18c   : > { %6251 = vmatprep.subr.bf16.mxu0 %v21081_v1 }
 0x18e   : > { %5770 = vmatmul.mubr.bf16.gmra.mrb[32].mxu0 %v2850_v57  ;;  %v18287_v57 = vcombine.low %v1791_v45, %v18283_v53  ;;  %v1304_v45 = vor.u32 %v1302_v23, %v1301_v41 }
 0x18f   : > { %5777 = vmatprep.mubr.bf16.mxu0 %v18251_v58 }
 0x190   : > { %v1631_v18 = vsel %vm17519_vm8, %v1304_v45, %v1630_v39  ;;  %v17190_v45 = vld [vmem:[#allocation2 + $0xec] ss:$0 sps:$4 sm:$0x11]  }
 0x191   : > { %1632 = vst [vmem:[#allocation2 + $0x198] sm:$0xf] %v1631_v18 }
 0x196   : > { %5778 = vmatmul.mubr.bf16.gmra.mrb[36].mxu0 %v2853_v48  ;;  %v1747_v48 = vld [vmem:[#allocation2 + $0xa8] sm:$0xe] }
 0x197   : > { %5785 = vmatprep.mubr.bf16.mxu0 %v18262_v42  ;;  %v14146_v47 = vcombine.low %v1747_v48, %v17183_v22  ;;  %v17186_v48 = vld [vmem:[#allocation2 + $0xbc] ss:$0 sps:$4 sm:$0x11]   ;;  %v1749_v22 = vld [vmem:[#allocation2 + $0xd8] sm:$0xe] }
 0x198   : > { %v2870_v12 = vrot.slane %v17186_v48, 1 }
 0x199   : > { %v2866_v15 = vrot.slane %v14146_v47, 1 }
 0x19a   : > { %v2871_v47 = vsel %vm2823_vm10, %v2869_v3, %v2870_v12  ;;  %v14150_v3 = vcombine.low %v1751_v6, %v17191_v2  ;;  %v17192_v12 = vld [vmem:[#allocation2 + $0xf8] ss:$0 sps:$4 sm:$0x11]  }
 0x19c   : > { %v2878_v48 = vrot.slane %v14150_v3, 1  ;;  %v1807_v3 = vld [vmem:[#allocation2 + $0x120] sm:$0xf] }
 0x19e   : > { %5786 = vmatmul.mubr.bf16.gmra.mrb[40].mxu0 %v2856_v60  ;;  %v768_v60 = vld [vmem:[%s17484_s19 + $0xfc] sm:$0xf] }
 0x19f   : > { %5793 = vmatprep.mubr.bf16.mxu0 %v18269_v28  ;;  %v1307_v30 = vshrl.u32 %v768_v60, 16  ;;  %v1310_v9 = vshll.u32 %v768_v60, 16  ;;  %v17187_v60 = vld [vmem:[#allocation2 + $0xdc] sm:$0xf] }
 0x1a0   : > { %v14148_v29 = vcombine.low %v1749_v22, %v17187_v60  ;;  %v1803_v22 = vld [vmem:[#allocation2 + $0x108] sm:$0xf]  ;;  %v1752_v60 = vld [vmem:[#allocation2 + $0xfc] sm:$0xe] }
 0x1a1   : > { %v18307_v26 = vrot.slane %v1307_v30, 7 }
 0x1a2   : > { %v2872_v30 = vrot.slane %v14148_v29, 1 }
 0x1a3   : > { %v1312_v54 = vor.u32 %v1310_v9, %v18307_v26  ;;  %v17189_v9 = vld [vmem:[#allocation2 + $0xe8] sm:$0xf] }
 0x1a5   : > { %v1313_v33 = vsel %vm17529_vm9, %v1305_v17, %v1312_v54  ;;  %v14149_v17 = vcombine.low %v1750_v36, %v17189_v9  ;;  %v2876_v54 = vrot.slane %v17190_v45, 1  ;;  %v17194_v36 = vld [vmem:[#allocation2 + $0x104] ss:$0 sps:$4 sm:$0x11]   ;;  %v1805_v9 = vld [vmem:[#allocation2 + $0x114] sm:$0xf] }
 0x1a6   : > { %5794 = vmatmul.mubr.bf16.gmra.mrb[44].mxu0 %v2859_v46  ;;  %v18305_v46 = vld [vmem:[#allocation2 + $0xc4] sm:$0xf]  ;;  %1633 = vst [vmem:[#allocation2 + $0x19c] sm:$0xf] %v1313_v33 }
 0x1a7   : > { %5801 = vmatprep.mubr.bf16.mxu0 %v18280_v27  ;;  %v18312_v63 = vcombine.low %v1795_v32, %v18305_v46  ;;  %v18330_v32 = vld [vmem:[#allocation2 + $0xf4] sm:$0xf]  ;;  %v2875_v39 = vrot.slane %v14149_v17, 1  ;;  %v1806_v17 = vld [vmem:[#allocation2 + $0x118] sm:$0xf] }
 0x1a9   : > { %v2877_v33 = vsel %vm2823_vm10, %v2875_v39, %v2876_v54  ;;  %v1753_v39 = vld [vmem:[#allocation2 + $0x108] sm:$0xe]  ;;  %v18346_v54 = vcombine.low %v1805_v9, %v1806_v17 }
 0x1ae   : > { %5802 = vmatmul.mubr.bf16.gmra.mrb[48].mxu0 %v2862_v62  ;;  %v2868_v62 = vsel %vm2823_vm10, %v2866_v15, %v2867_v16  ;;  %v2873_v16 = vrot.slane %v17188_v19, 1  ;;  %v1799_v15 = vld [vmem:[#allocation2 + $0xf0] sm:$0xf]  ;;  %v17193_v19 = vld [vmem:[#allocation2 + $0x100] sm:$0xf] }
 0x1af   : > { %5809 = vmatprep.mubr.bf16.mxu0 %v18287_v57  ;;  %v18334_v23 = vcombine.low %v1799_v15, %v18330_v32 }
 0x1b0   : > { %v2874_v41 = vsel %vm2823_vm10, %v2872_v30, %v2873_v16  ;;  %v14151_v16 = vcombine.low %v1752_v60, %v17193_v19  ;;  %v17198_v19 = vld [vmem:[#allocation2 + $0x11c] ss:$0 sps:$4 sm:$0x11]  }
 0x1b2   : > { %v2881_v15 = vrot.slane %v14151_v16, 1  ;;  %v2888_v16 = vrot.slane %v17198_v19, 1 }
 0x1b6   : > { %5810 = vmatmul.mubr.bf16.gmra.mrb[52].mxu0 %v2865_v13  ;;  %v18322_v13 = vld [vmem:[#allocation2 + $0xe8] sm:$0xf] }
 0x1b7   : > { %5817 = vmatprep.mubr.bf16.mxu0 %v18300_v21  ;;  %v18327_v25 = vcombine.low %v1797_v10, %v18322_v13  ;;  %v2879_v10 = vrot.slane %v17192_v12, 1  ;;  %v1754_v12 = vld [vmem:[#allocation2 + $0x114] sm:$0xe] }
 0x1b9   : > { %v2880_v29 = vsel %vm2823_vm10, %v2878_v48, %v2879_v10  ;;  %v1808_v48 = vld [vmem:[#allocation2 + $0x124] sm:$0xf] }
 0x1be   : > { %5818 = vmatmul.mubr.bf16.gmra.mrb[56].mxu0 %v2868_v62  ;;  %v1801_v62 = vld [vmem:[#allocation2 + $0xfc] sm:$0xf] }
 0x1bf   : > { %5825 = vmatprep.mubr.bf16.mxu0 %v18312_v63  ;;  %v18338_v18 = vcombine.low %v1801_v62, %v1802_v35  ;;  %v17195_v62 = vld [vmem:[#allocation2 + $0x10c] sm:$0xf] }
 0x1c0   : > { %v14152_v35 = vcombine.low %v1753_v39, %v17195_v62  ;;  %v17199_v39 = vld [vmem:[#allocation2 + $0x124] sm:$0xf] }
 0x1c2   : > { %v2884_v6 = vrot.slane %v14152_v35, 1  ;;  %v17200_v35 = vld [vmem:[#allocation2 + $0x128] ss:$0 sps:$4 sm:$0x11]  }
 0x1c6   : > { %5826 = vmatmul.mubr.bf16.gmra.mrb[60].mxu0 %v2871_v47  ;;  %v1804_v47 = vld [vmem:[#allocation2 + $0x10c] sm:$0xf] }
 0x1c7   : > { %5833 = vmatprep.mubr.bf16.mxu0 %v18327_v25  ;;  %v18342_v30 = vcombine.low %v1803_v22, %v1804_v47  ;;  %v18350_v22 = vcombine.low %v1807_v3, %v1808_v48  ;;  %v17197_v47 = vld [vmem:[#allocation2 + $0x118] sm:$0xf]  ;;  %v1756_v3 = vld [vmem:[#allocation2 + $0x12c] sm:$0xe] }
 0x1c8   : > { %v14153_v60 = vcombine.low %v1754_v12, %v17197_v47 }
 0x1ce   : > { %5834 = vmatmul.mubr.bf16.gmra.mrb[64].mxu0 %v2874_v41  ;;  %v2882_v41 = vrot.slane %v17194_v36, 1  ;;  %v1810_v36 = vld [vmem:[#allocation2 + $0x130] sm:$0xf] }
 0x1cf   : > { %5841 = vmatprep.mubr.bf16.mxu0 %v18334_v23 }
 0x1d0   : > { %v2883_v45 = vsel %vm2823_vm10, %v2881_v15, %v2882_v41  ;;  %v1809_v15 = vld [vmem:[#allocation2 + $0x12c] sm:$0xf]  ;;  %v1755_v41 = vld [vmem:[#allocation2 + $0x120] sm:$0xe] }
 0x1d1   : > { %v18354_v17 = vcombine.low %v1809_v15, %v1810_v36  ;;  %v1814_v15 = vld [vmem:[#allocation2 + $0x148] sm:$0xf]  ;;  %v1757_v36 = vld [vmem:[#allocation2 + $0x138] sm:$0xe] }
 0x1d6   : > { %5842 = vmatmul.mubr.bf16.gmra.mrb[68].mxu0 %v2877_v33  ;;  %v17196_v33 = vld [vmem:[#allocation2 + $0x110] ss:$0 sps:$4 sm:$0x11]  }
 0x1d7   : > { %5849 = vmatprep.mubr.bf16.mxu0 %v18338_v18  ;;  %v2885_v2 = vrot.slane %v17196_v33, 1  ;;  %v1811_v33 = vld [vmem:[#allocation2 + $0x138] sm:$0xf] }
 0x1d9   : > { %v2886_v10 = vsel %vm2823_vm10, %v2884_v6, %v2885_v2  ;;  %v2891_v6 = vrot.slane %v17200_v35, 1  ;;  %v1812_v2 = vld [vmem:[#allocation2 + $0x13c] sm:$0xf]  ;;  %v17204_v35 = vld [vmem:[#allocation2 + $0x140] ss:$0 sps:$4 sm:$0x11]  }
 0x1da   : > { %v18358_v12 = vcombine.low %v1811_v33, %v1812_v2  ;;  %v1815_v33 = vld [vmem:[#allocation2 + $0x150] sm:$0xf]  ;;  %v1816_v2 = vld [vmem:[#allocation2 + $0x154] sm:$0xf] }
 0x1de   : > { %5850 = vmatmul.mubr.bf16.gmra.mrb[72].mxu0 %v2880_v29  ;;  %v2887_v29 = vrot.slane %v14153_v60, 1 }
 0x1df   : > { %5857 = vmatprep.mubr.bf16.mxu0 %v18342_v30 }
 0x1e0   : > { %v2889_v9 = vsel %vm2823_vm10, %v2887_v29, %v2888_v16  ;;  %v17202_v29 = vld [vmem:[#allocation2 + $0x134] ss:$0 sps:$4 sm:$0x11]   ;;  %v1813_v16 = vld [vmem:[#allocation2 + $0x144] sm:$0xf] }
 0x1e1   : > { %v2894_v19 = vrot.slane %v17202_v29, 1 }
 0x1e6   : > { %5858 = vmatmul.mubr.bf16.gmra.mrb[76].mxu0 %v2883_v45  ;;  %v14154_v45 = vcombine.low %v1755_v41, %v17199_v39  ;;  %v17203_v39 = vld [vmem:[#allocation2 + $0x13c] sm:$0xf] }
 0x1e7   : > { %5865 = vmatprep.mubr.bf16.mxu0 %v18346_v54 }
 0x1e8   : > { %v2890_v62 = vrot.slane %v14154_v45, 1  ;;  %v14156_v45 = vcombine.low %v1757_v36, %v17203_v39  ;;  %v1818_v36 = vld [vmem:[#allocation2 + $0x160] sm:$0xf] }
 0x1ea   : > { %v2892_v48 = vsel %vm2823_vm10, %v2890_v62, %v2891_v6  ;;  %v2896_v62 = vrot.slane %v14156_v45, 1  ;;  %v2897_v6 = vrot.slane %v17204_v35, 1  ;;  %v17207_v35 = vld [vmem:[#allocation2 + $0x154] sm:$0xf] }
 0x1ee   : > { %5866 = vmatmul.mubr.bf16.gmra.mrb[80].mxu0 %v2886_v10  ;;  %v17201_v10 = vld [vmem:[#allocation2 + $0x130] sm:$0xf] }
 0x1ef   : > { %5873 = vmatprep.mubr.bf16.mxu0 %v18350_v22  ;;  %v14155_v47 = vcombine.low %v1756_v3, %v17201_v10  ;;  %v1758_v3 = vld [vmem:[#allocation2 + $0x144] sm:$0xe]  ;;  %v18366_v10 = vcombine.low %v1815_v33, %v1816_v2  ;;  %v1819_v2 = vld [vmem:[#allocation2 + $0x168] sm:$0xf] }
 0x1f1   : > { %v2893_v60 = vrot.slane %v14155_v47, 1  ;;  %v17205_v47 = vld [vmem:[#allocation2 + $0x148] sm:$0xf] }
 0x1f2   : > { %v14157_v29 = vcombine.low %v1758_v3, %v17205_v47  ;;  %v1820_v3 = vld [vmem:[#allocation2 + $0x16c] sm:$0xf] }
 0x1f3   : > { %v2895_v41 = vsel %vm2823_vm10, %v2893_v60, %v2894_v19  ;;  %v17206_v19 = vld [vmem:[#allocation2 + $0x14c] ss:$0 sps:$4 sm:$0x11]  }
 0x1f4   : > { %v2899_v60 = vrot.slane %v14157_v29, 1  ;;  %v18374_v29 = vcombine.low %v1819_v2, %v1820_v3  ;;  %v1823_v3 = vld [vmem:[#allocation2 + $0x180] sm:$0xf] }
 0x1f6   : > { %5874 = vmatmul.mubr.bf16.gmra.mrb[84].mxu0 %v2889_v9  ;;  %v18362_v9 = vcombine.low %v1813_v16, %v1814_v15  ;;  %v2900_v16 = vrot.slane %v17206_v19, 1  ;;  %v1817_v15 = vld [vmem:[#allocation2 + $0x15c] sm:$0xf]  ;;  %21139 = vst [vmem:[#allocation7_spill] sm:$0xff] %v18374_v29  ;;  %v17209_v19 = vld [vmem:[#allocation2 + $0x160] sm:$0xf] }
 0x1f7   : > { %5881 = vmatprep.mubr.bf16.mxu0 %v18354_v17  ;;  %v18370_v45 = vcombine.low %v1817_v15, %v1818_v36  ;;  %v1821_v36 = vld [vmem:[#allocation2 + $0x174] sm:$0xf] }
 0x1f8   : > { %v2901_v39 = vsel %vm2823_vm10, %v2899_v60, %v2900_v16  ;;  %v17210_v16 = vld [vmem:[#allocation2 + $0x164] ss:$0 sps:$4 sm:$0x11]  }
 0x1f9   : > { %21138 = vst [vmem:[#allocation6_spill] sm:$0xff] %v18370_v45  ;;  %v2906_v15 = vrot.slane %v17210_v16, 1  ;;  %v17213_v16 = vld [vmem:[#allocation2 + $0x178] sm:$0xf] }
 0x1fe   : > { %5882 = vmatmul.mubr.bf16.gmra.mrb[88].mxu0 %v2892_v48  ;;  %v2898_v48 = vsel %vm2823_vm10, %v2896_v62, %v2897_v6  ;;  %v17208_v6 = vld [vmem:[#allocation2 + $0x158] ss:$0 sps:$4 sm:$0x11]  }
 0x1ff   : > { %5889 = vmatprep.mubr.bf16.mxu0 %v18358_v12  ;;  %v2903_v33 = vrot.slane %v17208_v6, 1  ;;  %v17211_v6 = vld [vmem:[#allocation2 + $0x16c] sm:$0xf] }
 0x206   : > { %5890 = vmatmul.mubr.bf16.gmra.mrb[92].mxu0 %v2895_v41  ;;  %v1759_v41 = vld [vmem:[#allocation2 + $0x150] sm:$0xe] }
 0x207   : > { %5897 = vmatprep.mubr.bf16.mxu0 %v18362_v9  ;;  %v14158_v1 = vcombine.low %v1759_v41, %v17207_v35  ;;  %v1822_v41 = vld [vmem:[#allocation2 + $0x178] sm:$0xf] }
 0x208   : > { %v18378_v35 = vcombine.low %v1821_v36, %v1822_v41 }
 0x209   : > { %v2902_v62 = vrot.slane %v14158_v1, 1  ;;  %v1761_v1 = vld [vmem:[#allocation2 + $0x168] sm:$0xe] }
 0x20a   : > { %21140 = vst [vmem:[#allocation8_spill] sm:$0xff] %v18378_v35  ;;  %v14160_v38 = vcombine.low %v1761_v1, %v17211_v6  ;;  %v1825_v1 = vld [vmem:[#allocation2 + $0x18c] sm:$0xf]  ;;  %v1763_v6 = vld [vmem:[#allocation2 + $0x180] sm:$0xe] }
 0x20b   : > { %v2904_v47 = vsel %vm2823_vm10, %v2902_v62, %v2903_v33  ;;  %v17212_v33 = vld [vmem:[#allocation2 + $0x170] ss:$0 sps:$4 sm:$0x11]  }
 0x20c   : > { %v2908_v62 = vrot.slane %v14160_v38, 1  ;;  %v2909_v2 = vrot.slane %v17212_v33, 1  ;;  %v17214_v38 = vld [vmem:[#allocation2 + $0x17c] ss:$0 sps:$4 sm:$0x11]  }
 0x20d   : > { %v2912_v41 = vrot.slane %v17214_v38, 1  ;;  %v1828_v38 = vld [vmem:[#allocation2 + $0x19c] sm:$0xf] }
 0x20e   : > { %5898 = vmatmul.mubr.bf16.gmra.mrb[96].mxu0 %v2898_v48  ;;  %v1760_v48 = vld [vmem:[#allocation2 + $0x15c] sm:$0xe] }
 0x20f   : > { %5905 = vmatprep.mubr.bf16.mxu0 %v18366_v10  ;;  %v14159_v43 = vcombine.low %v1760_v48, %v17209_v19  ;;  %v1824_v48 = vld [vmem:[#allocation2 + $0x184] sm:$0xf] }
 0x210   : > { %v18382_v19 = vcombine.low %v1823_v3, %v1824_v48  ;;  %v17215_v3 = vld [vmem:[#allocation2 + $0x184] sm:$0xf] }
 0x211   : > { %v2905_v60 = vrot.slane %v14159_v43, 1  ;;  %v1762_v43 = vld [vmem:[#allocation2 + $0x174] sm:$0xe]  ;;  %v14162_v48 = vcombine.low %v1763_v6, %v17215_v3  ;;  %v17218_v6 = vld [vmem:[#allocation2 + $0x10] sm:$0xf] }
 0x212   : > { %21141 = vst [vmem:[#allocation9_spill] sm:$0xff] %v18382_v19  ;;  %v16643_v3 = vld [vmem:[#allocation2 + $0x14] ss:$0 sps:$4 sm:$0x11]  }
 0x216   : > { %5906 = vmatmul.mubr.bf16.gmra.mrb[100].mxu0 %v2901_v39  ;;  %v2907_v39 = vsel %vm2823_vm10, %v2905_v60, %v2906_v15  ;;  %v448_v60 = vld [vmem:[#allocation2 + $0xc8] sm:$0x1] }
 0x217   : > { %5913 = vmatprep.mubr.bf16.mxu0 %v18370_v45  ;;  %v449_v15 = vsel %vm17499_vm6, 0, %v448_v60  ;;  %v1863_v45 = vld [vmem:[#allocation2 + $0x24] sm:$0xe] }
 0x218   : > { %450 = vst [vmem:[#allocation2 + $0xc8] sm:$0x1] %v449_v15  ;;  %v1827_v15 = vld [vmem:[#allocation2 + $0x198] sm:$0xf] }
 0x21e   : > { %5914 = vmatmul.mubr.bf16.gmra.mrb[104].mxu0 %v2904_v47  ;;  %v2910_v47 = vsel %vm2823_vm10, %v2908_v62, %v2909_v2  ;;  %v1042_v62 = vrot.slane %v18141_v56, 4  ;;  %v1861_v56 = vld [vmem:[#allocation2 + $0xc] sm:$0xe] }
 0x21f   : > { %5921 = vmatprep.mubr.bf16.mxu0 %v18374_v29  ;;  %v14161_v29 = vcombine.low %v1762_v43, %v17213_v16  ;;  %v1522_v43 = vld [vmem:[#allocation2 + $0xc8] sm:$0x1] }
 0x220   : > { %v1523_v60 = vsel %vm17491_vm3, %v1042_v62, %v1522_v43  ;;  %v17219_v43 = vld [vmem:[#allocation2 + $0x194] ss:$0 sps:$4 sm:$0x11]  }
 0x221   : > { %v2911_v36 = vrot.slane %v14161_v29, 1  ;;  %v17216_v29 = vld [vmem:[#allocation2 + $0x188] ss:$0 sps:$4 sm:$0x11]   ;;  %1524 = vst [vmem:[#allocation2 + $0xc8] sm:$0x1] %v1523_v60 }
 0x222   : > { %v2915_v16 = vrot.slane %v17216_v29, 1  ;;  %v2918_v29 = vrot.slane %v17219_v43, 1  ;;  %v3753_v60 = vrot.slane %v16643_v3, 1 }
 0x223   : > { %v2913_v33 = vsel %vm2823_vm10, %v2911_v36, %v2912_v41  ;;  %v18395_v41 = vcombine.low %v1827_v15, %v1828_v38  ;;  %v17220_v38 = vld [vmem:[#allocation2 + $0x1c] sm:$0xf] }
 0x225   : > { %21143 = vst [vmem:[#allocation11_spill] sm:$0xff] %v18395_v41 }
 0x226   : > { %5922 = vmatmul.mubr.bf16.gmra.mrb[108].mxu0 %v2907_v39  ;;  %v1826_v39 = vld [vmem:[#allocation2 + $0x190] sm:$0xf] }
 0x227   : > { %5929 = vmatprep.mubr.bf16.mxu0 %v18378_v35  ;;  %v18389_v2 = vcombine.low %v1825_v1, %v1826_v39  ;;  %v17217_v1 = vld [vmem:[#allocation2 + $0x190] sm:$0xf]  ;;  %v1862_v35 = vld [vmem:[#allocation2 + $0x18] sm:$0xe] }
 0x229   : > { %21142 = vst [vmem:[#allocation10_spill] sm:$0xff] %v18389_v2 }
 0x22e   : > { %5930 = vmatmul.mubr.bf16.gmra.mrb[112].mxu0 %v2910_v47  ;;  %v2914_v47 = vrot.slane %v14162_v48, 1  ;;  %v3243_v48 = vshll.u32 %v18149_v5, 16 }
 0x22f   : > { %5937 = vmatprep.mubr.bf16.mxu0 %v18382_v19  ;;  %v1764_v19 = vld [vmem:[#allocation2 + $0x18c] sm:$0xe] }
 0x230   : > { %v2916_v36 = vsel %vm2823_vm10, %v2914_v47, %v2915_v16  ;;  %v14163_v39 = vcombine.low %v1764_v19, %v17217_v1  ;;  %v3241_v47 = vshrl.u32 %v18149_v5, 16  ;;  %v3245_v16 = vrot.slane %v3243_v48, 1  ;;  %v16645_v1 = vld [vmem:[#allocation2 + $0x20] ss:$0 sps:$4 sm:$0x11]  }
 0x231   : > { %v3248_v19 = vshll.u32 %v16643_v3, 16  ;;  %v16644_v3 = vld [vmem:[%s21074_s1 + $0x180] sm:$0xff]  }
 0x232   : > { %v2917_v62 = vrot.slane %v14163_v39, 1  ;;  %v3246_v39 = vor.u32 %v3245_v16, %v3241_v47  ;;  %v3267_v47 = vshll.u32 %v18167_v31, 16 }
 0x233   : > { %v3250_v43 = vrot.slane %v3248_v19, 1 }
 0x234   : > { %v2919_v15 = vsel %vm2823_vm10, %v2917_v62, %v2918_v29  ;;  %v17221_v62 = vld [vmem:[#allocation2 + $0x28] sm:$0xf] }
 0x235   : > { %v3251_v5 = vsel %vm2310_vm1, %v3246_v39, %v3250_v43  ;;  %v14230_v29 = vcombine.low %v1863_v45, %v17221_v62  ;;  %v16650_v43 = vld [vmem:[%s21074_s1 + $0x190] sm:$0xff]   ;;  %v16653_v62 = vld [vmem:[%s21074_s1 + $0x198] sm:$0xff]  }
 0x236   : > { %5938 = vmatmul.mubr.bf16.gmra.mrb[116].mxu0 %v2913_v33  ;;  %v14228_v33 = vcombine.low %v1861_v56, %v17218_v6  ;;  %v14229_v56 = vcombine.low %v1862_v35, %v17220_v38  ;;  %v3255_v6 = vshll.u32 %v18156_v59, 16  ;;  %v3253_v35 = vshrl.u32 %v18156_v59, 16  ;;  %v16647_v38 = vld [vmem:[%s21074_s1 + $0x188] sm:$0xff]  }
 0x237   : > { %5945 = vmatprep.mubr.bf16.mxu0 %v18389_v2 }
 0x238   : > { %v3752_v2 = vrot.slane %v14228_v33, 1  ;;  %v3755_v33 = vrot.slane %v14229_v56, 1  ;;  %v3257_v48 = vrot.slane %v3255_v6, 1  ;;  %v3758_v56 = vrot.slane %v14230_v29, 1 }
 0x239   : > { %v3269_v6 = vrot.slane %v3267_v47, 1 }
 0x23a   : > { %v3258_v16 = vor.u32 %v3257_v48, %v3253_v35  ;;  %v16648_v35 = vld [vmem:[#allocation2 + $0x38] ss:$0 sps:$4 sm:$0x11]   ;;  %v3279_v48 = vshll.u32 %v18179_v50, 16 }
 0x23e   : > { %5946 = vmatmul.mubr.bf16.gmra.mrb[120].mxu0 %v2916_v36  ;;  %v3754_v36 = vsel %vm2823_vm10, %v3752_v2, %v3753_v60  ;;  %v3260_v2 = vshll.u32 %v16645_v1, 16 }
 0x23f   : > { %5953 = vmatprep.mubr.bf16.mxu0 %v18395_v41  ;;  %v3756_v41 = vrot.slane %v16645_v1, 1  ;;  %v1864_v1 = vld [vmem:[#allocation2 + $0x30] sm:$0xe] }
 0x240   : > { %v3262_v19 = vrot.slane %v3260_v2, 1 }
 0x241   : > { %v3757_v60 = vsel %vm2823_vm10, %v3755_v33, %v3756_v41  ;;  %v3265_v41 = vshrl.u32 %v18167_v31, 16  ;;  %v17222_v33 = vld [vmem:[#allocation2 + $0x34] sm:$0xf] }
 0x242   : > { %v3263_v45 = vsel %vm2310_vm1, %v3258_v16, %v3262_v19  ;;  %v3277_v16 = vshrl.u32 %v18179_v50, 16  ;;  %v3281_v19 = vrot.slane %v3279_v48, 1 }
 0x243   : > { %v3270_v2 = vor.u32 %v3269_v6, %v3265_v41  ;;  %v3291_v41 = vshll.u32 %v18194_v61, 16 }
 0x244   : > { %v3282_v6 = vor.u32 %v3281_v19, %v3277_v16 }
 0x246   : > { %5954 = vmatmul.mubr.bf16.gmra.mrb[124].mxu0 %v2919_v15  ;;  %v16646_v15 = vld [vmem:[#allocation2 + $0x2c] ss:$0 sps:$4 sm:$0x11]  }
 0x247   : > { %5994 = vmatprep.mubr.bf16.mxu0 %v3754_v36  ;;  %v3759_v59 = vrot.slane %v16646_v15, 1  ;;  %v21144_v36 = vmov 0   ;;  %v3272_v39 = vshll.u32 %v16646_v15, 16  ;;  %v1865_v15 = vld [vmem:[#allocation2 + $0x3c] sm:$0xe] }
 0x249   : > { %v3274_v31 = vrot.slane %v3272_v39, 1  ;;  %v16659_v39 = vld [vmem:[%s21074_s1 + $0x1a8] sm:$0xff]  }
 0x24b   : > { %v3275_v47 = vsel %vm2310_vm1, %v3270_v2, %v3274_v31  ;;  %v16662_v2 = vld [vmem:[%s21074_s1 + $0x1b0] sm:$0xff]  }
 0x24e   : > { %5995 = vmatmul.mubr.bf16.vlgmr.msra.gmra.mrb[0].mxu0 %v3251_v5  ;;  %v14231_v5 = vcombine.low %v1864_v1, %v17222_v33 }
 0x24f   : > { %6252 = vmatpush1.bf16.msra.mxu0 %v16644_v3  ;;  %6002 = vmatprep.mubr.bf16.mxu0 %v3757_v60  ;;  %v3760_v3 = vsel %vm2823_vm10, %v3758_v56, %v3759_v59  ;;  %v3762_v60 = vrot.slane %v16648_v35, 1  ;;  %v16656_v56 = vld [vmem:[%s21074_s1 + $0x1a0] sm:$0xff]   ;;  %v14232_v59 = vcombine.low %v1865_v15, %v18183_v8  ;;  %v1866_v8 = vld [vmem:[#allocation2 + $0x48] sm:$0xe] }
 0x250   : > { %6253 = vmatprep.subr.bf16.mxu0 %v21144_v36  ;;  %v3761_v29 = vrot.slane %v14231_v5, 1  ;;  %v14233_v31 = vcombine.low %v1866_v8, %v18197_v0  ;;  %v1867_v0 = vld [vmem:[#allocation2 + $0x54] sm:$0xe] }
 0x252   : > { %v3763_v1 = vsel %vm2823_vm10, %v3761_v29, %v3762_v60  ;;  %v16651_v29 = vld [vmem:[#allocation2 + $0x50] ss:$0 sps:$4 sm:$0x11]   ;;  %v3303_v60 = vshll.u32 %v18209_v4, 16  ;;  %v3767_v16 = vrot.slane %v14233_v31, 1 }
 0x253   : > { %6254 = vmatpush1.bf16.msra.mxu0 %v16647_v38  ;;  %v3284_v38 = vshll.u32 %v16648_v35, 16  ;;  %v3293_v35 = vrot.slane %v3291_v41, 1  ;;  %v3768_v19 = vrot.slane %v16651_v29, 1  ;;  %v14234_v41 = vcombine.low %v1867_v0, %v18213_v11  ;;  %v1868_v11 = vld [vmem:[#allocation2 + $0x60] sm:$0xe]  ;;  %v16674_v31 = vld [vmem:[%s21074_s1 + $0x1d0] sm:$0xff]  }
 0x254   : > { %6255 = vmatprep.subr.bf16.mxu0 %v21144_v36 }
 0x255   : > { %v3286_v50 = vrot.slane %v3284_v38, 1  ;;  %v3770_v8 = vrot.slane %v14234_v41, 1  ;;  %v16677_v41 = vld [vmem:[%s21074_s1 + $0x1d8] sm:$0xff]  }
 0x256   : > { %6003 = vmatmul.mubr.bf16.gmra.mrb[4].mxu0 %v3263_v45  ;;  %v16649_v45 = vld [vmem:[#allocation2 + $0x44] ss:$0 sps:$4 sm:$0x11]  }
 0x257   : > { %6010 = vmatprep.mubr.bf16.mxu0 %v3760_v3  ;;  %6256 = vmatpush1.bf16.msra.mxu0 %v16650_v43  ;;  %v3764_v43 = vrot.slane %v14232_v59, 1  ;;  %v3765_v33 = vrot.slane %v16649_v45, 1  ;;  %v3287_v5 = vsel %vm2310_vm1, %v3282_v6, %v3286_v50  ;;  %v3289_v3 = vshrl.u32 %v18194_v61, 16  ;;  %v16652_v50 = vld [vmem:[#allocation2 + $0x5c] ss:$0 sps:$4 sm:$0x11]  }
 0x258   : > { %6257 = vmatprep.subr.bf16.mxu0 %v21144_v36  ;;  %v3296_v48 = vshll.u32 %v16649_v45, 16  ;;  %v3305_v59 = vrot.slane %v3303_v60, 1  ;;  %v16668_v45 = vld [vmem:[%s21074_s1 + $0x1c0] sm:$0xff]   ;;  %v3769_v6 = vsel %vm2823_vm10, %v3767_v16, %v3768_v19  ;;  %v16654_v60 = vld [vmem:[#allocation2 + $0x68] ss:$0 sps:$4 sm:$0x11]  }
 0x259   : > { %v3294_v15 = vor.u32 %v3293_v35, %v3289_v3  ;;  %v3313_v35 = vshrl.u32 %v18224_v24, 16  ;;  %v3774_v16 = vrot.slane %v16654_v60, 1  ;;  %v1869_v19 = vld [vmem:[#allocation2 + $0x6c] sm:$0xe] }
 0x25a   : > { %v3298_v61 = vrot.slane %v3296_v48, 1 }
 0x25b   : > { %6258 = vmatpush1.bf16.msra.mxu0 %v16653_v62  ;;  %v3766_v62 = vsel %vm2823_vm10, %v3764_v43, %v3765_v33  ;;  %v16671_v33 = vld [vmem:[%s21074_s1 + $0x1c8] sm:$0xff]  }
 0x25c   : > { %6259 = vmatprep.subr.bf16.mxu0 %v21144_v36  ;;  %v3299_v38 = vsel %vm2310_vm1, %v3294_v15, %v3298_v61  ;;  %v3327_v15 = vshll.u32 %v18233_v34, 16 }
 0x25e   : > { %6011 = vmatmul.mubr.bf16.gmra.mrb[8].mxu0 %v3275_v47  ;;  %v16665_v47 = vld [vmem:[%s21074_s1 + $0x1b8] sm:$0xff]  }
 0x25f   : > { %6018 = vmatprep.mubr.bf16.mxu0 %v3763_v1  ;;  %6260 = vmatpush1.bf16.msra.mxu0 %v16656_v56  ;;  %v3301_v56 = vshrl.u32 %v18209_v4, 16  ;;  %v3308_v1 = vshll.u32 %v16651_v29, 16 }
 0x260   : > { %6261 = vmatprep.subr.bf16.mxu0 %v21144_v36 }
 0x261   : > { %v3306_v43 = vor.u32 %v3305_v59, %v3301_v56  ;;  %v3310_v4 = vrot.slane %v3308_v1, 1  ;;  %v3332_v56 = vshll.u32 %v16654_v60, 16  ;;  %v14236_v59 = vcombine.low %v1869_v19, %v18239_v49  ;;  %v1871_v60 = vld [vmem:[#allocation2 + $0x84] sm:$0xe] }
 0x262   : > { %v16680_v19 = vld [vmem:[%s21074_s1 + $0x1e0] sm:$0xff]  }
 0x263   : > { %6262 = vmatpush1.bf16.msra.mxu0 %v16659_v39  ;;  %v3315_v39 = vshll.u32 %v18224_v24, 16  ;;  %v3311_v3 = vsel %vm2310_vm1, %v3306_v43, %v3310_v4  ;;  %v3776_v43 = vrot.slane %v14236_v59, 1 }
 0x264   : > { %6263 = vmatprep.subr.bf16.mxu0 %v21144_v36 }
 0x265   : > { %v3317_v48 = vrot.slane %v3315_v39, 1  ;;  %v3334_v39 = vrot.slane %v3332_v56, 1 }
 0x266   : > { %6019 = vmatmul.mubr.bf16.gmra.mrb[12].mxu0 %v3287_v5  ;;  %v3771_v5 = vrot.slane %v16652_v50, 1 }
 0x267   : > { %6026 = vmatprep.mubr.bf16.mxu0 %v3766_v62  ;;  %6264 = vmatpush1.bf16.msra.mxu0 %v16662_v2  ;;  %v3320_v2 = vshll.u32 %v16652_v50, 16  ;;  %v14235_v62 = vcombine.low %v1868_v11, %v18227_v51  ;;  %v3318_v61 = vor.u32 %v3317_v48, %v3313_v35  ;;  %v3325_v51 = vshrl.u32 %v18233_v34, 16  ;;  %v1870_v34 = vld [vmem:[#allocation2 + $0x78] sm:$0xe] }
 0x268   : > { %6265 = vmatprep.subr.bf16.mxu0 %v21144_v36  ;;  %v3772_v29 = vsel %vm2823_vm10, %v3770_v8, %v3771_v5  ;;  %v14237_v11 = vcombine.low %v1870_v34, %v18247_v55  ;;  %v16657_v35 = vld [vmem:[#allocation2 + $0x80] ss:$0 sps:$4 sm:$0x11]   ;;  %v3351_v48 = vshll.u32 %v18251_v58, 16  ;;  %v14238_v55 = vcombine.low %v1871_v60, %v18257_v52 }
 0x269   : > { %v3322_v24 = vrot.slane %v3320_v2, 1 }
 0x26a   : > { %v3782_v56 = vrot.slane %v14238_v55, 1 }
 0x26b   : > { %6266 = vmatpush1.bf16.msra.mxu0 %v16665_v47  ;;  %v3773_v47 = vrot.slane %v14235_v62, 1  ;;  %v3323_v0 = vsel %vm2310_vm1, %v3318_v61, %v3322_v24  ;;  %v3779_v62 = vrot.slane %v14237_v11, 1  ;;  %v3353_v61 = vrot.slane %v3351_v48, 1  ;;  %v16661_v48 = vld [vmem:[#allocation2 + $0xa4] ss:$0 sps:$4 sm:$0x11]  }
 0x26c   : > { %6267 = vmatprep.subr.bf16.mxu0 %v21144_v36  ;;  %v3356_v24 = vshll.u32 %v16657_v35, 16 }
 0x26d   : > { %v3775_v1 = vsel %vm2823_vm10, %v3773_v47, %v3774_v16  ;;  %v16658_v16 = vld [vmem:[#allocation2 + $0x8c] ss:$0 sps:$4 sm:$0x11]  }
 0x26e   : > { %6027 = vmatmul.mubr.bf16.gmra.mrb[16].mxu0 %v3299_v38  ;;  %v3329_v38 = vrot.slane %v3327_v15, 1  ;;  %v3783_v59 = vrot.slane %v16658_v16, 1 }
 0x26f   : > { %6034 = vmatprep.mubr.bf16.mxu0 %v3769_v6  ;;  %6268 = vmatpush1.bf16.msra.mxu0 %v16668_v45  ;;  %v16655_v45 = vld [vmem:[#allocation2 + $0x74] ss:$0 sps:$4 sm:$0x11]   ;;  %v3339_v6 = vshll.u32 %v18244_v37, 16 }
 0x270   : > { %6269 = vmatprep.subr.bf16.mxu0 %v21144_v36  ;;  %v3330_v50 = vor.u32 %v3329_v38, %v3325_v51  ;;  %v3777_v4 = vrot.slane %v16655_v45, 1  ;;  %v3344_v5 = vshll.u32 %v16655_v45, 16  ;;  %v3358_v38 = vrot.slane %v3356_v24, 1 }
 0x271   : > { %v3341_v8 = vrot.slane %v3339_v6, 1  ;;  %v3392_v24 = vshll.u32 %v16661_v48, 16 }
 0x272   : > { %v3335_v49 = vsel %vm2310_vm1, %v3330_v50, %v3334_v39  ;;  %v3784_v50 = vsel %vm2823_vm10, %v3782_v56, %v3783_v59  ;;  %v16660_v39 = vld [vmem:[#allocation2 + $0x98] ss:$0 sps:$4 sm:$0x11]  }
 0x273   : > { %6270 = vmatpush1.bf16.msra.mxu0 %v16671_v33  ;;  %v3337_v33 = vshrl.u32 %v18244_v37, 16  ;;  %v3349_v37 = vshrl.u32 %v18251_v58, 16  ;;  %v1872_v58 = vld [vmem:[#allocation2 + $0x90] sm:$0xe] }
 0x274   : > { %6271 = vmatprep.subr.bf16.mxu0 %v21144_v36  ;;  %v14239_v6 = vcombine.low %v1872_v58, %v18265_v44  ;;  %v3397_v58 = vshrl.u32 %v18287_v57, 16 }
 0x275   : > { %v3342_v2 = vor.u32 %v3341_v8, %v3337_v33  ;;  %v3354_v51 = vor.u32 %v3353_v61, %v3349_v37  ;;  %v3786_v33 = vrot.slane %v16660_v39, 1  ;;  %v1873_v8 = vld [vmem:[#allocation2 + $0x9c] sm:$0xe]  ;;  %v3385_v37 = vshrl.u32 %v18280_v27, 16 }
 0x276   : > { %6035 = vmatmul.mubr.bf16.gmra.mrb[20].mxu0 %v3311_v3  ;;  %v3778_v3 = vsel %vm2823_vm10, %v3776_v43, %v3777_v4  ;;  %v3375_v43 = vshll.u32 %v18269_v28, 16  ;;  %v14240_v44 = vcombine.low %v1873_v8, %v18275_v40 }
 0x277   : > { %6042 = vmatprep.mubr.bf16.mxu0 %v3772_v29  ;;  %6272 = vmatpush1.bf16.msra.mxu0 %v16674_v31  ;;  %v3346_v31 = vrot.slane %v3344_v5, 1  ;;  %v3780_v29 = vrot.slane %v16657_v35, 1  ;;  %v3359_v52 = vsel %vm2310_vm1, %v3354_v51, %v3358_v38  ;;  %v3394_v38 = vrot.slane %v3392_v24, 1 }
 0x278   : > { %6273 = vmatprep.subr.bf16.mxu0 %v21144_v36  ;;  %v3377_v11 = vrot.slane %v3375_v43, 1  ;;  %v3788_v60 = vrot.slane %v14240_v44, 1  ;;  %v16687_v43 = vld [vmem:[%s21074_s1 + $0x1f0] sm:$0xff]   ;;  %v3421_v24 = vshrl.u32 %v18312_v63, 16 }
 0x279   : > { %v3347_v15 = vsel %vm2310_vm1, %v3342_v2, %v3346_v31  ;;  %v3781_v47 = vsel %vm2823_vm10, %v3779_v62, %v3780_v29  ;;  %v16683_v2 = vld [vmem:[%s21074_s1 + $0x1e8] sm:$0xff]   ;;  %v3387_v31 = vshll.u32 %v18280_v27, 16  ;;  %v1875_v27 = vld [vmem:[#allocation2 + $0xb4] sm:$0xe] }
 0x27b   : > { %6274 = vmatpush1.bf16.msra.mxu0 %v16677_v41  ;;  %v3368_v41 = vshll.u32 %v16658_v16, 16  ;;  %v3389_v61 = vrot.slane %v3387_v31, 1  ;;  %v16663_v16 = vld [vmem:[#allocation2 + $0xb0] ss:$0 sps:$4 sm:$0x11]  }
 0x27c   : > { %6275 = vmatprep.subr.bf16.mxu0 %v21144_v36  ;;  %v3792_v59 = vrot.slane %v16663_v16, 1  ;;  %v16666_v31 = vld [vmem:[#allocation2 + $0xc8] ss:$0 sps:$4 sm:$0x11]  }
 0x27d   : > { %v3370_v34 = vrot.slane %v3368_v41, 1  ;;  %v3390_v51 = vor.u32 %v3389_v61, %v3385_v37  ;;  %v1877_v37 = vld [vmem:[#allocation2 + $0xe4] sm:$0xe] }
 0x27e   : > { %6043 = vmatmul.mubr.bf16.gmra.mrb[24].mxu0 %v3323_v0  ;;  %v3363_v0 = vshll.u32 %v18262_v42, 16 }
 0x27f   : > { %6050 = vmatprep.mubr.bf16.mxu0 %v3775_v1  ;;  %6276 = vmatpush1.bf16.msra.mxu0 %v16680_v19  ;;  %v3361_v1 = vshrl.u32 %v18262_v42, 16  ;;  %v3373_v42 = vshrl.u32 %v18269_v28, 16  ;;  %v1874_v28 = vld [vmem:[#allocation2 + $0xa8] sm:$0xe]  ;;  %v16685_v19 = vld [vmem:[%s21074_s1 + $0x200] sm:$0xff]  }
 0x280   : > { %6277 = vmatprep.subr.bf16.mxu0 %v21144_v36  ;;  %v3365_v45 = vrot.slane %v3363_v0, 1  ;;  %v14241_v55 = vcombine.low %v1874_v28, %v18283_v53  ;;  %v3399_v0 = vshll.u32 %v18287_v57, 16  ;;  %15482 = vmatprep.subr.bf16.mxu1 %v16685_v19  ;;  %v3395_v53 = vsel %vm2310_vm1, %v3390_v51, %v3394_v38  ;;  %v16689_v57 = vld [vmem:[%s21074_s1 + $0x210] sm:$0xff]   ;;  %v16695_v51 = vld [vmem:[%s21074_s1 + $0x228] sm:$0xff]  }
 0x281   : > { %v3378_v62 = vor.u32 %v3377_v11, %v3373_v42  ;;  %15483 = vmatpush3.bf16.msra.mxu1 %v16685_v19  ;;  %v3409_v11 = vshrl.u32 %v18300_v21, 16  ;;  %v3798_v28 = vrot.slane %v16666_v31, 1  ;;  %v3435_v38 = vshll.u32 %v18327_v25, 16 }
 0x282   : > { %v3366_v4 = vor.u32 %v3365_v45, %v3361_v1  ;;  %v3791_v56 = vrot.slane %v14241_v55, 1  ;;  %v3404_v1 = vshll.u32 %v16663_v16, 16  ;;  %v14242_v45 = vcombine.low %v1875_v27, %v18293_v7 }
 0x283   : > { %6278 = vmatpush1.bf16.msra.mxu0 %v16683_v2  ;;  %v3411_v7 = vshll.u32 %v18300_v21, 16  ;;  %v16692_v21 = vld [vmem:[%s21074_s1 + $0x220] sm:$0xff]   ;;  %v14244_v16 = vcombine.low %v1877_v37, %v18322_v13 }
 0x284   : > { %v3371_v5 = vsel %vm2310_vm1, %v3366_v4, %v3370_v34  ;;  %6279 = vmatprep.subr.bf16.mxu0 %v21144_v36  ;;  %v3793_v41 = vsel %vm2823_vm10, %v3791_v56, %v3792_v59  ;;  %v3406_v34 = vrot.slane %v3404_v1, 1  ;;  %v16694_v56 = vld [vmem:[%s21074_s1 + $0x1f8] sm:$0xff]   ;;  %v3437_v1 = vrot.slane %v3435_v38, 1 }
 0x285   : > { %v3800_v27 = vrot.slane %v14244_v16, 1 }
 0x286   : > { %6051 = vmatmul.mubr.bf16.gmra.mrb[28].mxu0 %v3335_v49  ;;  %v3785_v49 = vrot.slane %v14239_v6, 1  ;;  %v16664_v6 = vld [vmem:[#allocation2 + $0xbc] ss:$0 sps:$4 sm:$0x11]  }
 0x287   : > { %6058 = vmatprep.mubr.bf16.mxu0 %v3778_v3  ;;  %v3380_v3 = vshll.u32 %v16660_v39, 16  ;;  %v496_v39 = vld [vmem:[#allocation2 + $0x1a0] sm:$0x1]  ;;  %v3795_v8 = vrot.slane %v16664_v6, 1  ;;  %6280 = vmatpush1.bf16.msra.mxu0 %v16687_v43  ;;  %v3416_v44 = vshll.u32 %v16664_v6, 16 }
 0x288   : > { %v3787_v35 = vsel %vm2823_vm10, %v3785_v49, %v3786_v33  ;;  %v497_v49 = vsel %vm17499_vm6, 0, %v496_v39  ;;  %v3794_v33 = vrot.slane %v14242_v45, 1  ;;  %6281 = vmatprep.subr.bf16.mxu0 %v21144_v36  ;;  %v1895_v39 = vld [vmem:[#allocation2 + $0x1c] sm:$0xf]  ;;  %v1990_v43 = vld [vmem:[#allocation2 + $0x18] sm:$0xe] }
 0x289   : > { %v3382_v29 = vrot.slane %v3380_v3, 1  ;;  %498 = vst [vmem:[#allocation2 + $0x1a0] sm:$0x1] %v497_v49  ;;  %v3413_v3 = vrot.slane %v3411_v7, 1  ;;  %v14324_v49 = vcombine.low %v1990_v43, %v1895_v39 }
 0x28a   : > { %v3796_v2 = vsel %vm2823_vm10, %v3794_v33, %v3795_v8  ;;  %v3447_v33 = vshll.u32 %v18334_v23, 16 }
 0x28b   : > { %v3383_v40 = vsel %vm2310_vm1, %v3378_v62, %v3382_v29  ;;  %v16691_v62 = vld [vmem:[%s21074_s1 + $0x218] sm:$0xff]   ;;  %v3423_v29 = vshll.u32 %v18312_v63, 16  ;;  %v16696_v63 = vld [vmem:[%s21074_s1 + $0x230] sm:$0xff]   ;;  %6282 = vmatpush1.bf16.msra.mxu0 %v16694_v56  ;;  %v16670_v56 = vld [vmem:[#allocation2 + $0x104] ss:$0 sps:$4 sm:$0x11]  }
 0x28c   : > { %v3464_v43 = vshll.u32 %v16670_v56, 16 }
 0x28d   : > { %v3425_v55 = vrot.slane %v3423_v29, 1 }
 0x28e   : > { %6059 = vmatmul.mubr.bf16.gmra.mrb[32].mxu0 %v3347_v15  ;;  %v3789_v15 = vrot.slane %v16661_v48, 1  ;;  %v1314_v48 = vrot.slane %v18307_v26, 4 }
 0x28f   : > { %6066 = vmatprep.mubr.bf16.mxu0 %v3781_v47  ;;  %v3426_v13 = vor.u32 %v3425_v55, %v3421_v24  ;;  %v3449_v55 = vrot.slane %v3447_v33, 1  ;;  %v1898_v33 = vld [vmem:[#allocation2 + $0x30] sm:$0xf] }
 0x290   : > { %v3790_v47 = vsel %vm2823_vm10, %v3788_v60, %v3789_v15  ;;  %v3414_v60 = vor.u32 %v3413_v3, %v3409_v11  ;;  %v1634_v26 = vld [vmem:[#allocation2 + $0x1a0] sm:$0x1]  ;;  %v4680_v3 = vrot.slane %v14324_v49, 1 }
 0x296   : > { %6067 = vmatmul.mubr.bf16.gmra.mrb[36].mxu0 %v3359_v52  ;;  %v3401_v52 = vrot.slane %v3399_v0, 1  ;;  %v16667_v0 = vld [vmem:[#allocation2 + $0xec] ss:$0 sps:$4 sm:$0x11]  }
 0x297   : > { %6074 = vmatprep.mubr.bf16.mxu0 %v3784_v50  ;;  %v16688_v50 = vld [vmem:[%s21074_s1 + $0x208] sm:$0xff]   ;;  %v3440_v45 = vshll.u32 %v16667_v0, 16 }
 0x298   : > { %15484 = vmatprep.subr.bf16.mxu1 %v16688_v50  ;;  %v3402_v4 = vor.u32 %v3401_v52, %v3397_v58  ;;  %v1878_v58 = vld [vmem:[#allocation2 + $0xf0] sm:$0xe]  ;;  %v3433_v52 = vshrl.u32 %v18327_v25, 16  ;;  %v16700_v25 = vld [vmem:[#allocation2 + $0x20] ss:$0 sps:$4 sm:$0x11]  }
 0x299   : > { %15485 = vmatpush3.bf16.msra.mxu1 %v16688_v50  ;;  %v1894_v50 = vld [vmem:[#allocation2 + $0x18] sm:$0xf]  ;;  %v3442_v11 = vrot.slane %v3440_v45, 1  ;;  %v3807_v45 = vrot.slane %v16670_v56, 1 }
 0x29a   : > { %15486 = vmatprep.subr.bf16.mxu1 %v16689_v57  ;;  %v3407_v42 = vsel %vm2310_vm1, %v3402_v4, %v3406_v34  ;;  %v16698_v4 = vld [vmem:[%s21074_s1 + $0x238] sm:$0xff]   ;;  %v18572_v34 = vcombine.low %v1894_v50, %v1895_v39  ;;  %v3438_v8 = vor.u32 %v3437_v1, %v3433_v52  ;;  %v1880_v52 = vld [vmem:[#allocation2 + $0x108] sm:$0xe]  ;;  %v3457_v50 = vshrl.u32 %v18338_v18, 16 }
 0x29c   : > { %v3443_v37 = vsel %vm2310_vm1, %v3438_v8, %v3442_v11  ;;  %v1899_v8 = vld [vmem:[#allocation2 + $0x34] sm:$0xf] }
 0x29d   : > { %15487 = vmatpush3.bf16.msra.mxu1 %v16689_v57  ;;  %v14245_v57 = vcombine.low %v1878_v58, %v18330_v32  ;;  %v4681_v32 = vrot.slane %v16700_v25, 1 }
 0x29e   : > { %6075 = vmatmul.mubr.bf16.gmra.mrb[40].mxu0 %v3371_v5  ;;  %v1876_v5 = vld [vmem:[#allocation2 + $0xc0] sm:$0xe]  ;;  %15488 = vmatprep.subr.bf16.mxu1 %v16691_v62 }
 0x29f   : > { %6082 = vmatprep.mubr.bf16.mxu0 %v3787_v35  ;;  %v14243_v35 = vcombine.low %v1876_v5, %v18305_v46  ;;  %v3418_v46 = vrot.slane %v3416_v44, 1  ;;  %v1897_v5 = vld [vmem:[#allocation2 + $0x28] sm:$0xf]  ;;  %v1896_v44 = vld [vmem:[#allocation2 + $0x24] sm:$0xf] }
 0x2a0   : > { %v18581_v24 = vcombine.low %v1896_v44, %v1897_v5  ;;  %v1901_v44 = vld [vmem:[#allocation2 + $0x40] sm:$0xf] }
 0x2a1   : > { %15489 = vmatpush3.bf16.msra.mxu1 %v16691_v62  ;;  %v3797_v15 = vrot.slane %v14243_v35, 1  ;;  %v3419_v61 = vsel %vm2310_vm1, %v3414_v60, %v3418_v46  ;;  %v4176_v62 = vshll.u32 %v16700_v25, 16  ;;  %v4682_v60 = vsel %vm2823_vm10, %v4680_v3, %v4681_v32  ;;  %v16706_v32 = vld [vmem:[#allocation2 + $0x38] ss:$0 sps:$4 sm:$0x11]  }
 0x2a2   : > { %15490 = vmatprep.subr.bf16.mxu1 %v16692_v21  ;;  %15498 = vmatprep.mubr.bf16.mxu1 %v4682_v60  ;;  %v18597_v3 = vcombine.low %v1898_v33, %v1899_v8  ;;  %v3481_v33 = vshrl.u32 %v18346_v54, 16 }
 0x2a3   : > { %v3799_v19 = vsel %vm2823_vm10, %v3797_v15, %v3798_v28 }
 0x2a5   : > { %15491 = vmatpush3.bf16.msra.mxu1 %v16692_v21  ;;  %v3803_v21 = vrot.slane %v14245_v57, 1  ;;  %v16672_v57 = vld [vmem:[#allocation2 + $0x110] ss:$0 sps:$4 sm:$0x11]  }
 0x2a6   : > { %6083 = vmatmul.mubr.bf16.gmra.mrb[44].mxu0 %v3383_v40  ;;  %v1635_v40 = vsel %vm17491_vm3, %v1314_v48, %v1634_v26  ;;  %15492 = vmatprep.subr.bf16.mxu1 %v16695_v51  ;;  %v16703_v48 = vld [vmem:[#allocation2 + $0x2c] ss:$0 sps:$4 sm:$0x11]   ;;  %v1879_v26 = vld [vmem:[#allocation2 + $0xfc] sm:$0xe] }
 0x2a7   : > { %6090 = vmatprep.mubr.bf16.mxu0 %v3790_v47  ;;  %1636 = vst [vmem:[#allocation2 + $0x1a0] sm:$0x1] %v1635_v40  ;;  %v3428_v47 = vshll.u32 %v16666_v31, 16  ;;  %v4171_v31 = vshll.u32 %v18572_v34, 16  ;;  %v4684_v15 = vrot.slane %v16703_v48, 1  ;;  %v4178_v40 = vrot.slane %v4176_v62, 1 }
 0x2a8   : > { %v3466_v62 = vrot.slane %v3464_v43, 1 }
 0x2a9   : > { %v3430_v59 = vrot.slane %v3428_v47, 1  ;;  %15493 = vmatpush3.bf16.msra.mxu1 %v16695_v51  ;;  %v4173_v28 = vrot.slane %v4171_v31, 1  ;;  %v16709_v31 = vld [vmem:[#allocation2 + $0x44] ss:$0 sps:$4 sm:$0x11]  }
 0x2aa   : > { %15494 = vmatprep.subr.bf16.mxu1 %v16696_v63 }
 0x2ab   : > { %v3431_v6 = vsel %vm2310_vm1, %v3426_v13, %v3430_v59  ;;  %v4183_v59 = vshll.u32 %v18581_v24, 16 }
 0x2ad   : > { %15495 = vmatpush3.bf16.msra.mxu1 %v16696_v63  ;;  %v3459_v63 = vshll.u32 %v18338_v18, 16 }
 0x2ae   : > { %6091 = vmatmul.mubr.bf16.gmra.mrb[48].mxu0 %v3395_v53  ;;  %v3801_v53 = vrot.slane %v16667_v0, 1  ;;  %15496 = vmatprep.subr.bf16.mxu1 %v16698_v4  ;;  %v17223_v0 = vld [vmem:[#allocation2 + $0x100] sm:$0xf] }
 0x2af   : > { %6098 = vmatprep.mubr.bf16.mxu0 %v3793_v41  ;;  %v16669_v41 = vld [vmem:[#allocation2 + $0xf8] ss:$0 sps:$4 sm:$0x11]   ;;  %v14246_v51 = vcombine.low %v1879_v26, %v17223_v0  ;;  %v3461_v39 = vrot.slane %v3459_v63, 1  ;;  %v4690_v26 = vrot.slane %v16709_v31, 1  ;;  %v3469_v63 = vshrl.u32 %v18342_v30, 16 }
 0x2b0   : > { %v3802_v7 = vsel %vm2823_vm10, %v3800_v27, %v3801_v53  ;;  %v3804_v29 = vrot.slane %v16669_v41, 1  ;;  %v3452_v47 = vshll.u32 %v16669_v41, 16  ;;  %v4188_v27 = vshll.u32 %v16703_v48, 16 }
 0x2b1   : > { %15497 = vmatpush3.bf16.msra.mxu1 %v16698_v4  ;;  %v3806_v1 = vrot.slane %v14246_v51, 1  ;;  %v4185_v41 = vrot.slane %v4183_v59, 1  ;;  %v17224_v4 = vld [vmem:[#allocation2 + $0x10c] sm:$0xf]  ;;  %v3462_v48 = vor.u32 %v3461_v39, %v3457_v50  ;;  %v3476_v59 = vshll.u32 %v16672_v57, 16 }
 0x2b2   : > { %11836 = vmatprep.subr.bf16.mxu1 %v21144_v36  ;;  %v3805_v38 = vsel %vm2823_vm10, %v3803_v21, %v3804_v29  ;;  %v3454_v58 = vrot.slane %v3452_v47, 1  ;;  %v14247_v25 = vcombine.low %v1880_v52, %v17224_v4  ;;  %v4687_v29 = vrot.slane %v16706_v32, 1 }
 0x2b3   : > { %v3467_v51 = vsel %vm2310_vm1, %v3462_v48, %v3466_v62  ;;  %v3478_v43 = vrot.slane %v3476_v59, 1  ;;  %v1902_v48 = vld [vmem:[#allocation2 + $0x48] sm:$0xf] }
 0x2b6   : > { %6099 = vmatmul.mubr.bf16.gmra.mrb[52].mxu0 %v3407_v42  ;;  %v1991_v42 = vld [vmem:[#allocation2 + $0x24] sm:$0xe] }
 0x2b7   : > { %6106 = vmatprep.mubr.bf16.mxu0 %v3796_v2  ;;  %v14325_v35 = vcombine.low %v1991_v42, %v1897_v5  ;;  %v4169_v2 = vshrl.u32 %v18572_v34, 16  ;;  %v1992_v5 = vld [vmem:[#allocation2 + $0x30] sm:$0xe]  ;;  %v3808_v42 = vsel %vm2823_vm10, %v3806_v1, %v3807_v45  ;;  %v16673_v1 = vld [vmem:[#allocation2 + $0x11c] ss:$0 sps:$4 sm:$0x11]  }
 0x2b8   : > { %v14326_v18 = vcombine.low %v1992_v5, %v1899_v8  ;;  %v3483_v45 = vshll.u32 %v18346_v54, 16  ;;  %v3813_v4 = vrot.slane %v16673_v1, 1  ;;  %v3488_v5 = vshll.u32 %v16673_v1, 16 }
 0x2b9   : > { %v4683_v46 = vrot.slane %v14325_v35, 1  ;;  %v3471_v35 = vshll.u32 %v18342_v30, 16  ;;  %v4212_v30 = vshll.u32 %v16709_v31, 16  ;;  %v1994_v31 = vld [vmem:[#allocation2 + $0x48] sm:$0xe] }
 0x2ba   : > { %v4686_v21 = vrot.slane %v14326_v18, 1  ;;  %v3485_v8 = vrot.slane %v3483_v45, 1  ;;  %v17226_v18 = vld [vmem:[#allocation2 + $0x124] sm:$0xf] }
 0x2bb   : > { %v4685_v16 = vsel %vm2823_vm10, %v4683_v46, %v4684_v15  ;;  %v1900_v46 = vld [vmem:[#allocation2 + $0x3c] sm:$0xf]  ;;  %v4193_v15 = vshrl.u32 %v18597_v3, 16 }
 0x2bc   : > { %15499 = vmatmul.mubr.bf16.vlgmr.msra.gmra.mrb[0].mxu1 %v4685_v16  ;;  %v1881_v16 = vld [vmem:[#allocation2 + $0x114] sm:$0xe] }
 0x2be   : > { %6107 = vmatmul.mubr.bf16.gmra.mrb[56].mxu0 %v3419_v61  ;;  %v3445_v61 = vshrl.u32 %v18334_v23, 16  ;;  %v4181_v23 = vshrl.u32 %v18581_v24, 16 }
 0x2bf   : > { %6114 = vmatprep.mubr.bf16.mxu0 %v3799_v19  ;;  %v4174_v19 = vor.u32 %v4173_v28, %v4169_v2  ;;  %v1993_v2 = vld [vmem:[#allocation2 + $0x3c] sm:$0xe]  ;;  %v4195_v28 = vshll.u32 %v18597_v3, 16 }
 0x2c0   : > { %v3450_v53 = vor.u32 %v3449_v55, %v3445_v61  ;;  %v14327_v60 = vcombine.low %v1993_v2, %v1901_v44  ;;  %v3810_v61 = vrot.slane %v16672_v57, 1  ;;  %v4688_v55 = vsel %vm2823_vm10, %v4686_v21, %v4687_v29  ;;  %v1882_v57 = vld [vmem:[#allocation2 + $0x120] sm:$0xe]  ;;  %v1903_v2 = vld [vmem:[#allocation2 + $0x4c] sm:$0xf] }
 0x2c1   : > { %v18587_v13 = vsel %vm2310_vm1, %v4174_v19, %v4178_v40  ;;  %v4200_v40 = vshll.u32 %v16706_v32, 16  ;;  %15502 = vmatprep.mubr.bf16.mxu1 %v4688_v55  ;;  %v4197_v19 = vrot.slane %v4195_v28, 1  ;;  %v18621_v29 = vcombine.low %v1902_v48, %v1903_v2  ;;  %v1995_v28 = vld [vmem:[#allocation2 + $0x54] sm:$0xe] }
 0x2c2   : > { %v3455_v49 = vsel %vm2310_vm1, %v3450_v53, %v3454_v58  ;;  %v4689_v47 = vrot.slane %v14327_v60, 1  ;;  %v17225_v53 = vld [vmem:[#allocation2 + $0x118] sm:$0xf]  ;;  %v16712_v60 = vld [vmem:[#allocation2 + $0x50] ss:$0 sps:$4 sm:$0x11]   ;;  %v14328_v54 = vcombine.low %v1994_v31, %v1903_v2 }
 0x2c3   : > { %v4202_v0 = vrot.slane %v4200_v40, 1  ;;  %v14248_v58 = vcombine.low %v1881_v16, %v17225_v53  ;;  %v16715_v40 = vld [vmem:[#allocation2 + $0x5c] ss:$0 sps:$4 sm:$0x11]   ;;  %v4693_v55 = vrot.slane %v16712_v60, 1  ;;  %v3505_v31 = vshrl.u32 %v18354_v17, 16 }
 0x2c4   : > { %v4691_v56 = vsel %vm2823_vm10, %v4689_v47, %v4690_v26  ;;  %v3495_v26 = vshll.u32 %v18350_v22, 16  ;;  %v1904_v16 = vld [vmem:[#allocation2 + $0x54] sm:$0xf]  ;;  %v1883_v53 = vld [vmem:[#allocation2 + $0x12c] sm:$0xe] }
 0x2c5   : > { %15503 = vmatmul.mubr.bf16.gmra.mrb[4].mxu1 %v4691_v56  ;;  %v4224_v56 = vshll.u32 %v16712_v60, 16 }
 0x2c6   : > { %6115 = vmatmul.mubr.bf16.gmra.mrb[60].mxu0 %v3431_v6  ;;  %v4190_v6 = vrot.slane %v4188_v27, 1  ;;  %v4198_v27 = vor.u32 %v4197_v19, %v4193_v15  ;;  %v3486_v15 = vor.u32 %v3485_v8, %v3481_v33  ;;  %v4696_v19 = vrot.slane %v16715_v40, 1 }
 0x2c7   : > { %6122 = vmatprep.mubr.bf16.mxu0 %v3802_v7  ;;  %v4186_v7 = vor.u32 %v4185_v41, %v4181_v23  ;;  %v3473_v23 = vrot.slane %v3471_v35, 1 }
 0x2c8   : > { %v18611_v41 = vsel %vm2310_vm1, %v4198_v27, %v4202_v0  ;;  %v4217_v0 = vshrl.u32 %v18621_v29, 16 }
 0x2c9   : > { %v18595_v11 = vsel %vm2310_vm1, %v4186_v7, %v4190_v6  ;;  %v3474_v39 = vor.u32 %v3473_v23, %v3469_v63  ;;  %v3812_v7 = vrot.slane %v14248_v58, 1 }
 0x2cb   : > { %v3479_v35 = vsel %vm2310_vm1, %v3474_v39, %v3478_v43  ;;  %v3814_v62 = vsel %vm2823_vm10, %v3812_v7, %v3813_v4 }
 0x2ce   : > { %6123 = vmatmul.mubr.bf16.gmra.mrb[64].mxu0 %v3443_v37  ;;  %v3809_v37 = vrot.slane %v14247_v25, 1 }
 0x2cf   : > { %6130 = vmatprep.mubr.bf16.mxu0 %v3805_v38  ;;  %v18604_v38 = vcombine.low %v1900_v46, %v1901_v44  ;;  %v14249_v44 = vcombine.low %v1882_v57, %v17226_v18  ;;  %v1905_v46 = vld [vmem:[#allocation2 + $0x58] sm:$0xf]  ;;  %v17227_v57 = vld [vmem:[#allocation2 + $0x130] sm:$0xf] }
 0x2d0   : > { %v3811_v52 = vsel %vm2823_vm10, %v3809_v37, %v3810_v61  ;;  %v3490_v37 = vrot.slane %v3488_v5, 1  ;;  %v4692_v61 = vrot.slane %v14328_v54, 1  ;;  %v14329_v47 = vcombine.low %v1995_v28, %v1905_v46  ;;  %v1884_v18 = vld [vmem:[#allocation2 + $0x138] sm:$0xe] }
 0x2d1   : > { %v4205_v6 = vshrl.u32 %v18604_v38, 16  ;;  %v4207_v50 = vshll.u32 %v18604_v38, 16  ;;  %v3815_v63 = vrot.slane %v14249_v44, 1  ;;  %v18628_v45 = vcombine.low %v1904_v16, %v1905_v46  ;;  %v16678_v54 = vld [vmem:[#allocation2 + $0x140] ss:$0 sps:$4 sm:$0x11]  }
 0x2d2   : > { %v4694_v59 = vsel %vm2823_vm10, %v4692_v61, %v4693_v55  ;;  %v4695_v27 = vrot.slane %v14329_v47, 1  ;;  %v3491_v1 = vsel %vm2310_vm1, %v3486_v15, %v3490_v37  ;;  %v14250_v7 = vcombine.low %v1883_v53, %v17227_v57  ;;  %v1906_v37 = vld [vmem:[#allocation2 + $0x60] sm:$0xf] }
 0x2d3   : > { %v4209_v25 = vrot.slane %v4207_v50, 1  ;;  %15506 = vmatprep.mubr.bf16.mxu1 %v4694_v59  ;;  %v3493_v50 = vshrl.u32 %v18350_v22, 16  ;;  %v4229_v8 = vshrl.u32 %v18628_v45, 16  ;;  %v4231_v5 = vshll.u32 %v18628_v45, 16  ;;  %v1996_v61 = vld [vmem:[#allocation2 + $0x60] sm:$0xe] }
 0x2d4   : > { %v4236_v22 = vshll.u32 %v16715_v40, 16  ;;  %v3818_v44 = vrot.slane %v14250_v7, 1  ;;  %v1907_v40 = vld [vmem:[#allocation2 + $0x64] sm:$0xf] }
 0x2d5   : > { %v4210_v32 = vor.u32 %v4209_v25, %v4205_v6  ;;  %v4697_v6 = vsel %vm2823_vm10, %v4695_v27, %v4696_v19  ;;  %v16676_v25 = vld [vmem:[#allocation2 + $0x134] ss:$0 sps:$4 sm:$0x11]   ;;  %v4233_v48 = vrot.slane %v4231_v5, 1  ;;  %v18645_v16 = vcombine.low %v1906_v37, %v1907_v40 }
 0x2d6   : > { %6131 = vmatmul.mubr.bf16.gmra.mrb[68].mxu0 %v3455_v49  ;;  %v4214_v49 = vrot.slane %v4212_v30, 1  ;;  %v3497_v30 = vrot.slane %v3495_v26, 1  ;;  %15507 = vmatmul.mubr.bf16.gmra.mrb[8].mxu1 %v4697_v6  ;;  %v4238_v2 = vrot.slane %v4236_v22, 1  ;;  %v3512_v60 = vshll.u32 %v16676_v25, 16  ;;  %v17228_v26 = vld [vmem:[#allocation2 + $0x13c] sm:$0xf] }
 0x2d7   : > { %6138 = vmatprep.mubr.bf16.mxu0 %v3808_v42  ;;  %v16675_v42 = vld [vmem:[#allocation2 + $0x128] ss:$0 sps:$4 sm:$0x11]   ;;  %v4234_v46 = vor.u32 %v4233_v48, %v4229_v8  ;;  %v14251_v15 = vcombine.low %v1884_v18, %v17228_v26  ;;  %v4241_v6 = vshrl.u32 %v18645_v16, 16  ;;  %v3524_v18 = vshll.u32 %v16678_v54, 16 }
 0x2d8   : > { %v18619_v21 = vsel %vm2310_vm1, %v4210_v32, %v4214_v49  ;;  %v3816_v23 = vrot.slane %v16675_v42, 1  ;;  %v3500_v39 = vshll.u32 %v16675_v42, 16  ;;  %v3507_v49 = vshll.u32 %v18354_v17, 16  ;;  %v16718_v19 = vld [vmem:[#allocation2 + $0x68] ss:$0 sps:$4 sm:$0x11]  }
 0x2d9   : > { %v3498_v42 = vor.u32 %v3497_v30, %v3493_v50  ;;  %v18643_v47 = vsel %vm2310_vm1, %v4234_v46, %v4238_v2  ;;  %v14330_v17 = vcombine.low %v1996_v61, %v1907_v40  ;;  %v3514_v59 = vrot.slane %v3512_v60, 1 }
 0x2da   : > { %v3817_v4 = vsel %vm2823_vm10, %v3815_v63, %v3816_v23  ;;  %v3502_v32 = vrot.slane %v3500_v39, 1  ;;  %v1997_v63 = vld [vmem:[#allocation2 + $0x6c] sm:$0xe]  ;;  %v16721_v23 = vld [vmem:[#allocation2 + $0x74] ss:$0 sps:$4 sm:$0x11]  }
 0x2db   : > { %v4698_v27 = vrot.slane %v14330_v17, 1  ;;  %v4699_v53 = vrot.slane %v16718_v19, 1  ;;  %v4243_v50 = vshll.u32 %v18645_v16, 16  ;;  %v4248_v30 = vshll.u32 %v16718_v19, 16 }
 0x2dc   : > { %v3503_v28 = vsel %vm2310_vm1, %v3498_v42, %v3502_v32  ;;  %v3821_v39 = vrot.slane %v14251_v15, 1  ;;  %v3517_v42 = vshrl.u32 %v18358_v12, 16  ;;  %v3526_v15 = vrot.slane %v3524_v18, 1 }
 0x2dd   : > { %v4700_v57 = vsel %vm2823_vm10, %v4698_v27, %v4699_v53  ;;  %v3529_v19 = vshrl.u32 %v18362_v9, 16  ;;  %v1910_v53 = vld [vmem:[#allocation2 + $0x78] sm:$0xf] }
 0x2de   : > { %6139 = vmatmul.mubr.bf16.gmra.mrb[72].mxu0 %v3467_v51  ;;  %v4219_v51 = vshll.u32 %v18621_v29, 16  ;;  %15510 = vmatprep.mubr.bf16.mxu1 %v4700_v57  ;;  %v1999_v57 = vld [vmem:[#allocation2 + $0x84] sm:$0xe] }
 0x2df   : > { %6146 = vmatprep.mubr.bf16.mxu0 %v3811_v52  ;;  %v4226_v52 = vrot.slane %v4224_v56, 1 }
 0x2e0   : > { %v4221_v58 = vrot.slane %v4219_v51, 1  ;;  %v3519_v51 = vshll.u32 %v18358_v12, 16  ;;  %v4260_v12 = vshll.u32 %v16721_v23, 16 }
 0x2e2   : > { %v4222_v43 = vor.u32 %v4221_v58, %v4217_v0  ;;  %v1909_v0 = vld [vmem:[#allocation2 + $0x70] sm:$0xf]  ;;  %v3521_v32 = vrot.slane %v3519_v51, 1  ;;  %v16681_v51 = vld [vmem:[#allocation2 + $0x158] ss:$0 sps:$4 sm:$0x11]  }
 0x2e3   : > { %v14331_v58 = vcombine.low %v1997_v63, %v1909_v0  ;;  %v17230_v63 = vld [vmem:[#allocation2 + $0x154] sm:$0xf] }
 0x2e4   : > { %v18635_v33 = vsel %vm2310_vm1, %v4222_v43, %v4226_v52  ;;  %v1908_v52 = vld [vmem:[#allocation2 + $0x6c] sm:$0xf]  ;;  %v3822_v43 = vrot.slane %v16678_v54, 1  ;;  %v3522_v54 = vor.u32 %v3521_v32, %v3517_v42 }
 0x2e5   : > { %v4701_v7 = vrot.slane %v14331_v58, 1  ;;  %v18652_v5 = vcombine.low %v1908_v52, %v1909_v0  ;;  %v1998_v58 = vld [vmem:[#allocation2 + $0x78] sm:$0xe] }
 0x2e6   : > { %6147 = vmatmul.mubr.bf16.gmra.mrb[76].mxu0 %v3479_v35  ;;  %v3819_v35 = vrot.slane %v16676_v25, 1  ;;  %v4245_v25 = vrot.slane %v4243_v50, 1  ;;  %v3823_v2 = vsel %vm2823_vm10, %v3821_v39, %v3822_v43  ;;  %v3527_v27 = vsel %vm2310_vm1, %v3522_v54, %v3526_v15  ;;  %v16724_v50 = vld [vmem:[#allocation2 + $0x80] ss:$0 sps:$4 sm:$0x11]  }
 0x2e7   : > { %6154 = vmatprep.mubr.bf16.mxu0 %v3814_v62  ;;  %v3509_v62 = vrot.slane %v3507_v49, 1  ;;  %v4250_v49 = vrot.slane %v4248_v30, 1  ;;  %v4253_v46 = vshrl.u32 %v18652_v5, 16  ;;  %v4255_v26 = vshll.u32 %v18652_v5, 16  ;;  %v1913_v30 = vld [vmem:[#allocation2 + $0x88] sm:$0xf] }
 0x2e8   : > { %v3820_v55 = vsel %vm2823_vm10, %v3818_v44, %v3819_v35  ;;  %v4246_v44 = vor.u32 %v4245_v25, %v4241_v6  ;;  %v17229_v35 = vld [vmem:[#allocation2 + $0x148] sm:$0xf]  ;;  %v3543_v39 = vshll.u32 %v18366_v10, 16 }
 0x2e9   : > { %v3510_v56 = vor.u32 %v3509_v62, %v3505_v31  ;;  %v16679_v31 = vld [vmem:[#allocation2 + $0x14c] ss:$0 sps:$4 sm:$0x11]   ;;  %v3531_v62 = vshll.u32 %v18362_v9, 16  ;;  %v4257_v61 = vrot.slane %v4255_v26, 1 }
 0x2ea   : > { %v18659_v60 = vsel %vm2310_vm1, %v4246_v44, %v4250_v49  ;;  %v3825_v40 = vrot.slane %v16679_v31, 1  ;;  %v3536_v0 = vshll.u32 %v16679_v31, 16  ;;  %v4705_v49 = vrot.slane %v16724_v50, 1 }
 0x2eb   : > { %v3515_v8 = vsel %vm2310_vm1, %v3510_v56, %v3514_v59  ;;  %v3533_v17 = vrot.slane %v3531_v62, 1  ;;  %v4258_v56 = vor.u32 %v4257_v61, %v4253_v46  ;;  %v4272_v44 = vshll.u32 %v16724_v50, 16  ;;  %v1887_v62 = vld [vmem:[#allocation2 + $0x15c] sm:$0xe] }
 0x2ed   : > { %v3534_v43 = vor.u32 %v3533_v17, %v3529_v19  ;;  %v4274_v26 = vrot.slane %v4272_v44, 1 }
 0x2ee   : > { %6155 = vmatmul.mubr.bf16.gmra.mrb[80].mxu0 %v3491_v1  ;;  %v4702_v1 = vrot.slane %v16721_v23, 1  ;;  %v1911_v23 = vld [vmem:[#allocation2 + $0x7c] sm:$0xf] }
 0x2ef   : > { %6162 = vmatprep.mubr.bf16.mxu0 %v3817_v4  ;;  %v1885_v4 = vld [vmem:[#allocation2 + $0x144] sm:$0xe]  ;;  %v18669_v6 = vcombine.low %v1910_v53, %v1911_v23  ;;  %v14332_v9 = vcombine.low %v1998_v58, %v1911_v23  ;;  %v1888_v58 = vld [vmem:[#allocation2 + $0x168] sm:$0xe] }
 0x2f0   : > { %v4703_v22 = vsel %vm2823_vm10, %v4701_v7, %v4702_v1  ;;  %v14252_v48 = vcombine.low %v1885_v4, %v17229_v35  ;;  %v16727_v7 = vld [vmem:[#allocation2 + $0x8c] ss:$0 sps:$4 sm:$0x11]   ;;  %v3538_v4 = vrot.slane %v3536_v0, 1 }
 0x2f1   : > { %15511 = vmatmul.mubr.bf16.gmra.mrb[12].mxu1 %v4703_v22  ;;  %v4704_v25 = vrot.slane %v14332_v9, 1  ;;  %v1912_v22 = vld [vmem:[#allocation2 + $0x84] sm:$0xf]  ;;  %v4708_v42 = vrot.slane %v16727_v7, 1  ;;  %v4265_v32 = vshrl.u32 %v18669_v6, 16  ;;  %v4267_v18 = vshll.u32 %v18669_v6, 16 }
 0x2f2   : > { %v3824_v37 = vrot.slane %v14252_v48, 1  ;;  %v3828_v48 = vrot.slane %v16681_v51, 1  ;;  %v18676_v54 = vcombine.low %v1912_v22, %v1913_v30  ;;  %v16682_v0 = vld [vmem:[#allocation2 + $0x164] ss:$0 sps:$4 sm:$0x11]  }
 0x2f3   : > { %v4269_v46 = vrot.slane %v4267_v18, 1  ;;  %v3831_v50 = vrot.slane %v16682_v0, 1 }
 0x2f4   : > { %v3826_v52 = vsel %vm2823_vm10, %v3824_v37, %v3825_v40  ;;  %v3545_v37 = vrot.slane %v3543_v39, 1  ;;  %v3548_v40 = vshll.u32 %v16681_v51, 16  ;;  %v4279_v53 = vshll.u32 %v18676_v54, 16 }
 0x2f5   : > { %v4270_v61 = vor.u32 %v4269_v46, %v4265_v32  ;;  %v2000_v32 = vld [vmem:[#allocation2 + $0x90] sm:$0xe] }
 0x2f6   : > { %6163 = vmatmul.mubr.bf16.gmra.mrb[84].mxu0 %v3503_v28  ;;  %v1886_v28 = vld [vmem:[#allocation2 + $0x150] sm:$0xe]  ;;  %v3550_v23 = vrot.slane %v3548_v40, 1  ;;  %v4281_v9 = vrot.slane %v4279_v53, 1 }
 0x2f7   : > { %6170 = vmatprep.mubr.bf16.mxu0 %v3820_v55  ;;  %v4262_v55 = vrot.slane %v4260_v12, 1  ;;  %v14253_v59 = vcombine.low %v1886_v28, %v17230_v63  ;;  %v3539_v12 = vsel %vm2310_vm1, %v3534_v43, %v3538_v4  ;;  %v3541_v28 = vshrl.u32 %v18366_v10, 16  ;;  %v16684_v4 = vld [vmem:[#allocation2 + $0x170] ss:$0 sps:$4 sm:$0x11]  }
 0x2f8   : > { %v4284_v10 = vshll.u32 %v16727_v7, 16  ;;  %v1915_v7 = vld [vmem:[#allocation2 + $0x94] sm:$0xf] }
 0x2f9   : > { %v18667_v1 = vsel %vm2310_vm1, %v4258_v56, %v4262_v55  ;;  %v3827_v35 = vrot.slane %v14253_v59, 1  ;;  %v17231_v55 = vld [vmem:[#allocation2 + $0x160] sm:$0xf]  ;;  %v21145_v56 = vld [vmem:[#allocation6_spill] sm:$0xff]  ;;  %v18683_v59 = vsel %vm2310_vm1, %v4270_v61, %v4274_v26  ;;  %v3546_v51 = vor.u32 %v3545_v37, %v3541_v28 }
 0x2fa   : > { %v14254_v19 = vcombine.low %v1887_v62, %v17231_v55  ;;  %v3555_v63 = vshll.u32 %v21145_v56, 16  ;;  %v3553_v39 = vshrl.u32 %v21145_v56, 16  ;;  %v21146_v62 = vld [vmem:[#allocation7_spill] sm:$0xff] }
 0x2fb   : > { %v3829_v17 = vsel %vm2823_vm10, %v3827_v35, %v3828_v48  ;;  %v3551_v22 = vsel %vm2310_vm1, %v3546_v51, %v3550_v23  ;;  %v16730_v48 = vld [vmem:[#allocation2 + $0x98] ss:$0 sps:$4 sm:$0x11]   ;;  %v3567_v46 = vshll.u32 %v21146_v62, 16  ;;  %v1916_v55 = vld [vmem:[#allocation2 + $0x9c] sm:$0xf] }
 0x2fc   : > { %v3557_v43 = vrot.slane %v3555_v63, 1  ;;  %v4711_v40 = vrot.slane %v16730_v48, 1  ;;  %v4296_v56 = vshll.u32 %v16730_v48, 16  ;;  %v1889_v51 = vld [vmem:[#allocation2 + $0x174] sm:$0xe] }
 0x2fe   : > { %6171 = vmatmul.mubr.bf16.gmra.mrb[88].mxu0 %v3515_v8  ;;  %v14333_v8 = vcombine.low %v1999_v57, %v1913_v30  ;;  %v4286_v30 = vrot.slane %v4284_v10, 1  ;;  %v3560_v57 = vshll.u32 %v16682_v0, 16  ;;  %v3558_v26 = vor.u32 %v3557_v43, %v3553_v39 }
 0x2ff   : > { %6178 = vmatprep.mubr.bf16.mxu0 %v3823_v2  ;;  %v4706_v2 = vsel %vm2823_vm10, %v4704_v25, %v4705_v49  ;;  %v17232_v49 = vld [vmem:[#allocation2 + $0x16c] sm:$0xf]  ;;  %v3569_v39 = vrot.slane %v3567_v46, 1  ;;  %v3572_v43 = vshll.u32 %v16684_v4, 16 }
 0x300   : > { %v4707_v31 = vrot.slane %v14333_v8, 1  ;;  %15514 = vmatprep.mubr.bf16.mxu1 %v4706_v2  ;;  %v14255_v8 = vcombine.low %v1888_v58, %v17232_v49  ;;  %v14334_v2 = vcombine.low %v2000_v32, %v1915_v7  ;;  %v3562_v28 = vrot.slane %v3560_v57, 1 }
 0x301   : > { %v4298_v58 = vrot.slane %v4296_v56, 1 }
 0x302   : > { %v4709_v15 = vsel %vm2823_vm10, %v4707_v31, %v4708_v42  ;;  %v1914_v42 = vld [vmem:[#allocation2 + $0x90] sm:$0xf]  ;;  %v1917_v31 = vld [vmem:[#allocation2 + $0xa0] sm:$0xf]  ;;  %v4710_v37 = vrot.slane %v14334_v2, 1  ;;  %v3833_v63 = vrot.slane %v14255_v8, 1 }
 0x303   : > { %15515 = vmatmul.mubr.bf16.gmra.mrb[16].mxu1 %v4709_v15  ;;  %v18693_v35 = vcombine.low %v1914_v42, %v1915_v7  ;;  %v16733_v15 = vld [vmem:[#allocation2 + $0xa4] ss:$0 sps:$4 sm:$0x11]  }
 0x304   : > { %v4712_v53 = vsel %vm2823_vm10, %v4710_v37, %v4711_v40  ;;  %v21147_v42 = vld [vmem:[#allocation8_spill] sm:$0xff]  ;;  %v4308_v2 = vshll.u32 %v16733_v15, 16 }
 0x305   : > { %v4291_v0 = vshll.u32 %v18693_v35, 16  ;;  %15518 = vmatprep.mubr.bf16.mxu1 %v4712_v53  ;;  %v3579_v7 = vshll.u32 %v21147_v42, 16  ;;  %v3577_v37 = vshrl.u32 %v21147_v42, 16  ;;  %v1920_v42 = vld [vmem:[#allocation2 + $0xb4] sm:$0xf] }
 0x306   : > { %6179 = vmatmul.mubr.bf16.gmra.mrb[92].mxu0 %v3527_v27  ;;  %v4277_v27 = vshrl.u32 %v18676_v54, 16 }
 0x307   : > { %6186 = vmatprep.mubr.bf16.mxu0 %v3826_v52  ;;  %v3830_v52 = vrot.slane %v14254_v19, 1  ;;  %v4714_v19 = vrot.slane %v16733_v15, 1  ;;  %v4293_v23 = vrot.slane %v4291_v0, 1  ;;  %v3581_v40 = vrot.slane %v3579_v7, 1  ;;  %v1919_v15 = vld [vmem:[#allocation2 + $0xac] sm:$0xf] }
 0x308   : > { %v4282_v25 = vor.u32 %v4281_v9, %v4277_v27  ;;  %v3834_v27 = vrot.slane %v16684_v4, 1 }
 0x309   : > { %v3832_v18 = vsel %vm2823_vm10, %v3830_v52, %v3831_v50  ;;  %v3563_v52 = vsel %vm2310_vm1, %v3558_v26, %v3562_v28  ;;  %v18700_v50 = vcombine.low %v1916_v55, %v1917_v31  ;;  %v4310_v28 = vrot.slane %v4308_v2, 1  ;;  %v16690_v55 = vld [vmem:[#allocation2 + $0x188] ss:$0 sps:$4 sm:$0x11]  }
 0x30a   : > { %v18691_v44 = vsel %vm2310_vm1, %v4282_v25, %v4286_v30  ;;  %v3565_v30 = vshrl.u32 %v21146_v62, 16  ;;  %v17233_v25 = vld [vmem:[#allocation2 + $0x178] sm:$0xf]  ;;  %v3835_v8 = vsel %vm2823_vm10, %v3833_v63, %v3834_v27  ;;  %v1890_v62 = vld [vmem:[#allocation2 + $0x180] sm:$0xe] }
 0x30b   : > { %v14256_v49 = vcombine.low %v1889_v51, %v17233_v25  ;;  %v4303_v48 = vshll.u32 %v18700_v50, 16  ;;  %v1918_v63 = vld [vmem:[#allocation2 + $0xa8] sm:$0xf] }
 0x30c   : > { %v3570_v4 = vor.u32 %v3569_v39, %v3565_v30  ;;  %v2002_v27 = vld [vmem:[#allocation2 + $0xa8] sm:$0xe]  ;;  %v18717_v51 = vcombine.low %v1918_v63, %v1919_v15  ;;  %v3582_v39 = vor.u32 %v3581_v40, %v3577_v37  ;;  %v17235_v63 = vld [vmem:[#allocation2 + $0x190] sm:$0xf] }
 0x30d   : > { %v3836_v46 = vrot.slane %v14256_v49, 1 }
 0x30e   : > { %6187 = vmatmul.mubr.bf16.gmra.mrb[96].mxu0 %v3539_v12  ;;  %v2001_v12 = vld [vmem:[#allocation2 + $0x9c] sm:$0xe] }
 0x30f   : > { %6194 = vmatprep.mubr.bf16.mxu0 %v3829_v17  ;;  %v14335_v61 = vcombine.low %v2001_v12, %v1917_v31  ;;  %v4289_v17 = vshrl.u32 %v18693_v35, 16  ;;  %v3574_v31 = vrot.slane %v3572_v43, 1  ;;  %v4305_v12 = vrot.slane %v4303_v48, 1  ;;  %v2003_v43 = vld [vmem:[#allocation2 + $0xb4] sm:$0xe] }
 0x310   : > { %v4315_v48 = vshll.u32 %v18717_v51, 16 }
 0x311   : > { %v4713_v10 = vrot.slane %v14335_v61, 1  ;;  %v4294_v57 = vor.u32 %v4293_v23, %v4289_v17  ;;  %v17234_v17 = vld [vmem:[#allocation2 + $0x184] sm:$0xf]  ;;  %v3575_v56 = vsel %vm2310_vm1, %v3570_v4, %v3574_v31  ;;  %v16736_v23 = vld [vmem:[#allocation2 + $0xb0] ss:$0 sps:$4 sm:$0x11]  }
 0x312   : > { %v14257_v0 = vcombine.low %v1890_v62, %v17234_v17  ;;  %v4320_v2 = vshll.u32 %v16736_v23, 16  ;;  %v3840_v31 = vrot.slane %v16690_v55, 1 }
 0x313   : > { %v4715_v9 = vsel %vm2823_vm10, %v4713_v10, %v4714_v19  ;;  %v18707_v32 = vsel %vm2310_vm1, %v4294_v57, %v4298_v58  ;;  %v14336_v58 = vcombine.low %v2002_v27, %v1919_v15  ;;  %v16739_v57 = vld [vmem:[#allocation2 + $0xbc] ss:$0 sps:$4 sm:$0x11]  }
 0x314   : > { %15519 = vmatmul.mubr.bf16.gmra.mrb[20].mxu1 %v4715_v9  ;;  %v21148_v9 = vld [vmem:[#allocation9_spill] sm:$0xff]  ;;  %v4720_v7 = vrot.slane %v16739_v57, 1  ;;  %v3839_v4 = vrot.slane %v14257_v0, 1 }
 0x315   : > { %v3591_v30 = vshll.u32 %v21148_v9, 16  ;;  %v4716_v49 = vrot.slane %v14336_v58, 1 }
 0x316   : > { %6195 = vmatmul.mubr.bf16.gmra.mrb[100].mxu0 %v3551_v22  ;;  %v16686_v22 = vld [vmem:[#allocation2 + $0x17c] ss:$0 sps:$4 sm:$0x11]   ;;  %v3841_v27 = vsel %vm2823_vm10, %v3839_v4, %v3840_v31 }
 0x317   : > { %6202 = vmatprep.mubr.bf16.mxu0 %v3832_v18  ;;  %v4301_v18 = vshrl.u32 %v18700_v50, 16  ;;  %v3837_v26 = vrot.slane %v16686_v22, 1  ;;  %v3584_v61 = vshll.u32 %v16686_v22, 16  ;;  %v3593_v17 = vrot.slane %v3591_v30, 1  ;;  %v17236_v31 = vld [vmem:[#allocation2 + $0x19c] sm:$0xf] }
 0x319   : > { %v4306_v19 = vor.u32 %v4305_v12, %v4301_v18  ;;  %v3838_v53 = vsel %vm2823_vm10, %v3836_v46, %v3837_v26  ;;  %v3586_v25 = vrot.slane %v3584_v61, 1  ;;  %v4313_v18 = vshrl.u32 %v18717_v51, 16  ;;  %v1891_v26 = vld [vmem:[#allocation2 + $0x18c] sm:$0xe] }
 0x31a   : > { %v4317_v12 = vrot.slane %v4315_v48, 1  ;;  %v14258_v15 = vcombine.low %v1891_v26, %v17235_v63  ;;  %v1922_v26 = vld [vmem:[#allocation2 + $0xc0] sm:$0xf] }
 0x31b   : > { %v18715_v10 = vsel %vm2310_vm1, %v4306_v19, %v4310_v28  ;;  %v4322_v28 = vrot.slane %v4320_v2, 1  ;;  %v3587_v37 = vsel %vm2310_vm1, %v3582_v39, %v3586_v25  ;;  %v3589_v19 = vshrl.u32 %v21148_v9, 16  ;;  %v1892_v25 = vld [vmem:[#allocation2 + $0x198] sm:$0xe] }
 0x31c   : > { %v4318_v0 = vor.u32 %v4317_v12, %v4313_v18  ;;  %v4332_v9 = vshll.u32 %v16739_v57, 16  ;;  %v16697_v2 = vld [vmem:[#allocation2 + $0x1a0] ss:$0 sps:$4 sm:$0x11]   ;;  %v1923_v57 = vld [vmem:[#allocation2 + $0xc4] sm:$0xf] }
 0x31d   : > { %v2004_v12 = vld [vmem:[#allocation2 + $0xc0] sm:$0xe] }
 0x31e   : > { %6203 = vmatmul.mubr.bf16.gmra.mrb[104].mxu0 %v3563_v52  ;;  %v1921_v52 = vld [vmem:[#allocation2 + $0xb8] sm:$0xf] }
 0x31f   : > { %6210 = vmatprep.mubr.bf16.mxu0 %v3835_v8  ;;  %v4717_v8 = vrot.slane %v16736_v23, 1  ;;  %v14337_v22 = vcombine.low %v2003_v43, %v1921_v52  ;;  %v18724_v40 = vcombine.low %v1920_v42, %v1921_v52  ;;  %v21149_v23 = vld [vmem:[#allocation10_spill] sm:$0xff]  ;;  %v18731_v43 = vsel %vm2310_vm1, %v4318_v0, %v4322_v28  ;;  %v21150_v0 = vld [vmem:[#allocation11_spill] sm:$0xff] }
 0x320   : > { %v3603_v58 = vshll.u32 %v21149_v23, 16  ;;  %v4334_v42 = vrot.slane %v4332_v9, 1  ;;  %v3615_v63 = vshll.u32 %v21150_v0, 16  ;;  %v1924_v9 = vld [vmem:[#allocation2 + $0xcc] sm:$0xf] }
 0x321   : > { %v4718_v62 = vsel %vm2823_vm10, %v4716_v49, %v4717_v8  ;;  %v4719_v46 = vrot.slane %v14337_v22, 1  ;;  %v4325_v52 = vshrl.u32 %v18724_v40, 16  ;;  %v4327_v39 = vshll.u32 %v18724_v40, 16 }
 0x322   : > { %15522 = vmatprep.mubr.bf16.mxu1 %v4718_v62  ;;  %v3842_v49 = vrot.slane %v14258_v15, 1  ;;  %v3605_v18 = vrot.slane %v3603_v58, 1  ;;  %v14259_v62 = vcombine.low %v1892_v25, %v17236_v31 }
 0x323   : > { %v4721_v61 = vsel %vm2823_vm10, %v4719_v46, %v4720_v7  ;;  %v4329_v22 = vrot.slane %v4327_v39, 1  ;;  %v3601_v7 = vshrl.u32 %v21149_v23, 16 }
 0x324   : > { %15523 = vmatmul.mubr.bf16.gmra.mrb[24].mxu1 %v4721_v61  ;;  %v18741_v61 = vcombine.low %v1922_v26, %v1923_v57  ;;  %v3613_v26 = vshrl.u32 %v21150_v0, 16 }
 0x325   : > { %v4330_v4 = vor.u32 %v4329_v22, %v4325_v52  ;;  %v3606_v15 = vor.u32 %v3605_v18, %v3601_v7  ;;  %v3846_v22 = vrot.slane %v16697_v2, 1 }
 0x326   : > { %6211 = vmatmul.mubr.bf16.gmra.mrb[108].mxu0 %v3575_v56  ;;  %v3596_v56 = vshll.u32 %v16690_v55, 16  ;;  %v3594_v55 = vor.u32 %v3593_v17, %v3589_v19  ;;  %v16742_v19 = vld [vmem:[#allocation2 + $0xc8] ss:$0 sps:$4 sm:$0x11]   ;;  %v14338_v17 = vcombine.low %v2004_v12, %v1923_v57  ;;  %v4339_v25 = vshll.u32 %v18741_v61, 16 }
 0x327   : > { %6218 = vmatprep.mubr.bf16.mxu0 %v3838_v53  ;;  %v16693_v53 = vld [vmem:[#allocation2 + $0x194] ss:$0 sps:$4 sm:$0x11]   ;;  %v4723_v52 = vrot.slane %v16742_v19, 1  ;;  %v3617_v57 = vrot.slane %v3615_v63, 1  ;;  %v3620_v12 = vshll.u32 %v16697_v2, 16 }
 0x328   : > { %v3598_v30 = vrot.slane %v3596_v56, 1  ;;  %v3843_v8 = vrot.slane %v16693_v53, 1  ;;  %v3608_v48 = vshll.u32 %v16693_v53, 16  ;;  %v1925_v56 = vld [vmem:[#allocation2 + $0xd0] sm:$0xf]  ;;  %v4722_v58 = vrot.slane %v14338_v17, 1 }
 0x329   : > { %v16745_v53 = vld [vmem:[#allocation2 + $0xd4] ss:$0 sps:$4 sm:$0x11]   ;;  %v4341_v18 = vrot.slane %v4339_v25, 1  ;;  %v18748_v31 = vcombine.low %v1924_v9, %v1925_v56  ;;  %v16747_v17 = vld [vmem:[%s21077_s4] sm:$0xff]   ;;  %v3618_v0 = vor.u32 %v3617_v57, %v3613_v26  ;;  %v3622_v2 = vrot.slane %v3620_v12, 1 }
 0x32a   : > { %v3599_v46 = vsel %vm2310_vm1, %v3594_v55, %v3598_v30  ;;  %v3844_v28 = vsel %vm2823_vm10, %v3842_v49, %v3843_v8  ;;  %v3610_v23 = vrot.slane %v3608_v48, 1  ;;  %v4726_v55 = vrot.slane %v16745_v53, 1  ;;  %11837 = vmatpush1.bf16.msra.mxu1 %v16747_v17  ;;  %v1927_v9 = vld [vmem:[#allocation2 + $0xf4] sm:$0xf] }
 0x32b   : > { %v4337_v30 = vshrl.u32 %v18741_v61, 16  ;;  %v4344_v49 = vshll.u32 %v16742_v19, 16  ;;  %v3845_v8 = vrot.slane %v14259_v62, 1  ;;  %11838 = vmatprep.subr.bf16.mxu1 %v21144_v36 }
 0x32c   : > { %v3611_v48 = vsel %vm2310_vm1, %v3606_v15, %v3610_v23  ;;  %v4351_v15 = vshll.u32 %v18748_v31, 16 }
 0x32d   : > { %v3847_v62 = vsel %vm2823_vm10, %v3845_v8, %v3846_v22  ;;  %v1929_v8 = vld [vmem:[#allocation2 + $0x100] sm:$0xf]  ;;  %v2007_v22 = vld [vmem:[#allocation2 + $0xfc] sm:$0xe] }
 0x32e   : > { %6219 = vmatmul.mubr.bf16.gmra.mrb[112].mxu0 %v3587_v37  ;;  %v18739_v37 = vsel %vm2310_vm1, %v4330_v4, %v4334_v42  ;;  %v4724_v42 = vsel %vm2823_vm10, %v4722_v58, %v4723_v52  ;;  %v4346_v4 = vrot.slane %v4344_v49, 1  ;;  %v4353_v63 = vrot.slane %v4351_v15, 1 }
 0x32f   : > { %6226 = vmatprep.mubr.bf16.mxu0 %v3841_v27  ;;  %v2005_v27 = vld [vmem:[#allocation2 + $0xcc] sm:$0xe]  ;;  %15526 = vmatprep.mubr.bf16.mxu1 %v4724_v42  ;;  %v3623_v52 = vsel %vm2310_vm1, %v3618_v0, %v3622_v2  ;;  %v16753_v42 = vld [vmem:[#allocation2 + $0x104] ss:$0 sps:$4 sm:$0x11]  }
 0x330   : > { %v14339_v39 = vcombine.low %v2005_v27, %v1925_v56  ;;  %v4349_v56 = vshrl.u32 %v18748_v31, 16  ;;  %v4356_v27 = vshll.u32 %v16745_v53, 16  ;;  %v16750_v53 = vld [vmem:[#allocation2 + $0xf8] ss:$0 sps:$4 sm:$0x11]   ;;  %v4732_v26 = vrot.slane %v16753_v42, 1 }
 0x332   : > { %v4725_v7 = vrot.slane %v14339_v39, 1  ;;  %v4358_v23 = vrot.slane %v4356_v27, 1  ;;  %v4354_v58 = vor.u32 %v4353_v63, %v4349_v56  ;;  %v1926_v39 = vld [vmem:[#allocation2 + $0xf0] sm:$0xf] }
 0x333   : > { %v18766_v25 = vcombine.low %v1926_v39, %v1927_v9  ;;  %v16755_v63 = vld [vmem:[%s21077_s4 + $0x10] sm:$0xff]  }
 0x335   : > { %v4361_v57 = vshrl.u32 %v18766_v25, 16  ;;  %v4363_v12 = vshll.u32 %v18766_v25, 16 }
 0x336   : > { %6227 = vmatmul.mubr.bf16.gmra.mrb[116].mxu0 %v3599_v46  ;;  %v4727_v46 = vsel %vm2823_vm10, %v4725_v7, %v4726_v55  ;;  %v2006_v55 = vld [vmem:[#allocation2 + $0xf0] sm:$0xe]  ;;  %v16748_v7 = vld [vmem:[%s21077_s4 + $0x8] sm:$0xff]  }
 0x337   : > { %6234 = vmatprep.mubr.bf16.mxu0 %v3844_v28  ;;  %15527 = vmatmul.mubr.bf16.gmra.mrb[28].mxu1 %v4727_v46  ;;  %v4342_v28 = vor.u32 %v4341_v18, %v4337_v30  ;;  %v18764_v30 = vsel %vm2310_vm1, %v4354_v58, %v4358_v23  ;;  %v14340_v49 = vcombine.low %v2006_v55, %v1927_v9  ;;  %v1928_v46 = vld [vmem:[#allocation2 + $0xfc] sm:$0xf]  ;;  %v4365_v56 = vrot.slane %v4363_v12, 1  ;;  %v1932_v12 = vld [vmem:[#allocation2 + $0x114] sm:$0xf] }
 0x338   : > { %11839 = vmatpush1.bf16.msra.mxu1 %v16748_v7  ;;  %v18776_v27 = vcombine.low %v1928_v46, %v1929_v8  ;;  %v16758_v7 = vld [vmem:[#allocation2 + $0x110] ss:$0 sps:$4 sm:$0x11]  }
 0x339   : > { %v18754_v19 = vsel %vm2310_vm1, %v4342_v28, %v4346_v4  ;;  %v4728_v18 = vrot.slane %v14340_v49, 1  ;;  %v4729_v4 = vrot.slane %v16750_v53, 1  ;;  %v4368_v28 = vshll.u32 %v16750_v53, 16  ;;  %11840 = vmatprep.subr.bf16.mxu1 %v21144_v36  ;;  %v1930_v53 = vld [vmem:[#allocation2 + $0x108] sm:$0xf] }
 0x33a   : > { %v4366_v0 = vor.u32 %v4365_v56, %v4361_v57  ;;  %v4373_v23 = vshrl.u32 %v18776_v27, 16  ;;  %v4375_v58 = vshll.u32 %v18776_v27, 16  ;;  %v1931_v49 = vld [vmem:[#allocation2 + $0x10c] sm:$0xf]  ;;  %v4392_v56 = vshll.u32 %v16758_v7, 16 }
 0x33b   : > { %v4370_v15 = vrot.slane %v4368_v28, 1 }
 0x33c   : > { %11841 = vmatpush1.bf16.msra.mxu1 %v16755_v63  ;;  %v4377_v39 = vrot.slane %v4375_v58, 1 }
 0x33d   : > { %v18780_v2 = vsel %vm2310_vm1, %v4366_v0, %v4370_v15  ;;  %11842 = vmatprep.subr.bf16.mxu1 %v21144_v36  ;;  %v4394_v0 = vrot.slane %v4392_v56, 1 }
 0x33e   : > { %6235 = vmatmul.mubr.bf16.gmra.mrb[120].mxu0 %v3611_v48  ;;  %v14341_v48 = vcombine.low %v2007_v22, %v1929_v8  ;;  %v4378_v55 = vor.u32 %v4377_v39, %v4373_v23  ;;  %v18793_v22 = vcombine.low %v1930_v53, %v1931_v49 }
 0x33f   : > { %6242 = vmatprep.mubr.bf16.mxu0 %v3847_v62  ;;  %v4730_v62 = vsel %vm2823_vm10, %v4728_v18, %v4729_v4  ;;  %v1933_v4 = vld [vmem:[#allocation2 + $0x118] sm:$0xf] }
 0x340   : > { %v4731_v17 = vrot.slane %v14341_v48, 1  ;;  %15530 = vmatprep.mubr.bf16.mxu1 %v4730_v62  ;;  %v16761_v48 = vld [vmem:[#allocation2 + $0x11c] ss:$0 sps:$4 sm:$0x11]   ;;  %v4385_v62 = vshrl.u32 %v18793_v22, 16  ;;  %v18804_v63 = vcombine.low %v1932_v12, %v1933_v4 }
 0x341   : > { %v4738_v28 = vrot.slane %v16761_v48, 1 }
 0x342   : > { %v4397_v39 = vshrl.u32 %v18804_v63, 16 }
 0x346   : > { %6243 = vmatmul.mubr.bf16.gmra.mrb[124].mxu0 %v3623_v52  ;;  %v4380_v52 = vshll.u32 %v16753_v42, 16  ;;  %v2009_v42 = vld [vmem:[#allocation2 + $0x114] sm:$0xe] }
 0x347   : > { %6283 = vmatprep.mubr.bf16.mxu0 %v18587_v13  ;;  %v4733_v13 = vsel %vm2823_vm10, %v4731_v17, %v4732_v26  ;;  %v4735_v26 = vrot.slane %v16758_v7, 1  ;;  %v14343_v57 = vcombine.low %v2009_v42, %v1933_v4  ;;  %v4387_v17 = vshll.u32 %v18793_v22, 16  ;;  %v1934_v7 = vld [vmem:[#allocation2 + $0x120] sm:$0xf] }
 0x348   : > { %15531 = vmatmul.mubr.bf16.gmra.mrb[32].mxu1 %v4733_v13  ;;  %v4382_v9 = vrot.slane %v4380_v52, 1  ;;  %v16763_v52 = vld [vmem:[%s21077_s4 + $0x20] sm:$0xff]  }
 0x349   : > { %v4389_v13 = vrot.slane %v4387_v17, 1  ;;  %v1936_v17 = vld [vmem:[#allocation2 + $0x12c] sm:$0xf] }
 0x34a   : > { %v18791_v8 = vsel %vm2310_vm1, %v4378_v55, %v4382_v9  ;;  %v4399_v9 = vshll.u32 %v18804_v63, 16  ;;  %v4404_v55 = vshll.u32 %v16761_v48, 16  ;;  %v2011_v48 = vld [vmem:[#allocation2 + $0x12c] sm:$0xe] }
 0x34b   : > { %v4390_v23 = vor.u32 %v4389_v13, %v4385_v62 }
 0x34c   : > { %v4401_v53 = vrot.slane %v4399_v9, 1 }
 0x34d   : > { %v18808_v58 = vsel %vm2310_vm1, %v4390_v23, %v4394_v0 }
 0x34e   : > { %6284 = vmatmul.mubr.bf16.vlgmr.msra.gmra.mrb[0].mxu0 %v18572_v34  ;;  %v2008_v34 = vld [vmem:[#allocation2 + $0x108] sm:$0xe] }
 0x34f   : > { %6291 = vmatprep.mubr.bf16.mxu0 %v18595_v11  ;;  %v14342_v18 = vcombine.low %v2008_v34, %v1931_v49  ;;  %v16756_v11 = vld [vmem:[%s21077_s4 + $0x18] sm:$0xff]   ;;  %v4406_v49 = vrot.slane %v4404_v55, 1  ;;  %v4402_v34 = vor.u32 %v4401_v53, %v4397_v39  ;;  %v16771_v55 = vld [vmem:[%s21077_s4 + $0x30] sm:$0xff]  }
 0x350   : > { %11843 = vmatpush1.bf16.msra.mxu1 %v16756_v11  ;;  %v16766_v11 = vld [vmem:[#allocation2 + $0x128] ss:$0 sps:$4 sm:$0x11]  }
 0x351   : > { %v4734_v46 = vrot.slane %v14342_v18, 1  ;;  %11844 = vmatprep.subr.bf16.mxu1 %v21144_v36  ;;  %v1935_v18 = vld [vmem:[#allocation2 + $0x124] sm:$0xf]  ;;  %v18819_v4 = vsel %vm2310_vm1, %v4402_v34, %v4406_v49  ;;  %v4416_v13 = vshll.u32 %v16766_v11, 16 }
 0x352   : > { %v18821_v42 = vcombine.low %v1934_v7, %v1935_v18 }
 0x353   : > { %v4736_v15 = vsel %vm2823_vm10, %v4734_v46, %v4735_v26  ;;  %v1937_v26 = vld [vmem:[#allocation2 + $0x130] sm:$0xf]  ;;  %v4418_v23 = vrot.slane %v4416_v13, 1 }
 0x354   : > { %15534 = vmatprep.mubr.bf16.mxu1 %v4736_v15  ;;  %11845 = vmatpush1.bf16.msra.mxu1 %v16763_v52  ;;  %v14345_v62 = vcombine.low %v2011_v48, %v1937_v26  ;;  %v4409_v15 = vshrl.u32 %v18821_v42, 16  ;;  %v18832_v52 = vcombine.low %v1936_v17, %v1937_v26 }
 0x355   : > { %11846 = vmatprep.subr.bf16.mxu1 %v21144_v36 }
 0x356   : > { %6292 = vmatmul.mubr.bf16.gmra.mrb[4].mxu0 %v18581_v24  ;;  %v4737_v24 = vrot.slane %v14343_v57, 1  ;;  %v16769_v57 = vld [vmem:[#allocation2 + $0x134] ss:$0 sps:$4 sm:$0x11]   ;;  %v4421_v53 = vshrl.u32 %v18832_v52, 16  ;;  %v4423_v49 = vshll.u32 %v18832_v52, 16 }
 0x357   : > { %6299 = vmatprep.mubr.bf16.mxu0 %v18611_v41  ;;  %v4744_v56 = vrot.slane %v16769_v57, 1  ;;  %v4428_v34 = vshll.u32 %v16769_v57, 16  ;;  %v2013_v57 = vld [vmem:[#allocation2 + $0x144] sm:$0xe] }
 0x358   : > { %v4739_v41 = vsel %vm2823_vm10, %v4737_v24, %v4738_v28  ;;  %v4741_v28 = vrot.slane %v16766_v11, 1  ;;  %v4411_v24 = vshll.u32 %v18821_v42, 16  ;;  %v4425_v7 = vrot.slane %v4423_v49, 1  ;;  %v1938_v11 = vld [vmem:[#allocation2 + $0x138] sm:$0xf] }
 0x359   : > { %15535 = vmatmul.mubr.bf16.gmra.mrb[36].mxu1 %v4739_v41 }
 0x35a   : > { %v4413_v41 = vrot.slane %v4411_v24, 1  ;;  %v1940_v24 = vld [vmem:[#allocation2 + $0x144] sm:$0xf] }
 0x35c   : > { %v4414_v39 = vor.u32 %v4413_v41, %v4409_v15 }
 0x35e   : > { %6300 = vmatmul.mubr.bf16.gmra.mrb[8].mxu0 %v18597_v3  ;;  %v2010_v3 = vld [vmem:[#allocation2 + $0x120] sm:$0xe]  ;;  %v18836_v9 = vsel %vm2310_vm1, %v4414_v39, %v4418_v23 }
 0x35f   : > { %6307 = vmatprep.mubr.bf16.mxu0 %v18619_v21  ;;  %v14344_v46 = vcombine.low %v2010_v3, %v1935_v18  ;;  %v16764_v21 = vld [vmem:[%s21077_s4 + $0x28] sm:$0xff]   ;;  %v4430_v18 = vrot.slane %v4428_v34, 1  ;;  %v4426_v3 = vor.u32 %v4425_v7, %v4421_v53  ;;  %v16779_v34 = vld [vmem:[%s21077_s4 + $0x40] sm:$0xff]  }
 0x360   : > { %11847 = vmatpush1.bf16.msra.mxu1 %v16764_v21  ;;  %v16774_v21 = vld [vmem:[#allocation2 + $0x140] ss:$0 sps:$4 sm:$0x11]  }
 0x361   : > { %v4740_v12 = vrot.slane %v14344_v46, 1  ;;  %11848 = vmatprep.subr.bf16.mxu1 %v21144_v36  ;;  %v1939_v46 = vld [vmem:[#allocation2 + $0x13c] sm:$0xf]  ;;  %v18847_v26 = vsel %vm2310_vm1, %v4426_v3, %v4430_v18  ;;  %v4440_v41 = vshll.u32 %v16774_v21, 16 }
 0x362   : > { %v18849_v48 = vcombine.low %v1938_v11, %v1939_v46 }
 0x363   : > { %v4742_v0 = vsel %vm2823_vm10, %v4740_v12, %v4741_v28  ;;  %v1941_v28 = vld [vmem:[#allocation2 + $0x148] sm:$0xf]  ;;  %v4442_v39 = vrot.slane %v4440_v41, 1 }
 0x364   : > { %15538 = vmatprep.mubr.bf16.mxu1 %v4742_v0  ;;  %11849 = vmatpush1.bf16.msra.mxu1 %v16771_v55  ;;  %v14347_v15 = vcombine.low %v2013_v57, %v1941_v28  ;;  %v4433_v0 = vshrl.u32 %v18849_v48, 16  ;;  %v18860_v55 = vcombine.low %v1940_v24, %v1941_v28 }
 0x365   : > { %11850 = vmatprep.subr.bf16.mxu1 %v21144_v36 }
 0x366   : > { %6308 = vmatmul.mubr.bf16.gmra.mrb[12].mxu0 %v18604_v38  ;;  %v4743_v38 = vrot.slane %v14345_v62, 1  ;;  %v16777_v62 = vld [vmem:[#allocation2 + $0x14c] ss:$0 sps:$4 sm:$0x11]   ;;  %v4445_v7 = vshrl.u32 %v18860_v55, 16  ;;  %v4447_v18 = vshll.u32 %v18860_v55, 16 }
 0x367   : > { %6315 = vmatprep.mubr.bf16.mxu0 %v18635_v33  ;;  %v4750_v13 = vrot.slane %v16777_v62, 1  ;;  %v4452_v3 = vshll.u32 %v16777_v62, 16  ;;  %v2015_v62 = vld [vmem:[#allocation2 + $0x15c] sm:$0xe] }
 0x368   : > { %v4745_v33 = vsel %vm2823_vm10, %v4743_v38, %v4744_v56  ;;  %v4747_v56 = vrot.slane %v16774_v21, 1  ;;  %v4435_v38 = vshll.u32 %v18849_v48, 16  ;;  %v4449_v11 = vrot.slane %v4447_v18, 1  ;;  %v1942_v21 = vld [vmem:[#allocation2 + $0x150] sm:$0xf] }
 0x369   : > { %15539 = vmatmul.mubr.bf16.gmra.mrb[40].mxu1 %v4745_v33 }
 0x36a   : > { %v4437_v33 = vrot.slane %v4435_v38, 1  ;;  %v1944_v38 = vld [vmem:[#allocation2 + $0x15c] sm:$0xf] }
 0x36c   : > { %v4438_v53 = vor.u32 %v4437_v33, %v4433_v0 }
 0x36e   : > { %6316 = vmatmul.mubr.bf16.gmra.mrb[16].mxu0 %v18621_v29  ;;  %v2012_v29 = vld [vmem:[#allocation2 + $0x138] sm:$0xe]  ;;  %v18864_v49 = vsel %vm2310_vm1, %v4438_v53, %v4442_v39 }
 0x36f   : > { %6323 = vmatprep.mubr.bf16.mxu0 %v18643_v47  ;;  %v14346_v12 = vcombine.low %v2012_v29, %v1939_v46  ;;  %v16772_v47 = vld [vmem:[%s21077_s4 + $0x38] sm:$0xff]   ;;  %v4454_v46 = vrot.slane %v4452_v3, 1  ;;  %v4450_v29 = vor.u32 %v4449_v11, %v4445_v7  ;;  %v16787_v3 = vld [vmem:[%s21077_s4 + $0x50] sm:$0xff]  }
 0x370   : > { %11851 = vmatpush1.bf16.msra.mxu1 %v16772_v47  ;;  %v16782_v47 = vld [vmem:[#allocation2 + $0x158] ss:$0 sps:$4 sm:$0x11]  }
 0x371   : > { %v4746_v17 = vrot.slane %v14346_v12, 1  ;;  %11852 = vmatprep.subr.bf16.mxu1 %v21144_v36  ;;  %v1943_v12 = vld [vmem:[#allocation2 + $0x154] sm:$0xf]  ;;  %v18875_v28 = vsel %vm2310_vm1, %v4450_v29, %v4454_v46  ;;  %v4464_v33 = vshll.u32 %v16782_v47, 16 }
 0x372   : > { %v18877_v57 = vcombine.low %v1942_v21, %v1943_v12 }
 0x373   : > { %v4748_v23 = vsel %vm2823_vm10, %v4746_v17, %v4747_v56  ;;  %v1945_v56 = vld [vmem:[#allocation2 + $0x160] sm:$0xf]  ;;  %v4466_v53 = vrot.slane %v4464_v33, 1 }
 0x374   : > { %15542 = vmatprep.mubr.bf16.mxu1 %v4748_v23  ;;  %11853 = vmatpush1.bf16.msra.mxu1 %v16779_v34  ;;  %v14349_v0 = vcombine.low %v2015_v62, %v1945_v56  ;;  %v4457_v23 = vshrl.u32 %v18877_v57, 16  ;;  %v18888_v34 = vcombine.low %v1944_v38, %v1945_v56 }
 0x375   : > { %11854 = vmatprep.subr.bf16.mxu1 %v21144_v36 }
 0x376   : > { %6324 = vmatmul.mubr.bf16.gmra.mrb[20].mxu0 %v18628_v45  ;;  %v4749_v45 = vrot.slane %v14347_v15, 1  ;;  %v16785_v15 = vld [vmem:[#allocation2 + $0x164] ss:$0 sps:$4 sm:$0x11]   ;;  %v4469_v11 = vshrl.u32 %v18888_v34, 16  ;;  %v4471_v46 = vshll.u32 %v18888_v34, 16 }
 0x377   : > { %6331 = vmatprep.mubr.bf16.mxu0 %v18659_v60  ;;  %v4756_v41 = vrot.slane %v16785_v15, 1  ;;  %v4476_v29 = vshll.u32 %v16785_v15, 16  ;;  %v2017_v15 = vld [vmem:[#allocation2 + $0x174] sm:$0xe] }
 0x378   : > { %v4751_v60 = vsel %vm2823_vm10, %v4749_v45, %v4750_v13  ;;  %v4753_v13 = vrot.slane %v16782_v47, 1  ;;  %v4459_v45 = vshll.u32 %v18877_v57, 16  ;;  %v4473_v21 = vrot.slane %v4471_v46, 1  ;;  %v1946_v47 = vld [vmem:[#allocation2 + $0x168] sm:$0xf] }
 0x379   : > { %15543 = vmatmul.mubr.bf16.gmra.mrb[44].mxu1 %v4751_v60 }
 0x37a   : > { %v4461_v60 = vrot.slane %v4459_v45, 1  ;;  %v1948_v45 = vld [vmem:[#allocation2 + $0x174] sm:$0xf] }
 0x37c   : > { %v4462_v7 = vor.u32 %v4461_v60, %v4457_v23 }
 0x37e   : > { %6332 = vmatmul.mubr.bf16.gmra.mrb[24].mxu0 %v18645_v16  ;;  %v2014_v16 = vld [vmem:[#allocation2 + $0x150] sm:$0xe]  ;;  %v18892_v18 = vsel %vm2310_vm1, %v4462_v7, %v4466_v53 }
 0x37f   : > { %6339 = vmatprep.mubr.bf16.mxu0 %v18667_v1  ;;  %v14348_v17 = vcombine.low %v2014_v16, %v1943_v12  ;;  %v16780_v1 = vld [vmem:[%s21077_s4 + $0x48] sm:$0xff]   ;;  %v4478_v12 = vrot.slane %v4476_v29, 1  ;;  %v4474_v16 = vor.u32 %v4473_v21, %v4469_v11  ;;  %v16795_v29 = vld [vmem:[%s21077_s4 + $0x60] sm:$0xff]   ;;  %v513_v21 = vld [vmem:[#allocation3 + $0xc] sm:$0x1] }
 0x380   : > { %11855 = vmatpush1.bf16.msra.mxu1 %v16780_v1  ;;  %v16790_v1 = vld [vmem:[#allocation2 + $0x170] ss:$0 sps:$4 sm:$0x11]  }
 0x381   : > { %v4752_v24 = vrot.slane %v14348_v17, 1  ;;  %11856 = vmatprep.subr.bf16.mxu1 %v21144_v36  ;;  %v1947_v17 = vld [vmem:[#allocation2 + $0x16c] sm:$0xf]  ;;  %v18903_v56 = vsel %vm2310_vm1, %v4474_v16, %v4478_v12  ;;  %v4488_v60 = vshll.u32 %v16790_v1, 16 }
 0x382   : > { %v18905_v62 = vcombine.low %v1946_v47, %v1947_v17  ;;  %v514_v47 = vsel %vm17491_vm3, 0, %v513_v21 }
 0x383   : > { %v4754_v39 = vsel %vm2823_vm10, %v4752_v24, %v4753_v13  ;;  %v1949_v13 = vld [vmem:[#allocation2 + $0x178] sm:$0xf]  ;;  %v4490_v7 = vrot.slane %v4488_v60, 1  ;;  %515 = vst [vmem:[#allocation3 + $0xc] sm:$0x1] %v514_v47 }
 0x384   : > { %15546 = vmatprep.mubr.bf16.mxu1 %v4754_v39  ;;  %11857 = vmatpush1.bf16.msra.mxu1 %v16787_v3  ;;  %v14351_v23 = vcombine.low %v2017_v15, %v1949_v13  ;;  %v4481_v39 = vshrl.u32 %v18905_v62, 16  ;;  %v18916_v3 = vcombine.low %v1948_v45, %v1949_v13 }
 0x385   : > { %11858 = vmatprep.subr.bf16.mxu1 %v21144_v36 }
 0x386   : > { %6340 = vmatmul.mubr.bf16.gmra.mrb[28].mxu0 %v18652_v5  ;;  %v4755_v5 = vrot.slane %v14349_v0, 1  ;;  %v16793_v0 = vld [vmem:[#allocation2 + $0x17c] ss:$0 sps:$4 sm:$0x11]   ;;  %v4495_v12 = vshll.u32 %v18916_v3, 16 }
 0x387   : > { %6347 = vmatprep.mubr.bf16.mxu0 %v18683_v59  ;;  %v4762_v33 = vrot.slane %v16793_v0, 1 }
 0x388   : > { %v4757_v59 = vsel %vm2823_vm10, %v4755_v5, %v4756_v41  ;;  %v4759_v41 = vrot.slane %v16790_v1, 1  ;;  %v4483_v5 = vshll.u32 %v18905_v62, 16  ;;  %v4500_v1 = vshll.u32 %v16793_v0, 16  ;;  %v2019_v0 = vld [vmem:[#allocation2 + $0x18c] sm:$0xe] }
 0x389   : > { %15547 = vmatmul.mubr.bf16.gmra.mrb[48].mxu1 %v4757_v59 }
 0x38a   : > { %v4485_v59 = vrot.slane %v4483_v5, 1  ;;  %v4502_v15 = vrot.slane %v4500_v1, 1  ;;  %v1953_v5 = vld [vmem:[#allocation2 + $0x190] sm:$0xf] }
 0x38c   : > { %v4486_v11 = vor.u32 %v4485_v59, %v4481_v39  ;;  %v14353_v59 = vcombine.low %v2019_v0, %v1953_v5  ;;  %v516_v0 = vld [vmem:[#allocation3 + $0x18] sm:$0x1] }
 0x38e   : > { %6348 = vmatmul.mubr.bf16.gmra.mrb[32].mxu0 %v18669_v6  ;;  %v2016_v6 = vld [vmem:[#allocation2 + $0x168] sm:$0xe]  ;;  %v18920_v46 = vsel %vm2310_vm1, %v4486_v11, %v4490_v7  ;;  %v4767_v11 = vrot.slane %v14353_v59, 1  ;;  %v517_v59 = vsel %vm17491_vm3, 0, %v516_v0 }
 0x38f   : > { %6355 = vmatprep.mubr.bf16.mxu0 %v18691_v44  ;;  %v14350_v24 = vcombine.low %v2016_v6, %v1947_v17  ;;  %v16788_v44 = vld [vmem:[%s21077_s4 + $0x58] sm:$0xff]   ;;  %v18928_v16 = vpop.f32.mrb[0].mxu1  ;;  %v4497_v6 = vrot.slane %v4495_v12, 1  ;;  %518 = vst [vmem:[#allocation3 + $0x18] sm:$0x1] %v517_v59 }
 0x390   : > { %11859 = vmatpush1.bf16.msra.mxu1 %v16788_v44  ;;  %v18932_v17 = vpop.f32.mrb[1].mxu1  ;;  %v1950_v44 = vld [vmem:[#allocation2 + $0x180] sm:$0xf] }
 0x391   : > { %v4758_v38 = vrot.slane %v14350_v24, 1  ;;  %11860 = vmatprep.subr.bf16.mxu1 %v21144_v36  ;;  %v18935_v24 = vpop.f32.mrb[2].mxu1 }
 0x392   : > { %v18938_v13 = vpop.f32.mrb[3].mxu1 }
 0x393   : > { %v4760_v53 = vsel %vm2823_vm10, %v4758_v38, %v4759_v41  ;;  %v1951_v38 = vld [vmem:[#allocation2 + $0x184] sm:$0xf]  ;;  %v2018_v41 = vld [vmem:[#allocation2 + $0x180] sm:$0xe] }
 0x394   : > { %15550 = vmatprep.mubr.bf16.mxu1 %v4760_v53  ;;  %11861 = vmatpush1.bf16.msra.mxu1 %v16795_v29  ;;  %v18943_v45 = vcombine.low %v1950_v44, %v1951_v38  ;;  %v14352_v39 = vcombine.low %v2018_v41, %v1951_v38 }
 0x395   : > { %11862 = vmatprep.subr.bf16.mxu1 %v21144_v36 }
 0x396   : > { %6356 = vmatmul.mubr.bf16.gmra.mrb[36].mxu0 %v18676_v54  ;;  %v4761_v54 = vrot.slane %v14351_v23, 1  ;;  %v4764_v60 = vrot.slane %v14352_v39, 1  ;;  %v4507_v7 = vshll.u32 %v18943_v45, 16  ;;  %v4505_v21 = vshrl.u32 %v18943_v45, 16  ;;  %v2020_v39 = vld [vmem:[#allocation2 + $0x198] sm:$0xe] }
 0x397   : > { %6363 = vmatprep.mubr.bf16.mxu0 %v18707_v32 }
 0x398   : > { %v4763_v32 = vsel %vm2823_vm10, %v4761_v54, %v4762_v33  ;;  %v16798_v33 = vld [vmem:[#allocation2 + $0x188] ss:$0 sps:$4 sm:$0x11]   ;;  %v16801_v54 = vld [vmem:[#allocation2 + $0x194] ss:$0 sps:$4 sm:$0x11]  }
 0x399   : > { %15551 = vmatmul.mubr.bf16.gmra.mrb[52].mxu1 %v4763_v32  ;;  %v4765_v53 = vrot.slane %v16798_v33, 1  ;;  %v4768_v29 = vrot.slane %v16801_v54, 1  ;;  %v4509_v12 = vrot.slane %v4507_v7, 1  ;;  %v4512_v47 = vshll.u32 %v16798_v33, 16  ;;  %v18959_v38 = vpop.f32.mrb[4].mxu1 }
 0x39a   : > { %v18962_v41 = vpop.f32.mrb[5].mxu1  ;;  %v1955_v33 = vld [vmem:[#allocation2 + $0x19c] sm:$0xf] }
 0x39b   : > { %v4766_v32 = vsel %vm2823_vm10, %v4764_v60, %v4765_v53  ;;  %v4510_v1 = vor.u32 %v4509_v12, %v4505_v21  ;;  %v18964_v60 = vpop.f32.mrb[6].mxu1  ;;  %v14354_v53 = vcombine.low %v2020_v39, %v1955_v33 }
 0x39c   : > { %15554 = vmatprep.mubr.bf16.mxu1 %v4766_v32  ;;  %v18969_v7 = vpop.f32.mrb[7].mxu1  ;;  %v16796_v32 = vld [vmem:[%s21077_s4 + $0x68] sm:$0xff]  }
 0x39d   : > { %11863 = vmatpush1.bf16.msra.mxu1 %v16796_v32  ;;  %v8092_v32 = vld [vmem:[#allocation3 + $0x4] sm:$0xf] }
 0x39e   : > { %6364 = vmatmul.mubr.bf16.gmra.mrb[40].mxu0 %v18693_v35  ;;  %v4493_v35 = vshrl.u32 %v18916_v3, 16  ;;  %11864 = vmatprep.subr.bf16.mxu1 %v21144_v36 }
 0x39f   : > { %6371 = vmatprep.mubr.bf16.mxu0 %v18715_v10 }
 0x3a0   : > { %v4498_v10 = vor.u32 %v4497_v6, %v4493_v35  ;;  %v609_v35 = vld [vmem:[#allocation3 + $0x14] sm:$0x1] }
 0x3a1   : > { %v610_v6 = vsel %vm17499_vm6, 0, %v609_v35 }
 0x3a2   : > { %v18941_v23 = vsel %vm2310_vm1, %v4498_v10, %v4502_v15  ;;  %611 = vst [vmem:[#allocation3 + $0x14] sm:$0x1] %v610_v6  ;;  %v1952_v10 = vld [vmem:[#allocation2 + $0x18c] sm:$0xf] }
 0x3a3   : > { %v18953_v15 = vcombine.low %v1952_v10, %v1953_v5  ;;  %v1954_v10 = vld [vmem:[#allocation2 + $0x198] sm:$0xf] }
 0x3a4   : > { %v18985_v59 = vcombine.low %v1954_v10, %v1955_v33 }
 0x3a5   : > { %v4519_v5 = vshll.u32 %v18953_v15, 16  ;;  %v4517_v21 = vshrl.u32 %v18953_v15, 16 }
 0x3a6   : > { %6372 = vmatmul.mubr.bf16.gmra.mrb[44].mxu0 %v18700_v50  ;;  %v4769_v50 = vsel %vm2823_vm10, %v4767_v11, %v4768_v29  ;;  %v612_v11 = vld [vmem:[#allocation3 + $0x20] sm:$0x1]  ;;  %v4770_v29 = vrot.slane %v14354_v53, 1  ;;  %v18982_v53 = vld [vmem:[#allocation2 + $0x1ac] ss:$0 sps:$4 sm:$0x11]  }
 0x3a7   : > { %6379 = vmatprep.mubr.bf16.mxu0 %v18731_v43  ;;  %15555 = vmatmul.mubr.bf16.gmra.mrb[56].mxu1 %v4769_v50  ;;  %v4514_v43 = vrot.slane %v4512_v47, 1  ;;  %v4521_v12 = vrot.slane %v4519_v5, 1  ;;  %v613_v47 = vsel %vm17499_vm6, 0, %v612_v11  ;;  %v4524_v50 = vshll.u32 %v16801_v54, 16  ;;  %v16811_v54 = vld [vmem:[%s21077_s4 + $0x208] sm:$0xff]   ;;  %v16803_v11 = vld [vmem:[%s21077_s4 + $0x70] sm:$0xff]  }
 0x3a8   : > { %614 = vst [vmem:[#allocation3 + $0x20] sm:$0x1] %v613_v47  ;;  %11865 = vmatpush1.bf16.msra.mxu1 %v16803_v11  ;;  %v519_v47 = vld [vmem:[#allocation3 + $0x24] sm:$0x1] }
 0x3a9   : > { %v18956_v44 = vsel %vm2310_vm1, %v4510_v1, %v4514_v43  ;;  %v4522_v6 = vor.u32 %v4521_v12, %v4517_v21  ;;  %v1957_v1 = vld [vmem:[#allocation2 + $0x1a8] sm:$0xf]  ;;  %v2021_v43 = vld [vmem:[#allocation2 + $0x1a4] sm:$0xe]  ;;  %v4526_v0 = vrot.slane %v4524_v50, 1  ;;  %v4531_v12 = vshll.u32 %v18985_v59, 16  ;;  %11866 = vmatprep.subr.bf16.mxu1 %v21144_v36 }
 0x3aa   : > { %v14355_v5 = vcombine.low %v2021_v43, %v1957_v1  ;;  %v520_v50 = vsel %vm17491_vm3, 0, %v519_v47  ;;  %v4529_v43 = vshrl.u32 %v18985_v59, 16  ;;  %v1956_v47 = vld [vmem:[#allocation2 + $0x1a4] sm:$0xf] }
 0x3ab   : > { %v4533_v10 = vrot.slane %v4531_v12, 1  ;;  %521 = vst [vmem:[#allocation3 + $0x24] sm:$0x1] %v520_v50 }
 0x3ac   : > { %v4773_v21 = vrot.slane %v14355_v5, 1  ;;  %v16815_v5 = vld [vmem:[#allocation3 + $0x8] ss:$0 sps:$4 sm:$0x11]  }
 0x3ad   : > { %v4534_v11 = vor.u32 %v4533_v10, %v4529_v43  ;;  %v8772_v12 = vshll.u32 %v16815_v5, 16 }
 0x3ae   : > { %6380 = vmatmul.mubr.bf16.gmra.mrb[48].mxu0 %v18717_v51  ;;  %v16804_v51 = vld [vmem:[%s21077_s4 + $0x200] sm:$0xff]  }
 0x3af   : > { %6387 = vmatprep.mubr.bf16.mxu0 %v18739_v37  ;;  %v16806_v37 = vld [vmem:[#allocation2 + $0x1a0] ss:$0 sps:$4 sm:$0x11]   ;;  %15562 = vmatprep.subr.bf16.mxu0 %v16804_v51  ;;  %v8774_v43 = vrot.slane %v8772_v12, 1 }
 0x3b0   : > { %v4771_v35 = vrot.slane %v16806_v37, 1  ;;  %15563 = vmatpush3.bf16.msra.mxu0 %v16804_v51  ;;  %v8091_v51 = vld [vmem:[#allocation3] sm:$0xf] }
 0x3b1   : > { %v14494_v33 = vcombine.low %v8091_v51, %v8092_v32  ;;  %15564 = vmatprep.subr.bf16.mxu0 %v16811_v54  ;;  %v16812_v32 = vld [vmem:[%s21077_s4 + $0x78] sm:$0xff]  }
 0x3b2   : > { %v4772_v39 = vsel %vm2823_vm10, %v4770_v29, %v4771_v35  ;;  %v18995_v29 = vsel %vm2310_vm1, %v4522_v6, %v4526_v0  ;;  %v16813_v6 = vld [vmem:[%s21077_s4 + $0x210] sm:$0xff]   ;;  %v615_v0 = vld [vmem:[#allocation3 + $0x2c] sm:$0x1]  ;;  %11867 = vmatpush1.bf16.msra.mxu1 %v16812_v32 }
 0x3b3   : > { %15558 = vmatprep.mubr.bf16.mxu1 %v4772_v39  ;;  %v4536_v39 = vshll.u32 %v16806_v37, 16  ;;  %v8765_v51 = vshrl.u32 %v14494_v33, 16  ;;  %v19013_v37 = vcombine.low %v1956_v47, %v1957_v1  ;;  %12125 = vmatprep.subr.bf16.mxu1 %v21144_v36 }
 0x3b4   : > { %15565 = vmatpush3.bf16.msra.mxu0 %v16811_v54  ;;  %v616_v54 = vsel %vm17499_vm6, 0, %v615_v0  ;;  %v16816_v0 = vld [vmem:[%s21077_s4 + $0x218] sm:$0xff]  }
 0x3b5   : > { %15566 = vmatprep.subr.bf16.mxu0 %v16813_v6  ;;  %617 = vst [vmem:[#allocation3 + $0x2c] sm:$0x1] %v616_v54  ;;  %v4543_v1 = vshll.u32 %v19013_v37, 16  ;;  %v4541_v54 = vshrl.u32 %v19013_v37, 16 }
 0x3b6   : > { %6388 = vmatmul.mubr.bf16.gmra.mrb[52].mxu0 %v18724_v40  ;;  %v4774_v40 = vrot.slane %v18982_v53, 1 }
 0x3b7   : > { %6395 = vmatprep.mubr.bf16.mxu0 %v18754_v19  ;;  %v8767_v19 = vshll.u32 %v14494_v33, 16  ;;  %v4545_v32 = vrot.slane %v4543_v1, 1  ;;  %v16817_v1 = vld [vmem:[%s21077_s4 + $0x80] sm:$0xff]  }
 0x3b8   : > { %v4775_v35 = vsel %vm2823_vm10, %v4773_v21, %v4774_v40  ;;  %v4538_v21 = vrot.slane %v4536_v39, 1  ;;  %15567 = vmatpush3.bf16.msra.mxu0 %v16813_v6  ;;  %v522_v39 = vld [vmem:[#allocation3 + $0x30] sm:$0x1] }
 0x3b9   : > { %15559 = vmatmul.mubr.bf16.gmra.mrb[60].mxu1 %v4775_v35  ;;  %v8769_v40 = vrot.slane %v8767_v19, 1  ;;  %v19022_v19 = vpop.f32.mrb[8].mxu1  ;;  %15568 = vmatprep.subr.bf16.mxu0 %v16816_v0  ;;  %v4546_v47 = vor.u32 %v4545_v32, %v4541_v54 }
 0x3ba   : > { %v19016_v35 = vsel %vm2310_vm1, %v4534_v11, %v4538_v21  ;;  %v4548_v11 = vshll.u32 %v18982_v53, 16  ;;  %v618_v21 = vld [vmem:[#allocation3 + $0x38] sm:$0x1] }
 0x3bb   : > { %v8770_v50 = vor.u32 %v8769_v40, %v8765_v51  ;;  %v523_v51 = vsel %vm17491_vm3, 0, %v522_v39  ;;  %v619_v40 = vsel %vm17499_vm6, 0, %v618_v21  ;;  %v16821_v53 = vld [vmem:[%s21077_s4 + $0x228] sm:$0xff]   ;;  %v528_v39 = vld [vmem:[#allocation3 + $0x48] sm:$0x1] }
 0x3bc   : > { %15569 = vmatpush3.bf16.msra.mxu0 %v16816_v0  ;;  %524 = vst [vmem:[#allocation3 + $0x30] sm:$0x1] %v523_v51  ;;  %v4550_v12 = vrot.slane %v4548_v11, 1  ;;  %620 = vst [vmem:[#allocation3 + $0x38] sm:$0x1] %v619_v40 }
 0x3bd   : > { %v8775_v6 = vsel %vm2310_vm1, %v8770_v50, %v8774_v43  ;;  %v525_v50 = vld [vmem:[#allocation3 + $0x3c] sm:$0x1]  ;;  %v621_v43 = vld [vmem:[#allocation3 + $0x44] sm:$0x1]  ;;  %v624_v51 = vld [vmem:[#allocation3 + $0x50] sm:$0x1] }
 0x3be   : > { %6396 = vmatmul.mubr.bf16.gmra.mrb[56].mxu0 %v18741_v61  ;;  %v19025_v61 = vpop.f32.mrb[9].mxu1  ;;  %11868 = vmatprep.mubr.bf16.mxu1 %v8775_v6  ;;  %v526_v0 = vsel %vm17491_vm3, 0, %v525_v50  ;;  %v531_v21 = vld [vmem:[#allocation3 + $0x54] sm:$0x1]  ;;  %v627_v40 = vld [vmem:[#allocation3 + $0x5c] sm:$0x1] }
 0x3bf   : > { %6403 = vmatprep.mubr.bf16.mxu0 %v18764_v30  ;;  %v19029_v10 = vpop.f32.mrb[10].mxu1  ;;  %v16818_v30 = vld [vmem:[%s21077_s4 + $0x220] sm:$0xff]   ;;  %527 = vst [vmem:[#allocation3 + $0x3c] sm:$0x1] %v526_v0 }
 0x3c0   : > { %v19031_v5 = vpop.f32.mrb[11].mxu1  ;;  %15570 = vmatprep.subr.bf16.mxu0 %v16818_v30 }
 0x3c1   : > { %11869 = vmatmul.mubr.bf16.vlgmr.msra.gmra.mrb[64].mxu1 %v14494_v33  ;;  %15571 = vmatpush3.bf16.msra.mxu0 %v16818_v30  ;;  %v19045_v33 = vsel %vm2310_vm1, %v4546_v47, %v4550_v12  ;;  %v529_v30 = vsel %vm17491_vm3, 0, %v528_v39  ;;  %v628_v47 = vsel %vm17499_vm6, 0, %v627_v40  ;;  %v546_v40 = vld [vmem:[#allocation3 + $0x90] sm:$0x1] }
 0x3c2   : > { %15572 = vmatprep.subr.bf16.mxu0 %v16821_v53  ;;  %12126 = vmatpush1.bf16.msra.mxu1 %v16817_v1  ;;  %530 = vst [vmem:[#allocation3 + $0x48] sm:$0x1] %v529_v30  ;;  %629 = vst [vmem:[#allocation3 + $0x5c] sm:$0x1] %v628_v47  ;;  %v633_v1 = vld [vmem:[#allocation3 + $0x74] sm:$0x1] }
 0x3c3   : > { %12127 = vmatprep.subr.bf16.mxu1 %v21144_v36  ;;  %v634_v39 = vsel %vm17499_vm6, 0, %v633_v1  ;;  %v547_v47 = vsel %vm17491_vm3, 0, %v546_v40  ;;  %v552_v1 = vld [vmem:[#allocation3 + $0xa8] sm:$0x1] }
 0x3c4   : > { %v19062_v6 = vpop.f32.mrb[12].mxu1  ;;  %635 = vst [vmem:[#allocation3 + $0x74] sm:$0x1] %v634_v39  ;;  %548 = vst [vmem:[#allocation3 + $0x90] sm:$0x1] %v547_v47  ;;  %v553_v39 = vsel %vm17491_vm3, 0, %v552_v1 }
 0x3c5   : > { %15573 = vmatpush3.bf16.msra.mxu0 %v16821_v53  ;;  %v19074_v54 = vpop.f32.mrb[13].mxu1  ;;  %v630_v53 = vld [vmem:[#allocation3 + $0x68] sm:$0x1]  ;;  %554 = vst [vmem:[#allocation3 + $0xa8] sm:$0x1] %v553_v39 }
 0x3c6   : > { %6404 = vmatmul.mubr.bf16.gmra.mrb[60].mxu0 %v18748_v31  ;;  %v16822_v31 = vld [vmem:[%s21077_s4 + $0x230] sm:$0xff]   ;;  %v19076_v32 = vpop.f32.mrb[14].mxu1  ;;  %v631_v0 = vsel %vm17499_vm6, 0, %v630_v53 }
 0x3c7   : > { %6411 = vmatprep.mubr.bf16.mxu0 %v18780_v2  ;;  %v622_v2 = vsel %vm17499_vm6, 0, %v621_v43  ;;  %15574 = vmatprep.subr.bf16.mxu0 %v16822_v31  ;;  %v19078_v11 = vpop.f32.mrb[15].mxu1  ;;  %632 = vst [vmem:[#allocation3 + $0x68] sm:$0x1] %v631_v0 }
 0x3c8   : > { %623 = vst [vmem:[#allocation3 + $0x44] sm:$0x1] %v622_v2 }
 0x3c9   : > { %15575 = vmatpush3.bf16.msra.mxu0 %v16822_v31 }
 0x3ce   : > { %6412 = vmatmul.mubr.bf16.gmra.mrb[64].mxu0 %v18766_v25  ;;  %v16828_v25 = vld [vmem:[%s21077_s4 + $0x238] sm:$0xff]  }
 0x3cf   : > { %6419 = vmatprep.mubr.bf16.mxu0 %v18791_v8  ;;  %v625_v8 = vsel %vm17499_vm6, 0, %v624_v51  ;;  %15576 = vmatprep.subr.bf16.mxu0 %v16828_v25  ;;  %v636_v51 = vld [vmem:[#allocation3 + $0x80] sm:$0x1] }
 0x3d0   : > { %626 = vst [vmem:[#allocation3 + $0x50] sm:$0x1] %v625_v8  ;;  %15577 = vmatpush3.bf16.msra.mxu0 %v16828_v25  ;;  %v637_v8 = vsel %vm17499_vm6, 0, %v636_v51 }
 0x3d1   : > { %638 = vst [vmem:[#allocation3 + $0x80] sm:$0x1] %v637_v8 }
 0x3d6   : > { %6420 = vmatmul.mubr.bf16.gmra.mrb[68].mxu0 %v18776_v27  ;;  %v16829_v27 = vld [vmem:[%s21077_s4 + $0x88] sm:$0xff]   ;;  %v19094_v12 = vpop.f32.mrb[16].mxu1 }
 0x3d7   : > { %6427 = vmatprep.mubr.bf16.mxu0 %v18808_v58  ;;  %v532_v58 = vsel %vm17491_vm3, 0, %v531_v21  ;;  %12128 = vmatpush1.bf16.msra.mxu1 %v16829_v27  ;;  %v19096_v50 = vpop.f32.mrb[17].mxu1  ;;  %v543_v21 = vld [vmem:[#allocation3 + $0x84] sm:$0x1] }
 0x3d8   : > { %533 = vst [vmem:[#allocation3 + $0x54] sm:$0x1] %v532_v58  ;;  %12129 = vmatprep.subr.bf16.mxu1 %v21144_v36  ;;  %v19100_v31 = vpop.f32.mrb[18].mxu1  ;;  %v544_v58 = vsel %vm17491_vm3, 0, %v543_v21 }
 0x3d9   : > { %v19102_v43 = vpop.f32.mrb[19].mxu1  ;;  %545 = vst [vmem:[#allocation3 + $0x84] sm:$0x1] %v544_v58 }
 0x3de   : > { %6428 = vmatmul.mubr.bf16.gmra.mrb[72].mxu0 %v18793_v22  ;;  %v534_v22 = vld [vmem:[#allocation3 + $0x60] sm:$0x1] }
 0x3df   : > { %6435 = vmatprep.mubr.bf16.mxu0 %v18819_v4  ;;  %v535_v4 = vsel %vm17491_vm3, 0, %v534_v22 }
 0x3e0   : > { %536 = vst [vmem:[#allocation3 + $0x60] sm:$0x1] %v535_v4  ;;  %v642_v4 = vld [vmem:[#allocation3 + $0x98] sm:$0x1] }
 0x3e6   : > { %6436 = vmatmul.mubr.bf16.gmra.mrb[76].mxu0 %v18804_v63  ;;  %v16839_v63 = vld [vmem:[%s21077_s4 + $0x90] sm:$0xff]  }
 0x3e7   : > { %6443 = vmatprep.mubr.bf16.mxu0 %v18836_v9  ;;  %v537_v9 = vld [vmem:[#allocation3 + $0x6c] sm:$0x1]  ;;  %12130 = vmatpush1.bf16.msra.mxu1 %v16839_v63  ;;  %v19118_v30 = vpop.f32.mrb[20].mxu1  ;;  %v16861_v63 = vld [vmem:[%s21077_s4 + $0xa0] sm:$0xff]  }
 0x3e8   : > { %v538_v2 = vsel %vm17491_vm3, 0, %v537_v9  ;;  %12131 = vmatprep.subr.bf16.mxu1 %v21144_v36  ;;  %v19120_v25 = vpop.f32.mrb[21].mxu1  ;;  %v549_v9 = vld [vmem:[#allocation3 + $0x9c] sm:$0x1] }
 0x3e9   : > { %539 = vst [vmem:[#allocation3 + $0x6c] sm:$0x1] %v538_v2  ;;  %v19125_v27 = vpop.f32.mrb[22].mxu1 }
 0x3ee   : > { %6444 = vmatmul.mubr.bf16.gmra.mrb[80].mxu0 %v18821_v42  ;;  %v540_v42 = vld [vmem:[#allocation3 + $0x78] sm:$0x1] }
 0x3ef   : > { %6451 = vmatprep.mubr.bf16.mxu0 %v18847_v26  ;;  %v541_v26 = vsel %vm17491_vm3, 0, %v540_v42 }
 0x3f0   : > { %542 = vst [vmem:[#allocation3 + $0x78] sm:$0x1] %v541_v26  ;;  %v648_v26 = vld [vmem:[#allocation3 + $0xb0] sm:$0x1] }
 0x3f6   : > { %6452 = vmatmul.mubr.bf16.gmra.mrb[84].mxu0 %v18832_v52  ;;  %v19128_v52 = vpop.f32.mrb[23].mxu1 }
 0x3f7   : > { %6459 = vmatprep.mubr.bf16.mxu0 %v18864_v49  ;;  %v16850_v49 = vld [vmem:[%s21077_s4 + $0x98] sm:$0xff]   ;;  %v19142_v22 = vpop.f32.mrb[24].mxu1 }
 0x3f8   : > { %12132 = vmatpush1.bf16.msra.mxu1 %v16850_v49  ;;  %v649_v49 = vsel %vm17499_vm6, 0, %v648_v26 }
 0x3f9   : > { %12133 = vmatprep.subr.bf16.mxu1 %v21144_v36  ;;  %650 = vst [vmem:[#allocation3 + $0xb0] sm:$0x1] %v649_v49 }
 0x3fc   : > { %12134 = vmatpush1.bf16.msra.mxu1 %v16861_v63  ;;  %v555_v63 = vld [vmem:[#allocation3 + $0xb4] sm:$0x1] }
 0x3fd   : > { %12135 = vmatprep.subr.bf16.mxu1 %v21144_v36 }
 0x3fe   : > { %6460 = vmatmul.mubr.bf16.gmra.mrb[88].mxu0 %v18849_v48  ;;  %v639_v48 = vld [vmem:[#allocation3 + $0x8c] sm:$0x1] }
 0x3ff   : > { %6467 = vmatprep.mubr.bf16.mxu0 %v18875_v28  ;;  %v640_v28 = vsel %vm17499_vm6, 0, %v639_v48 }
 0x400   : > { %641 = vst [vmem:[#allocation3 + $0x8c] sm:$0x1] %v640_v28 }
 0x406   : > { %6468 = vmatmul.mubr.bf16.gmra.mrb[92].mxu0 %v18860_v55  ;;  %v19146_v55 = vpop.f32.mrb[25].mxu1 }
 0x407   : > { %6475 = vmatprep.mubr.bf16.mxu0 %v18892_v18  ;;  %v643_v18 = vsel %vm17499_vm6, 0, %v642_v4  ;;  %v19150_v53 = vpop.f32.mrb[26].mxu1 }
 0x408   : > { %644 = vst [vmem:[#allocation3 + $0x98] sm:$0x1] %v643_v18  ;;  %v19152_v0 = vpop.f32.mrb[27].mxu1  ;;  %v16872_v18 = vld [vmem:[%s21077_s4 + $0xa8] sm:$0xff]  }
 0x409   : > { %12136 = vmatpush1.bf16.msra.mxu1 %v16872_v18 }
 0x40a   : > { %12137 = vmatprep.subr.bf16.mxu1 %v21144_v36 }
 0x40e   : > { %6476 = vmatmul.mubr.bf16.gmra.mrb[96].mxu0 %v18877_v57  ;;  %v550_v57 = vsel %vm17491_vm3, 0, %v549_v9  ;;  %v556_v9 = vsel %vm17491_vm3, 0, %v555_v63  ;;  %v558_v63 = vld [vmem:[#allocation3 + $0xc0] sm:$0x1] }
 0x40f   : > { %6483 = vmatprep.mubr.bf16.mxu0 %v18903_v56  ;;  %551 = vst [vmem:[#allocation3 + $0x9c] sm:$0x1] %v550_v57  ;;  %v645_v56 = vld [vmem:[#allocation3 + $0xa4] sm:$0x1]  ;;  %557 = vst [vmem:[#allocation3 + $0xb4] sm:$0x1] %v556_v9 }
 0x410   : > { %v646_v2 = vsel %vm17499_vm6, 0, %v645_v56 }
 0x411   : > { %647 = vst [vmem:[#allocation3 + $0xa4] sm:$0x1] %v646_v2 }
 0x416   : > { %6484 = vmatmul.mubr.bf16.gmra.mrb[100].mxu0 %v18888_v34  ;;  %v19168_v34 = vpop.f32.mrb[28].mxu1 }
 0x417   : > { %6491 = vmatprep.mubr.bf16.mxu0 %v18920_v46  ;;  %v19173_v46 = vld [vmem:[%s21075_s2] ss:$0 sm:$0xff]  ;;  %v19175_v51 = vpop.f32.mrb[29].mxu1 }
 0x418   : > { %v19180_v21 = vpop.f32.mrb[30].mxu1 }
 0x419   : > { %v19187_v48 = vpop.f32.mrb[31].mxu1 }
 0x41e   : > { %6492 = vmatmul.mubr.bf16.gmra.mrb[104].mxu0 %v18905_v62 }
 0x41f   : > { %6499 = vmatprep.mubr.bf16.mxu0 %v18941_v23  ;;  %v19185_v23 = vld [vmem:[%s21076_s3] ss:$0 sm:$0xff] }
 0x421   : > { %v6285_v42 = vpop.f32.mrb[0].mxu0 }
 0x422   : > { %v6575_v8 = vadd.f32 %v18932_v17, %v6285_v42  ;;  %v6287_v62 = vpop.f32.mrb[1].mxu0  ;;  %v651_v42 = vld [vmem:[#allocation3 + $0xbc] sm:$0x1] }
 0x423   : > { %v6288_v58 = vpop.f32.mrb[2].mxu0 }
 0x424   : > { %v6836_v28 = vmul.f32 %v19173_v46, %v6575_v8  ;;  %v6578_v40 = vadd.f32 %v18938_v13, %v6288_v58  ;;  %v6290_v17 = vpop.f32.mrb[3].mxu0 }
 0x426   : > { %v6907_v47 = vadd.f32 %v19185_v23, %v6836_v28  ;;  %v6837_v4 = vmul.f32 %v19173_v46, %v6578_v40  ;;  %6500 = vmatmul.mubr.bf16.gmra.mrb[108].mxu0 %v18916_v3 }
 0x427   : > { %6507 = vmatprep.mubr.bf16.mxu0 %v18956_v44  ;;  %v652_v44 = vsel %vm17499_vm6, 0, %v651_v42  ;;  %v19214_v42 = vpop.f32.mrb[32].mxu1 }
 0x428   : > { %v6971_v57 = vmax.f32 %v6907_v47, 0.0  ;;  %v6908_v13 = vadd.f32 %v19185_v23, %v6837_v4  ;;  %653 = vst [vmem:[#allocation3 + $0xbc] sm:$0x1] %v652_v44 }
 0x429   : > { %v6293_v56 = vpop.f32.mrb[4].mxu0 }
 0x42a   : > { %v14924_v2 = vpack.c.bf16 %v6971_v57, %v6971_v57  ;;  %v6972_v3 = vmax.f32 %v6908_v13, 0.0  ;;  %v6583_v1 = vadd.f32 %v18928_v16, %v6293_v56  ;;  %v6295_v39 = vpop.f32.mrb[5].mxu0  ;;  %v7867_v16 = vld [vmem:[#allocation3 + $0xc] sm:$0xf] }
 0x42b   : > { %v6296_v26 = vpop.f32.mrb[6].mxu0  ;;  %v559_v39 = vsel %vm17491_vm3, 0, %v558_v63 }
 0x42c   : > { %v7228_v8 = vshrl.u32 %v14924_v2, 16  ;;  %v14925_v62 = vpack.c.bf16 %v6972_v3, %v6972_v3  ;;  %v6838_v49 = vmul.f32 %v19173_v46, %v6583_v1  ;;  %v6298_v58 = vpop.f32.mrb[7].mxu0  ;;  %v6586_v28 = vadd.f32 %v18935_v24, %v6296_v26  ;;  %v7871_v1 = vld [vmem:[#allocation3 + $0x14] sm:$0x1]  ;;  %560 = vst [vmem:[#allocation3 + $0xc0] sm:$0x1] %v559_v39 }
 0x42d   : > { %v7231_v17 = vshll.u32 %v14924_v2, 16 }
 0x42e   : > { %v7230_v40 = vrot.slane %v7228_v8, 7  ;;  %v7236_v47 = vshrl.u32 %v14925_v62, 16  ;;  %v6909_v4 = vadd.f32 %v19185_v23, %v6838_v49  ;;  %6508 = vmatmul.mubr.bf16.gmra.mrb[112].mxu0 %v18943_v45  ;;  %v6839_v18 = vmul.f32 %v19173_v46, %v6586_v28 }
 0x42f   : > { %6515 = vmatprep.mubr.bf16.mxu0 %v18995_v29  ;;  %v7239_v13 = vshll.u32 %v14925_v62, 16 }
 0x430   : > { %v7233_v9 = vor.u32 %v7231_v17, %v7230_v40  ;;  %v7238_v57 = vrot.slane %v7236_v47, 7  ;;  %v6973_v56 = vmax.f32 %v6909_v4, 0.0  ;;  %v7234_v3 = vrot.slane %v7230_v40, 4  ;;  %v654_v40 = vld [vmem:[#allocation3 + $0xc8] sm:$0x1] }
 0x431   : > { %v6910_v24 = vadd.f32 %v19185_v23, %v6839_v18  ;;  %v6301_v2 = vpop.f32.mrb[8].mxu0 }
 0x432   : > { %v7868_v26 = vsel %vm17519_vm8, %v7233_v9, %v7867_v16  ;;  %v7241_v44 = vor.u32 %v7239_v13, %v7238_v57  ;;  %v7243_v29 = vrot.slane %v7238_v57, 4  ;;  %v14926_v8 = vpack.c.bf16 %v6973_v56, %v6973_v56  ;;  %v6303_v49 = vpop.f32.mrb[9].mxu0  ;;  %v19223_v16 = vpop.f32.mrb[33].mxu1 }
 0x433   : > { %7869 = vst [vmem:[#allocation3 + $0xc] sm:$0xf] %v7868_v26  ;;  %v6974_v62 = vmax.f32 %v6910_v24, 0.0  ;;  %v6591_v58 = vadd.f32 %v18962_v41, %v6301_v2  ;;  %v6304_v28 = vpop.f32.mrb[10].mxu0  ;;  %v655_v41 = vsel %vm17499_vm6, 0, %v654_v40  ;;  %v19229_v56 = vpop.f32.mrb[34].mxu1 }
 0x434   : > { %v7242_v47 = vsel %vm17529_vm9, %v7234_v3, %v7241_v44  ;;  %v7872_v4 = vsel %vm17491_vm3, %v7243_v29, %v7871_v1  ;;  %v7245_v18 = vshrl.u32 %v14926_v8, 16  ;;  %v6306_v63 = vpop.f32.mrb[11].mxu0  ;;  %v6594_v13 = vadd.f32 %v18969_v7, %v6304_v28  ;;  %656 = vst [vmem:[#allocation3 + $0xc8] sm:$0x1] %v655_v41  ;;  %v19232_v1 = vpop.f32.mrb[35].mxu1  ;;  %v16883_v49 = vld [vmem:[%s21077_s4 + $0xb0] sm:$0xff]  }
 0x435   : > { %7870 = vst [vmem:[#allocation3 + $0x10] sm:$0xf] %v7242_v47  ;;  %7873 = vst [vmem:[#allocation3 + $0x14] sm:$0x1] %v7872_v4  ;;  %v14927_v9 = vpack.c.bf16 %v6974_v62, %v6974_v62  ;;  %v6840_v57 = vmul.f32 %v19173_v46, %v6591_v58  ;;  %v7248_v24 = vshll.u32 %v14926_v8, 16  ;;  %12138 = vmatpush1.bf16.msra.mxu1 %v16883_v49 }
 0x436   : > { %v7247_v3 = vrot.slane %v7245_v18, 7  ;;  %6516 = vmatmul.mubr.bf16.gmra.mrb[116].mxu0 %v18953_v15  ;;  %v7874_v2 = vld [vmem:[#allocation3 + $0x18] sm:$0xf]  ;;  %v6841_v44 = vmul.f32 %v19173_v46, %v6594_v13  ;;  %v561_v8 = vld [vmem:[#allocation3 + $0xe4] sm:$0x1]  ;;  %12139 = vmatprep.subr.bf16.mxu1 %v21144_v36 }
 0x437   : > { %v7253_v39 = vshrl.u32 %v14927_v9, 16  ;;  %v6911_v26 = vadd.f32 %v19185_v23, %v6840_v57  ;;  %6523 = vmatprep.mubr.bf16.mxu0 %v19016_v35  ;;  %v7256_v29 = vshll.u32 %v14927_v9, 16  ;;  %v562_v40 = vsel %vm17491_vm3, 0, %v561_v8  ;;  %v7878_v35 = vld [vmem:[#allocation3 + $0x20] sm:$0x1] }
 0x438   : > { %v7250_v7 = vor.u32 %v7248_v24, %v7247_v3  ;;  %v6912_v58 = vadd.f32 %v19185_v23, %v6841_v44  ;;  %v7251_v47 = vrot.slane %v7247_v3, 4  ;;  %563 = vst [vmem:[#allocation3 + $0xe4] sm:$0x1] %v562_v40 }
 0x439   : > { %v7255_v62 = vrot.slane %v7253_v39, 7  ;;  %v6975_v15 = vmax.f32 %v6911_v26, 0.0  ;;  %v6309_v28 = vpop.f32.mrb[12].mxu0 }
 0x43a   : > { %v7875_v4 = vsel %vm17519_vm8, %v7250_v7, %v7874_v2  ;;  %v6599_v18 = vadd.f32 %v18959_v38, %v6309_v28  ;;  %v6311_v63 = vpop.f32.mrb[13].mxu0  ;;  %v6976_v41 = vmax.f32 %v6912_v58, 0.0  ;;  %v657_v58 = vld [vmem:[#allocation3 + $0xec] sm:$0x1] }
 0x43b   : > { %7876 = vst [vmem:[#allocation3 + $0x18] sm:$0xf] %v7875_v4  ;;  %v7258_v9 = vor.u32 %v7256_v29, %v7255_v62  ;;  %v7260_v57 = vrot.slane %v7255_v62, 4  ;;  %v14928_v13 = vpack.c.bf16 %v6975_v15, %v6975_v15  ;;  %v6312_v24 = vpop.f32.mrb[14].mxu0  ;;  %v8093_v29 = vld [vmem:[#allocation3 + $0xc] sm:$0xf] }
 0x43c   : > { %v6842_v39 = vmul.f32 %v19173_v46, %v6599_v18  ;;  %v6602_v3 = vadd.f32 %v18964_v60, %v6312_v24  ;;  %v6314_v26 = vpop.f32.mrb[15].mxu0  ;;  %v8094_v2 = vld [vmem:[#allocation3 + $0x10] sm:$0xf]  ;;  %v16820_v49 = vld [vmem:[#allocation3 + $0x14] ss:$0 sps:$4 sm:$0x11]   ;;  %v14929_v8 = vpack.c.bf16 %v6976_v41, %v6976_v41 }
 0x43d   : > { %v7259_v38 = vsel %vm17529_vm9, %v7251_v47, %v7258_v9  ;;  %v7879_v44 = vsel %vm17491_vm3, %v7260_v57, %v7878_v35  ;;  %v7262_v7 = vshrl.u32 %v14928_v13, 16  ;;  %v19256_v60 = vcombine.low %v8093_v29, %v8094_v2  ;;  %v7881_v35 = vld [vmem:[#allocation3 + $0x24] sm:$0xf] }
 0x43e   : > { %7877 = vst [vmem:[#allocation3 + $0x1c] sm:$0xf] %v7259_v38  ;;  %7880 = vst [vmem:[#allocation3 + $0x20] sm:$0x1] %v7879_v44  ;;  %v6913_v62 = vadd.f32 %v19185_v23, %v6842_v39  ;;  %v6843_v15 = vmul.f32 %v19173_v46, %v6602_v3  ;;  %6524 = vmatmul.mubr.bf16.gmra.mrb[120].mxu0 %v18985_v59  ;;  %v7265_v40 = vshll.u32 %v14928_v13, 16  ;;  %v8784_v47 = vshll.u32 %v16820_v49, 16 }
 0x43f   : > { %v7264_v28 = vrot.slane %v7262_v7, 7  ;;  %6531 = vmatprep.mubr.bf16.mxu0 %v19045_v33  ;;  %v658_v4 = vsel %vm17499_vm6, 0, %v657_v58  ;;  %v7270_v18 = vshrl.u32 %v14929_v8, 16  ;;  %v7273_v59 = vshll.u32 %v14929_v8, 16  ;;  %v7885_v13 = vld [vmem:[#allocation3 + $0x2c] sm:$0x1] }
 0x440   : > { %v6977_v63 = vmax.f32 %v6913_v62, 0.0  ;;  %v6914_v9 = vadd.f32 %v19185_v23, %v6843_v15  ;;  %659 = vst [vmem:[#allocation3 + $0xec] sm:$0x1] %v658_v4  ;;  %v8779_v39 = vshll.u32 %v19256_v60, 16  ;;  %v8777_v29 = vshrl.u32 %v19256_v60, 16  ;;  %v19267_v15 = vpop.f32.mrb[36].mxu1 }
 0x441   : > { %v7267_v57 = vor.u32 %v7265_v40, %v7264_v28  ;;  %v7268_v41 = vrot.slane %v7264_v28, 4  ;;  %v6317_v24 = vpop.f32.mrb[16].mxu0  ;;  %v7272_v3 = vrot.slane %v7270_v18, 7  ;;  %v8786_v62 = vrot.slane %v8784_v47, 1  ;;  %21153 = vst [vmem:[#allocation6_spill] sm:$0xff] %v19267_v15 }
 0x442   : > { %v14930_v26 = vpack.c.bf16 %v6977_v63, %v6977_v63  ;;  %v6978_v33 = vmax.f32 %v6914_v9, 0.0  ;;  %v6607_v2 = vadd.f32 %v19025_v61, %v6317_v24  ;;  %v6319_v38 = vpop.f32.mrb[17].mxu0  ;;  %v8781_v49 = vrot.slane %v8779_v39, 1  ;;  %v7888_v18 = vld [vmem:[#allocation3 + $0x30] sm:$0xf] }
 0x443   : > { %v7882_v44 = vsel %vm17519_vm8, %v7267_v57, %v7881_v35  ;;  %v6320_v7 = vpop.f32.mrb[18].mxu0  ;;  %v7275_v8 = vor.u32 %v7273_v59, %v7272_v3  ;;  %v7277_v58 = vrot.slane %v7272_v3, 4  ;;  %v8444_v24 = vld [vmem:[#allocation3 + $0x18] sm:$0xe] }
 0x444   : > { %7883 = vst [vmem:[#allocation3 + $0x24] sm:$0xf] %v7882_v44  ;;  %v7279_v28 = vshrl.u32 %v14930_v26, 16  ;;  %v7282_v40 = vshll.u32 %v14930_v26, 16  ;;  %v6322_v4 = vpop.f32.mrb[19].mxu0  ;;  %v14931_v63 = vpack.c.bf16 %v6978_v33, %v6978_v33  ;;  %v6844_v61 = vmul.f32 %v19173_v46, %v6607_v2  ;;  %v19278_v44 = vpop.f32.mrb[37].mxu1 }
 0x445   : > { %v6610_v9 = vadd.f32 %v19031_v5, %v6320_v7  ;;  %v8782_v35 = vor.u32 %v8781_v49, %v8777_v29  ;;  %v8349_v57 = vld [vmem:[#allocation3 + $0x1c] sm:$0xf]  ;;  %v7276_v47 = vsel %vm17529_vm9, %v7268_v41, %v7275_v8  ;;  %v7886_v39 = vsel %vm17491_vm3, %v7277_v58, %v7885_v13  ;;  %v16824_v3 = vld [vmem:[#allocation3 + $0x20] ss:$0 sps:$4 sm:$0x11]   ;;  %v19281_v8 = vpop.f32.mrb[38].mxu1 }
 0x446   : > { %v7281_v59 = vrot.slane %v7279_v28, 7  ;;  %6532 = vmatmul.mubr.bf16.gmra.mrb[124].mxu0 %v19013_v37  ;;  %7884 = vst [vmem:[#allocation3 + $0x28] sm:$0xf] %v7276_v47  ;;  %7887 = vst [vmem:[#allocation3 + $0x2c] sm:$0x1] %v7886_v39  ;;  %v7287_v26 = vshrl.u32 %v14931_v63, 16  ;;  %v6915_v2 = vadd.f32 %v19185_v23, %v6844_v61  ;;  %v14750_v49 = vcombine.low %v8444_v24, %v8349_v57 }
 0x447   : > { %v7290_v33 = vshll.u32 %v14931_v63, 16  ;;  %v6845_v5 = vmul.f32 %v19173_v46, %v6610_v9  ;;  %v8096_v38 = vld [vmem:[#allocation3 + $0x1c] sm:$0xf]  ;;  %v7892_v29 = vld [vmem:[#allocation3 + $0x38] sm:$0x1]  ;;  %v8787_v13 = vsel %vm2310_vm1, %v8782_v35, %v8786_v62  ;;  %21154 = vst [vmem:[#allocation7_spill] sm:$0xff] %v19281_v8 }
 0x448   : > { %v7284_v7 = vor.u32 %v7282_v40, %v7281_v59  ;;  %v7285_v41 = vrot.slane %v7281_v59, 4  ;;  %v7289_v37 = vrot.slane %v7287_v26, 7  ;;  %v6979_v58 = vmax.f32 %v6915_v2, 0.0  ;;  %11876 = vmatprep.mubr.bf16.mxu1 %v8787_v13  ;;  %v8095_v61 = vld [vmem:[#allocation3 + $0x18] sm:$0xf]  ;;  %v19290_v57 = vpop.f32.mrb[39].mxu1 }
 0x449   : > { %v6916_v28 = vadd.f32 %v19185_v23, %v6845_v5  ;;  %v6325_v4 = vpop.f32.mrb[20].mxu0  ;;  %v11133_v63 = vrot.slane %v16824_v3, 1  ;;  %11877 = vmatmul.mubr.bf16.gmra.mrb[68].mxu1 %v19256_v60  ;;  %v11132_v62 = vrot.slane %v14750_v49, 1  ;;  %v19288_v35 = vcombine.low %v8095_v61, %v8096_v38  ;;  %v16827_v2 = vld [vmem:[#allocation3 + $0x20] ss:$0 sps:$4 sm:$0x11]  }
 0x44a   : > { %v7889_v9 = vsel %vm17519_vm8, %v7284_v7, %v7888_v18  ;;  %v6615_v40 = vadd.f32 %v19022_v19, %v6325_v4  ;;  %v6327_v47 = vpop.f32.mrb[21].mxu0  ;;  %v7292_v24 = vor.u32 %v7290_v33, %v7289_v37  ;;  %v7294_v39 = vrot.slane %v7289_v37, 4  ;;  %v564_v38 = vld [vmem:[#allocation3 + $0xf0] sm:$0x1]  ;;  %v16894_v13 = vld [vmem:[%s21077_s4 + $0xb8] sm:$0xff]  }
 0x44b   : > { %7890 = vst [vmem:[#allocation3 + $0x30] sm:$0xf] %v7889_v9  ;;  %v14932_v59 = vpack.c.bf16 %v6979_v58, %v6979_v58  ;;  %v6980_v26 = vmax.f32 %v6916_v28, 0.0  ;;  %v6328_v3 = vpop.f32.mrb[22].mxu0  ;;  %v11134_v18 = vsel %vm2823_vm10, %v11132_v62, %v11133_v63  ;;  %v8789_v7 = vshrl.u32 %v19288_v35, 16  ;;  %12140 = vmatpush1.bf16.msra.mxu1 %v16894_v13 }
 0x44c   : > { %v6846_v5 = vmul.f32 %v19173_v46, %v6615_v40  ;;  %v6618_v60 = vadd.f32 %v19029_v10, %v6328_v3  ;;  %v6330_v19 = vpop.f32.mrb[23].mxu0  ;;  %v7293_v33 = vsel %vm17529_vm9, %v7285_v41, %v7292_v24  ;;  %v7893_v49 = vsel %vm17491_vm3, %v7294_v39, %v7892_v29  ;;  %15578 = vmatprep.mubr.bf16.mxu0 %v11134_v18  ;;  %v8445_v28 = vld [vmem:[#allocation3 + $0x24] sm:$0xe]  ;;  %v7895_v24 = vld [vmem:[#allocation3 + $0x3c] sm:$0xf] }
 0x44d   : > { %v7296_v37 = vshrl.u32 %v14932_v59, 16  ;;  %v7299_v58 = vshll.u32 %v14932_v59, 16  ;;  %7891 = vst [vmem:[#allocation3 + $0x34] sm:$0xf] %v7293_v33  ;;  %7894 = vst [vmem:[#allocation3 + $0x38] sm:$0x1] %v7893_v49  ;;  %v14933_v10 = vpack.c.bf16 %v6980_v26, %v6980_v26  ;;  %12141 = vmatprep.subr.bf16.mxu1 %v21144_v36 }
 0x44e   : > { %v6917_v4 = vadd.f32 %v19185_v23, %v6846_v5  ;;  %v6847_v63 = vmul.f32 %v19173_v46, %v6618_v60  ;;  %v8791_v61 = vshll.u32 %v19288_v35, 16  ;;  %v8351_v9 = vld [vmem:[#allocation3 + $0x28] sm:$0xf]  ;;  %v8796_v41 = vshll.u32 %v16827_v2, 16  ;;  %v7899_v33 = vld [vmem:[#allocation3 + $0x44] sm:$0x1] }
 0x44f   : > { %v7298_v40 = vrot.slane %v7296_v37, 7  ;;  %v16830_v47 = vld [vmem:[#allocation3 + $0x2c] ss:$0 sps:$4 sm:$0x11]   ;;  %v14751_v62 = vcombine.low %v8445_v28, %v8351_v9  ;;  %v565_v29 = vsel %vm17491_vm3, 0, %v564_v38  ;;  %v7304_v39 = vshrl.u32 %v14933_v10, 16 }
 0x450   : > { %v7307_v59 = vshll.u32 %v14933_v10, 16  ;;  %v6981_v26 = vmax.f32 %v6917_v4, 0.0  ;;  %v6918_v3 = vadd.f32 %v19185_v23, %v6847_v63  ;;  %566 = vst [vmem:[#allocation3 + $0xf0] sm:$0x1] %v565_v29  ;;  %v8793_v60 = vrot.slane %v8791_v61, 1 }
 0x451   : > { %v7301_v5 = vor.u32 %v7299_v58, %v7298_v40  ;;  %v7302_v18 = vrot.slane %v7298_v40, 4  ;;  %v8798_v19 = vrot.slane %v8796_v41, 1  ;;  %v6333_v13 = vpop.f32.mrb[24].mxu0  ;;  %v7306_v2 = vrot.slane %v7304_v39, 7  ;;  %v8098_v15 = vld [vmem:[#allocation3 + $0x28] sm:$0xf] }
 0x452   : > { %v14934_v49 = vpack.c.bf16 %v6981_v26, %v6981_v26  ;;  %v6982_v37 = vmax.f32 %v6918_v3, 0.0  ;;  %v6623_v38 = vadd.f32 %v19074_v54, %v6333_v13  ;;  %v6335_v28 = vpop.f32.mrb[25].mxu0  ;;  %v8794_v10 = vor.u32 %v8793_v60, %v8789_v7  ;;  %v16833_v29 = vld [vmem:[#allocation3 + $0x2c] ss:$0 sps:$4 sm:$0x11]  }
 0x453   : > { %v7896_v9 = vsel %vm17519_vm8, %v7301_v5, %v7895_v24  ;;  %v11135_v4 = vrot.slane %v14751_v62, 1  ;;  %v11136_v8 = vrot.slane %v16830_v47, 1  ;;  %v6336_v63 = vpop.f32.mrb[26].mxu0  ;;  %v7309_v58 = vor.u32 %v7307_v59, %v7306_v2  ;;  %v8097_v59 = vld [vmem:[#allocation3 + $0x24] sm:$0xf]  ;;  %v19326_v28 = vpop.f32.mrb[40].mxu1 }
 0x454   : > { %7897 = vst [vmem:[#allocation3 + $0x3c] sm:$0xf] %v7896_v9  ;;  %v7311_v61 = vrot.slane %v7306_v2, 4  ;;  %v7313_v40 = vshrl.u32 %v14934_v49, 16  ;;  %v7316_v41 = vshll.u32 %v14934_v49, 16  ;;  %v6338_v39 = vpop.f32.mrb[27].mxu0  ;;  %v14935_v26 = vpack.c.bf16 %v6982_v37, %v6982_v37 }
 0x455   : > { %v8799_v3 = vsel %vm2310_vm1, %v8794_v10, %v8798_v19  ;;  %v6848_v54 = vmul.f32 %v19173_v46, %v6623_v38  ;;  %v11137_v13 = vsel %vm2823_vm10, %v11135_v4, %v11136_v8  ;;  %v7310_v7 = vsel %vm17529_vm9, %v7302_v18, %v7309_v58  ;;  %v7902_v5 = vld [vmem:[#allocation3 + $0x48] sm:$0xf]  ;;  %v7906_v49 = vld [vmem:[#allocation3 + $0x50] sm:$0x1]  ;;  %v8353_v38 = vld [vmem:[#allocation3 + $0x34] sm:$0xf] }
 0x456   : > { %v7900_v47 = vsel %vm17491_vm3, %v7311_v61, %v7899_v33  ;;  %v7315_v62 = vrot.slane %v7313_v40, 7  ;;  %11884 = vmatprep.mubr.bf16.mxu1 %v8799_v3  ;;  %15579 = vmatmul.mubr.bf16.vlgmr.msra.gmra.mrb[128].mxu0 %v11137_v13  ;;  %v6626_v24 = vadd.f32 %v19078_v11, %v6336_v63  ;;  %7898 = vst [vmem:[#allocation3 + $0x40] sm:$0xf] %v7310_v7  ;;  %v7321_v60 = vshrl.u32 %v14935_v26, 16  ;;  %v8446_v13 = vld [vmem:[#allocation3 + $0x30] sm:$0xe] }
 0x457   : > { %7901 = vst [vmem:[#allocation3 + $0x44] sm:$0x1] %v7900_v47  ;;  %11885 = vmatmul.mubr.bf16.gmra.mrb[72].mxu1 %v19288_v35  ;;  %v6919_v8 = vadd.f32 %v19185_v23, %v6848_v54  ;;  %v19323_v19 = vcombine.low %v8097_v59, %v8098_v15  ;;  %v7324_v2 = vshll.u32 %v14935_v26, 16  ;;  %v8808_v37 = vshll.u32 %v16833_v29, 16  ;;  %v19329_v35 = vpop.f32.mrb[41].mxu1 }
 0x458   : > { %v7318_v18 = vor.u32 %v7316_v41, %v7315_v62  ;;  %v6849_v33 = vmul.f32 %v19173_v46, %v6626_v24  ;;  %v7319_v11 = vrot.slane %v7315_v62, 4  ;;  %v7323_v9 = vrot.slane %v7321_v60, 7  ;;  %v16835_v41 = vld [vmem:[#allocation3 + $0x38] ss:$0 sps:$4 sm:$0x11]   ;;  %v19336_v47 = vpop.f32.mrb[42].mxu1 }
 0x459   : > { %v6983_v10 = vmax.f32 %v6919_v8, 0.0  ;;  %v8803_v4 = vshll.u32 %v19323_v19, 16  ;;  %v6341_v63 = vpop.f32.mrb[28].mxu0  ;;  %v8801_v61 = vshrl.u32 %v19323_v19, 16  ;;  %v8810_v24 = vrot.slane %v8808_v37, 1 }
 0x45a   : > { %v7903_v15 = vsel %vm17519_vm8, %v7318_v18, %v7902_v5  ;;  %v6920_v58 = vadd.f32 %v19185_v23, %v6849_v33  ;;  %v6631_v29 = vadd.f32 %v19062_v6, %v6341_v63  ;;  %v6343_v40 = vpop.f32.mrb[29].mxu0  ;;  %v7326_v39 = vor.u32 %v7324_v2, %v7323_v9  ;;  %v8100_v8 = vld [vmem:[#allocation3 + $0x34] sm:$0xf]  ;;  %v8099_v63 = vld [vmem:[#allocation3 + $0x30] sm:$0xf] }
 0x45b   : > { %7904 = vst [vmem:[#allocation3 + $0x48] sm:$0xf] %v7903_v15  ;;  %v7328_v26 = vrot.slane %v7323_v9, 4  ;;  %v14936_v3 = vpack.c.bf16 %v6983_v10, %v6983_v10  ;;  %v8805_v54 = vrot.slane %v8803_v4, 1  ;;  %v6344_v7 = vpop.f32.mrb[30].mxu0  ;;  %v14752_v5 = vcombine.low %v8446_v13, %v8353_v38  ;;  %v16905_v38 = vld [vmem:[%s21077_s4 + $0xc0] sm:$0xff]  }
 0x45c   : > { %v6984_v62 = vmax.f32 %v6920_v58, 0.0  ;;  %v6850_v59 = vmul.f32 %v19173_v46, %v6631_v29  ;;  %v6346_v60 = vpop.f32.mrb[31].mxu0  ;;  %v7327_v6 = vsel %vm17529_vm9, %v7319_v11, %v7326_v39  ;;  %v11139_v58 = vrot.slane %v16835_v41, 1  ;;  %v19350_v40 = vpop.f32.mrb[43].mxu1  ;;  %v7909_v39 = vld [vmem:[#allocation3 + $0x54] sm:$0xf]  ;;  %12142 = vmatpush1.bf16.msra.mxu1 %v16905_v38 }
 0x45d   : > { %v7907_v18 = vsel %vm17491_vm3, %v7328_v26, %v7906_v49  ;;  %v7330_v2 = vshrl.u32 %v14936_v3, 16  ;;  %v7333_v33 = vshll.u32 %v14936_v3, 16  ;;  %7905 = vst [vmem:[#allocation3 + $0x4c] sm:$0xf] %v7327_v6  ;;  %v8806_v10 = vor.u32 %v8805_v54, %v8801_v61  ;;  %12143 = vmatprep.subr.bf16.mxu1 %v21144_v36  ;;  %v8355_v38 = vld [vmem:[#allocation3 + $0x40] sm:$0xf] }
 0x45e   : > { %7908 = vst [vmem:[#allocation3 + $0x50] sm:$0x1] %v7907_v18  ;;  %v14937_v9 = vpack.c.bf16 %v6984_v62, %v6984_v62  ;;  %v6921_v4 = vadd.f32 %v19185_v23, %v6850_v59  ;;  %v11138_v37 = vrot.slane %v14752_v5, 1  ;;  %v6634_v11 = vadd.f32 %v19076_v32, %v6344_v7  ;;  %v16838_v49 = vld [vmem:[#allocation3 + $0x38] ss:$0 sps:$4 sm:$0x11]  }
 0x45f   : > { %v7332_v15 = vrot.slane %v7330_v2, 7  ;;  %v19348_v29 = vcombine.low %v8099_v63, %v8100_v8  ;;  %v8811_v61 = vsel %vm2310_vm1, %v8806_v10, %v8810_v24  ;;  %v7913_v5 = vld [vmem:[#allocation3 + $0x5c] sm:$0x1]  ;;  %v8820_v2 = vshll.u32 %v16838_v49, 16 }
 0x460   : > { %v7338_v26 = vshrl.u32 %v14937_v9, 16  ;;  %v6985_v3 = vmax.f32 %v6921_v4, 0.0  ;;  %v7341_v13 = vshll.u32 %v14937_v9, 16  ;;  %11892 = vmatprep.mubr.bf16.mxu1 %v8811_v61  ;;  %v11140_v62 = vsel %vm2823_vm10, %v11138_v37, %v11139_v58  ;;  %v16841_v9 = vld [vmem:[#allocation3 + $0x44] ss:$0 sps:$4 sm:$0x11]  }
 0x461   : > { %v7335_v54 = vor.u32 %v7333_v33, %v7332_v15  ;;  %v6851_v41 = vmul.f32 %v19173_v46, %v6634_v11  ;;  %v6349_v59 = vpop.f32.mrb[32].mxu0  ;;  %v7336_v32 = vrot.slane %v7332_v15, 4  ;;  %11893 = vmatmul.mubr.bf16.gmra.mrb[76].mxu1 %v19323_v19  ;;  %15582 = vmatprep.mubr.bf16.mxu0 %v11140_v62  ;;  %v8815_v24 = vshll.u32 %v19348_v29, 16  ;;  %v7916_v11 = vld [vmem:[#allocation3 + $0x60] sm:$0xf] }
 0x462   : > { %v7340_v7 = vrot.slane %v7338_v26, 7  ;;  %v14938_v60 = vpack.c.bf16 %v6985_v3, %v6985_v3  ;;  %v6351_v8 = vpop.f32.mrb[33].mxu0  ;;  %v6639_v33 = vadd.f32 %v19096_v50, %v6349_v59  ;;  %v8813_v19 = vshrl.u32 %v19348_v29, 16  ;;  %v8447_v3 = vld [vmem:[#allocation3 + $0x3c] sm:$0xe] }
 0x463   : > { %v7910_v6 = vsel %vm17519_vm8, %v7335_v54, %v7909_v39  ;;  %v6922_v18 = vadd.f32 %v19185_v23, %v6851_v41  ;;  %v6352_v10 = vpop.f32.mrb[34].mxu0  ;;  %v8817_v61 = vrot.slane %v8815_v24, 1  ;;  %v8102_v62 = vld [vmem:[#allocation3 + $0x40] sm:$0xf] }
 0x464   : > { %7911 = vst [vmem:[#allocation3 + $0x54] sm:$0xf] %v7910_v6  ;;  %v7343_v4 = vor.u32 %v7341_v13, %v7340_v7  ;;  %v7345_v37 = vrot.slane %v7340_v7, 4  ;;  %v7347_v63 = vshrl.u32 %v14938_v60, 16  ;;  %v6354_v15 = vpop.f32.mrb[35].mxu0  ;;  %v7350_v58 = vshll.u32 %v14938_v60, 16 }
 0x465   : > { %v6986_v26 = vmax.f32 %v6922_v18, 0.0  ;;  %v6852_v39 = vmul.f32 %v19173_v46, %v6639_v33  ;;  %v8822_v13 = vrot.slane %v8820_v2, 1  ;;  %v8818_v59 = vor.u32 %v8817_v61, %v8813_v19  ;;  %v16844_v24 = vld [vmem:[#allocation3 + $0x44] ss:$0 sps:$4 sm:$0x11]   ;;  %v19370_v33 = vpop.f32.mrb[44].mxu1 }
 0x466   : > { %v7344_v50 = vsel %vm17529_vm9, %v7336_v32, %v7343_v4  ;;  %v7914_v49 = vsel %vm17491_vm3, %v7345_v37, %v7913_v5  ;;  %v7349_v54 = vrot.slane %v7347_v63, 7  ;;  %v14753_v60 = vcombine.low %v8447_v3, %v8355_v38  ;;  %v8101_v37 = vld [vmem:[#allocation3 + $0x3c] sm:$0xf] }
 0x467   : > { %7912 = vst [vmem:[#allocation3 + $0x58] sm:$0xf] %v7344_v50  ;;  %7915 = vst [vmem:[#allocation3 + $0x5c] sm:$0x1] %v7914_v49  ;;  %v14939_v41 = vpack.c.bf16 %v6986_v26, %v6986_v26  ;;  %v6923_v7 = vadd.f32 %v19185_v23, %v6852_v39  ;;  %v11142_v6 = vrot.slane %v16841_v9, 1  ;;  %v6642_v18 = vadd.f32 %v19102_v43, %v6352_v10 }
 0x468   : > { %v7352_v8 = vor.u32 %v7350_v58, %v7349_v54  ;;  %v8823_v5 = vsel %vm2310_vm1, %v8818_v59, %v8822_v13  ;;  %v11141_v15 = vrot.slane %v14753_v60, 1  ;;  %v14499_v58 = vcombine.low %v8101_v37, %v8102_v62  ;;  %v19378_v39 = vld [vmem:[#allocation3 + $0x50] ss:$0 sps:$4 sm:$0x11]   ;;  %v7920_v49 = vld [vmem:[#allocation3 + $0x68] sm:$0x1] }
 0x469   : > { %v7355_v32 = vshrl.u32 %v14939_v41, 16  ;;  %v7358_v4 = vshll.u32 %v14939_v41, 16  ;;  %v6987_v2 = vmax.f32 %v6923_v7, 0.0  ;;  %v6357_v63 = vpop.f32.mrb[36].mxu0  ;;  %11900 = vmatprep.mubr.bf16.mxu1 %v8823_v5  ;;  %v6853_v38 = vmul.f32 %v19173_v46, %v6642_v18  ;;  %v19382_v59 = vpop.f32.mrb[45].mxu1 }
 0x46a   : > { %v7917_v19 = vsel %vm17519_vm8, %v7352_v8, %v7916_v11  ;;  %v6359_v9 = vpop.f32.mrb[37].mxu0  ;;  %11901 = vmatmul.mubr.bf16.gmra.mrb[80].mxu1 %v19348_v29  ;;  %v8832_v26 = vshll.u32 %v16844_v24, 16  ;;  %v6647_v61 = vadd.f32 %v19094_v12, %v6357_v63  ;;  %v7353_v50 = vrot.slane %v7349_v54, 4  ;;  %v8357_v8 = vld [vmem:[#allocation3 + $0x4c] sm:$0xf]  ;;  %v19384_v12 = vpop.f32.mrb[46].mxu1 }
 0x46b   : > { %7918 = vst [vmem:[#allocation3 + $0x60] sm:$0xf] %v7917_v19  ;;  %v7357_v43 = vrot.slane %v7355_v32, 7  ;;  %v14940_v10 = vpack.c.bf16 %v6987_v2, %v6987_v2  ;;  %v6360_v3 = vpop.f32.mrb[38].mxu0  ;;  %v11143_v11 = vsel %vm2823_vm10, %v11141_v15, %v11142_v6  ;;  %v6924_v13 = vadd.f32 %v19185_v23, %v6853_v38  ;;  %21155 = vst [vmem:[#allocation8_spill] sm:$0xff] %v19384_v12  ;;  %v19387_v37 = vpop.f32.mrb[47].mxu1 }
 0x46c   : > { %v8827_v41 = vshll.u32 %v14499_v58, 16  ;;  %v6362_v62 = vpop.f32.mrb[39].mxu0  ;;  %15583 = vmatmul.mubr.bf16.gmra.mrb[132].mxu0 %v11143_v11  ;;  %v8825_v24 = vshrl.u32 %v14499_v58, 16  ;;  %v7923_v32 = vld [vmem:[#allocation3 + $0x6c] sm:$0xf]  ;;  %v6854_v6 = vmul.f32 %v19173_v46, %v6647_v61  ;;  %v8834_v15 = vrot.slane %v8832_v26, 1 }
 0x46d   : > { %v7360_v7 = vor.u32 %v7358_v4, %v7357_v43  ;;  %v7362_v60 = vrot.slane %v7357_v43, 4  ;;  %v7364_v29 = vshrl.u32 %v14940_v10, 16  ;;  %v7367_v18 = vshll.u32 %v14940_v10, 16  ;;  %v8448_v2 = vld [vmem:[#allocation3 + $0x48] sm:$0xe] }
 0x46e   : > { %v6988_v54 = vmax.f32 %v6924_v13, 0.0  ;;  %v8829_v5 = vrot.slane %v8827_v41, 1  ;;  %v8104_v38 = vld [vmem:[#allocation3 + $0x4c] sm:$0xf]  ;;  %v6925_v10 = vadd.f32 %v19185_v23, %v6854_v6  ;;  %v14754_v11 = vcombine.low %v8448_v2, %v8357_v8 }
 0x46f   : > { %v7361_v63 = vsel %vm17529_vm9, %v7353_v50, %v7360_v7  ;;  %v7921_v4 = vsel %vm17491_vm3, %v7362_v60, %v7920_v49  ;;  %v7366_v19 = vrot.slane %v7364_v29, 7  ;;  %v16849_v61 = vld [vmem:[#allocation3 + $0x50] ss:$0 sps:$4 sm:$0x11]   ;;  %v11145_v41 = vrot.slane %v19378_v39, 1 }
 0x470   : > { %7919 = vst [vmem:[#allocation3 + $0x64] sm:$0xf] %v7361_v63  ;;  %7922 = vst [vmem:[#allocation3 + $0x68] sm:$0x1] %v7921_v4  ;;  %v14941_v9 = vpack.c.bf16 %v6988_v54, %v6988_v54  ;;  %v8830_v43 = vor.u32 %v8829_v5, %v8825_v24  ;;  %v6650_v62 = vadd.f32 %v19100_v31, %v6360_v3  ;;  %v6989_v26 = vmax.f32 %v6925_v10, 0.0  ;;  %v16916_v63 = vld [vmem:[%s21077_s4 + $0xc8] sm:$0xff]  }
 0x471   : > { %v7369_v13 = vor.u32 %v7367_v18, %v7366_v19  ;;  %v6365_v50 = vpop.f32.mrb[40].mxu0  ;;  %v8103_v60 = vld [vmem:[#allocation3 + $0x48] sm:$0xf]  ;;  %v11144_v54 = vrot.slane %v14754_v11, 1  ;;  %v8844_v3 = vshll.u32 %v16849_v61, 16  ;;  %v7370_v4 = vrot.slane %v7366_v19, 4  ;;  %12144 = vmatpush1.bf16.msra.mxu1 %v16916_v63 }
 0x472   : > { %v7372_v7 = vshrl.u32 %v14941_v9, 16  ;;  %v7375_v12 = vshll.u32 %v14941_v9, 16  ;;  %v8835_v49 = vsel %vm2310_vm1, %v8830_v43, %v8834_v15  ;;  %v6367_v29 = vpop.f32.mrb[41].mxu0  ;;  %v6855_v8 = vmul.f32 %v19173_v46, %v6650_v62  ;;  %v8359_v43 = vld [vmem:[#allocation3 + $0x58] sm:$0xf]  ;;  %12145 = vmatprep.subr.bf16.mxu1 %v21144_v36 }
 0x473   : > { %v7924_v24 = vsel %vm17519_vm8, %v7369_v13, %v7923_v32  ;;  %11908 = vmatprep.mubr.bf16.mxu1 %v8835_v49  ;;  %v14500_v18 = vcombine.low %v8103_v60, %v8104_v38  ;;  %v6368_v5 = vpop.f32.mrb[42].mxu0  ;;  %v14942_v31 = vpack.c.bf16 %v6989_v26, %v6989_v26  ;;  %v6655_v6 = vadd.f32 %v19120_v25, %v6365_v50  ;;  %v7927_v32 = vld [vmem:[#allocation3 + $0x74] sm:$0x1]  ;;  %v16852_v13 = vld [vmem:[#allocation3 + $0x5c] ss:$0 sps:$4 sm:$0x11]  }
 0x474   : > { %7925 = vst [vmem:[#allocation3 + $0x6c] sm:$0xf] %v7924_v24  ;;  %v7374_v39 = vrot.slane %v7372_v7, 7  ;;  %11909 = vmatmul.mubr.bf16.gmra.mrb[84].mxu1 %v14499_v58  ;;  %v6370_v2 = vpop.f32.mrb[43].mxu0  ;;  %v11146_v15 = vsel %vm2823_vm10, %v11144_v54, %v11145_v41  ;;  %v6926_v9 = vadd.f32 %v19185_v23, %v6855_v8  ;;  %v7930_v62 = vld [vmem:[#allocation3 + $0x78] sm:$0xf]  ;;  %v6658_v63 = vadd.f32 %v19128_v52, %v6368_v5 }
 0x475   : > { %v8839_v38 = vshll.u32 %v14500_v18, 16  ;;  %v7381_v58 = vshrl.u32 %v14942_v31, 16  ;;  %15586 = vmatprep.mubr.bf16.mxu0 %v11146_v15  ;;  %v8837_v61 = vshrl.u32 %v14500_v18, 16  ;;  %v7384_v25 = vshll.u32 %v14942_v31, 16  ;;  %v8449_v49 = vld [vmem:[#allocation3 + $0x54] sm:$0xe] }
 0x476   : > { %v7377_v10 = vor.u32 %v7375_v12, %v7374_v39  ;;  %v7379_v11 = vrot.slane %v7374_v39, 4  ;;  %v6990_v50 = vmax.f32 %v6926_v9, 0.0  ;;  %v6856_v19 = vmul.f32 %v19173_v46, %v6655_v6  ;;  %v8106_v29 = vld [vmem:[#allocation3 + $0x58] sm:$0xf] }
 0x477   : > { %v8841_v7 = vrot.slane %v8839_v38, 1  ;;  %v7383_v26 = vrot.slane %v7381_v58, 7  ;;  %v8846_v60 = vrot.slane %v8844_v3, 1  ;;  %v14755_v39 = vcombine.low %v8449_v49, %v8359_v43  ;;  %v16855_v46 = vld [vmem:[#allocation3 + $0x5c] ss:$0 sps:$4 sm:$0x11]  }
 0x478   : > { %v7378_v41 = vsel %vm17529_vm9, %v7370_v4, %v7377_v10  ;;  %v7928_v12 = vsel %vm17491_vm3, %v7379_v11, %v7927_v32  ;;  %v14943_v24 = vpack.c.bf16 %v6990_v50, %v6990_v50  ;;  %v6927_v8 = vadd.f32 %v19185_v23, %v6856_v19  ;;  %v8105_v38 = vld [vmem:[#allocation3 + $0x54] sm:$0xf]  ;;  %v19420_v43 = vld [vmem:[%s21075_s2] ss:$0 sm:$0xff] }
 0x479   : > { %7926 = vst [vmem:[#allocation3 + $0x70] sm:$0xf] %v7378_v41  ;;  %7929 = vst [vmem:[#allocation3 + $0x74] sm:$0x1] %v7928_v12  ;;  %v8842_v54 = vor.u32 %v8841_v7, %v8837_v61  ;;  %v6373_v31 = vpop.f32.mrb[44].mxu0  ;;  %v7386_v6 = vor.u32 %v7384_v25, %v7383_v26  ;;  %v11148_v2 = vrot.slane %v16852_v13, 1  ;;  %v6857_v52 = vmul.f32 %v19420_v43, %v6658_v63 }
 0x47a   : > { %v6375_v4 = vpop.f32.mrb[45].mxu0  ;;  %v7389_v15 = vshrl.u32 %v14943_v24, 16  ;;  %v7392_v9 = vshll.u32 %v14943_v24, 16  ;;  %v6991_v3 = vmax.f32 %v6927_v8, 0.0  ;;  %v11147_v23 = vrot.slane %v14755_v39, 1 }
 0x47b   : > { %v8847_v32 = vsel %vm2310_vm1, %v8842_v54, %v8846_v60  ;;  %v6376_v10 = vpop.f32.mrb[46].mxu0  ;;  %v7931_v11 = vsel %vm17519_vm8, %v7386_v6, %v7930_v62  ;;  %v14501_v5 = vcombine.low %v8105_v38, %v8106_v29  ;;  %v7934_v13 = vld [vmem:[#allocation3 + $0x80] sm:$0x1]  ;;  %v8856_v50 = vshll.u32 %v16855_v46, 16  ;;  %v19428_v49 = vld [vmem:[%s21076_s3] ss:$0 sm:$0xff] }
 0x47c   : > { %11916 = vmatprep.mubr.bf16.mxu1 %v8847_v32  ;;  %v6378_v58 = vpop.f32.mrb[47].mxu0  ;;  %7932 = vst [vmem:[#allocation3 + $0x78] sm:$0xf] %v7931_v11  ;;  %v7391_v61 = vrot.slane %v7389_v15, 7  ;;  %v14944_v25 = vpack.c.bf16 %v6991_v3, %v6991_v3  ;;  %v6663_v7 = vadd.f32 %v19118_v30, %v6373_v31  ;;  %v7387_v62 = vrot.slane %v7383_v26, 4  ;;  %v19431_v30 = vpop.f32.mrb[48].mxu1 }
 0x47d   : > { %11917 = vmatmul.mubr.bf16.gmra.mrb[88].mxu1 %v14500_v18  ;;  %v11149_v19 = vsel %vm2823_vm10, %v11147_v23, %v11148_v2  ;;  %v6928_v41 = vadd.f32 %v19428_v49, %v6857_v52  ;;  %v8851_v12 = vshll.u32 %v14501_v5, 16  ;;  %v16857_v60 = vld [vmem:[#allocation3 + $0x68] ss:$0 sps:$4 sm:$0x11]   ;;  %v8849_v18 = vshrl.u32 %v14501_v5, 16  ;;  %v19434_v4 = vpop.f32.mrb[49].mxu1 }
 0x47e   : > { %v7394_v29 = vor.u32 %v7392_v9, %v7391_v61  ;;  %v7396_v24 = vrot.slane %v7391_v61, 4  ;;  %v7398_v54 = vshrl.u32 %v14944_v25, 16  ;;  %15587 = vmatmul.mubr.bf16.gmra.mrb[136].mxu0 %v11149_v19  ;;  %v8361_v8 = vld [vmem:[#allocation3 + $0x64] sm:$0xf]  ;;  %v8450_v39 = vld [vmem:[#allocation3 + $0x60] sm:$0xe]  ;;  %v6858_v2 = vmul.f32 %v19420_v43, %v6663_v7 }
 0x47f   : > { %v7401_v26 = vshll.u32 %v14944_v25, 16  ;;  %v7937_v46 = vld [vmem:[#allocation3 + $0x84] sm:$0xf]  ;;  %v6992_v31 = vmax.f32 %v6928_v41, 0.0  ;;  %v8853_v6 = vrot.slane %v8851_v12, 1  ;;  %v8858_v3 = vrot.slane %v8856_v50, 1 }
 0x480   : > { %v8108_v63 = vld [vmem:[#allocation3 + $0x64] sm:$0xf]  ;;  %v7395_v15 = vsel %vm17529_vm9, %v7387_v62, %v7394_v29  ;;  %v7935_v9 = vsel %vm17491_vm3, %v7396_v24, %v7934_v13  ;;  %v7400_v32 = vrot.slane %v7398_v54, 7  ;;  %v6929_v52 = vadd.f32 %v19428_v49, %v6858_v2  ;;  %v16860_v61 = vld [vmem:[#allocation3 + $0x68] ss:$0 sps:$4 sm:$0x11]  }
 0x481   : > { %v6381_v38 = vpop.f32.mrb[48].mxu0  ;;  %7933 = vst [vmem:[#allocation3 + $0x7c] sm:$0xf] %v7395_v15  ;;  %7936 = vst [vmem:[#allocation3 + $0x80] sm:$0x1] %v7935_v9  ;;  %v14945_v11 = vpack.c.bf16 %v6992_v31, %v6992_v31  ;;  %v8854_v23 = vor.u32 %v8853_v6, %v8849_v18  ;;  %v14756_v58 = vcombine.low %v8450_v39, %v8361_v8  ;;  %v11151_v19 = vrot.slane %v16857_v60, 1 }
 0x482   : > { %v6383_v25 = vpop.f32.mrb[49].mxu0  ;;  %v7403_v7 = vor.u32 %v7401_v26, %v7400_v32  ;;  %v6666_v41 = vadd.f32 %v19125_v27, %v6376_v10  ;;  %v6993_v50 = vmax.f32 %v6929_v52, 0.0  ;;  %v8107_v24 = vld [vmem:[#allocation3 + $0x60] sm:$0xf]  ;;  %v7941_v31 = vld [vmem:[#allocation3 + $0x8c] sm:$0x1]  ;;  %v6671_v2 = vadd.f32 %v19146_v55, %v6381_v38 }
 0x483   : > { %v6384_v62 = vpop.f32.mrb[50].mxu0  ;;  %v7406_v12 = vshrl.u32 %v14945_v11, 16  ;;  %v7409_v29 = vshll.u32 %v14945_v11, 16  ;;  %v8859_v13 = vsel %vm2310_vm1, %v8854_v23, %v8858_v3  ;;  %v11150_v8 = vrot.slane %v14756_v58, 1  ;;  %v19446_v60 = vpop.f32.mrb[50].mxu1 }
 0x484   : > { %v6386_v54 = vpop.f32.mrb[51].mxu0  ;;  %v7938_v18 = vsel %vm17519_vm8, %v7403_v7, %v7937_v46  ;;  %11924 = vmatprep.mubr.bf16.mxu1 %v8859_v13  ;;  %v6859_v39 = vmul.f32 %v19420_v43, %v6666_v41  ;;  %v14502_v26 = vcombine.low %v8107_v24, %v8108_v63  ;;  %21156 = vst [vmem:[#allocation9_spill] sm:$0xff] %v19446_v60  ;;  %v8868_v6 = vshll.u32 %v16860_v61, 16  ;;  %v8363_v15 = vld [vmem:[#allocation3 + $0x70] sm:$0xf]  ;;  %v16927_v46 = vld [vmem:[%s21077_s4 + $0xd0] sm:$0xff]  }
 0x485   : > { %7939 = vst [vmem:[#allocation3 + $0x84] sm:$0xf] %v7938_v18  ;;  %v7408_v27 = vrot.slane %v7406_v12, 7  ;;  %11925 = vmatmul.mubr.bf16.gmra.mrb[92].mxu1 %v14501_v5  ;;  %v14946_v10 = vpack.c.bf16 %v6993_v50, %v6993_v50  ;;  %v16863_v9 = vld [vmem:[#allocation3 + $0x74] ss:$0 sps:$4 sm:$0x11]   ;;  %v11152_v63 = vsel %vm2823_vm10, %v11150_v8, %v11151_v19  ;;  %v6860_v13 = vmul.f32 %v19420_v43, %v6671_v2 }
 0x486   : > { %v19452_v3 = vpop.f32.mrb[51].mxu1  ;;  %v7404_v11 = vrot.slane %v7400_v32, 4  ;;  %v6930_v23 = vadd.f32 %v19428_v49, %v6859_v39  ;;  %v8863_v52 = vshll.u32 %v14502_v26, 16  ;;  %15590 = vmatprep.mubr.bf16.mxu0 %v11152_v63  ;;  %v8861_v61 = vshrl.u32 %v14502_v26, 16  ;;  %v8451_v55 = vld [vmem:[#allocation3 + $0x6c] sm:$0xe]  ;;  %12146 = vmatpush1.bf16.msra.mxu1 %v16927_v46 }
 0x487   : > { %v7411_v58 = vor.u32 %v7409_v29, %v7408_v27  ;;  %v7413_v5 = vrot.slane %v7408_v27, 4  ;;  %v7415_v25 = vshrl.u32 %v14946_v10, 16  ;;  %v7418_v38 = vshll.u32 %v14946_v10, 16  ;;  %v7944_v7 = vld [vmem:[#allocation3 + $0x90] sm:$0xf]  ;;  %12147 = vmatprep.subr.bf16.mxu1 %v21144_v36 }
 0x488   : > { %v6994_v41 = vmax.f32 %v6930_v23, 0.0  ;;  %v8865_v12 = vrot.slane %v8863_v52, 1  ;;  %v8110_v50 = vld [vmem:[#allocation3 + $0x70] sm:$0xf]  ;;  %v8870_v54 = vrot.slane %v8868_v6, 1  ;;  %v6931_v27 = vadd.f32 %v19428_v49, %v6860_v13 }
 0x489   : > { %v6389_v32 = vpop.f32.mrb[52].mxu0  ;;  %v7412_v19 = vsel %vm17529_vm9, %v7404_v11, %v7411_v58  ;;  %v7942_v29 = vsel %vm17491_vm3, %v7413_v5, %v7941_v31  ;;  %v7417_v24 = vrot.slane %v7415_v25, 7  ;;  %v14757_v10 = vcombine.low %v8451_v55, %v8363_v15  ;;  %v16866_v2 = vld [vmem:[#allocation3 + $0x74] ss:$0 sps:$4 sm:$0x11]   ;;  %v19465_v25 = vpop.f32.mrb[52].mxu1 }
 0x48a   : > { %v6391_v18 = vpop.f32.mrb[53].mxu0  ;;  %7940 = vst [vmem:[#allocation3 + $0x88] sm:$0xf] %v7412_v19  ;;  %7943 = vst [vmem:[#allocation3 + $0x8c] sm:$0x1] %v7942_v29  ;;  %v14947_v8 = vpack.c.bf16 %v6994_v41, %v6994_v41  ;;  %v8866_v39 = vor.u32 %v8865_v12, %v8861_v61  ;;  %v11154_v23 = vrot.slane %v16863_v9, 1  ;;  %v6674_v52 = vadd.f32 %v19152_v0, %v6384_v62 }
 0x48b   : > { %v6392_v46 = vpop.f32.mrb[54].mxu0  ;;  %v7420_v63 = vor.u32 %v7418_v38, %v7417_v24  ;;  %v6995_v6 = vmax.f32 %v6931_v27, 0.0  ;;  %v8109_v5 = vld [vmem:[#allocation3 + $0x6c] sm:$0xf]  ;;  %v7948_v41 = vld [vmem:[#allocation3 + $0x98] sm:$0x1]  ;;  %v6679_v12 = vadd.f32 %v19142_v22, %v6389_v32 }
 0x48c   : > { %v6394_v11 = vpop.f32.mrb[55].mxu0  ;;  %v7423_v58 = vshrl.u32 %v14947_v8, 16  ;;  %v7426_v60 = vshll.u32 %v14947_v8, 16  ;;  %v8871_v31 = vsel %vm2310_vm1, %v8866_v39, %v8870_v54  ;;  %v11153_v15 = vrot.slane %v14757_v10, 1  ;;  %v8365_v13 = vld [vmem:[#allocation3 + $0x7c] sm:$0xf] }
 0x48d   : > { %v7945_v61 = vsel %vm17519_vm8, %v7420_v63, %v7944_v7  ;;  %11932 = vmatprep.mubr.bf16.mxu1 %v8871_v31  ;;  %v6861_v55 = vmul.f32 %v19420_v43, %v6674_v52  ;;  %v14503_v9 = vcombine.low %v8109_v5, %v8110_v50  ;;  %v14948_v62 = vpack.c.bf16 %v6995_v6, %v6995_v6  ;;  %v16868_v19 = vld [vmem:[#allocation3 + $0x80] ss:$0 sps:$4 sm:$0x11]   ;;  %v19473_v63 = vpop.f32.mrb[53].mxu1  ;;  %v8452_v6 = vld [vmem:[#allocation3 + $0x78] sm:$0xe] }
 0x48e   : > { %7946 = vst [vmem:[#allocation3 + $0x90] sm:$0xf] %v7945_v61  ;;  %v7425_v0 = vrot.slane %v7423_v58, 7  ;;  %11933 = vmatmul.mubr.bf16.gmra.mrb[96].mxu1 %v14502_v26  ;;  %v8880_v38 = vshll.u32 %v16866_v2, 16  ;;  %v7421_v29 = vrot.slane %v7417_v24, 4  ;;  %v11155_v54 = vsel %vm2823_vm10, %v11153_v15, %v11154_v23 }
 0x48f   : > { %v6932_v7 = vadd.f32 %v19428_v49, %v6861_v55  ;;  %v8875_v18 = vshll.u32 %v14503_v9, 16  ;;  %v7432_v27 = vshrl.u32 %v14948_v62, 16  ;;  %15591 = vmatmul.mubr.bf16.gmra.mrb[140].mxu0 %v11155_v54  ;;  %v8873_v50 = vshrl.u32 %v14503_v9, 16  ;;  %v7951_v2 = vld [vmem:[#allocation3 + $0x9c] sm:$0xf] }
 0x490   : > { %v7428_v8 = vor.u32 %v7426_v60, %v7425_v0  ;;  %v7430_v39 = vrot.slane %v7425_v0, 4  ;;  %v7435_v26 = vshll.u32 %v14948_v62, 16  ;;  %v6862_v32 = vmul.f32 %v19420_v43, %v6679_v12  ;;  %v19476_v24 = vld [vmem:[#allocation3 + $0x80] ss:$0 sps:$4 sm:$0x11]   ;;  %v19483_v12 = vpop.f32.mrb[54].mxu1 }
 0x491   : > { %v6397_v10 = vpop.f32.mrb[56].mxu0  ;;  %v6996_v52 = vmax.f32 %v6932_v7, 0.0  ;;  %v8877_v22 = vrot.slane %v8875_v18, 1  ;;  %v7434_v58 = vrot.slane %v7432_v27, 7  ;;  %v8882_v31 = vrot.slane %v8880_v38, 1 }
 0x492   : > { %v6399_v23 = vpop.f32.mrb[57].mxu0  ;;  %v7429_v11 = vsel %vm17529_vm9, %v7421_v29, %v7428_v8  ;;  %v7949_v60 = vsel %vm17491_vm3, %v7430_v39, %v7948_v41  ;;  %v6933_v15 = vadd.f32 %v19428_v49, %v6862_v32  ;;  %v14758_v55 = vcombine.low %v8452_v6, %v8365_v13  ;;  %v8112_v0 = vld [vmem:[#allocation3 + $0x7c] sm:$0xf]  ;;  %v8111_v27 = vld [vmem:[#allocation3 + $0x78] sm:$0xf] }
 0x493   : > { %7947 = vst [vmem:[#allocation3 + $0x94] sm:$0xf] %v7429_v11  ;;  %7950 = vst [vmem:[#allocation3 + $0x98] sm:$0x1] %v7949_v60  ;;  %v14949_v5 = vpack.c.bf16 %v6996_v52, %v6996_v52  ;;  %v8878_v61 = vor.u32 %v8877_v22, %v8873_v50  ;;  %v6400_v62 = vpop.f32.mrb[58].mxu0  ;;  %v7437_v54 = vor.u32 %v7435_v26, %v7434_v58  ;;  %v11157_v7 = vrot.slane %v16868_v19, 1 }
 0x494   : > { %v6682_v29 = vadd.f32 %v19150_v53, %v6392_v46  ;;  %v6402_v18 = vpop.f32.mrb[59].mxu0  ;;  %v6997_v39 = vmax.f32 %v6933_v15, 0.0  ;;  %v19487_v52 = vpop.f32.mrb[55].mxu1  ;;  %v7955_v50 = vld [vmem:[#allocation3 + $0xa4] sm:$0x1]  ;;  %v11156_v22 = vrot.slane %v14758_v55, 1  ;;  %v14504_v19 = vcombine.low %v8111_v27, %v8112_v0 }
 0x495   : > { %v7440_v41 = vshrl.u32 %v14949_v5, 16  ;;  %v7443_v8 = vshll.u32 %v14949_v5, 16  ;;  %v8883_v38 = vsel %vm2310_vm1, %v8878_v61, %v8882_v31  ;;  %v7952_v13 = vsel %vm17519_vm8, %v7437_v54, %v7951_v2  ;;  %v16938_v53 = vld [vmem:[%s21077_s4 + $0xd8] sm:$0xff]  }
 0x496   : > { %11940 = vmatprep.mubr.bf16.mxu1 %v8883_v38  ;;  %v6863_v26 = vmul.f32 %v19420_v43, %v6682_v29  ;;  %7953 = vst [vmem:[#allocation3 + $0x9c] sm:$0xf] %v7952_v13  ;;  %v14950_v32 = vpack.c.bf16 %v6997_v39, %v6997_v39  ;;  %v8892_v23 = vshll.u32 %v19476_v24, 16  ;;  %v6687_v11 = vadd.f32 %v19175_v51, %v6397_v10  ;;  %v8367_v60 = vld [vmem:[#allocation3 + $0x88] sm:$0xf] }
 0x497   : > { %v7442_v46 = vrot.slane %v7440_v41, 7  ;;  %11941 = vmatmul.mubr.bf16.gmra.mrb[100].mxu1 %v14503_v9  ;;  %v16874_v2 = vld [vmem:[#allocation3 + $0x8c] ss:$0 sps:$4 sm:$0x11]   ;;  %v7438_v31 = vrot.slane %v7434_v58, 4  ;;  %v11158_v6 = vsel %vm2823_vm10, %v11156_v22, %v11157_v7  ;;  %v8887_v61 = vshll.u32 %v14504_v19, 16 }
 0x498   : > { %v6934_v5 = vadd.f32 %v19428_v49, %v6863_v26  ;;  %12148 = vmatpush1.bf16.msra.mxu1 %v16938_v53  ;;  %v7449_v54 = vshrl.u32 %v14950_v32, 16  ;;  %15594 = vmatprep.mubr.bf16.mxu0 %v11158_v6  ;;  %v8885_v9 = vshrl.u32 %v14504_v19, 16  ;;  %v7452_v24 = vshll.u32 %v14950_v32, 16  ;;  %v7958_v51 = vld [vmem:[#allocation3 + $0xa8] sm:$0xf] }
 0x499   : > { %v6405_v15 = vpop.f32.mrb[60].mxu0  ;;  %v7445_v55 = vor.u32 %v7443_v8, %v7442_v46  ;;  %v7447_v0 = vrot.slane %v7442_v46, 4  ;;  %12149 = vmatprep.subr.bf16.mxu1 %v21144_v36  ;;  %v8889_v18 = vrot.slane %v8887_v61, 1  ;;  %v6864_v58 = vmul.f32 %v19420_v43, %v6687_v11  ;;  %v8453_v7 = vld [vmem:[#allocation3 + $0x84] sm:$0xe] }
 0x49a   : > { %v6407_v29 = vpop.f32.mrb[61].mxu0  ;;  %v6998_v10 = vmax.f32 %v6934_v5, 0.0  ;;  %v7451_v39 = vrot.slane %v7449_v54, 7  ;;  %v8894_v27 = vrot.slane %v8892_v23, 1  ;;  %v8114_v13 = vld [vmem:[#allocation3 + $0x88] sm:$0xf]  ;;  %v14759_v46 = vcombine.low %v8453_v7, %v8367_v60 }
 0x49b   : > { %v19501_v41 = vpop.f32.mrb[62].mxu0  ;;  %v7446_v38 = vsel %vm17529_vm9, %v7438_v31, %v7445_v55  ;;  %v7956_v8 = vsel %vm17491_vm3, %v7447_v0, %v7955_v50  ;;  %v8890_v26 = vor.u32 %v8889_v18, %v8885_v9  ;;  %v6935_v53 = vadd.f32 %v19428_v49, %v6864_v58  ;;  %v16877_v32 = vld [vmem:[#allocation3 + $0x8c] ss:$0 sps:$4 sm:$0x11]   ;;  %v8113_v23 = vld [vmem:[#allocation3 + $0x84] sm:$0xf] }
 0x49c   : > { %7954 = vst [vmem:[#allocation3 + $0xa0] sm:$0xf] %v7446_v38  ;;  %7957 = vst [vmem:[#allocation3 + $0xa4] sm:$0x1] %v7956_v8  ;;  %v14951_v22 = vpack.c.bf16 %v6998_v10, %v6998_v10  ;;  %v6410_v11 = vpop.f32.mrb[63].mxu0  ;;  %v7454_v6 = vor.u32 %v7452_v24, %v7451_v39  ;;  %v11160_v5 = vrot.slane %v16874_v2, 1  ;;  %v6690_v61 = vadd.f32 %v19187_v48, %v6400_v62 }
 0x49d   : > { %v8895_v50 = vsel %vm2310_vm1, %v8890_v26, %v8894_v27  ;;  %v6999_v0 = vmax.f32 %v6935_v53, 0.0  ;;  %v7962_v29 = vld [vmem:[#allocation3 + $0xb0] sm:$0x1]  ;;  %v11159_v9 = vrot.slane %v14759_v46, 1  ;;  %v14505_v10 = vcombine.low %v8113_v23, %v8114_v13  ;;  %v8369_v27 = vld [vmem:[#allocation3 + $0x94] sm:$0xf] }
 0x49e   : > { %v7457_v31 = vshrl.u32 %v14951_v22, 16  ;;  %v7460_v55 = vshll.u32 %v14951_v22, 16  ;;  %v7959_v54 = vsel %vm17519_vm8, %v7454_v6, %v7958_v51  ;;  %11948 = vmatprep.mubr.bf16.mxu1 %v8895_v50  ;;  %v6865_v60 = vmul.f32 %v19420_v43, %v6690_v61  ;;  %v19514_v18 = vld [vmem:[#allocation3 + $0x98] ss:$0 sps:$4 sm:$0x11]   ;;  %v19518_v26 = vpop.f32.mrb[56].mxu1 }
 0x49f   : > { %7960 = vst [vmem:[#allocation3 + $0xa8] sm:$0xf] %v7959_v54  ;;  %11949 = vmatmul.mubr.bf16.gmra.mrb[104].mxu1 %v14504_v19  ;;  %v14952_v2 = vpack.c.bf16 %v6999_v0, %v6999_v0  ;;  %v8904_v48 = vshll.u32 %v16877_v32, 16  ;;  %v6695_v62 = vadd.f32 %v19168_v34, %v6405_v15  ;;  %v7455_v7 = vrot.slane %v7451_v39, 4  ;;  %v7965_v15 = vld [vmem:[#allocation3 + $0xb4] sm:$0xf] }
 0x4a0   : > { %v7459_v24 = vrot.slane %v7457_v31, 7  ;;  %v11161_v38 = vsel %vm2823_vm10, %v11159_v9, %v11160_v5  ;;  %v6936_v51 = vadd.f32 %v19428_v49, %v6865_v60  ;;  %v8899_v8 = vshll.u32 %v14505_v10, 16  ;;  %v8454_v5 = vld [vmem:[#allocation3 + $0x90] sm:$0xe]  ;;  %v8116_v23 = vld [vmem:[#allocation3 + $0x94] sm:$0xf] }
 0x4a1   : > { %v6413_v58 = vpop.f32.mrb[64].mxu0  ;;  %v7466_v19 = vshrl.u32 %v14952_v2, 16  ;;  %15595 = vmatmul.mubr.bf16.gmra.mrb[144].mxu0 %v11161_v38  ;;  %v8897_v46 = vshrl.u32 %v14505_v10, 16  ;;  %v7469_v34 = vshll.u32 %v14952_v2, 16  ;;  %v6866_v6 = vmul.f32 %v19420_v43, %v6695_v62 }
 0x4a2   : > { %v6415_v22 = vpop.f32.mrb[65].mxu0  ;;  %v7462_v13 = vor.u32 %v7460_v55, %v7459_v24  ;;  %v7464_v53 = vrot.slane %v7459_v24, 4  ;;  %v7000_v11 = vmax.f32 %v6936_v51, 0.0  ;;  %v8901_v39 = vrot.slane %v8899_v8, 1  ;;  %v19531_v51 = vpop.f32.mrb[57].mxu1 }
 0x4a3   : > { %v19520_v32 = vpop.f32.mrb[66].mxu0  ;;  %v7468_v50 = vrot.slane %v7466_v19, 7  ;;  %v8906_v0 = vrot.slane %v8904_v48, 1  ;;  %v6937_v60 = vadd.f32 %v19428_v49, %v6866_v6  ;;  %v14760_v24 = vcombine.low %v8454_v5, %v8369_v27  ;;  %v16882_v2 = vld [vmem:[#allocation3 + $0x98] ss:$0 sps:$4 sm:$0x11]  }
 0x4a4   : > { %v6418_v61 = vpop.f32.mrb[67].mxu0  ;;  %v7463_v31 = vsel %vm17529_vm9, %v7455_v7, %v7462_v13  ;;  %v7963_v55 = vsel %vm17491_vm3, %v7464_v53, %v7962_v29  ;;  %v14953_v54 = vpack.c.bf16 %v7000_v11, %v7000_v11  ;;  %v8902_v9 = vor.u32 %v8901_v39, %v8897_v46  ;;  %v8115_v13 = vld [vmem:[#allocation3 + $0x90] sm:$0xf]  ;;  %v19534_v53 = vpop.f32.mrb[58].mxu1  ;;  %v7969_v19 = vld [vmem:[#allocation3 + $0xbc] sm:$0x1] }
 0x4a5   : > { %7961 = vst [vmem:[#allocation3 + $0xac] sm:$0xf] %v7463_v31  ;;  %7964 = vst [vmem:[#allocation3 + $0xb0] sm:$0x1] %v7963_v55  ;;  %v7471_v62 = vor.u32 %v7469_v34, %v7468_v50  ;;  %v11163_v38 = vrot.slane %v19514_v18, 1  ;;  %v6698_v7 = vadd.f32 %v19180_v21, %v19501_v41  ;;  %v7001_v22 = vmax.f32 %v6937_v60, 0.0 }
 0x4a6   : > { %v7474_v29 = vshrl.u32 %v14953_v54, 16  ;;  %v7477_v8 = vshll.u32 %v14953_v54, 16  ;;  %v8907_v48 = vsel %vm2310_vm1, %v8902_v9, %v8906_v0  ;;  %v11162_v46 = vrot.slane %v14760_v24, 1  ;;  %v19544_v5 = vld [vmem:[#allocation3 + $0xa4] ss:$0 sps:$4 sm:$0x11]  }
 0x4a7   : > { %v7966_v27 = vsel %vm17519_vm8, %v7471_v62, %v7965_v15  ;;  %11956 = vmatprep.mubr.bf16.mxu1 %v8907_v48  ;;  %v6867_v18 = vmul.f32 %v19420_v43, %v6698_v7  ;;  %v19539_v34 = vcombine.low %v8115_v13, %v8116_v23  ;;  %v14954_v11 = vpack.c.bf16 %v7001_v22, %v7001_v22  ;;  %v19546_v15 = vpop.f32.mrb[59].mxu1  ;;  %v8371_v54 = vld [vmem:[#allocation3 + $0xa0] sm:$0xf]  ;;  %v8455_v48 = vld [vmem:[#allocation3 + $0x9c] sm:$0xe] }
 0x4a8   : > { %7967 = vst [vmem:[#allocation3 + $0xb4] sm:$0xf] %v7966_v27  ;;  %v7476_v41 = vrot.slane %v7474_v29, 7  ;;  %11957 = vmatmul.mubr.bf16.gmra.mrb[108].mxu1 %v14505_v10  ;;  %v8916_v39 = vshll.u32 %v16882_v2, 16  ;;  %v6703_v6 = vadd.f32 %v19223_v16, %v6413_v58  ;;  %v7472_v31 = vrot.slane %v7468_v50, 4  ;;  %v16949_v10 = vld [vmem:[%s21077_s4 + $0xe0] sm:$0xff]  }
 0x4a9   : > { %v19541_v21 = vpop.f32.mrb[68].mxu0  ;;  %v11164_v55 = vsel %vm2823_vm10, %v11162_v46, %v11163_v38  ;;  %v6938_v0 = vadd.f32 %v19428_v49, %v6867_v18  ;;  %v8911_v23 = vshll.u32 %v19539_v34, 16  ;;  %v7483_v60 = vshrl.u32 %v14954_v11, 16  ;;  %v7972_v62 = vld [vmem:[#allocation3 + $0xc0] sm:$0xf]  ;;  %12150 = vmatpush1.bf16.msra.mxu1 %v16949_v10  ;;  %v19558_v22 = vpop.f32.mrb[60].mxu1 }
 0x4aa   : > { %v6423_v61 = vpop.f32.mrb[69].mxu0  ;;  %v7479_v16 = vor.u32 %v7477_v8, %v7476_v41  ;;  %v7481_v58 = vrot.slane %v7476_v41, 4  ;;  %15598 = vmatprep.mubr.bf16.mxu0 %v11164_v55  ;;  %v8909_v24 = vshrl.u32 %v19539_v34, 16  ;;  %v7486_v2 = vshll.u32 %v14954_v11, 16  ;;  %v8118_v18 = vld [vmem:[#allocation3 + $0xa0] sm:$0xf]  ;;  %12151 = vmatprep.subr.bf16.mxu1 %v21144_v36 }
 0x4ab   : > { %v19551_v9 = vpop.f32.mrb[70].mxu0  ;;  %v7002_v38 = vmax.f32 %v6938_v0, 0.0  ;;  %v8913_v7 = vrot.slane %v8911_v23, 1  ;;  %v6868_v29 = vmul.f32 %v19420_v43, %v6703_v6  ;;  %v7485_v27 = vrot.slane %v7483_v60, 7  ;;  %v8117_v60 = vld [vmem:[#allocation3 + $0x9c] sm:$0xf] }
 0x4ac   : > { %v6426_v50 = vpop.f32.mrb[71].mxu0  ;;  %v7480_v13 = vsel %vm17529_vm9, %v7472_v31, %v7479_v16  ;;  %v7970_v8 = vsel %vm17491_vm3, %v7481_v58, %v7969_v19  ;;  %v8918_v46 = vrot.slane %v8916_v39, 1  ;;  %v14761_v61 = vcombine.low %v8455_v48, %v8371_v54  ;;  %v16888_v55 = vld [vmem:[#allocation3 + $0xa4] ss:$0 sps:$4 sm:$0x11]   ;;  %v19569_v19 = vpop.f32.mrb[61].mxu1 }
 0x4ad   : > { %7968 = vst [vmem:[#allocation3 + $0xb8] sm:$0xf] %v7480_v13  ;;  %7971 = vst [vmem:[#allocation3 + $0xbc] sm:$0x1] %v7970_v8  ;;  %v14955_v41 = vpack.c.bf16 %v7002_v38, %v7002_v38  ;;  %v8914_v11 = vor.u32 %v8913_v7, %v8909_v24  ;;  %v6939_v6 = vadd.f32 %v19428_v49, %v6868_v29  ;;  %v11166_v23 = vrot.slane %v19544_v5, 1 }
 0x4ae   : > { %v7488_v0 = vor.u32 %v7486_v2, %v7485_v27  ;;  %v6706_v31 = vadd.f32 %v19232_v1, %v19520_v32  ;;  %v7976_v24 = vld [vmem:[#allocation3 + $0xc8] sm:$0x1]  ;;  %v11165_v2 = vrot.slane %v14761_v61, 1  ;;  %v14507_v38 = vcombine.low %v8117_v60, %v8118_v18  ;;  %v19580_v13 = vld [vmem:[#allocation3 + $0xb0] ss:$0 sps:$4 sm:$0x11]  }
 0x4af   : > { %v7491_v39 = vshrl.u32 %v14955_v41, 16  ;;  %v7494_v10 = vshll.u32 %v14955_v41, 16  ;;  %v8919_v16 = vsel %vm2310_vm1, %v8914_v11, %v8918_v46  ;;  %v7003_v58 = vmax.f32 %v6939_v6, 0.0  ;;  %v8373_v6 = vld [vmem:[#allocation3 + $0xac] sm:$0xf] }
 0x4b0   : > { %v7973_v54 = vsel %vm17519_vm8, %v7488_v0, %v7972_v62  ;;  %11964 = vmatprep.mubr.bf16.mxu1 %v8919_v16  ;;  %v6869_v5 = vmul.f32 %v19420_v43, %v6706_v31  ;;  %v8928_v29 = vshll.u32 %v16888_v55, 16  ;;  %v6711_v48 = vadd.f32 %v19214_v42, %v19541_v21  ;;  %v19584_v62 = vpop.f32.mrb[62].mxu1  ;;  %v660_v61 = vld [vmem:[#allocation3 + $0xf8] sm:$0x1]  ;;  %v7979_v16 = vld [vmem:[#allocation3 + $0xe4] sm:$0xf] }
 0x4b1   : > { %v19572_v50 = vpop.f32.mrb[72].mxu0  ;;  %7974 = vst [vmem:[#allocation3 + $0xc0] sm:$0xf] %v7973_v54  ;;  %v7493_v32 = vrot.slane %v7491_v39, 7  ;;  %11965 = vmatmul.mubr.bf16.gmra.mrb[112].mxu1 %v19539_v34  ;;  %v14956_v7 = vpack.c.bf16 %v7003_v58, %v7003_v58  ;;  %21157 = vst [vmem:[#allocation10_spill] sm:$0xff] %v19584_v62  ;;  %v7489_v46 = vrot.slane %v7485_v27, 4  ;;  %v11167_v41 = vsel %vm2823_vm10, %v11165_v2, %v11166_v23 }
 0x4b2   : > { %v6431_v1 = vpop.f32.mrb[73].mxu0  ;;  %v6940_v18 = vadd.f32 %v19428_v49, %v6869_v5  ;;  %v8923_v11 = vshll.u32 %v14507_v38, 16  ;;  %v19588_v0 = vpop.f32.mrb[63].mxu1  ;;  %15599 = vmatmul.mubr.bf16.gmra.mrb[148].mxu0 %v11167_v41  ;;  %v8921_v21 = vshrl.u32 %v14507_v38, 16  ;;  %v6870_v27 = vmul.f32 %v19420_v43, %v6711_v48  ;;  %v8456_v23 = vld [vmem:[#allocation3 + $0xa8] sm:$0xe] }
 0x4b3   : > { %v19582_v8 = vpop.f32.mrb[74].mxu0  ;;  %v7496_v55 = vor.u32 %v7494_v10, %v7493_v32  ;;  %v7498_v31 = vrot.slane %v7493_v32, 4  ;;  %v7500_v42 = vshrl.u32 %v14956_v7, 16  ;;  %v7503_v39 = vshll.u32 %v14956_v7, 16  ;;  %v8120_v10 = vld [vmem:[#allocation3 + $0xac] sm:$0xf] }
 0x4b4   : > { %v6434_v34 = vpop.f32.mrb[75].mxu0  ;;  %v7004_v58 = vmax.f32 %v6940_v18, 0.0  ;;  %v8925_v60 = vrot.slane %v8923_v11, 1  ;;  %v8930_v1 = vrot.slane %v8928_v29, 1  ;;  %v6941_v7 = vadd.f32 %v19428_v49, %v6870_v27  ;;  %v7983_v27 = vld [vmem:[#allocation3 + $0xec] sm:$0x1] }
 0x4b5   : > { %v7497_v54 = vsel %vm17529_vm9, %v7489_v46, %v7496_v55  ;;  %v7977_v2 = vsel %vm17491_vm3, %v7498_v31, %v7976_v24  ;;  %v7502_v5 = vrot.slane %v7500_v42, 7  ;;  %v14762_v18 = vcombine.low %v8456_v23, %v8373_v6  ;;  %v16893_v11 = vld [vmem:[#allocation3 + $0xb0] ss:$0 sps:$4 sm:$0x11]   ;;  %v567_v55 = vld [vmem:[#allocation3 + $0xfc] sm:$0x1] }
 0x4b6   : > { %7975 = vst [vmem:[#allocation3 + $0xc4] sm:$0xf] %v7497_v54  ;;  %7978 = vst [vmem:[#allocation3 + $0xc8] sm:$0x1] %v7977_v2  ;;  %v14957_v32 = vpack.c.bf16 %v7004_v58, %v7004_v58  ;;  %v8926_v41 = vor.u32 %v8925_v60, %v8921_v21  ;;  %v11169_v48 = vrot.slane %v19580_v13, 1  ;;  %v661_v46 = vsel %vm17499_vm6, 0, %v660_v61 }
 0x4b7   : > { %v7505_v34 = vor.u32 %v7503_v39, %v7502_v5  ;;  %v7005_v31 = vmax.f32 %v6941_v7, 0.0  ;;  %662 = vst [vmem:[#allocation3 + $0xf8] sm:$0x1] %v661_v46  ;;  %v8119_v42 = vld [vmem:[#allocation3 + $0xa8] sm:$0xf]  ;;  %v11168_v21 = vrot.slane %v14762_v18, 1  ;;  %v6714_v13 = vadd.f32 %v19229_v56, %v19551_v9 }
 0x4b8   : > { %v7508_v62 = vshrl.u32 %v14957_v32, 16  ;;  %v7511_v24 = vshll.u32 %v14957_v32, 16  ;;  %v8931_v29 = vsel %vm2310_vm1, %v8926_v41, %v8930_v1  ;;  %v19606_v39 = vcombine.low %v8119_v42, %v8120_v10  ;;  %v16896_v1 = vld [vmem:[#allocation3 + $0xbc] ss:$0 sps:$4 sm:$0x11]  }
 0x4b9   : > { %v19600_v58 = vpop.f32.mrb[76].mxu0  ;;  %v7980_v6 = vsel %vm17519_vm8, %v7505_v34, %v7979_v16  ;;  %11972 = vmatprep.mubr.bf16.mxu1 %v8931_v29  ;;  %v14958_v23 = vpack.c.bf16 %v7005_v31, %v7005_v31  ;;  %v8940_v54 = vshll.u32 %v16893_v11, 16  ;;  %v568_v2 = vsel %vm17491_vm3, 0, %v567_v55  ;;  %v8375_v10 = vld [vmem:[#allocation3 + $0xb8] sm:$0xf] }
 0x4ba   : > { %v6439_v61 = vpop.f32.mrb[77].mxu0  ;;  %7981 = vst [vmem:[#allocation3 + $0xe4] sm:$0xf] %v7980_v6  ;;  %v7510_v60 = vrot.slane %v7508_v62, 7  ;;  %11973 = vmatmul.mubr.bf16.gmra.mrb[116].mxu1 %v14507_v38  ;;  %v7506_v16 = vrot.slane %v7502_v5, 4  ;;  %v11170_v41 = vsel %vm2823_vm10, %v11168_v21, %v11169_v48  ;;  %v6871_v56 = vmul.f32 %v19420_v43, %v6714_v13  ;;  %v16960_v38 = vld [vmem:[%s21077_s4 + $0xe8] sm:$0xff]  }
 0x4bb   : > { %v19610_v32 = vpop.f32.mrb[78].mxu0  ;;  %v8935_v9 = vshll.u32 %v19606_v39, 16  ;;  %569 = vst [vmem:[#allocation3 + $0xfc] sm:$0x1] %v568_v2  ;;  %v7517_v11 = vshrl.u32 %v14958_v23, 16  ;;  %15602 = vmatprep.mubr.bf16.mxu0 %v11170_v41  ;;  %v8933_v34 = vshrl.u32 %v19606_v39, 16  ;;  %v6719_v29 = vadd.f32 %v19278_v44, %v19572_v50  ;;  %12152 = vmatpush1.bf16.msra.mxu1 %v16960_v38 }
 0x4bc   : > { %v6442_v62 = vpop.f32.mrb[79].mxu0  ;;  %v7513_v7 = vor.u32 %v7511_v24, %v7510_v60  ;;  %v7515_v18 = vrot.slane %v7510_v60, 4  ;;  %v16899_v5 = vld [vmem:[#allocation3 + $0xbc] ss:$0 sps:$4 sm:$0x11]   ;;  %v7520_v46 = vshll.u32 %v14958_v23, 16  ;;  %v6942_v48 = vadd.f32 %v19428_v49, %v6871_v56  ;;  %12153 = vmatprep.subr.bf16.mxu1 %v21144_v36 }
 0x4bd   : > { %v8937_v55 = vrot.slane %v8935_v9, 1  ;;  %v663_v31 = vld [vmem:[#allocation3 + $0x104] sm:$0x1]  ;;  %v19626_v6 = vrot.slane %v7517_v11, 7  ;;  %v8942_v21 = vrot.slane %v8940_v54, 1  ;;  %v6872_v44 = vmul.f32 %v19420_v43, %v6719_v29 }
 0x4be   : > { %v7514_v42 = vsel %vm17529_vm9, %v7506_v16, %v7513_v7  ;;  %v7984_v24 = vsel %vm17491_vm3, %v7515_v18, %v7983_v27  ;;  %v8457_v13 = vld [vmem:[#allocation3 + $0xb4] sm:$0xe]  ;;  %v7986_v61 = vld [vmem:[#allocation3 + $0xf0] sm:$0xf]  ;;  %v7006_v60 = vmax.f32 %v6942_v48, 0.0  ;;  %v11172_v27 = vrot.slane %v16896_v1, 1 }
 0x4bf   : > { %7982 = vst [vmem:[#allocation3 + $0xe8] sm:$0xf] %v7514_v42  ;;  %7985 = vst [vmem:[#allocation3 + $0xec] sm:$0x1] %v7984_v24  ;;  %v8938_v23 = vor.u32 %v8937_v55, %v8933_v34  ;;  %v14763_v50 = vcombine.low %v8457_v13, %v8375_v10  ;;  %v8122_v2 = vld [vmem:[#allocation3 + $0xb8] sm:$0xf]  ;;  %v7522_v16 = vor.u32 %v7520_v46, %v19626_v6 }
 0x4c0   : > { %v664_v54 = vsel %vm17499_vm6, 0, %v663_v31  ;;  %v14959_v9 = vpack.c.bf16 %v7006_v60, %v7006_v60  ;;  %v6943_v38 = vadd.f32 %v19428_v49, %v6872_v44  ;;  %v8121_v18 = vld [vmem:[#allocation3 + $0xb4] sm:$0xf]  ;;  %v6722_v1 = vadd.f32 %v19290_v57, %v19582_v8  ;;  %v570_v48 = vld [vmem:[#allocation3 + $0x108] sm:$0x1] }
 0x4c1   : > { %v19630_v41 = vpop.f32.mrb[80].mxu0  ;;  %v8943_v62 = vsel %vm2310_vm1, %v8938_v23, %v8942_v21  ;;  %v11171_v7 = vrot.slane %v14763_v50, 1  ;;  %665 = vst [vmem:[#allocation3 + $0x104] sm:$0x1] %v664_v54  ;;  %v7987_v10 = vsel %vm17519_vm8, %v7522_v16, %v7986_v61  ;;  %v19643_v34 = vcombine.low %v8121_v18, %v8122_v2  ;;  %v8377_v21 = vld [vmem:[#allocation3 + $0xc4] sm:$0xf] }
 0x4c2   : > { %v6447_v56 = vpop.f32.mrb[81].mxu0  ;;  %11980 = vmatprep.mubr.bf16.mxu1 %v8943_v62  ;;  %v8952_v46 = vshll.u32 %v16899_v5, 16  ;;  %v7523_v29 = vrot.slane %v19626_v6, 4  ;;  %7988 = vst [vmem:[#allocation3 + $0xf0] sm:$0xf] %v7987_v10  ;;  %v7525_v31 = vshrl.u32 %v14959_v9, 16  ;;  %v6873_v61 = vmul.f32 %v19420_v43, %v6722_v1 }
 0x4c3   : > { %v19637_v11 = vpop.f32.mrb[82].mxu0  ;;  %11981 = vmatmul.mubr.bf16.gmra.mrb[120].mxu1 %v19606_v39  ;;  %v7007_v42 = vmax.f32 %v6943_v38, 0.0  ;;  %v11173_v24 = vsel %vm2823_vm10, %v11171_v7, %v11172_v27  ;;  %v7528_v13 = vshll.u32 %v14959_v9, 16  ;;  %v8945_v57 = vshrl.u32 %v19643_v34, 16  ;;  %v8458_v5 = vld [vmem:[#allocation3 + $0xc0] sm:$0xe] }
 0x4c4   : > { %v6450_v55 = vpop.f32.mrb[83].mxu0  ;;  %15603 = vmatmul.mubr.bf16.gmra.mrb[152].mxu0 %v11173_v24  ;;  %v8947_v8 = vshll.u32 %v19643_v34, 16  ;;  %v7527_v60 = vrot.slane %v7525_v31, 7  ;;  %v571_v6 = vsel %vm17491_vm3, 0, %v570_v48  ;;  %v21158_v39 = vld [vmem:[#allocation6_spill] sm:$0xff]  ;;  %v6944_v16 = vadd.f32 %v19428_v49, %v6873_v61 }
 0x4c5   : > { %v14960_v23 = vpack.c.bf16 %v7007_v42, %v7007_v42  ;;  %v6727_v44 = vadd.f32 %v21158_v39, %v19600_v58  ;;  %v16901_v50 = vld [vmem:[#allocation3 + $0xc8] ss:$0 sps:$4 sm:$0x11]   ;;  %v7990_v2 = vld [vmem:[#allocation3 + $0xf8] sm:$0x1]  ;;  %v8954_v54 = vrot.slane %v8952_v46, 1  ;;  %v14764_v43 = vcombine.low %v8458_v5, %v8377_v21 }
 0x4c6   : > { %v8949_v27 = vrot.slane %v8947_v8, 1  ;;  %572 = vst [vmem:[#allocation3 + $0x108] sm:$0x1] %v571_v6  ;;  %v7530_v56 = vor.u32 %v7528_v13, %v7527_v60  ;;  %v7532_v9 = vrot.slane %v7527_v60, 4  ;;  %v666_v7 = vld [vmem:[#allocation3 + $0x110] sm:$0x1] }
 0x4c7   : > { %v7534_v62 = vshrl.u32 %v14960_v23, 16  ;;  %v7537_v38 = vshll.u32 %v14960_v23, 16  ;;  %v8123_v18 = vld [vmem:[#allocation3 + $0xd8] sm:$0xf]  ;;  %v7008_v10 = vmax.f32 %v6944_v16, 0.0  ;;  %v11174_v49 = vrot.slane %v14764_v43, 1 }
 0x4c8   : > { %v8950_v1 = vor.u32 %v8949_v27, %v8945_v57  ;;  %v19659_v58 = vld [vmem:[%s21075_s2] ss:$0 sm:$0xff]  ;;  %v8124_v55 = vld [vmem:[#allocation3 + $0xdc] sm:$0xf]  ;;  %v7531_v31 = vsel %vm17529_vm9, %v7523_v29, %v7530_v56  ;;  %v7991_v42 = vsel %vm17491_vm3, %v7532_v9, %v7990_v2  ;;  %v11175_v21 = vrot.slane %v16901_v50, 1  ;;  %v21159_v16 = vld [vmem:[#allocation7_spill] sm:$0xff] }
 0x4c9   : > { %v6874_v48 = vmul.f32 %v19659_v58, %v6727_v44  ;;  %v19662_v46 = vpop.f32.mrb[84].mxu0  ;;  %v7536_v24 = vrot.slane %v7534_v62, 7  ;;  %v16904_v13 = vld [vmem:[#allocation3 + $0xe0] ss:$0 sps:$4 sm:$0x11]   ;;  %v14961_v8 = vpack.c.bf16 %v7008_v10, %v7008_v10  ;;  %v667_v23 = vsel %vm17499_vm6, 0, %v666_v7 }
 0x4ca   : > { %v6455_v61 = vpop.f32.mrb[85].mxu0  ;;  %7989 = vst [vmem:[#allocation3 + $0xf4] sm:$0xf] %v7531_v31  ;;  %7992 = vst [vmem:[#allocation3 + $0xf8] sm:$0x1] %v7991_v42  ;;  %v8955_v5 = vsel %vm2310_vm1, %v8950_v1, %v8954_v54  ;;  %v11176_v2 = vsel %vm2823_vm10, %v11174_v49, %v11175_v21  ;;  %v6730_v27 = vadd.f32 %v21159_v16, %v19610_v32  ;;  %v8964_v1 = vshll.u32 %v16904_v13, 16 }
 0x4cb   : > { %v7993_v57 = vld [vmem:[#allocation3 + $0xfc] sm:$0xf]  ;;  %v19672_v60 = vld [vmem:[%s21076_s3] ss:$0 sm:$0xff]  ;;  %v573_v6 = vld [vmem:[#allocation3 + $0x114] sm:$0x1]  ;;  %v7539_v44 = vor.u32 %v7537_v38, %v7536_v24  ;;  %11988 = vmatprep.mubr.bf16.mxu1 %v8955_v5  ;;  %15606 = vmatprep.mubr.bf16.mxu0 %v11176_v2  ;;  %v19683_v7 = vcombine.low %v8123_v18, %v8124_v55  ;;  %v6735_v21 = vadd.f32 %v19329_v35, %v19630_v41 }
 0x4cc   : > { %v6945_v29 = vadd.f32 %v19672_v60, %v6874_v48  ;;  %v19677_v39 = vpop.f32.mrb[86].mxu0  ;;  %v7540_v50 = vrot.slane %v7536_v24, 4  ;;  %668 = vst [vmem:[#allocation3 + $0x110] sm:$0x1] %v667_v23  ;;  %v669_v54 = vld [vmem:[#allocation3 + $0x11c] sm:$0x1]  ;;  %11989 = vmatmul.mubr.bf16.gmra.mrb[124].mxu1 %v19643_v34  ;;  %v6875_v10 = vmul.f32 %v19659_v58, %v6730_v27  ;;  %v6738_v35 = vadd.f32 %v19350_v40, %v19637_v11 }
 0x4cd   : > { %v6458_v43 = vpop.f32.mrb[87].mxu0  ;;  %v7542_v56 = vshrl.u32 %v14961_v8, 16  ;;  %v7545_v9 = vshll.u32 %v14961_v8, 16  ;;  %v7994_v38 = vsel %vm17519_vm8, %v7539_v44, %v7993_v57  ;;  %v574_v48 = vsel %vm17491_vm3, 0, %v573_v6  ;;  %v8126_v42 = vld [vmem:[#allocation3 + $0xe8] sm:$0xf] }
 0x4ce   : > { %v7009_v62 = vmax.f32 %v6945_v29, 0.0  ;;  %7995 = vst [vmem:[#allocation3 + $0xfc] sm:$0xf] %v7994_v38  ;;  %v8957_v31 = vshrl.u32 %v19683_v7, 16  ;;  %v8959_v34 = vshll.u32 %v19683_v7, 16  ;;  %v6946_v55 = vadd.f32 %v19672_v60, %v6875_v10  ;;  %v16971_v57 = vld [vmem:[%s21077_s4 + $0xf0] sm:$0xff]  }
 0x4cf   : > { %v7544_v32 = vrot.slane %v7542_v56, 7  ;;  %575 = vst [vmem:[#allocation3 + $0x114] sm:$0x1] %v574_v48  ;;  %v7997_v18 = vld [vmem:[#allocation3 + $0x104] sm:$0x1]  ;;  %v8966_v24 = vrot.slane %v8964_v1, 1  ;;  %v6876_v16 = vmul.f32 %v19659_v58, %v6735_v21  ;;  %12154 = vmatpush1.bf16.msra.mxu1 %v16971_v57  ;;  %v6877_v11 = vmul.f32 %v19659_v58, %v6738_v35 }
 0x4d0   : > { %v14962_v49 = vpack.c.bf16 %v7009_v62, %v7009_v62  ;;  %v670_v13 = vsel %vm17499_vm6, 0, %v669_v54  ;;  %v7010_v44 = vmax.f32 %v6946_v55, 0.0  ;;  %v8961_v2 = vrot.slane %v8959_v34, 1  ;;  %v8125_v41 = vld [vmem:[#allocation3 + $0xe4] sm:$0xf]  ;;  %12155 = vmatprep.subr.bf16.mxu1 %v21144_v36 }
 0x4d1   : > { %v19697_v61 = vpop.f32.mrb[88].mxu0  ;;  %v7547_v8 = vor.u32 %v7545_v9, %v7544_v32  ;;  %v7549_v5 = vrot.slane %v7544_v32, 4  ;;  %671 = vst [vmem:[#allocation3 + $0x11c] sm:$0x1] %v670_v13  ;;  %v19709_v56 = vcombine.low %v8125_v41, %v8126_v42  ;;  %v8000_v62 = vld [vmem:[#allocation3 + $0x108] sm:$0xf]  ;;  %v6947_v40 = vadd.f32 %v19672_v60, %v6876_v16 }
 0x4d2   : > { %v7551_v29 = vshrl.u32 %v14962_v49, 16  ;;  %v7554_v23 = vshll.u32 %v14962_v49, 16  ;;  %v6463_v6 = vpop.f32.mrb[89].mxu0  ;;  %v16907_v9 = vld [vmem:[#allocation3 + $0xec] ss:$0 sps:$4 sm:$0x11]   ;;  %v14963_v38 = vpack.c.bf16 %v7010_v44, %v7010_v44  ;;  %v8962_v10 = vor.u32 %v8961_v2, %v8957_v31 }
 0x4d3   : > { %v7548_v27 = vsel %vm17529_vm9, %v7540_v50, %v7547_v8  ;;  %v7998_v54 = vsel %vm17491_vm3, %v7549_v5, %v7997_v18  ;;  %v19714_v1 = vpop.f32.mrb[90].mxu0  ;;  %v8969_v48 = vshrl.u32 %v19709_v56, 16  ;;  %v8971_v32 = vshll.u32 %v19709_v56, 16  ;;  %v576_v49 = vld [vmem:[#allocation3 + $0x120] sm:$0x1] }
 0x4d4   : > { %v7553_v43 = vrot.slane %v7551_v29, 7  ;;  %7996 = vst [vmem:[#allocation3 + $0x100] sm:$0xf] %v7548_v27  ;;  %7999 = vst [vmem:[#allocation3 + $0x104] sm:$0x1] %v7998_v54  ;;  %v7559_v34 = vshrl.u32 %v14963_v38, 16  ;;  %v8967_v18 = vsel %vm2310_vm1, %v8962_v10, %v8966_v24  ;;  %v6948_v57 = vadd.f32 %v19672_v60, %v6877_v11 }
 0x4d5   : > { %v7562_v42 = vshll.u32 %v14963_v38, 16  ;;  %v7011_v55 = vmax.f32 %v6947_v40, 0.0  ;;  %v8379_v21 = vld [vmem:[#allocation3 + $0xd0] sm:$0xf]  ;;  %v6466_v13 = vpop.f32.mrb[91].mxu0  ;;  %11996 = vmatprep.mubr.bf16.mxu1 %v8967_v18  ;;  %v8973_v8 = vrot.slane %v8971_v32, 1  ;;  %v6743_v2 = vadd.f32 %v19326_v28, %v19662_v46 }
 0x4d6   : > { %v7556_v50 = vor.u32 %v7554_v23, %v7553_v43  ;;  %v8976_v5 = vshll.u32 %v16907_v9, 16  ;;  %v16909_v29 = vld [vmem:[#allocation3 + $0xd4] ss:$0 sps:$4 sm:$0x11]   ;;  %v7561_v23 = vrot.slane %v7559_v34, 7  ;;  %11997 = vmatmul.mubr.bf16.gmra.mrb[128].mxu1 %v19683_v7  ;;  %v577_v24 = vsel %vm17491_vm3, 0, %v576_v49 }
 0x4d7   : > { %v8004_v6 = vld [vmem:[#allocation3 + $0x110] sm:$0x1]  ;;  %v14964_v44 = vpack.c.bf16 %v7011_v55, %v7011_v55  ;;  %v8459_v16 = vld [vmem:[#allocation3 + $0xcc] sm:$0xe]  ;;  %v7557_v35 = vrot.slane %v7553_v43, 4  ;;  %v7012_v41 = vmax.f32 %v6948_v57, 0.0  ;;  %v8974_v27 = vor.u32 %v8973_v8, %v8969_v48 }
 0x4d8   : > { %v8001_v31 = vsel %vm17519_vm8, %v7556_v50, %v8000_v62  ;;  %v8978_v54 = vrot.slane %v8976_v5, 1  ;;  %578 = vst [vmem:[#allocation3 + $0x120] sm:$0x1] %v577_v24  ;;  %v8381_v9 = vld [vmem:[#allocation3 + $0xf4] sm:$0xf]  ;;  %v16979_v7 = vld [vmem:[%s21077_s4 + $0xf8] sm:$0xff]   ;;  %v7564_v38 = vor.u32 %v7562_v42, %v7561_v23  ;;  %v6878_v46 = vmul.f32 %v19659_v58, %v6743_v2 }
 0x4d9   : > { %8002 = vst [vmem:[#allocation3 + $0x108] sm:$0xf] %v8001_v31  ;;  %v19727_v62 = vpop.f32.mrb[92].mxu0  ;;  %v7566_v10 = vrot.slane %v7561_v23, 4  ;;  %v7568_v40 = vshrl.u32 %v14964_v44, 16  ;;  %v7571_v11 = vshll.u32 %v14964_v44, 16  ;;  %v14965_v32 = vpack.c.bf16 %v7012_v41, %v7012_v41  ;;  %12156 = vmatpush1.bf16.msra.mxu1 %v16979_v7 }
 0x4da   : > { %v6471_v50 = vpop.f32.mrb[93].mxu0  ;;  %v8979_v28 = vsel %vm2310_vm1, %v8974_v27, %v8978_v54  ;;  %v14765_v43 = vcombine.low %v8459_v16, %v8379_v21  ;;  %v8460_v48 = vld [vmem:[#allocation3 + $0xf0] sm:$0xe]  ;;  %v16912_v49 = vld [vmem:[#allocation3 + $0xf8] ss:$0 sps:$4 sm:$0x11]   ;;  %v7565_v18 = vsel %vm17529_vm9, %v7557_v35, %v7564_v38  ;;  %12414 = vmatprep.subr.bf16.mxu1 %v21144_v36  ;;  %v6949_v8 = vadd.f32 %v19672_v60, %v6878_v46 }
 0x4db   : > { %v672_v34 = vld [vmem:[#allocation3 + $0x128] sm:$0x1]  ;;  %v8005_v42 = vsel %vm17491_vm3, %v7566_v10, %v8004_v6  ;;  %v7570_v55 = vrot.slane %v7568_v40, 7  ;;  %v8007_v13 = vld [vmem:[#allocation3 + $0x114] sm:$0xf]  ;;  %12004 = vmatprep.mubr.bf16.mxu1 %v8979_v28  ;;  %v11178_v31 = vrot.slane %v16909_v29, 1  ;;  %v14766_v16 = vcombine.low %v8460_v48, %v8381_v9 }
 0x4dc   : > { %v19738_v57 = vpop.f32.mrb[94].mxu0  ;;  %8003 = vst [vmem:[#allocation3 + $0x10c] sm:$0xf] %v7565_v18  ;;  %8006 = vst [vmem:[#allocation3 + $0x110] sm:$0x1] %v8005_v42  ;;  %v7576_v21 = vshrl.u32 %v14965_v32, 16  ;;  %v6746_v9 = vadd.f32 %v19336_v47, %v19677_v39 }
 0x4dd   : > { %v11177_v5 = vrot.slane %v14765_v43, 1  ;;  %v6474_v23 = vpop.f32.mrb[95].mxu0  ;;  %v7573_v44 = vor.u32 %v7571_v11, %v7570_v55  ;;  %v7574_v24 = vrot.slane %v7570_v55, 4  ;;  %v7579_v2 = vshll.u32 %v14965_v32, 16  ;;  %v8128_v6 = vld [vmem:[#allocation3 + $0xf4] sm:$0xf] }
 0x4de   : > { %v579_v35 = vld [vmem:[#allocation3 + $0x12c] sm:$0x1]  ;;  %v7578_v41 = vrot.slane %v7576_v21, 7  ;;  %v7013_v27 = vmax.f32 %v6949_v8, 0.0  ;;  %v11181_v54 = vrot.slane %v16912_v49, 1  ;;  %12005 = vmatmul.mubr.bf16.gmra.mrb[132].mxu1 %v19709_v56  ;;  %v11180_v40 = vrot.slane %v14766_v16, 1 }
 0x4df   : > { %v11179_v29 = vsel %vm2823_vm10, %v11177_v5, %v11178_v31  ;;  %v16915_v7 = vld [vmem:[#allocation3 + $0xf8] ss:$0 sps:$4 sm:$0x11]   ;;  %v8008_v38 = vsel %vm17519_vm8, %v7573_v44, %v8007_v13  ;;  %v8011_v10 = vld [vmem:[#allocation3 + $0x11c] sm:$0x1]  ;;  %v673_v11 = vsel %vm17499_vm6, 0, %v672_v34  ;;  %v6879_v42 = vmul.f32 %v19659_v58, %v6746_v9 }
 0x4e0   : > { %15607 = vmatmul.mubr.bf16.gmra.mrb[156].mxu0 %v11179_v29  ;;  %v8127_v50 = vld [vmem:[#allocation3 + $0xf0] sm:$0xf]  ;;  %8009 = vst [vmem:[#allocation3 + $0x114] sm:$0xf] %v8008_v38  ;;  %v7581_v32 = vor.u32 %v7579_v2, %v7578_v41  ;;  %v7583_v28 = vrot.slane %v7578_v41, 4  ;;  %v14966_v46 = vpack.c.bf16 %v7013_v27, %v7013_v27  ;;  %v11182_v56 = vsel %vm2823_vm10, %v11180_v40, %v11181_v54 }
 0x4e1   : > { %674 = vst [vmem:[#allocation3 + $0x128] sm:$0x1] %v673_v11  ;;  %v19750_v43 = vcombine.low %v8127_v50, %v8128_v6  ;;  %v8383_v48 = vld [vmem:[#allocation3 + $0x100] sm:$0xf]  ;;  %v675_v49 = vld [vmem:[#allocation3 + $0x134] sm:$0x1]  ;;  %15610 = vmatprep.mubr.bf16.mxu0 %v11182_v56  ;;  %v6950_v44 = vadd.f32 %v19672_v60, %v6879_v42  ;;  %v6751_v41 = vadd.f32 %v19382_v59, %v19697_v61 }
 0x4e2   : > { %v19752_v18 = vpop.f32.mrb[96].mxu0  ;;  %v580_v34 = vsel %vm17491_vm3, 0, %v579_v35  ;;  %v16918_v47 = vld [vmem:[#allocation3 + $0x104] ss:$0 sps:$4 sm:$0x11]   ;;  %v7582_v55 = vsel %vm17529_vm9, %v7574_v24, %v7581_v32  ;;  %v8012_v13 = vsel %vm17491_vm3, %v7583_v28, %v8011_v10  ;;  %v7585_v31 = vshrl.u32 %v14966_v46, 16 }
 0x4e3   : > { %v6479_v39 = vpop.f32.mrb[97].mxu0  ;;  %v8988_v21 = vshll.u32 %v16915_v7, 16  ;;  %581 = vst [vmem:[#allocation3 + $0x12c] sm:$0x1] %v580_v34  ;;  %v8461_v8 = vld [vmem:[#allocation3 + $0xfc] sm:$0xe]  ;;  %v6880_v50 = vmul.f32 %v19659_v58, %v6751_v41  ;;  %v6754_v59 = vadd.f32 %v19387_v37, %v19714_v1  ;;  %v6759_v41 = vadd.f32 %v19370_v33, %v19727_v62 }
 0x4e4   : > { %v19762_v5 = vpop.f32.mrb[98].mxu0  ;;  %8010 = vst [vmem:[#allocation3 + $0x118] sm:$0xf] %v7582_v55  ;;  %8013 = vst [vmem:[#allocation3 + $0x11c] sm:$0x1] %v8012_v13  ;;  %v7588_v23 = vshll.u32 %v14966_v46, 16  ;;  %v14767_v27 = vcombine.low %v8461_v8, %v8383_v48 }
 0x4e5   : > { %v8983_v2 = vshll.u32 %v19750_v43, 16  ;;  %v16921_v16 = vld [vmem:[#allocation3 + $0x104] ss:$0 sps:$4 sm:$0x11]   ;;  %v6482_v6 = vpop.f32.mrb[99].mxu0  ;;  %v19766_v24 = vrot.slane %v7585_v31, 7  ;;  %v6951_v42 = vadd.f32 %v19672_v60, %v6880_v50  ;;  %v6881_v1 = vmul.f32 %v19659_v58, %v6754_v59 }
 0x4e6   : > { %v8981_v35 = vshrl.u32 %v19750_v43, 16  ;;  %v8130_v29 = vld [vmem:[#allocation3 + $0x100] sm:$0xf]  ;;  %v7014_v7 = vmax.f32 %v6950_v44, 0.0  ;;  %v11184_v10 = vrot.slane %v16918_v47, 1  ;;  %v676_v40 = vsel %vm17499_vm6, 0, %v675_v49 }
 0x4e7   : > { %v8014_v54 = vld [vmem:[#allocation3 + $0x120] sm:$0xf]  ;;  %v8985_v38 = vrot.slane %v8983_v2, 1  ;;  %v7590_v11 = vor.u32 %v7588_v23, %v19766_v24  ;;  %v8990_v9 = vrot.slane %v8988_v21, 1  ;;  %v11183_v32 = vrot.slane %v14767_v27, 1 }
 0x4e8   : > { %677 = vst [vmem:[#allocation3 + $0x134] sm:$0x1] %v676_v40  ;;  %v8129_v28 = vld [vmem:[#allocation3 + $0xfc] sm:$0xf]  ;;  %v14967_v46 = vpack.c.bf16 %v7014_v7, %v7014_v7  ;;  %v9000_v47 = vshll.u32 %v16921_v16, 16  ;;  %v7591_v13 = vrot.slane %v19766_v24, 4  ;;  %v6952_v24 = vadd.f32 %v19672_v60, %v6881_v1 }
 0x4e9   : > { %v8986_v56 = vor.u32 %v8985_v38, %v8981_v35  ;;  %v19777_v61 = vcombine.low %v8129_v28, %v8130_v29  ;;  %v19779_v48 = vpop.f32.mrb[100].mxu0  ;;  %v8015_v49 = vsel %vm17519_vm8, %v7590_v11, %v8014_v54  ;;  %v11185_v34 = vsel %vm2823_vm10, %v11183_v32, %v11184_v10  ;;  %v582_v39 = vld [vmem:[#allocation3 + $0x138] sm:$0x1]  ;;  %v8385_v21 = vld [vmem:[#allocation3 + $0x10c] sm:$0xf] }
 0x4ea   : > { %v6487_v55 = vpop.f32.mrb[101].mxu0  ;;  %8016 = vst [vmem:[#allocation3 + $0x120] sm:$0xf] %v8015_v49  ;;  %v7593_v31 = vshrl.u32 %v14967_v46, 16  ;;  %15611 = vmatmul.mubr.bf16.gmra.mrb[160].mxu0 %v11185_v34  ;;  %v7596_v8 = vshll.u32 %v14967_v46, 16  ;;  %v7015_v23 = vmax.f32 %v6951_v42, 0.0 }
 0x4eb   : > { %v8991_v37 = vsel %vm2310_vm1, %v8986_v56, %v8990_v9  ;;  %v8993_v44 = vshrl.u32 %v19777_v61, 16  ;;  %v8995_v2 = vshll.u32 %v19777_v61, 16  ;;  %v16923_v16 = vld [vmem:[#allocation3 + $0x110] ss:$0 sps:$4 sm:$0x11]   ;;  %v583_v35 = vsel %vm17491_vm3, 0, %v582_v39 }
 0x4ec   : > { %12012 = vmatprep.mubr.bf16.mxu1 %v8991_v37  ;;  %v7595_v6 = vrot.slane %v7593_v31, 7  ;;  %v8462_v27 = vld [vmem:[#allocation3 + $0x108] sm:$0xe]  ;;  %v8018_v29 = vld [vmem:[#allocation3 + $0x128] sm:$0x1]  ;;  %v14968_v54 = vpack.c.bf16 %v7015_v23, %v7015_v23  ;;  %v9002_v38 = vrot.slane %v9000_v47, 1 }
 0x4ed   : > { %12013 = vmatmul.mubr.bf16.gmra.mrb[136].mxu1 %v19750_v43  ;;  %v8997_v7 = vrot.slane %v8995_v2, 1  ;;  %584 = vst [vmem:[#allocation3 + $0x138] sm:$0x1] %v583_v35  ;;  %v14768_v10 = vcombine.low %v8462_v27, %v8385_v21  ;;  %v7016_v9 = vmax.f32 %v6952_v24, 0.0  ;;  %v6882_v43 = vmul.f32 %v19659_v58, %v6759_v41  ;;  %v678_v50 = vld [vmem:[#allocation3 + $0x140] sm:$0x1] }
 0x4ee   : > { %v7598_v40 = vor.u32 %v7596_v8, %v7595_v6  ;;  %v7600_v11 = vrot.slane %v7595_v6, 4  ;;  %v19797_v32 = vpop.f32.mrb[102].mxu0  ;;  %v7602_v28 = vshrl.u32 %v14968_v54, 16  ;;  %v7605_v46 = vshll.u32 %v14968_v54, 16  ;;  %v8132_v34 = vld [vmem:[#allocation3 + $0x10c] sm:$0xf] }
 0x4ef   : > { %v8998_v56 = vor.u32 %v8997_v7, %v8993_v44  ;;  %v11186_v59 = vrot.slane %v14768_v10, 1  ;;  %v14969_v49 = vpack.c.bf16 %v7016_v9, %v7016_v9  ;;  %v6953_v42 = vadd.f32 %v19672_v60, %v6882_v43  ;;  %v16926_v47 = vld [vmem:[#allocation3 + $0x110] ss:$0 sps:$4 sm:$0x11]   ;;  %v585_v39 = vld [vmem:[#allocation3 + $0x144] sm:$0x1] }
 0x4f0   : > { %v7599_v33 = vsel %vm17529_vm9, %v7591_v13, %v7598_v40  ;;  %v8019_v62 = vsel %vm17491_vm3, %v7600_v11, %v8018_v29  ;;  %v6490_v55 = vpop.f32.mrb[103].mxu0  ;;  %v7604_v31 = vrot.slane %v7602_v28, 7  ;;  %v11187_v1 = vrot.slane %v16923_v16, 1  ;;  %v8131_v13 = vld [vmem:[#allocation3 + $0x108] sm:$0xf]  ;;  %v21160_v6 = vld [vmem:[#allocation8_spill] sm:$0xff] }
 0x4f1   : > { %8017 = vst [vmem:[#allocation3 + $0x124] sm:$0xf] %v7599_v33  ;;  %8020 = vst [vmem:[#allocation3 + $0x128] sm:$0x1] %v8019_v62  ;;  %v9003_v37 = vsel %vm2310_vm1, %v8998_v56, %v9002_v38  ;;  %v679_v21 = vsel %vm17499_vm6, 0, %v678_v50  ;;  %v19807_v8 = vpop.f32.mrb[104].mxu0  ;;  %v6762_v24 = vadd.f32 %v21160_v6, %v19738_v57  ;;  %v14514_v16 = vcombine.low %v8131_v13, %v8132_v34 }
 0x4f2   : > { %v8021_v23 = vld [vmem:[#allocation3 + $0x12c] sm:$0xf]  ;;  %v7610_v44 = vshrl.u32 %v14969_v49, 16  ;;  %12020 = vmatprep.mubr.bf16.mxu1 %v9003_v37  ;;  %v7017_v2 = vmax.f32 %v6953_v42, 0.0  ;;  %680 = vst [vmem:[#allocation3 + $0x140] sm:$0x1] %v679_v21  ;;  %v7607_v41 = vor.u32 %v7605_v46, %v7604_v31  ;;  %v11188_v29 = vsel %vm2823_vm10, %v11186_v59, %v11187_v1 }
 0x4f3   : > { %v6495_v35 = vpop.f32.mrb[105].mxu0  ;;  %v7613_v27 = vshll.u32 %v14969_v49, 16  ;;  %15614 = vmatprep.mubr.bf16.mxu0 %v11188_v29  ;;  %v6883_v10 = vmul.f32 %v19659_v58, %v6762_v24  ;;  %v9012_v40 = vshll.u32 %v16926_v47, 16  ;;  %v8387_v11 = vld [vmem:[#allocation3 + $0x118] sm:$0xf]  ;;  %v7608_v43 = vrot.slane %v7604_v31, 4 }
 0x4f4   : > { %v19812_v54 = vpop.f32.mrb[106].mxu0  ;;  %v7612_v7 = vrot.slane %v7610_v44, 7  ;;  %v14970_v38 = vpack.c.bf16 %v7017_v2, %v7017_v2  ;;  %v8022_v57 = vsel %vm17519_vm8, %v7607_v41, %v8021_v23  ;;  %v8025_v50 = vld [vmem:[#allocation3 + $0x134] sm:$0x1]  ;;  %v9007_v28 = vshll.u32 %v14514_v16, 16 }
 0x4f5   : > { %12021 = vmatmul.mubr.bf16.gmra.mrb[140].mxu1 %v19777_v61  ;;  %v6498_v9 = vpop.f32.mrb[107].mxu0  ;;  %v586_v46 = vsel %vm17491_vm3, 0, %v585_v39  ;;  %v681_v56 = vld [vmem:[#allocation3 + $0x14c] sm:$0x1]  ;;  %8023 = vst [vmem:[#allocation3 + $0x12c] sm:$0xf] %v8022_v57  ;;  %v6954_v47 = vadd.f32 %v19672_v60, %v6883_v10  ;;  %v6767_v31 = vadd.f32 %v19434_v4, %v19752_v18 }
 0x4f6   : > { %v7615_v59 = vor.u32 %v7613_v27, %v7612_v7  ;;  %v7617_v61 = vrot.slane %v7612_v7, 4  ;;  %v7619_v33 = vshrl.u32 %v14970_v38, 16  ;;  %v9005_v62 = vshrl.u32 %v14514_v16, 16  ;;  %587 = vst [vmem:[#allocation3 + $0x144] sm:$0x1] %v586_v46 }
 0x4f7   : > { %v8463_v49 = vld [vmem:[#allocation3 + $0x114] sm:$0xe]  ;;  %v16929_v42 = vld [vmem:[#allocation3 + $0x11c] ss:$0 sps:$4 sm:$0x11]   ;;  %v7622_v34 = vshll.u32 %v14970_v38, 16  ;;  %v6884_v24 = vmul.f32 %v19659_v58, %v6767_v31 }
 0x4f8   : > { %v9009_v55 = vrot.slane %v9007_v28, 1  ;;  %v16932_v37 = vld [vmem:[#allocation3 + $0x11c] ss:$0 sps:$4 sm:$0x11]   ;;  %v7616_v39 = vsel %vm17529_vm9, %v7608_v43, %v7615_v59  ;;  %v8026_v1 = vsel %vm17491_vm3, %v7617_v61, %v8025_v50  ;;  %v19827_v21 = vrot.slane %v7619_v33, 7 }
 0x4f9   : > { %v9014_v13 = vrot.slane %v9012_v40, 1  ;;  %v19829_v23 = vpop.f32.mrb[108].mxu0  ;;  %8024 = vst [vmem:[#allocation3 + $0x130] sm:$0xf] %v7616_v39  ;;  %8027 = vst [vmem:[#allocation3 + $0x134] sm:$0x1] %v8026_v1  ;;  %v14769_v4 = vcombine.low %v8463_v49, %v8387_v11  ;;  %v6955_v10 = vadd.f32 %v19672_v60, %v6884_v24  ;;  %v6770_v11 = vadd.f32 %v19452_v3, %v19762_v5 }
 0x4fa   : > { %v8028_v44 = vld [vmem:[#allocation3 + $0x138] sm:$0xf]  ;;  %v7018_v2 = vmax.f32 %v6954_v47, 0.0  ;;  %v9010_v6 = vor.u32 %v9009_v55, %v9005_v62  ;;  %v7624_v35 = vor.u32 %v7622_v34, %v19827_v21  ;;  %v11190_v41 = vrot.slane %v16929_v42, 1  ;;  %v6503_v29 = vpop.f32.mrb[109].mxu0 }
 0x4fb   : > { %v8134_v18 = vld [vmem:[#allocation3 + $0x118] sm:$0xf]  ;;  %v682_v27 = vsel %vm17499_vm6, 0, %v681_v56  ;;  %v11189_v40 = vrot.slane %v14769_v4, 1  ;;  %v8133_v9 = vld [vmem:[#allocation3 + $0x114] sm:$0xf]  ;;  %v6885_v3 = vmul.f32 %v19659_v58, %v6770_v11 }
 0x4fc   : > { %v14971_v7 = vpack.c.bf16 %v7018_v2, %v7018_v2  ;;  %v9015_v38 = vsel %vm2310_vm1, %v9010_v6, %v9014_v13  ;;  %683 = vst [vmem:[#allocation3 + $0x14c] sm:$0x1] %v682_v27  ;;  %v8029_v43 = vsel %vm17519_vm8, %v7624_v35, %v8028_v44  ;;  %v14515_v57 = vcombine.low %v8133_v9, %v8134_v18  ;;  %v588_v28 = vld [vmem:[#allocation3 + $0x150] sm:$0x1]  ;;  %v19841_v46 = vpop.f32.mrb[110].mxu0 }
 0x4fd   : > { %12028 = vmatprep.mubr.bf16.mxu1 %v9015_v38  ;;  %v9024_v50 = vshll.u32 %v16932_v37, 16  ;;  %v7625_v56 = vrot.slane %v19827_v21, 4  ;;  %8030 = vst [vmem:[#allocation3 + $0x138] sm:$0xf] %v8029_v43  ;;  %v7019_v61 = vmax.f32 %v6955_v10, 0.0  ;;  %v11191_v33 = vsel %vm2823_vm10, %v11189_v40, %v11190_v41  ;;  %v6506_v42 = vpop.f32.mrb[111].mxu0 }
 0x4fe   : > { %v7627_v59 = vshrl.u32 %v14971_v7, 16  ;;  %12029 = vmatmul.mubr.bf16.gmra.mrb[144].mxu1 %v14514_v16  ;;  %v8389_v62 = vld [vmem:[#allocation3 + $0x124] sm:$0xf]  ;;  %v8464_v49 = vld [vmem:[#allocation3 + $0x120] sm:$0xe]  ;;  %v7630_v34 = vshll.u32 %v14971_v7, 16  ;;  %15615 = vmatmul.mubr.bf16.gmra.mrb[164].mxu0 %v11191_v33  ;;  %v6775_v16 = vadd.f32 %v19431_v30, %v19779_v48  ;;  %v6956_v13 = vadd.f32 %v19672_v60, %v6885_v3 }
 0x4ff   : > { %v8032_v47 = vld [vmem:[#allocation3 + $0x140] sm:$0x1]  ;;  %v9017_v5 = vshrl.u32 %v14515_v57, 16  ;;  %v9019_v55 = vshll.u32 %v14515_v57, 16  ;;  %v14972_v37 = vpack.c.bf16 %v7019_v61, %v7019_v61  ;;  %v589_v39 = vsel %vm17491_vm3, 0, %v588_v28  ;;  %v21161_v42 = vld [vmem:[#allocation9_spill] sm:$0xff] }
 0x500   : > { %v7629_v31 = vrot.slane %v7627_v59, 7  ;;  %v16934_v1 = vld [vmem:[#allocation3 + $0x128] ss:$0 sps:$4 sm:$0x11]   ;;  %v684_v21 = vld [vmem:[#allocation3 + $0x158] sm:$0x1]  ;;  %v14770_v6 = vcombine.low %v8464_v49, %v8389_v62  ;;  %v6886_v38 = vmul.f32 %v19659_v58, %v6775_v16 }
 0x501   : > { %v9021_v44 = vrot.slane %v9019_v55, 1  ;;  %v9026_v2 = vrot.slane %v9024_v50, 1  ;;  %590 = vst [vmem:[#allocation3 + $0x150] sm:$0x1] %v589_v39  ;;  %v19851_v24 = vpop.f32.mrb[112].mxu0  ;;  %v7636_v35 = vshrl.u32 %v14972_v37, 16 }
 0x502   : > { %v7632_v4 = vor.u32 %v7630_v34, %v7629_v31  ;;  %v7634_v18 = vrot.slane %v7629_v31, 4  ;;  %v7639_v41 = vshll.u32 %v14972_v37, 16  ;;  %v8136_v27 = vld [vmem:[#allocation3 + $0x124] sm:$0xf]  ;;  %v7020_v29 = vmax.f32 %v6956_v13, 0.0  ;;  %v6511_v11 = vpop.f32.mrb[113].mxu0 }
 0x503   : > { %v9022_v7 = vor.u32 %v9021_v44, %v9017_v5  ;;  %v11192_v30 = vrot.slane %v14770_v6, 1  ;;  %v16937_v48 = vld [vmem:[#allocation3 + $0x128] ss:$0 sps:$4 sm:$0x11]   ;;  %v7638_v9 = vrot.slane %v7636_v35, 7  ;;  %v11193_v43 = vrot.slane %v16934_v1, 1 }
 0x504   : > { %v7633_v10 = vsel %vm17529_vm9, %v7625_v56, %v7632_v4  ;;  %v8033_v40 = vsel %vm17491_vm3, %v7634_v18, %v8032_v47  ;;  %v8035_v50 = vld [vmem:[#allocation3 + $0x144] sm:$0xf]  ;;  %v14973_v28 = vpack.c.bf16 %v7020_v29, %v7020_v29  ;;  %v6957_v61 = vadd.f32 %v19672_v60, %v6886_v38  ;;  %v591_v62 = vld [vmem:[#allocation3 + $0x15c] sm:$0x1]  ;;  %v8135_v47 = vld [vmem:[#allocation3 + $0x120] sm:$0xf] }
 0x505   : > { %8031 = vst [vmem:[#allocation3 + $0x13c] sm:$0xf] %v7633_v10  ;;  %8034 = vst [vmem:[#allocation3 + $0x140] sm:$0x1] %v8033_v40  ;;  %v9027_v59 = vsel %vm2310_vm1, %v9022_v7, %v9026_v2  ;;  %v685_v33 = vsel %vm17499_vm6, 0, %v684_v21  ;;  %v7641_v49 = vor.u32 %v7639_v41, %v7638_v9  ;;  %v11194_v56 = vsel %vm2823_vm10, %v11192_v30, %v11193_v43  ;;  %v19865_v3 = vpop.f32.mrb[114].mxu0 }
 0x506   : > { %12036 = vmatprep.mubr.bf16.mxu1 %v9027_v59  ;;  %686 = vst [vmem:[#allocation3 + $0x158] sm:$0x1] %v685_v33  ;;  %v6778_v34 = vadd.f32 %v21161_v42, %v19797_v32  ;;  %v7642_v5 = vrot.slane %v7638_v9, 4  ;;  %v7644_v55 = vshrl.u32 %v14973_v28, 16  ;;  %v7021_v31 = vmax.f32 %v6957_v61, 0.0  ;;  %15618 = vmatprep.mubr.bf16.mxu0 %v11194_v56  ;;  %v6514_v39 = vpop.f32.mrb[115].mxu0 }
 0x507   : > { %12037 = vmatmul.mubr.bf16.gmra.mrb[148].mxu1 %v14515_v57  ;;  %v19867_v37 = vcombine.low %v8135_v47, %v8136_v27  ;;  %v8036_v16 = vsel %vm17519_vm8, %v7641_v49, %v8035_v50  ;;  %v9036_v21 = vshll.u32 %v16937_v48, 16  ;;  %v592_v32 = vsel %vm17491_vm3, 0, %v591_v62  ;;  %v16940_v13 = vld [vmem:[#allocation3 + $0x134] ss:$0 sps:$4 sm:$0x11]  }
 0x508   : > { %v6887_v1 = vmul.f32 %v19659_v58, %v6778_v34  ;;  %8037 = vst [vmem:[#allocation3 + $0x144] sm:$0xf] %v8036_v16  ;;  %v7646_v44 = vrot.slane %v7644_v55, 7  ;;  %v7647_v2 = vshll.u32 %v14973_v28, 16  ;;  %v14974_v6 = vpack.c.bf16 %v7021_v31, %v7021_v31  ;;  %593 = vst [vmem:[#allocation3 + $0x15c] sm:$0x1] %v592_v32 }
 0x509   : > { %v9031_v57 = vshll.u32 %v19867_v37, 16  ;;  %v8391_v4 = vld [vmem:[#allocation3 + $0x130] sm:$0xf]  ;;  %v19875_v18 = vpop.f32.mrb[116].mxu0  ;;  %v8039_v35 = vld [vmem:[#allocation3 + $0x14c] sm:$0x1]  ;;  %v6783_v7 = vadd.f32 %v19473_v63, %v19807_v8 }
 0x50a   : > { %v6958_v41 = vadd.f32 %v19672_v60, %v6887_v1  ;;  %v9029_v27 = vshrl.u32 %v19867_v37, 16  ;;  %v9038_v29 = vrot.slane %v9036_v21, 1  ;;  %v687_v38 = vld [vmem:[#allocation3 + $0x164] sm:$0x1]  ;;  %v6519_v30 = vpop.f32.mrb[117].mxu0  ;;  %v7649_v48 = vor.u32 %v7647_v2, %v7646_v44 }
 0x50b   : > { %v7651_v10 = vrot.slane %v7646_v44, 4  ;;  %v7653_v40 = vshrl.u32 %v14974_v6, 16  ;;  %v7656_v9 = vshll.u32 %v14974_v6, 16  ;;  %v8465_v43 = vld [vmem:[#allocation3 + $0x12c] sm:$0xe]  ;;  %v19881_v11 = vpop.f32.mrb[118].mxu0  ;;  %v6888_v59 = vmul.f32 %v19659_v58, %v6783_v7 }
 0x50c   : > { %v7022_v50 = vmax.f32 %v6958_v41, 0.0  ;;  %v9033_v28 = vrot.slane %v9031_v57, 1  ;;  %v14771_v61 = vcombine.low %v8465_v43, %v8391_v4  ;;  %v8138_v33 = vld [vmem:[#allocation3 + $0x130] sm:$0xf]  ;;  %v7650_v62 = vsel %vm17529_vm9, %v7642_v5, %v7649_v48  ;;  %v594_v1 = vld [vmem:[#allocation3 + $0x168] sm:$0x1] }
 0x50d   : > { %v8040_v63 = vsel %vm17491_vm3, %v7651_v10, %v8039_v35  ;;  %v7655_v8 = vrot.slane %v7653_v40, 7  ;;  %v11196_v49 = vrot.slane %v16940_v13, 1  ;;  %v16943_v56 = vld [vmem:[#allocation3 + $0x134] ss:$0 sps:$4 sm:$0x11]   ;;  %v6959_v55 = vadd.f32 %v19672_v60, %v6888_v59  ;;  %v6522_v21 = vpop.f32.mrb[119].mxu0 }
 0x50e   : > { %8038 = vst [vmem:[#allocation3 + $0x148] sm:$0xf] %v7650_v62  ;;  %8041 = vst [vmem:[#allocation3 + $0x14c] sm:$0x1] %v8040_v63  ;;  %v8042_v42 = vld [vmem:[#allocation3 + $0x150] sm:$0xf]  ;;  %v14975_v34 = vpack.c.bf16 %v7022_v50, %v7022_v50  ;;  %v9034_v47 = vor.u32 %v9033_v28, %v9029_v27  ;;  %v6786_v5 = vadd.f32 %v19487_v52, %v19812_v54 }
 0x50f   : > { %v11195_v31 = vrot.slane %v14771_v61, 1  ;;  %v7658_v39 = vor.u32 %v7656_v9, %v7655_v8  ;;  %v688_v16 = vsel %vm17499_vm6, 0, %v687_v38  ;;  %v7023_v2 = vmax.f32 %v6959_v55, 0.0  ;;  %v8137_v6 = vld [vmem:[#allocation3 + $0x12c] sm:$0xf] }
 0x510   : > { %v7661_v32 = vshrl.u32 %v14975_v34, 16  ;;  %v7664_v13 = vshll.u32 %v14975_v34, 16  ;;  %v9039_v44 = vsel %vm2310_vm1, %v9034_v47, %v9038_v29  ;;  %689 = vst [vmem:[#allocation3 + $0x164] sm:$0x1] %v688_v16  ;;  %v6889_v35 = vmul.f32 %v19659_v58, %v6786_v5  ;;  %v8046_v54 = vld [vmem:[#allocation3 + $0x158] sm:$0x1] }
 0x511   : > { %v8043_v57 = vsel %vm17519_vm8, %v7658_v39, %v8042_v42  ;;  %12044 = vmatprep.mubr.bf16.mxu1 %v9039_v44  ;;  %v11197_v4 = vsel %vm2823_vm10, %v11195_v31, %v11196_v49  ;;  %v14517_v41 = vcombine.low %v8137_v6, %v8138_v33  ;;  %v14976_v27 = vpack.c.bf16 %v7023_v2, %v7023_v2  ;;  %v19901_v38 = vpop.f32.mrb[120].mxu0  ;;  %v16945_v9 = vld [vmem:[#allocation3 + $0x140] ss:$0 sps:$4 sm:$0x11]   ;;  %v8393_v61 = vld [vmem:[#allocation3 + $0x13c] sm:$0xf] }
 0x512   : > { %8044 = vst [vmem:[#allocation3 + $0x150] sm:$0xf] %v8043_v57  ;;  %v7663_v52 = vrot.slane %v7661_v32, 7  ;;  %12045 = vmatmul.mubr.bf16.gmra.mrb[152].mxu1 %v19867_v37  ;;  %15619 = vmatmul.mubr.bf16.gmra.mrb[168].mxu0 %v11197_v4  ;;  %v9048_v29 = vshll.u32 %v16943_v56, 16  ;;  %v595_v7 = vsel %vm17491_vm3, 0, %v594_v1  ;;  %v7659_v30 = vrot.slane %v7655_v8, 4 }
 0x513   : > { %v6960_v48 = vadd.f32 %v19672_v60, %v6889_v35  ;;  %v9043_v10 = vshll.u32 %v14517_v41, 16  ;;  %596 = vst [vmem:[#allocation3 + $0x168] sm:$0x1] %v595_v7  ;;  %v6791_v40 = vadd.f32 %v19465_v25, %v19829_v23  ;;  %v6527_v43 = vpop.f32.mrb[121].mxu0  ;;  %v7670_v28 = vshrl.u32 %v14976_v27, 16 }
 0x514   : > { %v7666_v50 = vor.u32 %v7664_v13, %v7663_v52  ;;  %v7668_v37 = vrot.slane %v7663_v52, 4  ;;  %v9041_v59 = vshrl.u32 %v14517_v41, 16  ;;  %v19906_v33 = vpop.f32.mrb[122].mxu0  ;;  %v7673_v62 = vshll.u32 %v14976_v27, 16  ;;  %v690_v56 = vld [vmem:[#allocation3 + $0x170] sm:$0x1] }
 0x515   : > { %v7024_v63 = vmax.f32 %v6960_v48, 0.0  ;;  %v9045_v49 = vrot.slane %v9043_v10, 1  ;;  %v6890_v8 = vmul.f32 %v19659_v58, %v6791_v40  ;;  %v19909_v42 = vld [vmem:[#allocation3 + $0x140] ss:$0 sps:$4 sm:$0x11]   ;;  %v6530_v34 = vpop.f32.mrb[123].mxu0 }
 0x516   : > { %v7667_v25 = vsel %vm17529_vm9, %v7659_v30, %v7666_v50  ;;  %v8047_v23 = vsel %vm17491_vm3, %v7668_v37, %v8046_v54  ;;  %v7672_v47 = vrot.slane %v7670_v28, 7  ;;  %v9050_v55 = vrot.slane %v9048_v29, 1  ;;  %v8466_v31 = vld [vmem:[#allocation3 + $0x138] sm:$0xe]  ;;  %v8049_v39 = vld [vmem:[#allocation3 + $0x15c] sm:$0xf] }
 0x517   : > { %8045 = vst [vmem:[#allocation3 + $0x154] sm:$0xf] %v7667_v25  ;;  %8048 = vst [vmem:[#allocation3 + $0x158] sm:$0x1] %v8047_v23  ;;  %v14977_v16 = vpack.c.bf16 %v7024_v63, %v7024_v63  ;;  %v9046_v5 = vor.u32 %v9045_v49, %v9041_v59  ;;  %v6961_v58 = vadd.f32 %v19672_v60, %v6890_v8  ;;  %v8140_v21 = vld [vmem:[#allocation3 + $0x13c] sm:$0xf] }
 0x518   : > { %v14772_v1 = vcombine.low %v8466_v31, %v8393_v61  ;;  %v7675_v32 = vor.u32 %v7673_v62, %v7672_v47  ;;  %v11199_v13 = vrot.slane %v16945_v9, 1  ;;  %v691_v44 = vsel %vm17499_vm6, 0, %v690_v56  ;;  %v597_v2 = vld [vmem:[#allocation3 + $0x174] sm:$0x1]  ;;  %v8139_v52 = vld [vmem:[#allocation3 + $0x138] sm:$0xf] }
 0x519   : > { %v7678_v6 = vshrl.u32 %v14977_v16, 16  ;;  %v7681_v57 = vshll.u32 %v14977_v16, 16  ;;  %v9051_v4 = vsel %vm2310_vm1, %v9046_v5, %v9050_v55  ;;  %v7025_v35 = vmax.f32 %v6961_v58, 0.0  ;;  %692 = vst [vmem:[#allocation3 + $0x170] sm:$0x1] %v691_v44  ;;  %v19919_v54 = vpop.f32.mrb[124].mxu0 }
 0x51a   : > { %v8050_v60 = vsel %vm17519_vm8, %v7675_v32, %v8049_v39  ;;  %12052 = vmatprep.mubr.bf16.mxu1 %v9051_v4  ;;  %v11198_v27 = vrot.slane %v14772_v1, 1  ;;  %v6794_v29 = vadd.f32 %v19483_v12, %v19841_v46  ;;  %v14518_v7 = vcombine.low %v8139_v52, %v8140_v21  ;;  %v6535_v30 = vpop.f32.mrb[125].mxu0  ;;  %v8395_v43 = vld [vmem:[#allocation3 + $0x148] sm:$0xf]  ;;  %v8053_v28 = vld [vmem:[#allocation3 + $0x164] sm:$0x1] }
 0x51b   : > { %8051 = vst [vmem:[#allocation3 + $0x15c] sm:$0xf] %v8050_v60  ;;  %v7680_v48 = vrot.slane %v7678_v6, 7  ;;  %12053 = vmatmul.mubr.bf16.gmra.mrb[156].mxu1 %v14517_v41  ;;  %v14978_v10 = vpack.c.bf16 %v7025_v35, %v7025_v35  ;;  %v9060_v40 = vshll.u32 %v19909_v42, 16  ;;  %v598_v9 = vsel %vm17491_vm3, 0, %v597_v2  ;;  %v19928_v50 = vpop.f32.mrb[126].mxu0 }
 0x51c   : > { %v7676_v37 = vrot.slane %v7672_v47, 4  ;;  %v11200_v59 = vsel %vm2823_vm10, %v11198_v27, %v11199_v13  ;;  %v19934_v12 = vld [vmem:[%s21075_s2] ss:$0 sm:$0xff]  ;;  %v9055_v41 = vshll.u32 %v14518_v7, 16  ;;  %599 = vst [vmem:[#allocation3 + $0x174] sm:$0x1] %v598_v9  ;;  %v6799_v31 = vadd.f32 %v19531_v51, %v19851_v24 }
 0x51d   : > { %v6891_v46 = vmul.f32 %v19934_v12, %v6794_v29  ;;  %v693_v61 = vld [vmem:[#allocation3 + $0x17c] sm:$0x1]  ;;  %v6538_v62 = vpop.f32.mrb[127].mxu0  ;;  %v7683_v63 = vor.u32 %v7681_v57, %v7680_v48  ;;  %v7685_v49 = vrot.slane %v7680_v48, 4  ;;  %v7687_v8 = vshrl.u32 %v14978_v10, 16  ;;  %15622 = vmatprep.mubr.bf16.mxu0 %v11200_v59 }
 0x51e   : > { %v9053_v56 = vshrl.u32 %v14518_v7, 16  ;;  %v8467_v42 = vld [vmem:[#allocation3 + $0x144] sm:$0xe]  ;;  %v16951_v34 = vld [vmem:[#allocation3 + $0x14c] ss:$0 sps:$4 sm:$0x11]   ;;  %v6892_v2 = vmul.f32 %v19934_v12, %v6799_v31  ;;  %v6802_v30 = vadd.f32 %v19546_v15, %v19865_v3 }
 0x51f   : > { %v7690_v25 = vshll.u32 %v14978_v10, 16  ;;  %v19940_v23 = vld [vmem:[%s21076_s3] ss:$0 sm:$0xff]  ;;  %v9057_v55 = vrot.slane %v9055_v41, 1  ;;  %v8142_v39 = vld [vmem:[#allocation3 + $0x148] sm:$0xf]  ;;  %v7684_v16 = vsel %vm17529_vm9, %v7676_v37, %v7683_v63  ;;  %v8054_v5 = vsel %vm17491_vm3, %v7685_v49, %v8053_v28 }
 0x520   : > { %v6962_v47 = vadd.f32 %v19940_v23, %v6891_v46  ;;  %v7689_v58 = vrot.slane %v7687_v8, 7  ;;  %v9062_v1 = vrot.slane %v9060_v40, 1  ;;  %v16954_v21 = vld [vmem:[#allocation3 + $0x14c] ss:$0 sps:$4 sm:$0x11]   ;;  %v14773_v6 = vcombine.low %v8467_v42, %v8395_v43 }
 0x521   : > { %8052 = vst [vmem:[#allocation3 + $0x160] sm:$0xf] %v7684_v16  ;;  %8055 = vst [vmem:[#allocation3 + $0x164] sm:$0x1] %v8054_v5  ;;  %v8056_v32 = vld [vmem:[#allocation3 + $0x168] sm:$0xf]  ;;  %v9058_v44 = vor.u32 %v9057_v55, %v9053_v56  ;;  %v6963_v52 = vadd.f32 %v19940_v23, %v6892_v2  ;;  %v6893_v41 = vmul.f32 %v19934_v12, %v6802_v30 }
 0x522   : > { %v7026_v13 = vmax.f32 %v6962_v47, 0.0  ;;  %v7692_v57 = vor.u32 %v7690_v25, %v7689_v58  ;;  %v11202_v51 = vrot.slane %v16951_v34, 1  ;;  %v694_v24 = vsel %vm17499_vm6, 0, %v693_v61  ;;  %v8141_v27 = vld [vmem:[#allocation3 + $0x144] sm:$0xf] }
 0x523   : > { %v9063_v35 = vsel %vm2310_vm1, %v9058_v44, %v9062_v1  ;;  %v11201_v60 = vrot.slane %v14773_v6, 1  ;;  %695 = vst [vmem:[#allocation3 + $0x17c] sm:$0x1] %v694_v24  ;;  %v14519_v48 = vcombine.low %v8141_v27, %v8142_v39  ;;  %v9072_v10 = vshll.u32 %v16954_v21, 16  ;;  %v600_v40 = vld [vmem:[#allocation3 + $0x180] sm:$0x1] }
 0x524   : > { %v14979_v4 = vpack.c.bf16 %v7026_v13, %v7026_v13  ;;  %v8057_v29 = vsel %vm17519_vm8, %v7692_v57, %v8056_v32  ;;  %12060 = vmatprep.mubr.bf16.mxu1 %v9063_v35  ;;  %v7693_v9 = vrot.slane %v7689_v58, 4  ;;  %v7027_v37 = vmax.f32 %v6963_v52, 0.0  ;;  %v8397_v59 = vld [vmem:[#allocation3 + $0x154] sm:$0xf]  ;;  %v8468_v63 = vld [vmem:[#allocation3 + $0x150] sm:$0xe] }
 0x525   : > { %8058 = vst [vmem:[#allocation3 + $0x168] sm:$0xf] %v8057_v29  ;;  %12061 = vmatmul.mubr.bf16.gmra.mrb[160].mxu1 %v14518_v7  ;;  %v11203_v28 = vsel %vm2823_vm10, %v11201_v60, %v11202_v51  ;;  %v9065_v61 = vshrl.u32 %v14519_v48, 16  ;;  %v9067_v62 = vshll.u32 %v14519_v48, 16  ;;  %v601_v3 = vsel %vm17491_vm3, 0, %v600_v40 }
 0x526   : > { %v7695_v43 = vshrl.u32 %v14979_v4, 16  ;;  %v7698_v46 = vshll.u32 %v14979_v4, 16  ;;  %15623 = vmatmul.mubr.bf16.gmra.mrb[172].mxu0 %v11203_v28  ;;  %v14980_v15 = vpack.c.bf16 %v7027_v37, %v7027_v37  ;;  %v6807_v8 = vadd.f32 %v19518_v26, %v19875_v18  ;;  %v16956_v7 = vld [vmem:[#allocation3 + $0x158] ss:$0 sps:$4 sm:$0x11]  }
 0x527   : > { %v696_v56 = vld [vmem:[#allocation3 + $0x188] sm:$0x1]  ;;  %v8060_v42 = vld [vmem:[#allocation3 + $0x170] sm:$0x1]  ;;  %v6964_v34 = vadd.f32 %v19940_v23, %v6893_v41  ;;  %v9069_v25 = vrot.slane %v9067_v62, 1  ;;  %v9074_v47 = vrot.slane %v9072_v10, 1  ;;  %v14774_v55 = vcombine.low %v8468_v63, %v8397_v59 }
 0x528   : > { %v7697_v49 = vrot.slane %v7695_v43, 7  ;;  %602 = vst [vmem:[#allocation3 + $0x180] sm:$0x1] %v601_v3  ;;  %v7704_v16 = vshrl.u32 %v14980_v15, 16  ;;  %v7707_v5 = vshll.u32 %v14980_v15, 16  ;;  %v6894_v32 = vmul.f32 %v19934_v12, %v6807_v8 }
 0x529   : > { %v8144_v58 = vld [vmem:[#allocation3 + $0x154] sm:$0xf]  ;;  %v7028_v1 = vmax.f32 %v6964_v34, 0.0  ;;  %v9070_v21 = vor.u32 %v9069_v25, %v9065_v61  ;;  %v11204_v13 = vrot.slane %v14774_v55, 1  ;;  %v11205_v6 = vrot.slane %v16956_v7, 1  ;;  %v19970_v57 = vpop.f32.mrb[128].mxu0 }
 0x52a   : > { %v7700_v31 = vor.u32 %v7698_v46, %v7697_v49  ;;  %v7702_v39 = vrot.slane %v7697_v49, 4  ;;  %v16959_v26 = vld [vmem:[#allocation3 + $0x158] ss:$0 sps:$4 sm:$0x11]   ;;  %v7706_v2 = vrot.slane %v7704_v16, 7  ;;  %21162 = vst [vmem:[#allocation11_spill] sm:$0xff] %v19970_v57  ;;  %v6965_v35 = vadd.f32 %v19940_v23, %v6894_v32 }
 0x52b   : > { %v8063_v51 = vld [vmem:[#allocation3 + $0x174] sm:$0xf]  ;;  %v14981_v24 = vpack.c.bf16 %v7028_v1, %v7028_v1  ;;  %v9075_v4 = vsel %vm2310_vm1, %v9070_v21, %v9074_v47  ;;  %v697_v52 = vsel %vm17499_vm6, 0, %v696_v56  ;;  %v603_v60 = vld [vmem:[#allocation3 + $0x18c] sm:$0x1]  ;;  %v11206_v29 = vsel %vm2823_vm10, %v11204_v13, %v11205_v6  ;;  %v19979_v40 = vpop.f32.mrb[129].mxu0 }
 0x52c   : > { %v7701_v18 = vsel %vm17529_vm9, %v7693_v9, %v7700_v31  ;;  %v8061_v44 = vsel %vm17491_vm3, %v7702_v39, %v8060_v42  ;;  %v7709_v27 = vor.u32 %v7707_v5, %v7706_v2  ;;  %12068 = vmatprep.mubr.bf16.mxu1 %v9075_v4  ;;  %698 = vst [vmem:[#allocation3 + $0x188] sm:$0x1] %v697_v52  ;;  %v8143_v10 = vld [vmem:[#allocation3 + $0x150] sm:$0xf]  ;;  %21163 = vst [vmem:[#allocation4_spill] sm:$0xff] %v19979_v40  ;;  %v19981_v59 = vpop.f32.mrb[130].mxu0 }
 0x52d   : > { %8059 = vst [vmem:[#allocation3 + $0x16c] sm:$0xf] %v7701_v18  ;;  %8062 = vst [vmem:[#allocation3 + $0x170] sm:$0x1] %v8061_v44  ;;  %v6810_v30 = vadd.f32 %v19534_v53, %v19881_v11  ;;  %v7710_v9 = vrot.slane %v7706_v2, 4  ;;  %v7712_v43 = vshrl.u32 %v14981_v24, 16  ;;  %12069 = vmatmul.mubr.bf16.gmra.mrb[164].mxu1 %v14519_v48  ;;  %15626 = vmatprep.mubr.bf16.mxu0 %v11206_v29 }
 0x52e   : > { %v7029_v37 = vmax.f32 %v6965_v35, 0.0  ;;  %v14520_v28 = vcombine.low %v8143_v10, %v8144_v58  ;;  %21164 = vst [vmem:[#allocation5_spill] sm:$0xff] %v19981_v59  ;;  %v8064_v46 = vsel %vm17519_vm8, %v7709_v27, %v8063_v51  ;;  %v9084_v61 = vshll.u32 %v16959_v26, 16  ;;  %v8399_v11 = vld [vmem:[#allocation3 + $0x160] sm:$0xf]  ;;  %v19988_v62 = vpop.f32.mrb[131].mxu0 }
 0x52f   : > { %v6895_v41 = vmul.f32 %v19934_v12, %v6810_v30  ;;  %v604_v53 = vsel %vm17491_vm3, 0, %v603_v60  ;;  %21165 = vst [vmem:[#allocation6_spill] sm:$0xff] %v19988_v62  ;;  %8065 = vst [vmem:[#allocation3 + $0x174] sm:$0xf] %v8064_v46  ;;  %v7714_v63 = vrot.slane %v7712_v43, 7  ;;  %v7715_v48 = vshll.u32 %v14981_v24, 16 }
 0x530   : > { %v14982_v49 = vpack.c.bf16 %v7029_v37, %v7029_v37  ;;  %v9079_v15 = vshll.u32 %v14520_v28, 16  ;;  %605 = vst [vmem:[#allocation3 + $0x18c] sm:$0x1] %v604_v53  ;;  %v16962_v3 = vld [vmem:[#allocation3 + $0x164] ss:$0 sps:$4 sm:$0x11]   ;;  %v6815_v34 = vadd.f32 %v19569_v19, %v19901_v38  ;;  %v6818_v52 = vadd.f32 %v19588_v0, %v19906_v33 }
 0x531   : > { %v8067_v8 = vld [vmem:[#allocation3 + $0x17c] sm:$0x1]  ;;  %v6966_v7 = vadd.f32 %v19940_v23, %v6895_v41  ;;  %v9077_v56 = vshrl.u32 %v14520_v28, 16  ;;  %v9086_v42 = vrot.slane %v9084_v61, 1  ;;  %v699_v25 = vld [vmem:[#allocation3 + $0x194] sm:$0x1]  ;;  %v7717_v47 = vor.u32 %v7715_v48, %v7714_v63 }
 0x532   : > { %v7719_v55 = vrot.slane %v7714_v63, 4  ;;  %v7721_v31 = vshrl.u32 %v14982_v49, 16  ;;  %v7724_v39 = vshll.u32 %v14982_v49, 16  ;;  %v8469_v16 = vld [vmem:[#allocation3 + $0x15c] sm:$0xe]  ;;  %v9081_v58 = vrot.slane %v9079_v15, 1 }
 0x533   : > { %v7030_v5 = vmax.f32 %v6966_v7, 0.0  ;;  %v6896_v1 = vmul.f32 %v19934_v12, %v6815_v34  ;;  %v14775_v21 = vcombine.low %v8469_v16, %v8399_v11  ;;  %v8146_v32 = vld [vmem:[#allocation3 + $0x160] sm:$0xf]  ;;  %v7718_v13 = vsel %vm17529_vm9, %v7710_v9, %v7717_v47  ;;  %v16965_v38 = vld [vmem:[#allocation3 + $0x164] ss:$0 sps:$4 sm:$0x11]  }
 0x534   : > { %v8068_v26 = vsel %vm17491_vm3, %v7719_v55, %v8067_v8  ;;  %v7723_v18 = vrot.slane %v7721_v31, 7  ;;  %v11208_v19 = vrot.slane %v16962_v3, 1  ;;  %8066 = vst [vmem:[#allocation3 + $0x178] sm:$0xf] %v7718_v13  ;;  %v8070_v44 = vld [vmem:[#allocation3 + $0x180] sm:$0xf]  ;;  %v9082_v6 = vor.u32 %v9081_v58, %v9077_v56 }
 0x535   : > { %8069 = vst [vmem:[#allocation3 + $0x17c] sm:$0x1] %v8068_v26  ;;  %v14983_v2 = vpack.c.bf16 %v7030_v5, %v7030_v5  ;;  %v6967_v51 = vadd.f32 %v19940_v23, %v6896_v1  ;;  %v11207_v24 = vrot.slane %v14775_v21, 1  ;;  %v700_v35 = vsel %vm17499_vm6, 0, %v699_v25  ;;  %v606_v60 = vld [vmem:[#allocation3 + $0x198] sm:$0x1] }
 0x536   : > { %v7726_v4 = vor.u32 %v7724_v39, %v7723_v18  ;;  %v9087_v30 = vsel %vm2310_vm1, %v9082_v6, %v9086_v42  ;;  %701 = vst [vmem:[#allocation3 + $0x194] sm:$0x1] %v700_v35  ;;  %v8145_v9 = vld [vmem:[#allocation3 + $0x15c] sm:$0xf]  ;;  %v6897_v46 = vmul.f32 %v19934_v12, %v6818_v52  ;;  %v9096_v33 = vshll.u32 %v16965_v38, 16 }
 0x537   : > { %v7729_v27 = vshrl.u32 %v14983_v2, 16  ;;  %v7732_v29 = vshll.u32 %v14983_v2, 16  ;;  %v7031_v10 = vmax.f32 %v6967_v51, 0.0  ;;  %12076 = vmatprep.mubr.bf16.mxu1 %v9087_v30  ;;  %v11209_v37 = vsel %vm2823_vm10, %v11207_v24, %v11208_v19  ;;  %v8074_v63 = vld [vmem:[#allocation3 + $0x188] sm:$0x1] }
 0x538   : > { %v8071_v43 = vsel %vm17519_vm8, %v7726_v4, %v8070_v44  ;;  %v14521_v41 = vcombine.low %v8145_v9, %v8146_v32  ;;  %12077 = vmatmul.mubr.bf16.gmra.mrb[168].mxu1 %v14520_v28  ;;  %15627 = vmatmul.mubr.bf16.gmra.mrb[176].mxu0 %v11209_v37  ;;  %v607_v53 = vsel %vm17491_vm3, 0, %v606_v60  ;;  %v7727_v11 = vrot.slane %v7723_v18, 4  ;;  %v8401_v3 = vld [vmem:[#allocation3 + $0x16c] sm:$0xf]  ;;  %v702_v8 = vld [vmem:[#allocation3 + $0x1a0] sm:$0x1] }
 0x539   : > { %8072 = vst [vmem:[#allocation3 + $0x180] sm:$0xf] %v8071_v43  ;;  %v7731_v61 = vrot.slane %v7729_v27, 7  ;;  %v14984_v0 = vpack.c.bf16 %v7031_v10, %v7031_v10  ;;  %v6968_v48 = vadd.f32 %v19940_v23, %v6897_v46  ;;  %608 = vst [vmem:[#allocation3 + $0x198] sm:$0x1] %v607_v53  ;;  %v6823_v15 = vadd.f32 %v19558_v22, %v19919_v54  ;;  %v21166_v60 = vld [vmem:[#allocation10_spill] sm:$0xff] }
 0x53a   : > { %v9091_v49 = vshll.u32 %v14521_v41, 16  ;;  %v9089_v42 = vshrl.u32 %v14521_v41, 16  ;;  %v16967_v34 = vld [vmem:[#allocation3 + $0x170] ss:$0 sps:$4 sm:$0x11]   ;;  %v9098_v54 = vrot.slane %v9096_v33, 1  ;;  %v6826_v27 = vadd.f32 %v21166_v60, %v19928_v50 }
 0x53b   : > { %v7734_v7 = vor.u32 %v7732_v29, %v7731_v61  ;;  %v7736_v56 = vrot.slane %v7731_v61, 4  ;;  %v7738_v28 = vshrl.u32 %v14984_v0, 16  ;;  %v7741_v25 = vshll.u32 %v14984_v0, 16  ;;  %v16970_v39 = vld [vmem:[#allocation3 + $0x170] ss:$0 sps:$4 sm:$0x11]  }
 0x53c   : > { %v7032_v47 = vmax.f32 %v6968_v48, 0.0  ;;  %v9093_v55 = vrot.slane %v9091_v49, 1  ;;  %v6898_v31 = vmul.f32 %v19934_v12, %v6823_v15  ;;  %v8470_v58 = vld [vmem:[#allocation3 + $0x168] sm:$0xe]  ;;  %v8077_v1 = vld [vmem:[#allocation3 + $0x18c] sm:$0xf]  ;;  %v6899_v50 = vmul.f32 %v19934_v12, %v6826_v27 }
 0x53d   : > { %v7735_v16 = vsel %vm17529_vm9, %v7727_v11, %v7734_v7  ;;  %v8075_v5 = vsel %vm17491_vm3, %v7736_v56, %v8074_v63  ;;  %v7740_v22 = vrot.slane %v7738_v28, 7  ;;  %v14776_v26 = vcombine.low %v8470_v58, %v8401_v3  ;;  %v20019_v18 = vld [vmem:[#allocation3 + $0x16c] sm:$0xf]  ;;  %v8147_v4 = vld [vmem:[#allocation3 + $0x168] sm:$0xf] }
 0x53e   : > { %8073 = vst [vmem:[#allocation3 + $0x184] sm:$0xf] %v7735_v16  ;;  %8076 = vst [vmem:[#allocation3 + $0x188] sm:$0x1] %v8075_v5  ;;  %v14985_v21 = vpack.c.bf16 %v7032_v47, %v7032_v47  ;;  %v9094_v32 = vor.u32 %v9093_v55, %v9089_v42  ;;  %v6969_v13 = vadd.f32 %v19940_v23, %v6898_v31  ;;  %v11211_v38 = vrot.slane %v16967_v34, 1 }
 0x53f   : > { %v7743_v19 = vor.u32 %v7741_v25, %v7740_v22  ;;  %v703_v44 = vsel %vm17499_vm6, 0, %v702_v8  ;;  %v7744_v2 = vrot.slane %v7740_v22, 4  ;;  %v11210_v52 = vrot.slane %v14776_v26, 1  ;;  %v16973_v30 = vld [vmem:[#allocation3 + $0x17c] ss:$0 sps:$4 sm:$0x11]  }
 0x540   : > { %v7746_v6 = vshrl.u32 %v14985_v21, 16  ;;  %v9099_v51 = vsel %vm2310_vm1, %v9094_v32, %v9098_v54  ;;  %v7033_v24 = vmax.f32 %v6969_v13, 0.0  ;;  %704 = vst [vmem:[#allocation3 + $0x1a0] sm:$0x1] %v703_v44  ;;  %v14522_v29 = vcombine.low %v8147_v4, %v20019_v18  ;;  %v20029_v20 = vpop.f32.mrb[132].mxu0 }
 0x541   : > { %v8078_v35 = vsel %vm17519_vm8, %v7743_v19, %v8077_v1  ;;  %12084 = vmatprep.mubr.bf16.mxu1 %v9099_v51  ;;  %21167 = vst [vmem:[#allocation7_spill] sm:$0xff] %v20029_v20  ;;  %v7749_v9 = vshll.u32 %v14985_v21, 16  ;;  %v9108_v37 = vshll.u32 %v16970_v39, 16  ;;  %v8403_v46 = vld [vmem:[#allocation3 + $0x178] sm:$0xf]  ;;  %v20031_v0 = vpop.f32.mrb[133].mxu0  ;;  %v11212_v53 = vsel %vm2823_vm10, %v11210_v52, %v11211_v38 }
 0x542   : > { %8079 = vst [vmem:[#allocation3 + $0x18c] sm:$0xf] %v8078_v35  ;;  %v7748_v10 = vrot.slane %v7746_v6, 7  ;;  %12085 = vmatmul.mubr.bf16.gmra.mrb[172].mxu1 %v14521_v41  ;;  %v14986_v43 = vpack.c.bf16 %v7033_v24, %v7033_v24  ;;  %v8471_v61 = vld [vmem:[#allocation3 + $0x174] sm:$0xe]  ;;  %21168 = vst [vmem:[#allocation8_spill] sm:$0xff] %v20031_v0  ;;  %15630 = vmatprep.mubr.bf16.mxu0 %v11212_v53  ;;  %v6970_v42 = vadd.f32 %v19940_v23, %v6899_v50 }
 0x543   : > { %v8081_v33 = vld [vmem:[#allocation3 + $0x194] sm:$0x1]  ;;  %v9101_v11 = vshrl.u32 %v14522_v29, 16  ;;  %v9103_v63 = vshll.u32 %v14522_v29, 16  ;;  %v20035_v48 = vpop.f32.mrb[134].mxu0  ;;  %v9110_v12 = vrot.slane %v9108_v37, 1  ;;  %v14777_v25 = vcombine.low %v8471_v61, %v8403_v46 }
 0x544   : > { %21169 = vst [vmem:[#allocation9_spill] sm:$0xff] %v20035_v48  ;;  %v7751_v49 = vor.u32 %v7749_v9, %v7748_v10  ;;  %v7753_v15 = vrot.slane %v7748_v10, 4  ;;  %v7755_v3 = vshrl.u32 %v14986_v43, 16  ;;  %v7758_v8 = vshll.u32 %v14986_v43, 16  ;;  %v8149_v41 = vld [vmem:[#allocation3 + $0x174] sm:$0xf] }
 0x545   : > { %v20037_v7 = vld [vmem:[#allocation3 + $0x178] sm:$0xf]  ;;  %v20039_v56 = vld [vmem:[#allocation3 + $0x17c] ss:$0 sps:$4 sm:$0x11]   ;;  %v20041_v28 = vpop.f32.mrb[135].mxu0 }
 0x546   : > { %21170 = vst [vmem:[#allocation10_spill] sm:$0xff] %v20041_v28  ;;  %v9105_v34 = vrot.slane %v9103_v63, 1  ;;  %v20044_v47 = vld [vmem:[#allocation3 + $0x184] sm:$0xf]  ;;  %v7752_v55 = vsel %vm17529_vm9, %v7744_v2, %v7751_v49  ;;  %v8082_v31 = vsel %vm17491_vm3, %v7753_v15, %v8081_v33  ;;  %v7757_v39 = vrot.slane %v7755_v3, 7 }
 0x547   : > { %v8084_v16 = vld [vmem:[#allocation3 + $0x198] sm:$0xf]  ;;  %v11214_v5 = vrot.slane %v16973_v30, 1  ;;  %v8151_v22 = vld [vmem:[#allocation3 + $0x180] sm:$0xf]  ;;  %v7034_v54 = vmax.f32 %v6970_v42, 0.0  ;;  %v14523_v1 = vcombine.low %v8149_v41, %v20037_v7 }
 0x548   : > { %8080 = vst [vmem:[#allocation3 + $0x190] sm:$0xf] %v7752_v55  ;;  %8083 = vst [vmem:[#allocation3 + $0x194] sm:$0x1] %v8082_v31  ;;  %v9106_v58 = vor.u32 %v9105_v34, %v9101_v11  ;;  %v11213_v23 = vrot.slane %v14777_v25, 1  ;;  %v7760_v32 = vor.u32 %v7758_v8, %v7757_v39  ;;  %v14524_v13 = vcombine.low %v8151_v22, %v20044_v47 }
 0x549   : > { %v20051_v21 = vld [vmem:[#allocation3 + $0x188] ss:$0 sps:$4 sm:$0x11]   ;;  %v14987_v26 = vpack.c.bf16 %v7034_v54, %v7034_v54  ;;  %v9115_v2 = vshll.u32 %v14523_v1, 16  ;;  %v9120_v6 = vshll.u32 %v20039_v56, 16  ;;  %v7761_v35 = vrot.slane %v7757_v39, 4 }
 0x54a   : > { %v9111_v19 = vsel %vm2310_vm1, %v9106_v58, %v9110_v12  ;;  %v11215_v38 = vsel %vm2823_vm10, %v11213_v23, %v11214_v5  ;;  %v8085_v44 = vsel %vm17519_vm8, %v7760_v32, %v8084_v16  ;;  %v9127_v24 = vshll.u32 %v14524_v13, 16  ;;  %v8088_v52 = vld [vmem:[#allocation3 + $0x1a0] sm:$0x1]  ;;  %v8153_v43 = vld [vmem:[#allocation3 + $0x18c] sm:$0xf] }
 0x54b   : > { %12092 = vmatprep.mubr.bf16.mxu1 %v9111_v19  ;;  %15631 = vmatmul.mubr.bf16.gmra.mrb[180].mxu0 %v11215_v38  ;;  %8086 = vst [vmem:[#allocation3 + $0x198] sm:$0xf] %v8085_v44  ;;  %v7763_v51 = vshrl.u32 %v14987_v26, 16  ;;  %v9132_v4 = vshll.u32 %v20051_v21, 16  ;;  %v9113_v60 = vshrl.u32 %v14523_v1, 16  ;;  %v9117_v27 = vrot.slane %v9115_v2, 1 }
 0x54c   : > { %12093 = vmatmul.mubr.bf16.gmra.mrb[176].mxu1 %v14522_v29  ;;  %v7766_v10 = vshll.u32 %v14987_v26, 16  ;;  %v9125_v9 = vshrl.u32 %v14524_v13, 16  ;;  %v9129_v45 = vrot.slane %v9127_v24, 1  ;;  %v9122_v46 = vrot.slane %v9120_v6, 1  ;;  %v8187_v5 = vld [vmem:[#allocation3] sm:$0xe] }
 0x54d   : > { %v7765_v30 = vrot.slane %v7763_v51, 7  ;;  %v9118_v37 = vor.u32 %v9117_v27, %v9113_v60  ;;  %v9134_v61 = vrot.slane %v9132_v4, 1  ;;  %v20081_v22 = vld [vmem:[#allocation3 + $0x10] sm:$0xf]  ;;  %v17243_v54 = vld [vmem:[#allocation3 + $0x4] sm:$0xf] }
 0x54e   : > { %v9130_v29 = vor.u32 %v9129_v45, %v9125_v9  ;;  %v14558_v58 = vcombine.low %v8187_v5, %v17243_v54  ;;  %v8219_v23 = vld [vmem:[#allocation3 + $0xc] sm:$0xf]  ;;  %v17244_v26 = vld [vmem:[#allocation3 + $0x8] ss:$0 sps:$4 sm:$0x11]   ;;  %v16987_v51 = vld [vmem:[%s21077_s4 + $0x100] sm:$0xff]  }
 0x54f   : > { %v20060_v33 = vld [vmem:[#allocation3 + $0x190] sm:$0xf]  ;;  %v7768_v53 = vor.u32 %v7766_v10, %v7765_v30  ;;  %v7770_v50 = vrot.slane %v7765_v30, 4  ;;  %v20063_v63 = vld [vmem:[#allocation3 + $0x194] ss:$0 sps:$4 sm:$0x11]   ;;  %v9123_v49 = vsel %vm2310_vm1, %v9118_v37, %v9122_v46 }
 0x550   : > { %v14525_v11 = vcombine.low %v8153_v43, %v20060_v33  ;;  %12100 = vmatprep.mubr.bf16.mxu1 %v9123_v49  ;;  %v9135_v8 = vsel %vm2310_vm1, %v9130_v29, %v9134_v61  ;;  %v9144_v42 = vshll.u32 %v20063_v63, 16  ;;  %v9276_v32 = vrot.slane %v14558_v58, 1  ;;  %v8221_v4 = vld [vmem:[#allocation3 + $0x18] sm:$0xf]  ;;  %v17245_v60 = vld [vmem:[#allocation3 + $0x10] sm:$0xf] }
 0x551   : > { %v7769_v15 = vsel %vm17529_vm9, %v7761_v35, %v7768_v53  ;;  %v8089_v3 = vsel %vm17491_vm3, %v7770_v50, %v8088_v52  ;;  %v20072_v34 = vpop.f32.mrb[136].mxu0  ;;  %v9277_v19 = vrot.slane %v17244_v26, 1  ;;  %v8188_v35 = vld [vmem:[#allocation3 + $0xc] sm:$0xe]  ;;  %v16994_v30 = vld [vmem:[%s21077_s4 + $0x108] sm:$0xff]   ;;  %v17001_v37 = vld [vmem:[%s21077_s4 + $0x110] sm:$0xff]  }
 0x552   : > { %8087 = vst [vmem:[#allocation3 + $0x19c] sm:$0xf] %v7769_v15  ;;  %8090 = vst [vmem:[#allocation3 + $0x1a0] sm:$0x1] %v8089_v3  ;;  %v9139_v41 = vshll.u32 %v14525_v11, 16  ;;  %v9137_v12 = vshrl.u32 %v14525_v11, 16  ;;  %v14559_v27 = vcombine.low %v8188_v35, %v17245_v60 }
 0x553   : > { %21171 = vst [vmem:[#allocation12_spill] sm:$0xff] %v20072_v34  ;;  %v20074_v55 = vpop.f32.mrb[137].mxu0  ;;  %v9146_v39 = vrot.slane %v9144_v42, 1  ;;  %v9278_v6 = vsel %vm2823_vm10, %v9276_v32, %v9277_v19  ;;  %v17246_v9 = vld [vmem:[#allocation3 + $0x14] ss:$0 sps:$4 sm:$0x11]  }
 0x554   : > { %12101 = vmatmul.mubr.bf16.gmra.mrb[180].mxu1 %v14523_v1  ;;  %v9141_v25 = vrot.slane %v9139_v41, 1  ;;  %21172 = vst [vmem:[#allocation13_spill] sm:$0xff] %v20074_v55  ;;  %v20076_v17 = vpop.f32.mrb[138].mxu0  ;;  %v20084_v1 = vcombine.low %v8219_v23, %v20081_v22  ;;  %v9279_v10 = vrot.slane %v14559_v27, 1  ;;  %v9280_v45 = vrot.slane %v17246_v9, 1  ;;  %v17008_v49 = vld [vmem:[%s21077_s4 + $0x118] sm:$0xff]  }
 0x555   : > { %12108 = vmatprep.mubr.bf16.mxu1 %v9135_v8  ;;  %21173 = vst [vmem:[#allocation14_spill] sm:$0xff] %v20076_v17  ;;  %v20078_v31 = vpop.f32.mrb[139].mxu0  ;;  %v20109_v43 = vld [vmem:[#allocation3 + $0x28] sm:$0xf]  ;;  %v8223_v46 = vld [vmem:[#allocation3 + $0x24] sm:$0xf] }
 0x556   : > { %v9142_v14 = vor.u32 %v9141_v25, %v9137_v12  ;;  %21174 = vst [vmem:[#allocation15_spill] sm:$0xff] %v20078_v31  ;;  %v8189_v61 = vld [vmem:[#allocation3 + $0x18] sm:$0xe]  ;;  %v9281_v53 = vsel %vm2823_vm10, %v9279_v10, %v9280_v45  ;;  %v20117_v50 = vcombine.low %v8223_v46, %v20109_v43  ;;  %v17247_v29 = vld [vmem:[#allocation3 + $0x1c] sm:$0xf]  ;;  %v17015_v25 = vld [vmem:[%s21077_s4 + $0x120] sm:$0xff]  }
 0x557   : > { %v17248_v3 = vld [vmem:[#allocation3 + $0x20] ss:$0 sps:$4 sm:$0x11]   ;;  %v20124_v41 = vld [vmem:[#allocation3 + $0x34] sm:$0xf]  ;;  %v17022_v26 = vld [vmem:[%s21077_s4 + $0x128] sm:$0xff]  }
 0x558   : > { %v9147_v16 = vsel %vm2310_vm1, %v9142_v14, %v9146_v39  ;;  %v9283_v8 = vrot.slane %v17248_v3, 1  ;;  %v8225_v14 = vld [vmem:[#allocation3 + $0x30] sm:$0xf]  ;;  %v8190_v39 = vld [vmem:[#allocation3 + $0x24] sm:$0xe] }
 0x559   : > { %v20138_v54 = vcombine.low %v8225_v14, %v20124_v41  ;;  %v17249_v58 = vld [vmem:[#allocation3 + $0x28] sm:$0xf]  ;;  %v17029_v35 = vld [vmem:[%s21077_s4 + $0x130] sm:$0xff]   ;;  %v8227_v60 = vld [vmem:[#allocation3 + $0x3c] sm:$0xf] }
 0x55a   : > { %v14561_v23 = vcombine.low %v8190_v39, %v17249_v58  ;;  %v8191_v27 = vld [vmem:[#allocation3 + $0x30] sm:$0xe]  ;;  %v17251_v9 = vld [vmem:[#allocation3 + $0x34] sm:$0xf]  ;;  %v17253_v14 = vld [vmem:[#allocation3 + $0x40] sm:$0xf] }
 0x55b   : > { %v14562_v45 = vcombine.low %v8191_v27, %v17251_v9  ;;  %v8231_v27 = vld [vmem:[#allocation3 + $0x54] sm:$0xf]  ;;  %v20311_v17 = vld [vmem:[#allocation3 + $0xe8] sm:$0xf]  ;;  %v8206_v0 = vld [vmem:[#allocation3 + $0xfc] sm:$0xe] }
 0x55c   : > { %12109 = vmatmul.mubr.bf16.gmra.mrb[184].mxu1 %v14524_v13  ;;  %v20091_v13 = vld [vmem:[#allocation3 + $0x1c] sm:$0xf]  ;;  %v9285_v19 = vrot.slane %v14561_v23, 1  ;;  %v20356_v57 = vld [vmem:[#allocation3 + $0x118] sm:$0xf] }
 0x55d   : > { %12116 = vmatprep.mubr.bf16.mxu1 %v9147_v16  ;;  %v20102_v52 = vcombine.low %v8221_v4, %v20091_v13  ;;  %v20147_v4 = vld [vmem:[#allocation3 + $0x40] sm:$0xf]  ;;  %v9288_v46 = vrot.slane %v14562_v45, 1  ;;  %21212 = vst [vmem:[#allocation53_spill] sm:$0xff] %v20356_v57  ;;  %v8208_v62 = vld [vmem:[#allocation3 + $0x114] sm:$0xe] }
 0x55e   : > { %v20155_v10 = vcombine.low %v8227_v60, %v20147_v4  ;;  %v17057_v60 = vld [vmem:[%s21077_s4 + $0x150] sm:$0xff]  }
 0x562   : > { %v20087_v38 = vpop.f32.mrb[140].mxu0 }
 0x563   : > { %21175 = vst [vmem:[#allocation16_spill] sm:$0xff] %v20087_v38  ;;  %v20089_v44 = vpop.f32.mrb[141].mxu0  ;;  %v17272_v38 = vld [vmem:[#allocation3 + $0xb0] ss:$0 sps:$4 sm:$0x11]  }
 0x564   : > { %12117 = vmatmul.mubr.bf16.gmra.mrb[188].mxu1 %v14525_v11  ;;  %21176 = vst [vmem:[#allocation17_spill] sm:$0xff] %v20089_v44  ;;  %v20093_v2 = vpop.f32.mrb[142].mxu0  ;;  %v14560_v11 = vcombine.low %v8189_v61, %v17247_v29  ;;  %v17252_v61 = vld [vmem:[#allocation3 + $0x38] ss:$0 sps:$4 sm:$0x11]  }
 0x565   : > { %12157 = vmatprep.mubr.bf16.mxu1 %v20084_v1  ;;  %21177 = vst [vmem:[#allocation18_spill] sm:$0xff] %v20093_v2  ;;  %v20099_v24 = vpop.f32.mrb[143].mxu0  ;;  %v20162_v29 = vld [vmem:[#allocation3 + $0x4c] sm:$0xf]  ;;  %v8200_v2 = vld [vmem:[#allocation3 + $0x9c] sm:$0xe] }
 0x566   : > { %21178 = vst [vmem:[#allocation19_spill] sm:$0xff] %v20099_v24  ;;  %v9282_v15 = vrot.slane %v14560_v11, 1  ;;  %v17043_v11 = vld [vmem:[%s21077_s4 + $0x140] sm:$0xff]   ;;  %v9319_v24 = vrot.slane %v17272_v38, 1  ;;  %v17092_v38 = vld [vmem:[%s21077_s4 + $0x178] sm:$0xff]  }
 0x568   : > { %v9284_v5 = vsel %vm2823_vm10, %v9282_v15, %v9283_v8  ;;  %v8192_v15 = vld [vmem:[#allocation3 + $0x3c] sm:$0xe] }
 0x569   : > { %v14563_v39 = vcombine.low %v8192_v15, %v17253_v14  ;;  %v8233_v15 = vld [vmem:[#allocation3 + $0x60] sm:$0xf] }
 0x56c   : > { %12158 = vmatmul.mubr.bf16.vlgmr.msra.gmra.mrb[64].mxu1 %v9278_v6  ;;  %v17250_v6 = vld [vmem:[#allocation3 + $0x2c] ss:$0 sps:$4 sm:$0x11]  }
 0x56d   : > { %12165 = vmatprep.mubr.bf16.mxu1 %v20102_v52  ;;  %12415 = vmatpush1.bf16.msra.mxu1 %v16987_v51  ;;  %v9286_v51 = vrot.slane %v17250_v6, 1  ;;  %v17254_v6 = vld [vmem:[#allocation3 + $0x44] ss:$0 sps:$4 sm:$0x11]  }
 0x56e   : > { %12416 = vmatprep.subr.bf16.mxu1 %v21144_v36 }
 0x571   : > { %12417 = vmatpush1.bf16.msra.mxu1 %v16994_v30  ;;  %v9287_v30 = vsel %vm2823_vm10, %v9285_v19, %v9286_v51  ;;  %v9291_v19 = vrot.slane %v14563_v39, 1  ;;  %v9292_v51 = vrot.slane %v17254_v6, 1 }
 0x572   : > { %12418 = vmatprep.subr.bf16.mxu1 %v21144_v36 }
 0x573   : > { %v9293_v9 = vsel %vm2823_vm10, %v9291_v19, %v9292_v51 }
 0x574   : > { %12166 = vmatmul.mubr.bf16.gmra.mrb[68].mxu1 %v9281_v53  ;;  %v20126_v42 = vpop.f32.mrb[144].mxu0  ;;  %v9289_v53 = vrot.slane %v17252_v61, 1 }
 0x575   : > { %12173 = vmatprep.mubr.bf16.mxu1 %v20117_v50  ;;  %12419 = vmatpush1.bf16.msra.mxu1 %v17001_v37  ;;  %21179 = vst [vmem:[#allocation20_spill] sm:$0xff] %v20126_v42  ;;  %v20128_v12 = vpop.f32.mrb[145].mxu0  ;;  %v17036_v37 = vld [vmem:[%s21077_s4 + $0x138] sm:$0xff]   ;;  %v17268_v42 = vld [vmem:[#allocation3 + $0x98] ss:$0 sps:$4 sm:$0x11]  }
 0x576   : > { %12420 = vmatprep.subr.bf16.mxu1 %v21144_v36  ;;  %21180 = vst [vmem:[#allocation21_spill] sm:$0xff] %v20128_v12  ;;  %v20133_v16 = vpop.f32.mrb[146].mxu0  ;;  %v9290_v8 = vsel %vm2823_vm10, %v9288_v46, %v9289_v53  ;;  %v17256_v53 = vld [vmem:[#allocation3 + $0x50] ss:$0 sps:$4 sm:$0x11]  }
 0x577   : > { %21181 = vst [vmem:[#allocation22_spill] sm:$0xff] %v20133_v16  ;;  %v20140_v32 = vpop.f32.mrb[147].mxu0  ;;  %v8245_v12 = vld [vmem:[#allocation3 + $0xa8] sm:$0xf] }
 0x578   : > { %21182 = vst [vmem:[#allocation23_spill] sm:$0xff] %v20140_v32  ;;  %v9313_v32 = vrot.slane %v17268_v42, 1  ;;  %v17270_v42 = vld [vmem:[#allocation3 + $0xa4] ss:$0 sps:$4 sm:$0x11]  }
 0x579   : > { %12421 = vmatpush1.bf16.msra.mxu1 %v17008_v49  ;;  %v8229_v49 = vld [vmem:[#allocation3 + $0x48] sm:$0xf] }
 0x57a   : > { %12422 = vmatprep.subr.bf16.mxu1 %v21144_v36 }
 0x57c   : > { %12174 = vmatmul.mubr.bf16.gmra.mrb[72].mxu1 %v9284_v5 }
 0x57d   : > { %12181 = vmatprep.mubr.bf16.mxu1 %v20138_v54  ;;  %12423 = vmatpush1.bf16.msra.mxu1 %v17015_v25  ;;  %v20172_v25 = vcombine.low %v8229_v49, %v20162_v29  ;;  %v20197_v49 = vld [vmem:[#allocation3 + $0x64] sm:$0xf] }
 0x57e   : > { %12424 = vmatprep.subr.bf16.mxu1 %v21144_v36  ;;  %v20201_v39 = vcombine.low %v8233_v15, %v20197_v49 }
 0x581   : > { %12425 = vmatpush1.bf16.msra.mxu1 %v17022_v26  ;;  %v17050_v26 = vld [vmem:[%s21077_s4 + $0x148] sm:$0xff]  }
 0x582   : > { %12426 = vmatprep.subr.bf16.mxu1 %v21144_v36 }
 0x584   : > { %12182 = vmatmul.mubr.bf16.gmra.mrb[76].mxu1 %v9287_v30  ;;  %v8193_v30 = vld [vmem:[#allocation3 + $0x48] sm:$0xe] }
 0x585   : > { %12189 = vmatprep.mubr.bf16.mxu1 %v20155_v10  ;;  %12427 = vmatpush1.bf16.msra.mxu1 %v17029_v35  ;;  %v20167_v3 = vpop.f32.mrb[148].mxu0  ;;  %v20185_v35 = vld [vmem:[#allocation3 + $0x58] sm:$0xf] }
 0x586   : > { %12428 = vmatprep.subr.bf16.mxu1 %v21144_v36  ;;  %21183 = vst [vmem:[#allocation24_spill] sm:$0xff] %v20167_v3  ;;  %v20174_v5 = vpop.f32.mrb[149].mxu0  ;;  %v20193_v45 = vcombine.low %v8231_v27, %v20185_v35  ;;  %v17064_v27 = vld [vmem:[%s21077_s4 + $0x158] sm:$0xff]  }
 0x587   : > { %21184 = vst [vmem:[#allocation25_spill] sm:$0xff] %v20174_v5  ;;  %v20176_v58 = vpop.f32.mrb[150].mxu0 }
 0x588   : > { %21185 = vst [vmem:[#allocation26_spill] sm:$0xff] %v20176_v58  ;;  %v20179_v23 = vpop.f32.mrb[151].mxu0 }
 0x589   : > { %12429 = vmatpush1.bf16.msra.mxu1 %v17036_v37  ;;  %21186 = vst [vmem:[#allocation27_spill] sm:$0xff] %v20179_v23  ;;  %v17255_v37 = vld [vmem:[#allocation3 + $0x4c] sm:$0xf]  ;;  %v20245_v23 = vld [vmem:[#allocation3 + $0x94] sm:$0xf] }
 0x58a   : > { %12430 = vmatprep.subr.bf16.mxu1 %v21144_v36  ;;  %v14564_v46 = vcombine.low %v8193_v30, %v17255_v37  ;;  %v17258_v37 = vld [vmem:[#allocation3 + $0x5c] ss:$0 sps:$4 sm:$0x11]  }
 0x58c   : > { %12190 = vmatmul.mubr.bf16.gmra.mrb[80].mxu1 %v9290_v8  ;;  %v9294_v61 = vrot.slane %v14564_v46, 1  ;;  %v8194_v8 = vld [vmem:[#allocation3 + $0x54] sm:$0xe]  ;;  %v9298_v46 = vrot.slane %v17258_v37, 1 }
 0x58d   : > { %12197 = vmatprep.mubr.bf16.mxu1 %v20172_v25  ;;  %12431 = vmatpush1.bf16.msra.mxu1 %v17043_v11  ;;  %v9295_v11 = vrot.slane %v17256_v53, 1  ;;  %v8235_v53 = vld [vmem:[#allocation3 + $0x6c] sm:$0xf] }
 0x58e   : > { %12432 = vmatprep.subr.bf16.mxu1 %v21144_v36 }
 0x58f   : > { %v9296_v14 = vsel %vm2823_vm10, %v9294_v61, %v9295_v11  ;;  %v20215_v61 = vld [vmem:[#allocation3 + $0x70] sm:$0xf]  ;;  %v8195_v11 = vld [vmem:[#allocation3 + $0x60] sm:$0xe] }
 0x591   : > { %12433 = vmatpush1.bf16.msra.mxu1 %v17050_v26  ;;  %v17257_v26 = vld [vmem:[#allocation3 + $0x58] sm:$0xf] }
 0x592   : > { %12434 = vmatprep.subr.bf16.mxu1 %v21144_v36  ;;  %v14565_v19 = vcombine.low %v8194_v8, %v17257_v26  ;;  %v20220_v8 = vcombine.low %v8235_v53, %v20215_v61  ;;  %v17071_v53 = vld [vmem:[%s21077_s4 + $0x160] sm:$0xff]  }
 0x594   : > { %12198 = vmatmul.mubr.bf16.gmra.mrb[84].mxu1 %v9293_v9  ;;  %v9297_v9 = vrot.slane %v14565_v19, 1 }
 0x595   : > { %12205 = vmatprep.mubr.bf16.mxu1 %v20193_v45  ;;  %12435 = vmatpush1.bf16.msra.mxu1 %v17057_v60 }
 0x596   : > { %12436 = vmatprep.subr.bf16.mxu1 %v21144_v36  ;;  %v9299_v15 = vsel %vm2823_vm10, %v9297_v9, %v9298_v46  ;;  %v17261_v9 = vld [vmem:[#allocation3 + $0x70] sm:$0xf] }
 0x597   : > { %v20203_v6 = vpop.f32.mrb[152].mxu0 }
 0x598   : > { %21187 = vst [vmem:[#allocation28_spill] sm:$0xff] %v20203_v6  ;;  %v20205_v51 = vpop.f32.mrb[153].mxu0  ;;  %v8237_v6 = vld [vmem:[#allocation3 + $0x78] sm:$0xf] }
 0x599   : > { %21188 = vst [vmem:[#allocation29_spill] sm:$0xff] %v20205_v51  ;;  %v20208_v60 = vpop.f32.mrb[154].mxu0  ;;  %12437 = vmatpush1.bf16.msra.mxu1 %v17064_v27  ;;  %v20223_v27 = vld [vmem:[#allocation3 + $0x7c] sm:$0xf] }
 0x59a   : > { %21189 = vst [vmem:[#allocation30_spill] sm:$0xff] %v20208_v60  ;;  %v20213_v30 = vpop.f32.mrb[155].mxu0  ;;  %12438 = vmatprep.subr.bf16.mxu1 %v21144_v36  ;;  %v17260_v60 = vld [vmem:[#allocation3 + $0x68] ss:$0 sps:$4 sm:$0x11]   ;;  %v20227_v58 = vcombine.low %v8237_v6, %v20223_v27 }
 0x59b   : > { %21190 = vst [vmem:[#allocation31_spill] sm:$0xff] %v20213_v30  ;;  %v9301_v37 = vrot.slane %v17260_v60, 1  ;;  %v8196_v30 = vld [vmem:[#allocation3 + $0x6c] sm:$0xe]  ;;  %v8197_v6 = vld [vmem:[#allocation3 + $0x78] sm:$0xe] }
 0x59c   : > { %12206 = vmatmul.mubr.bf16.gmra.mrb[88].mxu1 %v9296_v14  ;;  %v17259_v14 = vld [vmem:[#allocation3 + $0x64] sm:$0xf]  ;;  %v14567_v46 = vcombine.low %v8196_v30, %v17261_v9  ;;  %v17262_v60 = vld [vmem:[#allocation3 + $0x74] ss:$0 sps:$4 sm:$0x11]  }
 0x59d   : > { %12213 = vmatprep.mubr.bf16.mxu1 %v20201_v39  ;;  %v14566_v26 = vcombine.low %v8195_v11, %v17259_v14  ;;  %12439 = vmatpush1.bf16.msra.mxu1 %v17071_v53  ;;  %v20233_v14 = vld [vmem:[#allocation3 + $0x88] sm:$0xf]  ;;  %v17263_v30 = vld [vmem:[#allocation3 + $0x7c] sm:$0xf] }
 0x59e   : > { %v9303_v11 = vrot.slane %v14567_v46, 1  ;;  %12440 = vmatprep.subr.bf16.mxu1 %v21144_v36  ;;  %v17264_v53 = vld [vmem:[#allocation3 + $0x80] ss:$0 sps:$4 sm:$0x11]  }
 0x59f   : > { %v9300_v19 = vrot.slane %v14566_v26, 1  ;;  %v8239_v26 = vld [vmem:[#allocation3 + $0x84] sm:$0xf] }
 0x5a1   : > { %v9302_v51 = vsel %vm2823_vm10, %v9300_v19, %v9301_v37  ;;  %v14568_v37 = vcombine.low %v8197_v6, %v17263_v30  ;;  %v17265_v30 = vld [vmem:[#allocation3 + $0x88] sm:$0xf] }
 0x5a3   : > { %v9306_v46 = vrot.slane %v14568_v37, 1  ;;  %v17078_v37 = vld [vmem:[%s21077_s4 + $0x168] sm:$0xff]  }
 0x5a4   : > { %12214 = vmatmul.mubr.bf16.gmra.mrb[92].mxu1 %v9299_v15  ;;  %v9304_v15 = vrot.slane %v17262_v60, 1  ;;  %v9307_v60 = vrot.slane %v17264_v53, 1 }
 0x5a5   : > { %12221 = vmatprep.mubr.bf16.mxu1 %v20220_v8  ;;  %12441 = vmatpush1.bf16.msra.mxu1 %v17078_v37 }
 0x5a6   : > { %v9305_v19 = vsel %vm2823_vm10, %v9303_v11, %v9304_v15  ;;  %v8241_v15 = vld [vmem:[#allocation3 + $0x90] sm:$0xf]  ;;  %v9308_v6 = vsel %vm2823_vm10, %v9306_v46, %v9307_v60  ;;  %12442 = vmatprep.subr.bf16.mxu1 %v21144_v36  ;;  %v8243_v60 = vld [vmem:[#allocation3 + $0x9c] sm:$0xf] }
 0x5ac   : > { %12222 = vmatmul.mubr.bf16.gmra.mrb[96].mxu1 %v9302_v51  ;;  %v20238_v51 = vcombine.low %v8239_v26, %v20233_v14  ;;  %v8198_v26 = vld [vmem:[#allocation3 + $0x84] sm:$0xe] }
 0x5ad   : > { %12229 = vmatprep.mubr.bf16.mxu1 %v20227_v58 }
 0x5b3   : > { %v20241_v9 = vpop.f32.mrb[156].mxu0 }
 0x5b4   : > { %12230 = vmatmul.mubr.bf16.gmra.mrb[100].mxu1 %v9305_v19  ;;  %21191 = vst [vmem:[#allocation32_spill] sm:$0xff] %v20241_v9  ;;  %v20243_v3 = vpop.f32.mrb[157].mxu0  ;;  %v20253_v19 = vcombine.low %v8241_v15, %v20245_v23  ;;  %v14569_v9 = vcombine.low %v8198_v26, %v17265_v30  ;;  %v8199_v15 = vld [vmem:[#allocation3 + $0x90] sm:$0xe] }
 0x5b5   : > { %12237 = vmatprep.mubr.bf16.mxu1 %v20238_v51  ;;  %21192 = vst [vmem:[#allocation33_spill] sm:$0xff] %v20243_v3  ;;  %v20247_v5 = vpop.f32.mrb[158].mxu0 }
 0x5b6   : > { %21193 = vst [vmem:[#allocation34_spill] sm:$0xff] %v20247_v5  ;;  %v20249_v11 = vpop.f32.mrb[159].mxu0  ;;  %v9309_v53 = vrot.slane %v14569_v9, 1  ;;  %v17266_v5 = vld [vmem:[#allocation3 + $0x8c] ss:$0 sps:$4 sm:$0x11]  }
 0x5b7   : > { %21194 = vst [vmem:[#allocation35_spill] sm:$0xff] %v20249_v11  ;;  %v9310_v3 = vrot.slane %v17266_v5, 1  ;;  %v20259_v11 = vld [vmem:[#allocation3 + $0xa0] sm:$0xf]  ;;  %v17267_v9 = vld [vmem:[#allocation3 + $0x94] sm:$0xf] }
 0x5b8   : > { %v20270_v30 = vcombine.low %v8243_v60, %v20259_v11  ;;  %v14570_v5 = vcombine.low %v8199_v15, %v17267_v9  ;;  %v17085_v15 = vld [vmem:[%s21077_s4 + $0x170] sm:$0xff]   ;;  %v9316_v9 = vrot.slane %v17270_v42, 1 }
 0x5b9   : > { %12443 = vmatpush1.bf16.msra.mxu1 %v17085_v15 }
 0x5ba   : > { %12444 = vmatprep.subr.bf16.mxu1 %v21144_v36 }
 0x5bc   : > { %12238 = vmatmul.mubr.bf16.gmra.mrb[104].mxu1 %v9308_v6  ;;  %v9311_v6 = vsel %vm2823_vm10, %v9309_v53, %v9310_v3  ;;  %v17269_v53 = vld [vmem:[#allocation3 + $0xa0] sm:$0xf] }
 0x5bd   : > { %12245 = vmatprep.mubr.bf16.mxu1 %v20253_v19  ;;  %v20261_v16 = vpop.f32.mrb[160].mxu0  ;;  %v14571_v60 = vcombine.low %v8200_v2, %v17269_v53  ;;  %12445 = vmatpush1.bf16.msra.mxu1 %v17092_v38  ;;  %v20321_v38 = vld [vmem:[#allocation3 + $0xf4] sm:$0xf] }
 0x5be   : > { %21195 = vst [vmem:[#allocation36_spill] sm:$0xff] %v20261_v16  ;;  %v20264_v46 = vpop.f32.mrb[161].mxu0  ;;  %v9312_v16 = vrot.slane %v14570_v5, 1  ;;  %v20285_v5 = vld [vmem:[#allocation3 + $0xb8] sm:$0xf]  ;;  %12703 = vmatprep.subr.bf16.mxu1 %v21144_v36 }
 0x5bf   : > { %21196 = vst [vmem:[#allocation37_spill] sm:$0xff] %v20264_v46  ;;  %v20266_v26 = vpop.f32.mrb[162].mxu0  ;;  %v20275_v46 = vld [vmem:[#allocation3 + $0xac] sm:$0xf] }
 0x5c0   : > { %21197 = vst [vmem:[#allocation38_spill] sm:$0xff] %v20266_v26  ;;  %v20272_v37 = vpop.f32.mrb[163].mxu0  ;;  %v9314_v26 = vsel %vm2823_vm10, %v9312_v16, %v9313_v32  ;;  %v20279_v3 = vcombine.low %v8245_v12, %v20275_v46  ;;  %v8247_v16 = vld [vmem:[#allocation3 + $0xb4] sm:$0xf]  ;;  %v8201_v12 = vld [vmem:[#allocation3 + $0xa8] sm:$0xe] }
 0x5c1   : > { %21198 = vst [vmem:[#allocation39_spill] sm:$0xff] %v20272_v37  ;;  %v20290_v2 = vcombine.low %v8247_v16, %v20285_v5  ;;  %v8202_v16 = vld [vmem:[#allocation3 + $0xb4] sm:$0xe] }
 0x5c4   : > { %12246 = vmatmul.mubr.bf16.gmra.mrb[108].mxu1 %v9311_v6  ;;  %v9315_v6 = vrot.slane %v14571_v60, 1 }
 0x5c5   : > { %12253 = vmatprep.mubr.bf16.mxu1 %v20270_v30 }
 0x5c6   : > { %v9317_v32 = vsel %vm2823_vm10, %v9315_v6, %v9316_v9  ;;  %v20301_v6 = vld [vmem:[#allocation3 + $0xc4] sm:$0xf]  ;;  %v8249_v9 = vld [vmem:[#allocation3 + $0xc0] sm:$0xf] }
 0x5cc   : > { %12254 = vmatmul.mubr.bf16.gmra.mrb[112].mxu1 %v9314_v26  ;;  %v17271_v26 = vld [vmem:[#allocation3 + $0xac] sm:$0xf] }
 0x5cd   : > { %12261 = vmatprep.mubr.bf16.mxu1 %v20279_v3  ;;  %v14572_v53 = vcombine.low %v8201_v12, %v17271_v26  ;;  %v17273_v26 = vld [vmem:[#allocation3 + $0xb8] sm:$0xf] }
 0x5cf   : > { %v9318_v42 = vrot.slane %v14572_v53, 1  ;;  %v8203_v53 = vld [vmem:[#allocation3 + $0xd8] sm:$0xe] }
 0x5d1   : > { %v20292_v37 = vpop.f32.mrb[164].mxu0  ;;  %v9320_v12 = vsel %vm2823_vm10, %v9318_v42, %v9319_v24  ;;  %v17275_v24 = vld [vmem:[#allocation3 + $0xdc] sm:$0xf] }
 0x5d2   : > { %21199 = vst [vmem:[#allocation40_spill] sm:$0xff] %v20292_v37  ;;  %v20295_v60 = vpop.f32.mrb[165].mxu0  ;;  %v14573_v37 = vcombine.low %v8202_v16, %v17273_v26  ;;  %v14574_v42 = vcombine.low %v8203_v53, %v17275_v24 }
 0x5d3   : > { %21200 = vst [vmem:[#allocation41_spill] sm:$0xff] %v20295_v60  ;;  %v20297_v15 = vpop.f32.mrb[166].mxu0 }
 0x5d4   : > { %12262 = vmatmul.mubr.bf16.gmra.mrb[116].mxu1 %v9317_v32  ;;  %21201 = vst [vmem:[#allocation42_spill] sm:$0xff] %v20297_v15  ;;  %v20299_v44 = vpop.f32.mrb[167].mxu0  ;;  %v20305_v32 = vcombine.low %v8249_v9, %v20301_v6  ;;  %v9321_v15 = vrot.slane %v14573_v37, 1  ;;  %v8251_v9 = vld [vmem:[#allocation3 + $0xe4] sm:$0xf]  ;;  %v9324_v26 = vrot.slane %v14574_v42, 1 }
 0x5d5   : > { %12269 = vmatprep.mubr.bf16.mxu1 %v20290_v2  ;;  %21202 = vst [vmem:[#allocation43_spill] sm:$0xff] %v20299_v44  ;;  %v17274_v44 = vld [vmem:[#allocation3 + $0xbc] ss:$0 sps:$4 sm:$0x11]   ;;  %v17277_v42 = vld [vmem:[#allocation3 + $0xe8] sm:$0xf] }
 0x5d6   : > { %v9322_v60 = vrot.slane %v17274_v44, 1  ;;  %v17276_v37 = vld [vmem:[#allocation3 + $0xe0] ss:$0 sps:$4 sm:$0x11]  }
 0x5d7   : > { %v9325_v34 = vrot.slane %v17276_v37, 1 }
 0x5d8   : > { %v9323_v16 = vsel %vm2823_vm10, %v9321_v15, %v9322_v60  ;;  %v8253_v60 = vld [vmem:[#allocation3 + $0xf0] sm:$0xf]  ;;  %v8204_v15 = vld [vmem:[#allocation3 + $0xe4] sm:$0xe] }
 0x5d9   : > { %v9326_v53 = vsel %vm2823_vm10, %v9324_v26, %v9325_v34  ;;  %v14575_v55 = vcombine.low %v8204_v15, %v17277_v42  ;;  %v8255_v34 = vld [vmem:[#allocation3 + $0xfc] sm:$0xf]  ;;  %v8205_v26 = vld [vmem:[#allocation3 + $0xf0] sm:$0xe] }
 0x5da   : > { %v17280_v15 = vld [vmem:[#allocation3 + $0xf8] ss:$0 sps:$4 sm:$0x11]  }
 0x5db   : > { %v9327_v37 = vrot.slane %v14575_v55, 1  ;;  %v9331_v42 = vrot.slane %v17280_v15, 1  ;;  %v20341_v55 = vld [vmem:[#allocation3 + $0x10c] sm:$0xf] }
 0x5dc   : > { %12270 = vmatmul.mubr.bf16.gmra.mrb[120].mxu1 %v9320_v12  ;;  %v20316_v12 = vcombine.low %v8251_v9, %v20311_v17  ;;  %v17282_v15 = vld [vmem:[#allocation3 + $0x104] ss:$0 sps:$4 sm:$0x11]  }
 0x5dd   : > { %12277 = vmatprep.mubr.bf16.mxu1 %v20305_v32 }
 0x5e4   : > { %12278 = vmatmul.mubr.bf16.gmra.mrb[124].mxu1 %v9323_v16  ;;  %v20331_v16 = vcombine.low %v8253_v60, %v20321_v38 }
 0x5e5   : > { %12285 = vmatprep.mubr.bf16.mxu1 %v20316_v12  ;;  %v20319_v44 = vpop.f32.mrb[168].mxu0 }
 0x5e6   : > { %21203 = vst [vmem:[#allocation44_spill] sm:$0xff] %v20319_v44  ;;  %v20323_v31 = vpop.f32.mrb[169].mxu0  ;;  %v17278_v44 = vld [vmem:[#allocation3 + $0xec] ss:$0 sps:$4 sm:$0x11]  }
 0x5e7   : > { %21204 = vst [vmem:[#allocation45_spill] sm:$0xff] %v20323_v31  ;;  %v20326_v24 = vpop.f32.mrb[170].mxu0  ;;  %v9328_v48 = vrot.slane %v17278_v44, 1  ;;  %v20334_v31 = vld [vmem:[#allocation3 + $0x100] sm:$0xf] }
 0x5e8   : > { %21205 = vst [vmem:[#allocation46_spill] sm:$0xff] %v20326_v24  ;;  %v20328_v9 = vpop.f32.mrb[171].mxu0  ;;  %v20338_v20 = vcombine.low %v8255_v34, %v20334_v31  ;;  %v8257_v44 = vld [vmem:[#allocation3 + $0x108] sm:$0xf] }
 0x5e9   : > { %21206 = vst [vmem:[#allocation47_spill] sm:$0xff] %v20328_v9  ;;  %v9329_v24 = vsel %vm2823_vm10, %v9327_v37, %v9328_v48  ;;  %v17279_v9 = vld [vmem:[#allocation3 + $0xf4] sm:$0xf]  ;;  %v20347_v48 = vcombine.low %v8257_v44, %v20341_v55 }
 0x5ea   : > { %v14576_v60 = vcombine.low %v8205_v26, %v17279_v9  ;;  %v17281_v9 = vld [vmem:[#allocation3 + $0x100] sm:$0xf] }
 0x5eb   : > { %21208 = vst [vmem:[#allocation49_spill] sm:$0xff] %v20347_v48 }
 0x5ec   : > { %12286 = vmatmul.mubr.bf16.gmra.mrb[128].mxu1 %v9326_v53  ;;  %v9330_v53 = vrot.slane %v14576_v60, 1 }
 0x5ed   : > { %12293 = vmatprep.mubr.bf16.mxu1 %v20331_v16 }
 0x5ee   : > { %v9332_v59 = vsel %vm2823_vm10, %v9330_v53, %v9331_v42  ;;  %v8259_v53 = vld [vmem:[#allocation3 + $0x114] sm:$0xf]  ;;  %v8207_v42 = vld [vmem:[#allocation3 + $0x108] sm:$0xe] }
 0x5f4   : > { %12294 = vmatmul.mubr.bf16.gmra.mrb[132].mxu1 %v9329_v24  ;;  %v14577_v24 = vcombine.low %v8206_v0, %v17281_v9  ;;  %v17283_v0 = vld [vmem:[#allocation3 + $0x10c] sm:$0xf] }
 0x5f5   : > { %12301 = vmatprep.mubr.bf16.mxu1 %v20338_v20 }
 0x5f6   : > { %v9333_v60 = vrot.slane %v14577_v24, 1  ;;  %v20363_v24 = vld [vmem:[#allocation3 + $0x124] sm:$0xf] }
 0x5f7   : > { %21214 = vst [vmem:[#allocation55_spill] sm:$0xff] %v20363_v24 }
 0x5f9   : > { %v20343_v28 = vpop.f32.mrb[172].mxu0 }
 0x5fa   : > { %21207 = vst [vmem:[#allocation48_spill] sm:$0xff] %v20343_v28  ;;  %v20349_v37 = vpop.f32.mrb[173].mxu0  ;;  %v9334_v28 = vrot.slane %v17282_v15, 1  ;;  %v8261_v15 = vld [vmem:[#allocation3 + $0x120] sm:$0xf] }
 0x5fb   : > { %21209 = vst [vmem:[#allocation50_spill] sm:$0xff] %v20349_v37  ;;  %v20351_v34 = vpop.f32.mrb[174].mxu0  ;;  %v20360_v37 = vcombine.low %v8259_v53, %v20356_v57 }
 0x5fc   : > { %12302 = vmatmul.mubr.bf16.gmra.mrb[136].mxu1 %v9332_v59  ;;  %21210 = vst [vmem:[#allocation51_spill] sm:$0xff] %v20351_v34  ;;  %v20354_v26 = vpop.f32.mrb[175].mxu0  ;;  %v9335_v44 = vsel %vm2823_vm10, %v9333_v60, %v9334_v28  ;;  %v14578_v59 = vcombine.low %v8207_v42, %v17283_v0  ;;  %v17284_v34 = vld [vmem:[#allocation3 + $0x110] ss:$0 sps:$4 sm:$0x11]  }
 0x5fd   : > { %12309 = vmatprep.mubr.bf16.mxu1 %v20347_v48  ;;  %21211 = vst [vmem:[#allocation52_spill] sm:$0xff] %v20354_v26  ;;  %21213 = vst [vmem:[#allocation54_spill] sm:$0xff] %v20360_v37  ;;  %v9337_v26 = vrot.slane %v17284_v34, 1  ;;  %v20367_v48 = vcombine.low %v8261_v15, %v20363_v24  ;;  %v17285_v28 = vld [vmem:[#allocation3 + $0x118] sm:$0xf] }
 0x5fe   : > { %v9336_v9 = vrot.slane %v14578_v59, 1  ;;  %v14579_v60 = vcombine.low %v8208_v62, %v17285_v28  ;;  %v17286_v34 = vld [vmem:[#allocation3 + $0x11c] ss:$0 sps:$4 sm:$0x11]   ;;  %v8209_v15 = vld [vmem:[#allocation3 + $0x120] sm:$0xe] }
 0x5ff   : > { %21215 = vst [vmem:[#allocation56_spill] sm:$0xff] %v20367_v48  ;;  %v9340_v0 = vrot.slane %v17286_v34, 1  ;;  %v17287_v28 = vld [vmem:[#allocation3 + $0x124] sm:$0xf]  ;;  %v8210_v24 = vld [vmem:[#allocation3 + $0x12c] sm:$0xe] }
 0x600   : > { %v9338_v40 = vsel %vm2823_vm10, %v9336_v9, %v9337_v26  ;;  %v8263_v9 = vld [vmem:[#allocation3 + $0x12c] sm:$0xf]  ;;  %v17288_v34 = vld [vmem:[#allocation3 + $0x128] ss:$0 sps:$4 sm:$0x11]  }
 0x604   : > { %12310 = vmatmul.mubr.bf16.gmra.mrb[140].mxu1 %v9335_v44  ;;  %v9339_v44 = vrot.slane %v14579_v60, 1 }
 0x605   : > { %12317 = vmatprep.mubr.bf16.mxu1 %v20360_v37  ;;  %v20376_v37 = vld [vmem:[#allocation3 + $0x130] sm:$0xf] }
 0x606   : > { %21219 = vst [vmem:[#allocation60_spill] sm:$0xff] %v20376_v37  ;;  %v9341_v62 = vsel %vm2823_vm10, %v9339_v44, %v9340_v0  ;;  %v17289_v44 = vld [vmem:[#allocation3 + $0x130] sm:$0xf] }
 0x607   : > { %v14581_v0 = vcombine.low %v8210_v24, %v17289_v44  ;;  %v17291_v44 = vld [vmem:[#allocation3 + $0x13c] sm:$0xf] }
 0x60b   : > { %v20370_v53 = vpop.f32.mrb[176].mxu0 }
 0x60c   : > { %12318 = vmatmul.mubr.bf16.gmra.mrb[144].mxu1 %v9338_v40  ;;  %21216 = vst [vmem:[#allocation57_spill] sm:$0xff] %v20370_v53  ;;  %v20372_v42 = vpop.f32.mrb[177].mxu0  ;;  %v20382_v40 = vcombine.low %v8263_v9, %v20376_v37  ;;  %v14580_v53 = vcombine.low %v8209_v15, %v17287_v28 }
 0x60d   : > { %12325 = vmatprep.mubr.bf16.mxu1 %v20367_v48  ;;  %21217 = vst [vmem:[#allocation58_spill] sm:$0xff] %v20372_v42  ;;  %v20374_v59 = vpop.f32.mrb[178].mxu0  ;;  %v9343_v42 = vrot.slane %v17288_v34, 1  ;;  %v8265_v48 = vld [vmem:[#allocation3 + $0x138] sm:$0xf] }
 0x60e   : > { %21218 = vst [vmem:[#allocation59_spill] sm:$0xff] %v20374_v59  ;;  %v20378_v26 = vpop.f32.mrb[179].mxu0  ;;  %21221 = vst [vmem:[#allocation62_spill] sm:$0xff] %v20382_v40  ;;  %v9342_v60 = vrot.slane %v14580_v53, 1  ;;  %v20385_v59 = vld [vmem:[#allocation3 + $0x13c] sm:$0xf] }
 0x60f   : > { %21220 = vst [vmem:[#allocation61_spill] sm:$0xff] %v20378_v26  ;;  %21222 = vst [vmem:[#allocation63_spill] sm:$0xff] %v20385_v59  ;;  %v20389_v57 = vcombine.low %v8265_v48, %v20385_v59  ;;  %v9345_v53 = vrot.slane %v14581_v0, 1  ;;  %v8267_v48 = vld [vmem:[#allocation3 + $0x144] sm:$0xf] }
 0x610   : > { %v9344_v26 = vsel %vm2823_vm10, %v9342_v60, %v9343_v42  ;;  %v8211_v60 = vld [vmem:[#allocation3 + $0x138] sm:$0xe]  ;;  %v8212_v59 = vld [vmem:[#allocation3 + $0x144] sm:$0xe] }
 0x611   : > { %21223 = vst [vmem:[#allocation64_spill] sm:$0xff] %v20389_v57 }
 0x614   : > { %12326 = vmatmul.mubr.bf16.gmra.mrb[148].mxu1 %v9341_v62  ;;  %v17290_v62 = vld [vmem:[#allocation3 + $0x134] ss:$0 sps:$4 sm:$0x11]  }
 0x615   : > { %12333 = vmatprep.mubr.bf16.mxu1 %v20382_v40  ;;  %v9346_v28 = vrot.slane %v17290_v62, 1  ;;  %v20398_v40 = vld [vmem:[#allocation3 + $0x148] sm:$0xf]  ;;  %v17292_v62 = vld [vmem:[#allocation3 + $0x140] ss:$0 sps:$4 sm:$0x11]  }
 0x616   : > { %21227 = vst [vmem:[#allocation68_spill] sm:$0xff] %v20398_v40 }
 0x617   : > { %v9347_v24 = vsel %vm2823_vm10, %v9345_v53, %v9346_v28  ;;  %v17293_v53 = vld [vmem:[#allocation3 + $0x148] sm:$0xf] }
 0x618   : > { %v14583_v28 = vcombine.low %v8212_v59, %v17293_v53  ;;  %v20421_v53 = vld [vmem:[#allocation3 + $0x16c] sm:$0xf] }
 0x61c   : > { %12334 = vmatmul.mubr.bf16.gmra.mrb[152].mxu1 %v9344_v26  ;;  %v20404_v26 = vcombine.low %v8267_v48, %v20398_v40  ;;  %v9351_v48 = vrot.slane %v14583_v28, 1  ;;  %v8273_v28 = vld [vmem:[#allocation3 + $0x168] sm:$0xf] }
 0x61d   : > { %12341 = vmatprep.mubr.bf16.mxu1 %v20389_v57  ;;  %v8269_v57 = vld [vmem:[#allocation3 + $0x150] sm:$0xf] }
 0x61e   : > { %v20392_v9 = vpop.f32.mrb[180].mxu0  ;;  %21229 = vst [vmem:[#allocation70_spill] sm:$0xff] %v20404_v26 }
 0x61f   : > { %21224 = vst [vmem:[#allocation65_spill] sm:$0xff] %v20392_v9  ;;  %v20394_v15 = vpop.f32.mrb[181].mxu0  ;;  %v14582_v9 = vcombine.low %v8211_v60, %v17291_v44  ;;  %v17294_v60 = vld [vmem:[#allocation3 + $0x14c] ss:$0 sps:$4 sm:$0x11]  }
 0x620   : > { %21225 = vst [vmem:[#allocation66_spill] sm:$0xff] %v20394_v15  ;;  %v20396_v34 = vpop.f32.mrb[182].mxu0  ;;  %v9349_v15 = vrot.slane %v17292_v62, 1  ;;  %v8271_v44 = vld [vmem:[#allocation3 + $0x15c] sm:$0xf] }
 0x621   : > { %21226 = vst [vmem:[#allocation67_spill] sm:$0xff] %v20396_v34  ;;  %v20400_v42 = vpop.f32.mrb[183].mxu0  ;;  %v9348_v0 = vrot.slane %v14582_v9, 1  ;;  %v20407_v34 = vld [vmem:[#allocation3 + $0x154] sm:$0xf] }
 0x622   : > { %21228 = vst [vmem:[#allocation69_spill] sm:$0xff] %v20400_v42  ;;  %21230 = vst [vmem:[#allocation71_spill] sm:$0xff] %v20407_v34  ;;  %v20411_v37 = vcombine.low %v8269_v57, %v20407_v34  ;;  %v20414_v9 = vld [vmem:[#allocation3 + $0x160] sm:$0xf]  ;;  %v8213_v62 = vld [vmem:[#allocation3 + $0x150] sm:$0xe]  ;;  %v20425_v34 = vcombine.low %v8273_v28, %v20421_v53 }
 0x623   : > { %v9350_v42 = vsel %vm2823_vm10, %v9348_v0, %v9349_v15  ;;  %21232 = vst [vmem:[#allocation73_spill] sm:$0xff] %v20414_v9  ;;  %v20418_v40 = vcombine.low %v8271_v44, %v20414_v9  ;;  %v17295_v15 = vld [vmem:[#allocation3 + $0x154] sm:$0xf]  ;;  %v17298_v44 = vld [vmem:[#allocation3 + $0x164] ss:$0 sps:$4 sm:$0x11]  }
 0x624   : > { %12342 = vmatmul.mubr.bf16.gmra.mrb[156].mxu1 %v9347_v24  ;;  %21231 = vst [vmem:[#allocation72_spill] sm:$0xff] %v20411_v37  ;;  %v9352_v24 = vrot.slane %v17294_v60, 1  ;;  %v14584_v57 = vcombine.low %v8213_v62, %v17295_v15  ;;  %v8214_v60 = vld [vmem:[#allocation3 + $0x15c] sm:$0xe]  ;;  %21234 = vst [vmem:[#allocation75_spill] sm:$0xff] %v20425_v34  ;;  %v9358_v62 = vrot.slane %v17298_v44, 1 }
 0x625   : > { %12349 = vmatprep.mubr.bf16.mxu1 %v20404_v26  ;;  %21233 = vst [vmem:[#allocation74_spill] sm:$0xff] %v20418_v40  ;;  %v20428_v15 = vld [vmem:[#allocation3 + $0x178] sm:$0xf] }
 0x626   : > { %v9353_v26 = vsel %vm2823_vm10, %v9351_v48, %v9352_v24  ;;  %v9354_v59 = vrot.slane %v14584_v57, 1  ;;  %v17297_v48 = vld [vmem:[#allocation3 + $0x160] sm:$0xf]  ;;  %v8275_v57 = vld [vmem:[#allocation3 + $0x174] sm:$0xf] }
 0x627   : > { %v14585_v24 = vcombine.low %v8214_v60, %v17297_v48  ;;  %v20432_v9 = vcombine.low %v8275_v57, %v20428_v15  ;;  %v20436_v60 = vld [vmem:[#allocation3 + $0x184] sm:$0xf]  ;;  %v8277_v48 = vld [vmem:[#allocation3 + $0x180] sm:$0xf]  ;;  %v8279_v57 = vld [vmem:[#allocation3 + $0x18c] sm:$0xf] }
 0x62c   : > { %12350 = vmatmul.mubr.bf16.gmra.mrb[160].mxu1 %v9350_v42  ;;  %v17296_v42 = vld [vmem:[#allocation3 + $0x158] ss:$0 sps:$4 sm:$0x11]  }
 0x62d   : > { %12357 = vmatprep.mubr.bf16.mxu1 %v20411_v37  ;;  %v9355_v0 = vrot.slane %v17296_v42, 1  ;;  %v8215_v42 = vld [vmem:[#allocation3 + $0x168] sm:$0xe] }
 0x62f   : > { %v9356_v37 = vsel %vm2823_vm10, %v9354_v59, %v9355_v0  ;;  %v14586_v59 = vcombine.low %v8215_v42, %v20019_v18  ;;  %v17299_v0 = vld [vmem:[#allocation3 + $0x170] ss:$0 sps:$4 sm:$0x11]   ;;  %v8217_v42 = vld [vmem:[#allocation3 + $0x180] sm:$0xe] }
 0x630   : > { %v9361_v28 = vrot.slane %v17299_v0, 1 }
 0x634   : > { %12358 = vmatmul.mubr.bf16.gmra.mrb[164].mxu1 %v9353_v26  ;;  %v9357_v26 = vrot.slane %v14585_v24, 1  ;;  %v8216_v24 = vld [vmem:[#allocation3 + $0x174] sm:$0xe] }
 0x635   : > { %12365 = vmatprep.mubr.bf16.mxu1 %v20418_v40 }
 0x636   : > { %v9359_v40 = vsel %vm2823_vm10, %v9357_v26, %v9358_v62  ;;  %v14587_v26 = vcombine.low %v8216_v24, %v20037_v7  ;;  %v8280_v62 = vld [vmem:[#allocation3 + $0x190] sm:$0xf]  ;;  %v9367_v7 = vrot.slane %v20051_v21, 1  ;;  %v8281_v24 = vld [vmem:[#allocation3 + $0x198] sm:$0xf]  ;;  %v9370_v21 = vrot.slane %v20063_v63, 1 }
 0x637   : > { %v20446_v0 = vcombine.low %v8279_v57, %v8280_v62  ;;  %v9695_v62 = vshll.u32 %v20084_v1, 16 }
 0x638   : > { %v9363_v18 = vrot.slane %v14587_v26, 1  ;;  %v8315_v26 = vld [vmem:[#allocation3 + $0xc] sm:$0xe] }
 0x639   : > { %21236 = vst [vmem:[#allocation77_spill] sm:$0xff] %v20446_v0 }
 0x63c   : > { %12366 = vmatmul.mubr.bf16.gmra.mrb[168].mxu1 %v9356_v37  ;;  %v9360_v37 = vrot.slane %v14586_v59, 1 }
 0x63d   : > { %12373 = vmatprep.mubr.bf16.mxu1 %v20425_v34  ;;  %v20440_v34 = vcombine.low %v8277_v48, %v20436_v60  ;;  %v8282_v48 = vld [vmem:[#allocation3 + $0x19c] sm:$0xf] }
 0x63e   : > { %v9362_v44 = vsel %vm2823_vm10, %v9360_v37, %v9361_v28  ;;  %v14588_v37 = vcombine.low %v8217_v42, %v20044_v47  ;;  %v17094_v47 = vld [vmem:[#allocation3 + $0x14] ss:$0 sps:$4 sm:$0x11]  }
 0x63f   : > { %21235 = vst [vmem:[#allocation76_spill] sm:$0xff] %v20440_v34 }
 0x640   : > { %v9366_v28 = vrot.slane %v14588_v37, 1  ;;  %v9697_v37 = vrot.slane %v9695_v62, 1  ;;  %v8317_v62 = vld [vmem:[#allocation3 + $0x24] sm:$0xe] }
 0x644   : > { %12374 = vmatmul.mubr.bf16.gmra.mrb[172].mxu1 %v9359_v40  ;;  %v9364_v40 = vrot.slane %v20039_v56, 1  ;;  %v9368_v56 = vsel %vm2823_vm10, %v9366_v28, %v9367_v7 }
 0x645   : > { %12381 = vmatprep.mubr.bf16.mxu1 %v20432_v9 }
 0x646   : > { %v9365_v59 = vsel %vm2823_vm10, %v9363_v18, %v9364_v40  ;;  %v14654_v40 = vcombine.low %v8315_v26, %v20081_v22  ;;  %v17095_v22 = vld [vmem:[#allocation3 + $0x20] ss:$0 sps:$4 sm:$0x11]  }
 0x648   : > { %v10204_v42 = vrot.slane %v14654_v40, 1  ;;  %v17096_v40 = vld [vmem:[%s21077_s4 + $0x180] sm:$0xff]  }
 0x64c   : > { %12382 = vmatmul.mubr.bf16.gmra.mrb[176].mxu1 %v9362_v44  ;;  %v8218_v44 = vld [vmem:[#allocation3 + $0x18c] sm:$0xe] }
 0x64d   : > { %12389 = vmatprep.mubr.bf16.mxu1 %v20440_v34  ;;  %v20452_v34 = vcombine.low %v8281_v24, %v8282_v48  ;;  %v14589_v18 = vcombine.low %v8218_v44, %v20060_v33  ;;  %v9693_v48 = vshrl.u32 %v20084_v1, 16  ;;  %v9700_v24 = vshll.u32 %v17094_v47, 16 }
 0x64e   : > { %v9707_v44 = vshll.u32 %v20102_v52, 16 }
 0x64f   : > { %v9369_v57 = vrot.slane %v14589_v18, 1  ;;  %v9698_v26 = vor.u32 %v9697_v37, %v9693_v48  ;;  %v9702_v18 = vrot.slane %v9700_v24, 1  ;;  %v9719_v37 = vshll.u32 %v20117_v50, 16  ;;  %v17102_v48 = vld [vmem:[%s21077_s4 + $0x190] sm:$0xff]  }
 0x651   : > { %v9371_v28 = vsel %vm2823_vm10, %v9369_v57, %v9370_v21  ;;  %v14656_v57 = vcombine.low %v8317_v62, %v20109_v43  ;;  %v9705_v21 = vshrl.u32 %v20102_v52, 16  ;;  %v8318_v52 = vld [vmem:[#allocation3 + $0x30] sm:$0xe]  ;;  %v9721_v24 = vrot.slane %v9719_v37, 1 }
 0x652   : > { %v9731_v62 = vshll.u32 %v20138_v54, 16  ;;  %v17100_v37 = vld [vmem:[#allocation3 + $0x44] ss:$0 sps:$4 sm:$0x11]  }
 0x654   : > { %12390 = vmatmul.mubr.bf16.gmra.mrb[180].mxu1 %v9365_v59  ;;  %v10205_v59 = vrot.slane %v17094_v47, 1  ;;  %v17097_v47 = vld [vmem:[#allocation3 + $0x2c] ss:$0 sps:$4 sm:$0x11]  }
 0x655   : > { %12397 = vmatprep.mubr.bf16.mxu1 %v20446_v0  ;;  %v8316_v0 = vld [vmem:[#allocation3 + $0x18] sm:$0xe]  ;;  %v10211_v43 = vrot.slane %v17097_v47, 1 }
 0x656   : > { %v14655_v7 = vcombine.low %v8316_v0, %v20091_v13  ;;  %v10206_v33 = vsel %vm2823_vm10, %v10204_v42, %v10205_v59  ;;  %v9703_v13 = vsel %vm2310_vm1, %v9698_v26, %v9702_v18  ;;  %v9709_v0 = vrot.slane %v9707_v44, 1  ;;  %v17099_v59 = vld [vmem:[%s21077_s4 + $0x188] sm:$0xff]  }
 0x657   : > { %v9712_v42 = vshll.u32 %v17095_v22, 16  ;;  %v14657_v44 = vcombine.low %v8318_v52, %v20124_v41  ;;  %v9724_v18 = vshll.u32 %v17097_v47, 16 }
 0x658   : > { %v10207_v63 = vrot.slane %v14655_v7, 1  ;;  %v10210_v7 = vrot.slane %v14656_v57, 1 }
 0x659   : > { %v9726_v57 = vrot.slane %v9724_v18, 1  ;;  %v17101_v18 = vld [vmem:[#allocation3 + $0x50] ss:$0 sps:$4 sm:$0x11]  }
 0x65a   : > { %v10212_v26 = vsel %vm2823_vm10, %v10210_v7, %v10211_v43  ;;  %v17111_v43 = vld [vmem:[%s21077_s4 + $0x1a8] sm:$0xff]  }
 0x65c   : > { %12398 = vmatmul.mubr.bf16.gmra.mrb[184].mxu1 %v9368_v56  ;;  %v10208_v56 = vrot.slane %v17095_v22, 1 }
 0x65d   : > { %12405 = vmatprep.mubr.bf16.mxu1 %v20452_v34 }
 0x65e   : > { %v10209_v1 = vsel %vm2823_vm10, %v10207_v63, %v10208_v56  ;;  %v17098_v63 = vld [vmem:[#allocation3 + $0x38] ss:$0 sps:$4 sm:$0x11]   ;;  %v9717_v56 = vshrl.u32 %v20117_v50, 16  ;;  %v8319_v50 = vld [vmem:[#allocation3 + $0x3c] sm:$0xe] }
 0x65f   : > { %v10214_v41 = vrot.slane %v17098_v63, 1  ;;  %v9736_v7 = vshll.u32 %v17098_v63, 16 }
 0x664   : > { %12406 = vmatmul.mubr.bf16.gmra.mrb[188].mxu1 %v9371_v28  ;;  %v9710_v28 = vor.u32 %v9709_v0, %v9705_v21  ;;  %v10213_v0 = vrot.slane %v14657_v44, 1  ;;  %v9733_v21 = vrot.slane %v9731_v62, 1  ;;  %v9748_v62 = vshll.u32 %v17100_v37, 16 }
 0x665   : > { %12446 = vmatprep.mubr.bf16.mxu1 %v10206_v33  ;;  %v9714_v33 = vrot.slane %v9712_v42, 1  ;;  %v14658_v42 = vcombine.low %v8319_v50, %v20147_v4  ;;  %v10217_v4 = vrot.slane %v17100_v37, 1  ;;  %v17120_v50 = vld [vmem:[%s21077_s4 + $0x1c0] sm:$0xff]   ;;  %v17103_v37 = vld [vmem:[#allocation3 + $0x5c] ss:$0 sps:$4 sm:$0x11]  }
 0x667   : > { %v9715_v22 = vsel %vm2310_vm1, %v9710_v28, %v9714_v33  ;;  %v9729_v28 = vshrl.u32 %v20138_v54, 16  ;;  %v9743_v33 = vshll.u32 %v20155_v10, 16  ;;  %v10216_v52 = vrot.slane %v14658_v42, 1  ;;  %v8320_v54 = vld [vmem:[#allocation3 + $0x48] sm:$0xe] }
 0x668   : > { %v14659_v63 = vcombine.low %v8320_v54, %v20162_v29  ;;  %v10220_v29 = vrot.slane %v17101_v18, 1 }
 0x66c   : > { %12447 = vmatmul.mubr.bf16.vlgmr.msra.gmra.mrb[64].mxu1 %v9703_v13  ;;  %v9722_v13 = vor.u32 %v9721_v24, %v9717_v56  ;;  %v17114_v24 = vld [vmem:[%s21077_s4 + $0x1b0] sm:$0xff]   ;;  %v10218_v56 = vsel %vm2823_vm10, %v10216_v52, %v10217_v4 }
 0x66d   : > { %12454 = vmatprep.mubr.bf16.mxu1 %v10209_v1  ;;  %12704 = vmatpush1.bf16.msra.mxu1 %v17096_v40  ;;  %v17105_v40 = vld [vmem:[%s21077_s4 + $0x198] sm:$0xff]   ;;  %v17108_v1 = vld [vmem:[%s21077_s4 + $0x1a0] sm:$0xff]  }
 0x66e   : > { %12705 = vmatprep.subr.bf16.mxu1 %v21144_v36  ;;  %v9727_v47 = vsel %vm2310_vm1, %v9722_v13, %v9726_v57  ;;  %v17117_v13 = vld [vmem:[%s21077_s4 + $0x1b8] sm:$0xff]   ;;  %v10219_v57 = vrot.slane %v14659_v63, 1 }
 0x66f   : > { %v17104_v63 = vld [vmem:[#allocation3 + $0x68] ss:$0 sps:$4 sm:$0x11]  }
 0x671   : > { %12706 = vmatpush1.bf16.msra.mxu1 %v17099_v59  ;;  %v10215_v59 = vsel %vm2823_vm10, %v10213_v0, %v10214_v41  ;;  %v9755_v0 = vshll.u32 %v20172_v25, 16 }
 0x672   : > { %12707 = vmatprep.subr.bf16.mxu1 %v21144_v36 }
 0x674   : > { %12455 = vmatmul.mubr.bf16.gmra.mrb[68].mxu1 %v9715_v22  ;;  %v9738_v22 = vrot.slane %v9736_v7, 1  ;;  %v9760_v7 = vshll.u32 %v17101_v18, 16  ;;  %v9772_v18 = vshll.u32 %v17103_v37, 16 }
 0x675   : > { %12462 = vmatprep.mubr.bf16.mxu1 %v10212_v26  ;;  %12708 = vmatpush1.bf16.msra.mxu1 %v17102_v48  ;;  %v9734_v48 = vor.u32 %v9733_v21, %v9729_v28  ;;  %v9745_v26 = vrot.slane %v9743_v33, 1  ;;  %v9757_v21 = vrot.slane %v9755_v0, 1  ;;  %v9753_v28 = vshrl.u32 %v20172_v25, 16  ;;  %v8322_v25 = vld [vmem:[#allocation3 + $0x60] sm:$0xe] }
 0x676   : > { %12709 = vmatprep.subr.bf16.mxu1 %v21144_v36  ;;  %v9767_v33 = vshll.u32 %v20193_v45, 16  ;;  %v9762_v4 = vrot.slane %v9760_v7, 1  ;;  %v10226_v0 = vrot.slane %v17104_v63, 1  ;;  %v8324_v7 = vld [vmem:[#allocation3 + $0x78] sm:$0xe] }
 0x677   : > { %v9739_v44 = vsel %vm2310_vm1, %v9734_v48, %v9738_v22  ;;  %v9758_v48 = vor.u32 %v9757_v21, %v9753_v28  ;;  %v17126_v22 = vld [vmem:[%s21077_s4 + $0x1d0] sm:$0xff]   ;;  %v17129_v21 = vld [vmem:[%s21077_s4 + $0x1d8] sm:$0xff]  }
 0x678   : > { %v9769_v54 = vrot.slane %v9767_v33, 1 }
 0x679   : > { %12710 = vmatpush1.bf16.msra.mxu1 %v17105_v40  ;;  %v9741_v40 = vshrl.u32 %v20155_v10, 16  ;;  %v8321_v10 = vld [vmem:[#allocation3 + $0x54] sm:$0xe] }
 0x67a   : > { %12711 = vmatprep.subr.bf16.mxu1 %v21144_v36  ;;  %v14660_v42 = vcombine.low %v8321_v10, %v20185_v35  ;;  %v10223_v35 = vrot.slane %v17103_v37, 1  ;;  %v9777_v10 = vshrl.u32 %v20201_v39, 16 }
 0x67b   : > { %v9746_v41 = vor.u32 %v9745_v26, %v9741_v40  ;;  %v9779_v40 = vshll.u32 %v20201_v39, 16  ;;  %v14663_v39 = vcombine.low %v8324_v7, %v20223_v27  ;;  %v8327_v7 = vld [vmem:[#allocation3 + $0x9c] sm:$0xe] }
 0x67c   : > { %12463 = vmatmul.mubr.bf16.gmra.mrb[72].mxu1 %v9727_v47  ;;  %v10222_v52 = vrot.slane %v14660_v42, 1  ;;  %v9791_v42 = vshll.u32 %v20220_v8, 16 }
 0x67d   : > { %12470 = vmatprep.mubr.bf16.mxu1 %v10215_v59  ;;  %12712 = vmatpush1.bf16.msra.mxu1 %v17108_v1  ;;  %v9750_v1 = vrot.slane %v9748_v62, 1  ;;  %v10221_v59 = vsel %vm2823_vm10, %v10219_v57, %v10220_v29  ;;  %v8323_v57 = vld [vmem:[#allocation3 + $0x6c] sm:$0xe]  ;;  %v9781_v29 = vrot.slane %v9779_v40, 1 }
 0x67e   : > { %12713 = vmatprep.subr.bf16.mxu1 %v21144_v36  ;;  %v10224_v26 = vsel %vm2823_vm10, %v10222_v52, %v10223_v35  ;;  %v9793_v33 = vrot.slane %v9791_v42, 1  ;;  %v17107_v52 = vld [vmem:[#allocation3 + $0x80] ss:$0 sps:$4 sm:$0x11]   ;;  %v9789_v35 = vshrl.u32 %v20220_v8, 16  ;;  %v9801_v8 = vshrl.u32 %v20227_v58, 16 }
 0x67f   : > { %v9751_v47 = vsel %vm2310_vm1, %v9746_v41, %v9750_v1  ;;  %v9774_v41 = vrot.slane %v9772_v18, 1  ;;  %v14662_v1 = vcombine.low %v8323_v57, %v20215_v61  ;;  %v17109_v40 = vld [vmem:[#allocation3 + $0x8c] ss:$0 sps:$4 sm:$0x11]   ;;  %v9827_v42 = vshll.u32 %v20253_v19, 16 }
 0x681   : > { %12714 = vmatpush1.bf16.msra.mxu1 %v17111_v43  ;;  %v17123_v43 = vld [vmem:[%s21077_s4 + $0x1c8] sm:$0xff]   ;;  %v10228_v37 = vrot.slane %v14662_v1, 1 }
 0x682   : > { %12715 = vmatprep.subr.bf16.mxu1 %v21144_v36 }
 0x684   : > { %12471 = vmatmul.mubr.bf16.gmra.mrb[76].mxu1 %v9739_v44  ;;  %v14661_v44 = vcombine.low %v8322_v25, %v20197_v49  ;;  %v9794_v25 = vor.u32 %v9793_v33, %v9789_v35  ;;  %v9829_v33 = vrot.slane %v9827_v42, 1  ;;  %v17135_v35 = vld [vmem:[%s21077_s4 + $0x1e8] sm:$0xff]  }
 0x685   : > { %12478 = vmatprep.mubr.bf16.mxu1 %v10218_v56  ;;  %12716 = vmatpush1.bf16.msra.mxu1 %v17114_v24  ;;  %v9763_v24 = vsel %vm2310_vm1, %v9758_v48, %v9762_v4  ;;  %v9765_v56 = vshrl.u32 %v20193_v45, 16  ;;  %v17106_v45 = vld [vmem:[#allocation3 + $0x74] ss:$0 sps:$4 sm:$0x11]  }
 0x686   : > { %12717 = vmatprep.subr.bf16.mxu1 %v21144_v36  ;;  %v10229_v28 = vrot.slane %v17106_v45, 1  ;;  %v9796_v4 = vshll.u32 %v17106_v45, 16 }
 0x687   : > { %v9770_v62 = vor.u32 %v9769_v54, %v9765_v56  ;;  %v10232_v54 = vrot.slane %v17107_v52, 1 }
 0x688   : > { %v10230_v48 = vsel %vm2823_vm10, %v10228_v37, %v10229_v28 }
 0x689   : > { %12718 = vmatpush1.bf16.msra.mxu1 %v17117_v13  ;;  %v10225_v13 = vrot.slane %v14661_v44, 1  ;;  %v9775_v49 = vsel %vm2310_vm1, %v9770_v62, %v9774_v41  ;;  %v9798_v44 = vrot.slane %v9796_v4, 1  ;;  %v9808_v62 = vshll.u32 %v17107_v52, 16 }
 0x68a   : > { %12719 = vmatprep.subr.bf16.mxu1 %v21144_v36  ;;  %v9839_v4 = vshll.u32 %v20270_v30, 16 }
 0x68c   : > { %12479 = vmatmul.mubr.bf16.gmra.mrb[80].mxu1 %v9751_v47  ;;  %v9784_v47 = vshll.u32 %v17104_v63, 16  ;;  %v9799_v63 = vsel %vm2310_vm1, %v9794_v25, %v9798_v44 }
 0x68d   : > { %12486 = vmatprep.mubr.bf16.mxu1 %v10221_v59  ;;  %12720 = vmatpush1.bf16.msra.mxu1 %v17120_v50  ;;  %v10227_v50 = vsel %vm2823_vm10, %v10225_v13, %v10226_v0  ;;  %v9782_v59 = vor.u32 %v9781_v29, %v9777_v10  ;;  %v17132_v13 = vld [vmem:[%s21077_s4 + $0x1e0] sm:$0xff]   ;;  %v9815_v0 = vshll.u32 %v20238_v51, 16  ;;  %v17110_v10 = vld [vmem:[#allocation3 + $0x98] ss:$0 sps:$4 sm:$0x11]  }
 0x68e   : > { %12721 = vmatprep.subr.bf16.mxu1 %v21144_v36  ;;  %v9786_v61 = vrot.slane %v9784_v47, 1  ;;  %v8326_v29 = vld [vmem:[#allocation3 + $0x90] sm:$0xe]  ;;  %v9813_v47 = vshrl.u32 %v20238_v51, 16  ;;  %v10238_v28 = vrot.slane %v17110_v10, 1  ;;  %v9825_v51 = vshrl.u32 %v20253_v19, 16 }
 0x68f   : > { %v9832_v52 = vshll.u32 %v17110_v10, 16 }
 0x691   : > { %12722 = vmatpush1.bf16.msra.mxu1 %v17123_v43  ;;  %v9787_v43 = vsel %vm2310_vm1, %v9782_v59, %v9786_v61 }
 0x692   : > { %12723 = vmatprep.subr.bf16.mxu1 %v21144_v36 }
 0x694   : > { %12487 = vmatmul.mubr.bf16.gmra.mrb[84].mxu1 %v9763_v24  ;;  %v10231_v24 = vrot.slane %v14663_v39, 1 }
 0x695   : > { %12494 = vmatprep.mubr.bf16.mxu1 %v10224_v26  ;;  %12724 = vmatpush1.bf16.msra.mxu1 %v17126_v22  ;;  %v9803_v22 = vshll.u32 %v20227_v58, 16  ;;  %v8325_v26 = vld [vmem:[#allocation3 + $0x84] sm:$0xe]  ;;  %v14665_v58 = vcombine.low %v8326_v29, %v20245_v23  ;;  %v14666_v23 = vcombine.low %v8327_v7, %v20259_v11  ;;  %v9834_v11 = vrot.slane %v9832_v52, 1 }
 0x696   : > { %12725 = vmatprep.subr.bf16.mxu1 %v21144_v36  ;;  %v14664_v27 = vcombine.low %v8325_v26, %v20233_v14  ;;  %v10233_v18 = vsel %vm2823_vm10, %v10231_v24, %v10232_v54  ;;  %v9810_v14 = vrot.slane %v9808_v62, 1  ;;  %v8328_v54 = vld [vmem:[#allocation3 + $0xa8] sm:$0xe]  ;;  %v9841_v26 = vrot.slane %v9839_v4, 1 }
 0x697   : > { %v9805_v56 = vrot.slane %v9803_v22, 1  ;;  %v10237_v37 = vrot.slane %v14665_v58, 1  ;;  %v9830_v22 = vor.u32 %v9829_v33, %v9825_v51  ;;  %v10240_v25 = vrot.slane %v14666_v23, 1  ;;  %v17115_v29 = vld [vmem:[#allocation3 + $0xbc] ss:$0 sps:$4 sm:$0x11]  }
 0x698   : > { %v10234_v57 = vrot.slane %v14664_v27, 1  ;;  %v14667_v19 = vcombine.low %v8328_v54, %v20275_v46  ;;  %v9837_v27 = vshrl.u32 %v20270_v30, 16  ;;  %v9849_v30 = vshrl.u32 %v20279_v3, 16  ;;  %v17118_v4 = vld [vmem:[#allocation3 + $0xec] ss:$0 sps:$4 sm:$0x11]  }
 0x699   : > { %12726 = vmatpush1.bf16.msra.mxu1 %v17129_v21  ;;  %v9806_v41 = vor.u32 %v9805_v56, %v9801_v8  ;;  %v9820_v21 = vshll.u32 %v17109_v40, 16  ;;  %v10239_v39 = vsel %vm2823_vm10, %v10237_v37, %v10238_v28  ;;  %v9835_v44 = vsel %vm2310_vm1, %v9830_v22, %v9834_v11  ;;  %v17113_v56 = vld [vmem:[#allocation3 + $0xb0] ss:$0 sps:$4 sm:$0x11]  }
 0x69a   : > { %12727 = vmatprep.subr.bf16.mxu1 %v21144_v36  ;;  %v9842_v8 = vor.u32 %v9841_v26, %v9837_v27  ;;  %v10243_v62 = vrot.slane %v14667_v19, 1  ;;  %v9863_v58 = vshll.u32 %v20290_v2, 16  ;;  %v17116_v28 = vld [vmem:[#allocation3 + $0xc8] ss:$0 sps:$4 sm:$0x11]   ;;  %v9868_v7 = vshll.u32 %v17115_v29, 16 }
 0x69b   : > { %v9811_v1 = vsel %vm2310_vm1, %v9806_v41, %v9810_v14  ;;  %v9822_v61 = vrot.slane %v9820_v21, 1  ;;  %v8329_v41 = vld [vmem:[#allocation3 + $0xb4] sm:$0xe]  ;;  %v8330_v21 = vld [vmem:[#allocation3 + $0xc0] sm:$0xe]  ;;  %v9880_v22 = vshll.u32 %v17116_v28, 16 }
 0x69c   : > { %12495 = vmatmul.mubr.bf16.gmra.mrb[88].mxu1 %v9775_v49  ;;  %v10235_v49 = vrot.slane %v17109_v40, 1  ;;  %v9851_v40 = vshll.u32 %v20279_v3, 16  ;;  %v14668_v46 = vcombine.low %v8329_v41, %v20285_v5  ;;  %v14669_v3 = vcombine.low %v8330_v21, %v20301_v6 }
 0x69d   : > { %12502 = vmatprep.mubr.bf16.mxu1 %v10227_v50  ;;  %12728 = vmatpush1.bf16.msra.mxu1 %v17132_v13  ;;  %v9817_v50 = vrot.slane %v9815_v0, 1  ;;  %v10244_v13 = vrot.slane %v17113_v56, 1  ;;  %v9882_v26 = vrot.slane %v9880_v22, 1 }
 0x69e   : > { %12729 = vmatprep.subr.bf16.mxu1 %v21144_v36  ;;  %v10236_v45 = vsel %vm2823_vm10, %v10234_v57, %v10235_v49  ;;  %v9853_v49 = vrot.slane %v9851_v40, 1  ;;  %v10246_v10 = vrot.slane %v14668_v46, 1  ;;  %v10249_v23 = vrot.slane %v14669_v3, 1  ;;  %v17122_v3 = vld [vmem:[#allocation3 + $0x110] ss:$0 sps:$4 sm:$0x11]  }
 0x69f   : > { %v9818_v59 = vor.u32 %v9817_v50, %v9813_v47  ;;  %v10245_v14 = vsel %vm2823_vm10, %v10243_v62, %v10244_v13  ;;  %v17138_v50 = vld [vmem:[%s21077_s4 + $0x1f0] sm:$0xff]   ;;  %v10247_v47 = vrot.slane %v17115_v29, 1  ;;  %v9885_v40 = vshrl.u32 %v20316_v12, 16 }
 0x6a0   : > { %v9899_v62 = vshll.u32 %v20331_v16, 16 }
 0x6a1   : > { %12730 = vmatpush1.bf16.msra.mxu1 %v17135_v35  ;;  %v10248_v37 = vsel %vm2823_vm10, %v10246_v10, %v10247_v47 }
 0x6a2   : > { %12731 = vmatprep.subr.bf16.mxu1 %v21144_v36 }
 0x6a4   : > { %12503 = vmatmul.mubr.bf16.gmra.mrb[92].mxu1 %v9787_v43  ;;  %v9823_v43 = vsel %vm2310_vm1, %v9818_v59, %v9822_v61  ;;  %v9865_v59 = vrot.slane %v9863_v58, 1  ;;  %v9861_v61 = vshrl.u32 %v20290_v2, 16  ;;  %v9873_v2 = vshrl.u32 %v20305_v32, 16 }
 0x6a5   : > { %12510 = vmatprep.mubr.bf16.mxu1 %v10230_v48  ;;  %v17112_v48 = vld [vmem:[#allocation3 + $0xa4] ss:$0 sps:$4 sm:$0x11]   ;;  %12732 = vmatpush1.bf16.msra.mxu1 %v17138_v50  ;;  %v9911_v50 = vshll.u32 %v20338_v20, 16 }
 0x6a6   : > { %v10241_v24 = vrot.slane %v17112_v48, 1  ;;  %12733 = vmatprep.subr.bf16.mxu1 %v21144_v36  ;;  %v9866_v33 = vor.u32 %v9865_v59, %v9861_v61  ;;  %v10250_v36 = vrot.slane %v17116_v28, 1  ;;  %v21237_v28 = vld [vmem:[#allocation49_spill] sm:$0xff] }
 0x6a7   : > { %v9923_v61 = vshll.u32 %v21237_v28, 16 }
 0x6a8   : > { %v10251_v35 = vsel %vm2823_vm10, %v10249_v23, %v10250_v36  ;;  %v8335_v36 = vld [vmem:[#allocation3 + $0x114] sm:$0xe] }
 0x6ac   : > { %12511 = vmatmul.mubr.bf16.gmra.mrb[96].mxu1 %v9799_v63  ;;  %v10242_v63 = vsel %vm2823_vm10, %v10240_v25, %v10241_v24  ;;  %v17141_v25 = vld [vmem:[%s21077_s4 + $0x1f8] sm:$0xff]   ;;  %v9887_v24 = vshll.u32 %v20316_v12, 16  ;;  %v9897_v12 = vshrl.u32 %v20331_v16, 16  ;;  %v9909_v16 = vshrl.u32 %v20338_v20, 16 }
 0x6ad   : > { %12518 = vmatprep.mubr.bf16.mxu1 %v10233_v18  ;;  %v9844_v18 = vshll.u32 %v17112_v48, 16  ;;  %v8331_v48 = vld [vmem:[#allocation3 + $0xe4] sm:$0xe]  ;;  %12734 = vmatpush1.bf16.msra.mxu1 %v17141_v25  ;;  %v9921_v20 = vshrl.u32 %v21237_v28, 16 }
 0x6ae   : > { %v14670_v6 = vcombine.low %v8331_v48, %v20311_v17  ;;  %v20605_v17 = vld [vmem:[%s21077_s4 + $0x200] sm:$0xff]   ;;  %v9925_v48 = vrot.slane %v9923_v61, 1 }
 0x6af   : > { %v9846_v0 = vrot.slane %v9844_v18, 1  ;;  %15642 = vmatprep.subr.bf16.mxu1 %v20605_v17  ;;  %v17119_v18 = vld [vmem:[#allocation3 + $0xf8] ss:$0 sps:$4 sm:$0x11]  }
 0x6b0   : > { %v10252_v54 = vrot.slane %v14670_v6, 1  ;;  %v10256_v41 = vrot.slane %v17119_v18, 1  ;;  %v17124_v6 = vld [vmem:[#allocation3 + $0x11c] ss:$0 sps:$4 sm:$0x11]   ;;  %v9926_v22 = vor.u32 %v9925_v48, %v9921_v20 }
 0x6b1   : > { %v9847_v57 = vsel %vm2310_vm1, %v9842_v8, %v9846_v0  ;;  %v9892_v8 = vshll.u32 %v17118_v4, 16  ;;  %v8339_v48 = vld [vmem:[#allocation3 + $0x144] sm:$0xe] }
 0x6b4   : > { %12519 = vmatmul.mubr.bf16.gmra.mrb[100].mxu1 %v9811_v1  ;;  %v9856_v1 = vshll.u32 %v17113_v56, 16 }
 0x6b5   : > { %12526 = vmatprep.mubr.bf16.mxu1 %v10236_v45  ;;  %v9854_v45 = vor.u32 %v9853_v49, %v9849_v30  ;;  %v8333_v49 = vld [vmem:[#allocation3 + $0xfc] sm:$0xe]  ;;  %v17121_v30 = vld [vmem:[#allocation3 + $0x104] ss:$0 sps:$4 sm:$0x11]  }
 0x6b6   : > { %v9858_v5 = vrot.slane %v9856_v1, 1  ;;  %v9904_v1 = vshll.u32 %v17119_v18, 16  ;;  %v10259_v10 = vrot.slane %v17121_v30, 1  ;;  %v9940_v18 = vshll.u32 %v17124_v6, 16 }
 0x6b8   : > { %v9859_v42 = vsel %vm2310_vm1, %v9854_v45, %v9858_v5  ;;  %v9906_v47 = vrot.slane %v9904_v1, 1  ;;  %v8334_v5 = vld [vmem:[#allocation3 + $0x108] sm:$0xe] }
 0x6bc   : > { %12527 = vmatmul.mubr.bf16.gmra.mrb[104].mxu1 %v9823_v43  ;;  %v9875_v43 = vshll.u32 %v20305_v32, 16  ;;  %v8332_v32 = vld [vmem:[#allocation3 + $0xf0] sm:$0xe] }
 0x6bd   : > { %12534 = vmatprep.mubr.bf16.mxu1 %v10239_v39  ;;  %v9870_v39 = vrot.slane %v9868_v7, 1  ;;  %v14671_v56 = vcombine.low %v8332_v32, %v20321_v38  ;;  %v14672_v38 = vcombine.low %v8333_v49, %v20334_v31  ;;  %v14673_v31 = vcombine.low %v8334_v5, %v20341_v55  ;;  %v21240_v32 = vld [vmem:[#allocation55_spill] sm:$0xff] }
 0x6be   : > { %v9877_v52 = vrot.slane %v9875_v43, 1 }
 0x6bf   : > { %v9871_v51 = vsel %vm2310_vm1, %v9866_v33, %v9870_v39  ;;  %v10255_v0 = vrot.slane %v14671_v56, 1  ;;  %v10258_v45 = vrot.slane %v14672_v38, 1  ;;  %v10261_v43 = vrot.slane %v14673_v31, 1  ;;  %v17125_v56 = vld [vmem:[#allocation3 + $0x128] ss:$0 sps:$4 sm:$0x11]  }
 0x6c0   : > { %v9878_v11 = vor.u32 %v9877_v52, %v9873_v2  ;;  %v10262_v33 = vrot.slane %v17122_v3, 1  ;;  %v9952_v1 = vshll.u32 %v17125_v56, 16 }
 0x6c1   : > { %v10257_v29 = vsel %vm2823_vm10, %v10255_v0, %v10256_v41  ;;  %v10260_v59 = vsel %vm2823_vm10, %v10258_v45, %v10259_v10  ;;  %v10268_v0 = vrot.slane %v17125_v56, 1  ;;  %v9942_v41 = vrot.slane %v9940_v18, 1  ;;  %v17131_v18 = vld [vmem:[#allocation3 + $0x158] ss:$0 sps:$4 sm:$0x11]  }
 0x6c2   : > { %v9883_v19 = vsel %vm2310_vm1, %v9878_v11, %v9882_v26  ;;  %v10263_v52 = vsel %vm2823_vm10, %v10261_v43, %v10262_v33  ;;  %v9954_v5 = vrot.slane %v9952_v1, 1  ;;  %v17133_v1 = vld [vmem:[#allocation3 + $0x164] ss:$0 sps:$4 sm:$0x11]  }
 0x6c4   : > { %12535 = vmatmul.mubr.bf16.gmra.mrb[108].mxu1 %v9835_v44  ;;  %v10253_v44 = vrot.slane %v17118_v4, 1  ;;  %v21239_v4 = vld [vmem:[#allocation54_spill] sm:$0xff] }
 0x6c5   : > { %12542 = vmatprep.mubr.bf16.mxu1 %v10242_v63  ;;  %v9889_v63 = vrot.slane %v9887_v24, 1  ;;  %v9935_v2 = vshll.u32 %v21239_v4, 16  ;;  %v10265_v24 = vrot.slane %v17124_v6, 1 }
 0x6c6   : > { %v10254_v27 = vsel %vm2823_vm10, %v10252_v54, %v10253_v44  ;;  %v8336_v54 = vld [vmem:[#allocation3 + $0x120] sm:$0xe] }
 0x6c7   : > { %v9890_v13 = vor.u32 %v9889_v63, %v9885_v40  ;;  %v9937_v26 = vrot.slane %v9935_v2, 1  ;;  %v21241_v40 = vld [vmem:[#allocation56_spill] sm:$0xff] }
 0x6cc   : > { %12543 = vmatmul.mubr.bf16.gmra.mrb[112].mxu1 %v9847_v57  ;;  %v9894_v57 = vrot.slane %v9892_v8, 1  ;;  %v9947_v8 = vshll.u32 %v21241_v40, 16 }
 0x6cd   : > { %12550 = vmatprep.mubr.bf16.mxu1 %v10245_v14  ;;  %v9901_v14 = vrot.slane %v9899_v62, 1 }
 0x6ce   : > { %v9895_v46 = vsel %vm2310_vm1, %v9890_v13, %v9894_v57  ;;  %v8337_v57 = vld [vmem:[#allocation3 + $0x12c] sm:$0xe] }
 0x6cf   : > { %v9902_v58 = vor.u32 %v9901_v14, %v9897_v12  ;;  %v21242_v14 = vld [vmem:[#allocation60_spill] sm:$0xff]  ;;  %v9945_v12 = vshrl.u32 %v21241_v40, 16 }
 0x6d0   : > { %v14676_v38 = vcombine.low %v8337_v57, %v21242_v14  ;;  %v10280_v57 = vrot.slane %v17131_v18, 1 }
 0x6d1   : > { %v9907_v21 = vsel %vm2310_vm1, %v9902_v58, %v9906_v47 }
 0x6d2   : > { %v10270_v10 = vrot.slane %v14676_v38, 1 }
 0x6d4   : > { %12551 = vmatmul.mubr.bf16.gmra.mrb[116].mxu1 %v9859_v42  ;;  %v9913_v42 = vrot.slane %v9911_v50, 1  ;;  %v21243_v50 = vld [vmem:[#allocation62_spill] sm:$0xff] }
 0x6d5   : > { %12558 = vmatprep.mubr.bf16.mxu1 %v10248_v37  ;;  %v9916_v37 = vshll.u32 %v17121_v30, 16  ;;  %v17127_v30 = vld [vmem:[#allocation3 + $0x134] ss:$0 sps:$4 sm:$0x11]   ;;  %v9959_v58 = vshll.u32 %v21243_v50, 16  ;;  %v9957_v28 = vshrl.u32 %v21243_v50, 16 }
 0x6d6   : > { %v9914_v7 = vor.u32 %v9913_v42, %v9909_v16  ;;  %v10271_v47 = vrot.slane %v17127_v30, 1  ;;  %v9964_v61 = vshll.u32 %v17127_v30, 16 }
 0x6d7   : > { %v9918_v23 = vrot.slane %v9916_v37, 1  ;;  %v9961_v31 = vrot.slane %v9959_v58, 1  ;;  %v17128_v37 = vld [vmem:[#allocation3 + $0x140] ss:$0 sps:$4 sm:$0x11]   ;;  %v10000_v58 = vshll.u32 %v17131_v18, 16 }
 0x6d8   : > { %v10272_v16 = vsel %vm2823_vm10, %v10270_v10, %v10271_v47  ;;  %v9976_v2 = vshll.u32 %v17128_v37, 16 }
 0x6d9   : > { %v9919_v39 = vsel %vm2310_vm1, %v9914_v7, %v9918_v23  ;;  %v21245_v7 = vld [vmem:[#allocation64_spill] sm:$0xff]  ;;  %v9962_v33 = vor.u32 %v9961_v31, %v9957_v28  ;;  %v8342_v31 = vld [vmem:[#allocation3 + $0x168] sm:$0xe] }
 0x6da   : > { %v9971_v43 = vshll.u32 %v21245_v7, 16  ;;  %v17134_v28 = vld [vmem:[#allocation3 + $0x170] ss:$0 sps:$4 sm:$0x11]  }
 0x6dc   : > { %12559 = vmatmul.mubr.bf16.gmra.mrb[120].mxu1 %v9871_v51  ;;  %v21238_v51 = vld [vmem:[#allocation53_spill] sm:$0xff] }
 0x6dd   : > { %12566 = vmatprep.mubr.bf16.mxu1 %v10251_v35  ;;  %v14674_v55 = vcombine.low %v8335_v36, %v21238_v51  ;;  %v9928_v35 = vshll.u32 %v17122_v3, 16  ;;  %v10274_v36 = vrot.slane %v17128_v37, 1 }
 0x6df   : > { %v10264_v25 = vrot.slane %v14674_v55, 1  ;;  %v9930_v11 = vrot.slane %v9928_v35, 1  ;;  %v9973_v55 = vrot.slane %v9971_v43, 1  ;;  %v17130_v35 = vld [vmem:[#allocation3 + $0x14c] ss:$0 sps:$4 sm:$0x11]  }
 0x6e0   : > { %v21252_v43 = vld [vmem:[#allocation75_spill] sm:$0xff] }
 0x6e1   : > { %v9931_v44 = vsel %vm2310_vm1, %v9926_v22, %v9930_v11  ;;  %v10266_v63 = vsel %vm2823_vm10, %v10264_v25, %v10265_v24  ;;  %v21247_v22 = vld [vmem:[#allocation70_spill] sm:$0xff] }
 0x6e2   : > { %v9983_v25 = vshll.u32 %v21247_v22, 16  ;;  %v9981_v40 = vshrl.u32 %v21247_v22, 16 }
 0x6e4   : > { %12567 = vmatmul.mubr.bf16.gmra.mrb[124].mxu1 %v9883_v19  ;;  %v14675_v19 = vcombine.low %v8336_v54, %v21240_v32  ;;  %v10277_v54 = vrot.slane %v17130_v35, 1 }
 0x6e5   : > { %12574 = vmatprep.mubr.bf16.mxu1 %v10254_v27  ;;  %v9933_v27 = vshrl.u32 %v21239_v4, 16  ;;  %v9969_v4 = vshrl.u32 %v21245_v7, 16  ;;  %v10012_v7 = vshll.u32 %v17133_v1, 16 }
 0x6e6   : > { %v10267_v13 = vrot.slane %v14675_v19, 1  ;;  %v9985_v19 = vrot.slane %v9983_v25, 1 }
 0x6e7   : > { %v9938_v62 = vor.u32 %v9937_v26, %v9933_v27  ;;  %v9974_v24 = vor.u32 %v9973_v55, %v9969_v4  ;;  %v8340_v26 = vld [vmem:[#allocation3 + $0x150] sm:$0xe]  ;;  %v10024_v4 = vshll.u32 %v17134_v28, 16 }
 0x6e9   : > { %v9943_v49 = vsel %vm2310_vm1, %v9938_v62, %v9942_v41  ;;  %v21249_v62 = vld [vmem:[#allocation72_spill] sm:$0xff] }
 0x6ea   : > { %v9993_v50 = vshrl.u32 %v21249_v62, 16 }
 0x6ec   : > { %12575 = vmatmul.mubr.bf16.gmra.mrb[128].mxu1 %v9895_v46  ;;  %v9949_v46 = vrot.slane %v9947_v8, 1  ;;  %v9988_v8 = vshll.u32 %v17130_v35, 16  ;;  %v10017_v35 = vshrl.u32 %v21252_v43, 16 }
 0x6ed   : > { %12582 = vmatprep.mubr.bf16.mxu1 %v10257_v29  ;;  %v10269_v29 = vsel %vm2823_vm10, %v10267_v13, %v10268_v0  ;;  %v9995_v13 = vshll.u32 %v21249_v62, 16  ;;  %v9986_v0 = vor.u32 %v9985_v19, %v9981_v40  ;;  %v17137_v19 = vld [vmem:[#allocation3 + $0x188] ss:$0 sps:$4 sm:$0x11]  }
 0x6ee   : > { %v9950_v45 = vor.u32 %v9949_v46, %v9945_v12  ;;  %v8341_v46 = vld [vmem:[#allocation3 + $0x15c] sm:$0xe]  ;;  %v10292_v62 = vrot.slane %v17137_v19, 1 }
 0x6ef   : > { %v9997_v38 = vrot.slane %v9995_v13, 1 }
 0x6f0   : > { %v9955_v42 = vsel %vm2310_vm1, %v9950_v45, %v9954_v5  ;;  %v21251_v45 = vld [vmem:[#allocation74_spill] sm:$0xff] }
 0x6f1   : > { %v10007_v10 = vshll.u32 %v21251_v45, 16  ;;  %v9998_v47 = vor.u32 %v9997_v38, %v9993_v50  ;;  %v10048_v38 = vshll.u32 %v17137_v19, 16 }
 0x6f4   : > { %12583 = vmatmul.mubr.bf16.gmra.mrb[132].mxu1 %v9907_v21  ;;  %v8338_v21 = vld [vmem:[#allocation3 + $0x138] sm:$0xe] }
 0x6f5   : > { %12590 = vmatprep.mubr.bf16.mxu1 %v10260_v59  ;;  %v21244_v59 = vld [vmem:[#allocation63_spill] sm:$0xff] }
 0x6f6   : > { %v14677_v3 = vcombine.low %v8338_v21, %v21244_v59  ;;  %v10283_v21 = vrot.slane %v17133_v1, 1 }
 0x6f8   : > { %v10273_v23 = vrot.slane %v14677_v3, 1  ;;  %v10009_v3 = vrot.slane %v10007_v10, 1  ;;  %v8346_v10 = vld [vmem:[#allocation3 + $0x198] sm:$0xe] }
 0x6fa   : > { %v10275_v20 = vsel %vm2823_vm10, %v10273_v23, %v10274_v36 }
 0x6fc   : > { %12591 = vmatmul.mubr.bf16.gmra.mrb[136].mxu1 %v9919_v39  ;;  %v9966_v39 = vrot.slane %v9964_v61, 1  ;;  %v10005_v61 = vshrl.u32 %v21251_v45, 16  ;;  %v8348_v45 = vld [vmem:[#allocation3 + $0x18] sm:$0xf] }
 0x6fd   : > { %12598 = vmatprep.mubr.bf16.mxu1 %v10263_v52  ;;  %v21246_v52 = vld [vmem:[#allocation68_spill] sm:$0xff] }
 0x6fe   : > { %v9967_v51 = vsel %vm2310_vm1, %v9962_v33, %v9966_v39  ;;  %v14678_v6 = vcombine.low %v8339_v48, %v21246_v52  ;;  %v10019_v33 = vshll.u32 %v21252_v43, 16  ;;  %v10010_v23 = vor.u32 %v10009_v3, %v10005_v61 }
 0x6ff   : > { %v10286_v39 = vrot.slane %v17134_v28, 1  ;;  %v10014_v48 = vrot.slane %v10012_v7, 1  ;;  %v10067_v61 = vshll.u32 %v20452_v34, 16 }
 0x700   : > { %v10276_v11 = vrot.slane %v14678_v6, 1  ;;  %v10021_v52 = vrot.slane %v10019_v33, 1 }
 0x701   : > { %v10015_v55 = vsel %vm2310_vm1, %v10010_v23, %v10014_v48  ;;  %v10069_v48 = vrot.slane %v10067_v61, 1 }
 0x702   : > { %v10278_v27 = vsel %vm2823_vm10, %v10276_v11, %v10277_v54  ;;  %v10022_v22 = vor.u32 %v10021_v52, %v10017_v35  ;;  %v10026_v11 = vrot.slane %v10024_v4, 1  ;;  %v8344_v54 = vld [vmem:[#allocation3 + $0x180] sm:$0xe] }
 0x704   : > { %12599 = vmatmul.mubr.bf16.gmra.mrb[140].mxu1 %v9931_v44  ;;  %v9978_v44 = vrot.slane %v9976_v2, 1  ;;  %v10031_v2 = vshll.u32 %v20432_v9, 16 }
 0x705   : > { %12606 = vmatprep.mubr.bf16.mxu1 %v10266_v63  ;;  %v21248_v63 = vld [vmem:[#allocation71_spill] sm:$0xff] }
 0x706   : > { %v9979_v32 = vsel %vm2310_vm1, %v9974_v24, %v9978_v44  ;;  %v14679_v56 = vcombine.low %v8340_v26, %v21248_v63  ;;  %v10027_v44 = vsel %vm2310_vm1, %v10022_v22, %v10026_v11  ;;  %v10033_v26 = vrot.slane %v10031_v2, 1  ;;  %v17305_v2 = vld [vmem:[#allocation3 + $0x20] ss:$0 sps:$4 sm:$0x11]  }
 0x707   : > { %v10029_v63 = vshrl.u32 %v20432_v9, 16  ;;  %v10628_v22 = vshll.u32 %v17305_v2, 16  ;;  %v17321_v2 = vld [vmem:[#allocation3 + $0x5c] ss:$0 sps:$4 sm:$0x11]  }
 0x708   : > { %v10279_v41 = vrot.slane %v14679_v56, 1 }
 0x709   : > { %v10034_v40 = vor.u32 %v10033_v26, %v10029_v63  ;;  %v8352_v26 = vld [vmem:[#allocation3 + $0x30] sm:$0xf] }
 0x70a   : > { %v10281_v12 = vsel %vm2823_vm10, %v10279_v41, %v10280_v57 }
 0x70c   : > { %12607 = vmatmul.mubr.bf16.gmra.mrb[144].mxu1 %v9943_v49  ;;  %v9990_v49 = vrot.slane %v9988_v8, 1 }
 0x70d   : > { %12614 = vmatprep.mubr.bf16.mxu1 %v10269_v29  ;;  %v21250_v29 = vld [vmem:[#allocation73_spill] sm:$0xff] }
 0x70e   : > { %v9991_v14 = vsel %vm2310_vm1, %v9986_v0, %v9990_v49  ;;  %v14680_v30 = vcombine.low %v8341_v46, %v21250_v29  ;;  %v8345_v0 = vld [vmem:[#allocation3 + $0x18c] sm:$0xe]  ;;  %v17301_v49 = vld [vmem:[#allocation3 + $0x190] sm:$0xf]  ;;  %v21254_v29 = vld [vmem:[#allocation77_spill] sm:$0xff] }
 0x710   : > { %v10282_v5 = vrot.slane %v14680_v30, 1  ;;  %v10055_v30 = vshll.u32 %v21254_v29, 16 }
 0x712   : > { %v10284_v37 = vsel %vm2823_vm10, %v10282_v5, %v10283_v21  ;;  %v10057_v5 = vrot.slane %v10055_v30, 1  ;;  %v17302_v21 = vld [vmem:[#allocation3 + $0x1c] sm:$0xf] }
 0x714   : > { %12615 = vmatmul.mubr.bf16.gmra.mrb[148].mxu1 %v9955_v42  ;;  %v10002_v42 = vrot.slane %v10000_v58, 1  ;;  %v10050_v58 = vrot.slane %v10048_v38, 1 }
 0x715   : > { %12622 = vmatprep.mubr.bf16.mxu1 %v10272_v16  ;;  %v14681_v16 = vcombine.low %v8342_v31, %v20421_v53  ;;  %v17303_v31 = vld [vmem:[#allocation3 + $0x19c] sm:$0xf] }
 0x716   : > { %v10003_v59 = vsel %vm2310_vm1, %v9998_v47, %v10002_v42  ;;  %v14686_v42 = vcombine.low %v8348_v45, %v17302_v21  ;;  %v17314_v21 = vld [vmem:[%s21077_s4 + $0x218] sm:$0xff]  }
 0x717   : > { %v10285_v36 = vrot.slane %v14681_v16, 1  ;;  %v17140_v16 = vld [vmem:[#allocation3 + $0x1a0] ss:$0 sps:$4 sm:$0x11]  }
 0x718   : > { %v10298_v33 = vrot.slane %v17140_v16, 1  ;;  %v10623_v23 = vshll.u32 %v14686_v42, 16  ;;  %v10072_v35 = vshll.u32 %v17140_v16, 16  ;;  %v10621_v4 = vshrl.u32 %v14686_v42, 16  ;;  %v8358_v16 = vld [vmem:[#allocation3 + $0x54] sm:$0xf] }
 0x719   : > { %v10287_v6 = vsel %vm2823_vm10, %v10285_v36, %v10286_v39 }
 0x71a   : > { %v10625_v52 = vrot.slane %v10623_v23, 1 }
 0x71c   : > { %12623 = vmatmul.mubr.bf16.gmra.mrb[152].mxu1 %v9967_v51  ;;  %v8343_v51 = vld [vmem:[#allocation3 + $0x174] sm:$0xe] }
 0x71d   : > { %12630 = vmatprep.mubr.bf16.mxu1 %v10275_v20  ;;  %v14682_v53 = vcombine.low %v8343_v51, %v20428_v15  ;;  %v17136_v20 = vld [vmem:[#allocation3 + $0x17c] ss:$0 sps:$4 sm:$0x11]   ;;  %v14683_v15 = vcombine.low %v8344_v54, %v20436_v60  ;;  %v14684_v60 = vcombine.low %v8345_v0, %v17301_v49  ;;  %v8350_v51 = vld [vmem:[#allocation3 + $0x24] sm:$0xf]  ;;  %v10074_v54 = vrot.slane %v10072_v35, 1 }
 0x71e   : > { %v10289_v24 = vrot.slane %v17136_v20, 1  ;;  %v10036_v56 = vshll.u32 %v17136_v20, 16  ;;  %v10065_v20 = vshrl.u32 %v20452_v34, 16  ;;  %v17308_v0 = vld [vmem:[#allocation3 + $0x40] sm:$0xf] }
 0x71f   : > { %v10288_v25 = vrot.slane %v14682_v53, 1  ;;  %v10291_v8 = vrot.slane %v14683_v15, 1  ;;  %v10294_v1 = vrot.slane %v14684_v60, 1  ;;  %v17304_v53 = vld [vmem:[#allocation3 + $0x28] sm:$0xf] }
 0x720   : > { %v10038_v13 = vrot.slane %v10036_v56, 1 }
 0x721   : > { %v10293_v46 = vsel %vm2823_vm10, %v10291_v8, %v10292_v62 }
 0x722   : > { %v10039_v41 = vsel %vm2310_vm1, %v10034_v40, %v10038_v13  ;;  %v8354_v13 = vld [vmem:[#allocation3 + $0x3c] sm:$0xf] }
 0x724   : > { %12631 = vmatmul.mubr.bf16.gmra.mrb[156].mxu1 %v9979_v32  ;;  %v10290_v32 = vsel %vm2823_vm10, %v10288_v25, %v10289_v24  ;;  %v10070_v25 = vor.u32 %v10069_v48, %v10065_v20  ;;  %v10626_v24 = vor.u32 %v10625_v52, %v10621_v4  ;;  %v8360_v52 = vld [vmem:[#allocation3 + $0x60] sm:$0xf] }
 0x725   : > { %12638 = vmatprep.mubr.bf16.mxu1 %v10278_v27  ;;  %v21253_v27 = vld [vmem:[#allocation76_spill] sm:$0xff] }
 0x726   : > { %v10043_v18 = vshll.u32 %v21253_v27, 16  ;;  %v10041_v9 = vshrl.u32 %v21253_v27, 16  ;;  %v10075_v15 = vsel %vm2310_vm1, %v10070_v25, %v10074_v54  ;;  %v17307_v27 = vld [vmem:[#allocation3 + $0x2c] ss:$0 sps:$4 sm:$0x11]  }
 0x727   : > { %v17322_v25 = vld [vmem:[%s21077_s4 + $0x238] sm:$0xff]  }
 0x728   : > { %v10045_v57 = vrot.slane %v10043_v18, 1  ;;  %v10640_v18 = vshll.u32 %v17307_v27, 16 }
 0x72a   : > { %v10642_v62 = vrot.slane %v10640_v18, 1 }
 0x72c   : > { %12639 = vmatmul.mubr.bf16.gmra.mrb[160].mxu1 %v9991_v14  ;;  %v17139_v14 = vld [vmem:[#allocation3 + $0x194] ss:$0 sps:$4 sm:$0x11]  }
 0x72d   : > { %12646 = vmatprep.mubr.bf16.mxu1 %v10281_v12  ;;  %v10046_v12 = vor.u32 %v10045_v57, %v10041_v9  ;;  %v10295_v50 = vrot.slane %v17139_v14, 1  ;;  %v10060_v28 = vshll.u32 %v17139_v14, 16  ;;  %v17310_v9 = vld [vmem:[%s21077_s4 + $0x208] sm:$0xff]  }
 0x72f   : > { %v10051_v47 = vsel %vm2310_vm1, %v10046_v12, %v10050_v58  ;;  %v10296_v3 = vsel %vm2823_vm10, %v10294_v1, %v10295_v50  ;;  %v10062_v36 = vrot.slane %v10060_v28, 1  ;;  %v17311_v12 = vld [vmem:[%s21077_s4 + $0x210] sm:$0xff]   ;;  %v8356_v1 = vld [vmem:[#allocation3 + $0x48] sm:$0xf]  ;;  %v17312_v50 = vld [vmem:[#allocation3 + $0x4c] sm:$0xf] }
 0x734   : > { %12647 = vmatmul.mubr.bf16.gmra.mrb[164].mxu1 %v10003_v59  ;;  %v14685_v59 = vcombine.low %v8346_v10, %v17303_v31 }
 0x735   : > { %12654 = vmatprep.mubr.bf16.mxu1 %v10284_v37  ;;  %v10053_v37 = vshrl.u32 %v21254_v29, 16 }
 0x736   : > { %v10297_v43 = vrot.slane %v14685_v59, 1 }
 0x737   : > { %v10058_v7 = vor.u32 %v10057_v5, %v10053_v37  ;;  %v17316_v37 = vld [vmem:[#allocation3 + $0x58] sm:$0xf] }
 0x738   : > { %v14691_v28 = vcombine.low %v8358_v16, %v17316_v37  ;;  %v17330_v16 = vld [vmem:[#allocation3 + $0x8c] ss:$0 sps:$4 sm:$0x11]  }
 0x739   : > { %v10063_v39 = vsel %vm2310_vm1, %v10058_v7, %v10062_v36  ;;  %v17318_v36 = vld [vmem:[%s21077_s4 + $0x228] sm:$0xff]   ;;  %v10736_v37 = vshll.u32 %v17330_v16, 16  ;;  %v8380_v16 = vld [vmem:[#allocation3 + $0xf0] sm:$0xf] }
 0x73a   : > { %v10683_v48 = vshll.u32 %v14691_v28, 16  ;;  %v10681_v4 = vshrl.u32 %v14691_v28, 16 }
 0x73c   : > { %12655 = vmatmul.mubr.bf16.gmra.mrb[168].mxu1 %v10015_v55  ;;  %v10299_v55 = vsel %vm2823_vm10, %v10297_v43, %v10298_v33  ;;  %v17317_v33 = vld [vmem:[#allocation3 + $0x50] ss:$0 sps:$4 sm:$0x11]   ;;  %v10685_v35 = vrot.slane %v10683_v48, 1 }
 0x73d   : > { %12662 = vmatprep.mubr.bf16.mxu1 %v10287_v6  ;;  %v14687_v6 = vcombine.low %v8350_v51, %v17304_v53  ;;  %v10676_v23 = vshll.u32 %v17317_v33, 16  ;;  %v17320_v53 = vld [vmem:[#allocation3 + $0x64] sm:$0xf]  ;;  %v17331_v33 = vld [vmem:[#allocation3 + $0xa0] sm:$0xf] }
 0x73f   : > { %v10635_v11 = vshll.u32 %v14687_v6, 16  ;;  %v10633_v34 = vshrl.u32 %v14687_v6, 16  ;;  %v10678_v51 = vrot.slane %v10676_v23, 1 }
 0x741   : > { %v10637_v56 = vrot.slane %v10635_v11, 1 }
 0x743   : > { %v10638_v40 = vor.u32 %v10637_v56, %v10633_v34  ;;  %v17324_v56 = vld [vmem:[#allocation3 + $0x68] ss:$0 sps:$4 sm:$0x11]  }
 0x744   : > { %12663 = vmatmul.mubr.bf16.gmra.mrb[172].mxu1 %v10027_v44  ;;  %v10630_v44 = vrot.slane %v10628_v22, 1  ;;  %v10688_v22 = vshll.u32 %v17321_v2, 16  ;;  %v10700_v34 = vshll.u32 %v17324_v56, 16 }
 0x745   : > { %12670 = vmatprep.mubr.bf16.mxu1 %v10290_v32  ;;  %v17306_v32 = vld [vmem:[#allocation3 + $0x34] sm:$0xf]  ;;  %v10643_v57 = vsel %vm2310_vm1, %v10638_v40, %v10642_v62  ;;  %v17325_v62 = vld [vmem:[#allocation3 + $0x7c] sm:$0xf] }
 0x746   : > { %v14688_v19 = vcombine.low %v8352_v26, %v17306_v32  ;;  %v10631_v63 = vsel %vm2310_vm1, %v10626_v24, %v10630_v44  ;;  %v10686_v24 = vor.u32 %v10685_v35, %v10681_v4  ;;  %v10690_v54 = vrot.slane %v10688_v22, 1  ;;  %v8362_v44 = vld [vmem:[#allocation3 + $0x6c] sm:$0xf]  ;;  %v17323_v26 = vld [vmem:[#allocation3 + $0x70] sm:$0xf] }
 0x747   : > { %v10702_v40 = vrot.slane %v10700_v34, 1  ;;  %v17333_v35 = vld [vmem:[#allocation3 + $0xac] sm:$0xf] }
 0x748   : > { %v10647_v8 = vshll.u32 %v14688_v19, 16  ;;  %v10645_v60 = vshrl.u32 %v14688_v19, 16  ;;  %v10691_v32 = vsel %vm2310_vm1, %v10686_v24, %v10690_v54  ;;  %v17334_v24 = vld [vmem:[#allocation3 + $0xa4] ss:$0 sps:$4 sm:$0x11]  }
 0x74a   : > { %v10649_v49 = vrot.slane %v10647_v8, 1  ;;  %v8364_v8 = vld [vmem:[#allocation3 + $0x78] sm:$0xf] }
 0x74c   : > { %12671 = vmatmul.mubr.bf16.gmra.mrb[176].mxu1 %v10039_v41  ;;  %v14689_v41 = vcombine.low %v8354_v13, %v17308_v0  ;;  %v10650_v38 = vor.u32 %v10649_v49, %v10645_v60  ;;  %v14694_v13 = vcombine.low %v8364_v8, %v17325_v62  ;;  %v17326_v49 = vld [vmem:[#allocation3 + $0x74] ss:$0 sps:$4 sm:$0x11]  }
 0x74d   : > { %12678 = vmatprep.mubr.bf16.mxu1 %v10293_v46  ;;  %v17309_v46 = vld [vmem:[#allocation3 + $0x38] ss:$0 sps:$4 sm:$0x11]   ;;  %v10712_v60 = vshll.u32 %v17326_v49, 16 }
 0x74e   : > { %v10652_v14 = vshll.u32 %v17309_v46, 16  ;;  %v10659_v29 = vshll.u32 %v14689_v41, 16  ;;  %v10657_v10 = vshrl.u32 %v14689_v41, 16 }
 0x750   : > { %v10654_v30 = vrot.slane %v10652_v14, 1  ;;  %v10661_v45 = vrot.slane %v10659_v29, 1  ;;  %v10719_v14 = vshll.u32 %v14694_v13, 16  ;;  %v17327_v29 = vld [vmem:[#allocation3 + $0x88] sm:$0xf] }
 0x752   : > { %v10655_v58 = vsel %vm2310_vm1, %v10650_v38, %v10654_v30  ;;  %v8366_v38 = vld [vmem:[#allocation3 + $0x84] sm:$0xf] }
 0x753   : > { %v14695_v30 = vcombine.low %v8366_v38, %v17327_v29 }
 0x754   : > { %12679 = vmatmul.mubr.bf16.gmra.mrb[180].mxu1 %v10051_v47  ;;  %v17313_v47 = vld [vmem:[#allocation3 + $0x44] ss:$0 sps:$4 sm:$0x11]  }
 0x755   : > { %12686 = vmatprep.mubr.bf16.mxu1 %v10296_v3  ;;  %v10664_v5 = vshll.u32 %v17313_v47, 16  ;;  %v17315_v3 = vld [vmem:[%s21077_s4 + $0x220] sm:$0xff]  }
 0x757   : > { %v10666_v59 = vrot.slane %v10664_v5, 1  ;;  %v8368_v5 = vld [vmem:[#allocation3 + $0x90] sm:$0xf] }
 0x75c   : > { %12687 = vmatmul.mubr.bf16.gmra.mrb[184].mxu1 %v10063_v39 }
 0x75d   : > { %12694 = vmatprep.mubr.bf16.mxu1 %v10299_v55  ;;  %v17319_v55 = vld [vmem:[%s21077_s4 + $0x230] sm:$0xff]  }
 0x764   : > { %12695 = vmatmul.mubr.bf16.gmra.mrb[188].mxu1 %v10075_v15  ;;  %v14693_v15 = vcombine.low %v8362_v44, %v17323_v26 }
 0x765   : > { %12735 = vmatprep.mubr.bf16.mxu1 %v10631_v63 }
 0x766   : > { %v10707_v18 = vshll.u32 %v14693_v15, 16 }
 0x76c   : > { %12736 = vmatmul.mubr.bf16.vlgmr.msra.gmra.mrb[64].mxu1 %v14686_v42  ;;  %v10662_v42 = vor.u32 %v10661_v45, %v10657_v10  ;;  %v10731_v10 = vshll.u32 %v14695_v30, 16 }
 0x76d   : > { %12743 = vmatprep.mubr.bf16.mxu1 %v10643_v57  ;;  %15650 = vmatpush3.bf16.msra.mxu1 %v20605_v17  ;;  %v14690_v17 = vcombine.low %v8356_v1, %v17312_v50  ;;  %v10705_v57 = vshrl.u32 %v14693_v15, 16  ;;  %v10721_v1 = vrot.slane %v10719_v14, 1  ;;  %v10717_v50 = vshrl.u32 %v14694_v13, 16 }
 0x76e   : > { %15643 = vmatprep.subr.bf16.mxu1 %v17310_v9  ;;  %v10667_v61 = vsel %vm2310_vm1, %v10662_v42, %v10666_v59  ;;  %v10733_v59 = vrot.slane %v10731_v10, 1 }
 0x76f   : > { %v10671_v31 = vshll.u32 %v14690_v17, 16  ;;  %v10669_v43 = vshrl.u32 %v14690_v17, 16  ;;  %v10722_v45 = vor.u32 %v10721_v1, %v10717_v50 }
 0x771   : > { %15651 = vmatpush3.bf16.msra.mxu1 %v17310_v9  ;;  %v10673_v7 = vrot.slane %v10671_v31, 1  ;;  %v10714_v9 = vrot.slane %v10712_v60, 1 }
 0x772   : > { %15644 = vmatprep.subr.bf16.mxu1 %v17311_v12 }
 0x773   : > { %v10674_v39 = vor.u32 %v10673_v7, %v10669_v43  ;;  %v10738_v7 = vrot.slane %v10736_v37, 1  ;;  %v8370_v43 = vld [vmem:[#allocation3 + $0x9c] sm:$0xf]  ;;  %v17342_v37 = vld [vmem:[#allocation3 + $0xf4] sm:$0xf] }
 0x774   : > { %12744 = vmatmul.mubr.bf16.gmra.mrb[68].mxu1 %v14687_v6  ;;  %v14692_v6 = vcombine.low %v8360_v52, %v17320_v53  ;;  %v14697_v23 = vcombine.low %v8370_v43, %v17331_v33 }
 0x775   : > { %12751 = vmatprep.mubr.bf16.mxu1 %v10655_v58  ;;  %15652 = vmatpush3.bf16.msra.mxu1 %v17311_v12  ;;  %v10679_v20 = vsel %vm2310_vm1, %v10674_v39, %v10678_v51  ;;  %v17332_v51 = vld [vmem:[#allocation3 + $0x98] ss:$0 sps:$4 sm:$0x11]  }
 0x776   : > { %15645 = vmatprep.subr.bf16.mxu1 %v17314_v21  ;;  %v10695_v11 = vshll.u32 %v14692_v6, 16  ;;  %v10693_v63 = vshrl.u32 %v14692_v6, 16  ;;  %v10755_v53 = vshll.u32 %v14697_v23, 16 }
 0x778   : > { %v10757_v22 = vrot.slane %v10755_v53, 1 }
 0x779   : > { %15653 = vmatpush3.bf16.msra.mxu1 %v17314_v21  ;;  %v17329_v21 = vld [vmem:[#allocation3 + $0x94] sm:$0xf] }
 0x77a   : > { %15646 = vmatprep.subr.bf16.mxu1 %v17315_v3  ;;  %v14696_v42 = vcombine.low %v8368_v5, %v17329_v21 }
 0x77c   : > { %12752 = vmatmul.mubr.bf16.gmra.mrb[72].mxu1 %v14688_v19  ;;  %v10697_v19 = vrot.slane %v10695_v11, 1  ;;  %v10741_v48 = vshrl.u32 %v14696_v42, 16  ;;  %v10760_v11 = vshll.u32 %v17334_v24, 16 }
 0x77d   : > { %12759 = vmatprep.mubr.bf16.mxu1 %v10667_v61  ;;  %15654 = vmatpush3.bf16.msra.mxu1 %v17315_v3  ;;  %v10729_v3 = vshrl.u32 %v14695_v30, 16  ;;  %v10743_v61 = vshll.u32 %v14696_v42, 16 }
 0x77e   : > { %15647 = vmatprep.subr.bf16.mxu1 %v17318_v36  ;;  %v10698_v27 = vor.u32 %v10697_v19, %v10693_v63  ;;  %v10762_v26 = vrot.slane %v10760_v11, 1 }
 0x77f   : > { %v10745_v39 = vrot.slane %v10743_v61, 1 }
 0x780   : > { %v10703_v0 = vsel %vm2310_vm1, %v10698_v27, %v10702_v40  ;;  %v17336_v27 = vld [vmem:[#allocation3 + $0xb0] ss:$0 sps:$4 sm:$0x11]  }
 0x781   : > { %15655 = vmatpush3.bf16.msra.mxu1 %v17318_v36  ;;  %v10746_v52 = vor.u32 %v10745_v39, %v10741_v48  ;;  %v17343_v39 = vld [vmem:[#allocation3 + $0x100] sm:$0xf] }
 0x782   : > { %15648 = vmatprep.subr.bf16.mxu1 %v17319_v55 }
 0x784   : > { %12760 = vmatmul.mubr.bf16.gmra.mrb[76].mxu1 %v14689_v41  ;;  %v10709_v41 = vrot.slane %v10707_v18, 1  ;;  %v10772_v18 = vshll.u32 %v17336_v27, 16 }
 0x785   : > { %12767 = vmatprep.mubr.bf16.mxu1 %v10679_v20  ;;  %15656 = vmatpush3.bf16.msra.mxu1 %v17319_v55  ;;  %v10748_v55 = vshll.u32 %v17332_v51, 16  ;;  %v8372_v20 = vld [vmem:[#allocation3 + $0xa8] sm:$0xf] }
 0x786   : > { %15649 = vmatprep.subr.bf16.mxu1 %v17322_v25  ;;  %v10710_v46 = vor.u32 %v10709_v41, %v10705_v57  ;;  %v14698_v4 = vcombine.low %v8372_v20, %v17333_v35  ;;  %v10774_v62 = vrot.slane %v10772_v18, 1 }
 0x788   : > { %v10715_v12 = vsel %vm2310_vm1, %v10710_v46, %v10714_v9  ;;  %v10767_v44 = vshll.u32 %v14698_v4, 16  ;;  %v10765_v34 = vshrl.u32 %v14698_v4, 16  ;;  %v17338_v46 = vld [vmem:[#allocation3 + $0xbc] ss:$0 sps:$4 sm:$0x11]  }
 0x789   : > { %15657 = vmatpush3.bf16.msra.mxu1 %v17322_v25  ;;  %v10753_v25 = vshrl.u32 %v14697_v23, 16  ;;  %v10784_v14 = vshll.u32 %v17338_v46, 16  ;;  %v8378_v9 = vld [vmem:[#allocation3 + $0xcc] sm:$0xf] }
 0x78a   : > { %v10769_v56 = vrot.slane %v10767_v44, 1 }
 0x78b   : > { %v10758_v54 = vor.u32 %v10757_v22, %v10753_v25  ;;  %v10786_v1 = vrot.slane %v10784_v14, 1 }
 0x78c   : > { %12768 = vmatmul.mubr.bf16.gmra.mrb[80].mxu1 %v14690_v17  ;;  %v17328_v17 = vld [vmem:[#allocation3 + $0x80] ss:$0 sps:$4 sm:$0x11]   ;;  %v10770_v40 = vor.u32 %v10769_v56, %v10765_v34 }
 0x78d   : > { %12775 = vmatprep.mubr.bf16.mxu1 %v10691_v32  ;;  %v10724_v58 = vshll.u32 %v17328_v17, 16  ;;  %v17335_v32 = vld [vmem:[#allocation3 + $0xb8] sm:$0xf]  ;;  %v10763_v63 = vsel %vm2310_vm1, %v10758_v54, %v10762_v26  ;;  %v17346_v54 = vld [vmem:[#allocation3 + $0x104] ss:$0 sps:$4 sm:$0x11]  }
 0x78e   : > { %v10775_v57 = vsel %vm2310_vm1, %v10770_v40, %v10774_v62  ;;  %v10832_v44 = vshll.u32 %v17346_v54, 16  ;;  %v17348_v40 = vld [vmem:[#allocation3 + $0x110] ss:$0 sps:$4 sm:$0x11]  }
 0x78f   : > { %v10726_v47 = vrot.slane %v10724_v58, 1 }
 0x791   : > { %v10727_v31 = vsel %vm2310_vm1, %v10722_v45, %v10726_v47  ;;  %v17340_v45 = vld [vmem:[#allocation3 + $0xc8] ss:$0 sps:$4 sm:$0x11]  }
 0x792   : > { %v10796_v10 = vshll.u32 %v17340_v45, 16 }
 0x794   : > { %12776 = vmatmul.mubr.bf16.gmra.mrb[84].mxu1 %v14691_v28  ;;  %v10734_v28 = vor.u32 %v10733_v59, %v10729_v3  ;;  %v10798_v21 = vrot.slane %v10796_v10, 1  ;;  %v17341_v59 = vld [vmem:[#allocation3 + $0xd4] ss:$0 sps:$4 sm:$0x11]  }
 0x795   : > { %12783 = vmatprep.mubr.bf16.mxu1 %v10703_v0  ;;  %v17337_v0 = vld [vmem:[#allocation3 + $0xc4] sm:$0xf]  ;;  %v10808_v3 = vshll.u32 %v17341_v59, 16  ;;  %v8392_v59 = vld [vmem:[#allocation3 + $0x138] sm:$0xf] }
 0x796   : > { %v10739_v36 = vsel %vm2310_vm1, %v10734_v28, %v10738_v7  ;;  %v14702_v28 = vcombine.low %v8380_v16, %v17342_v37 }
 0x797   : > { %v10810_v43 = vrot.slane %v10808_v3, 1  ;;  %v17353_v3 = vld [vmem:[#allocation3 + $0x13c] sm:$0xf] }
 0x798   : > { %v10815_v33 = vshll.u32 %v14702_v28, 16  ;;  %v14708_v16 = vcombine.low %v8392_v59, %v17353_v3  ;;  %v20733_v3 = vld [vmem:[#allocation3 + $0x184] sm:$0xf] }
 0x79a   : > { %v10817_v51 = vrot.slane %v10815_v33, 1 }
 0x79c   : > { %12784 = vmatmul.mubr.bf16.gmra.mrb[88].mxu1 %v14692_v6  ;;  %v10750_v6 = vrot.slane %v10748_v55, 1  ;;  %v10813_v55 = vshrl.u32 %v14702_v28, 16 }
 0x79d   : > { %12791 = vmatprep.mubr.bf16.mxu1 %v10715_v12 }
 0x79e   : > { %v10751_v2 = vsel %vm2310_vm1, %v10746_v52, %v10750_v6  ;;  %v17344_v52 = vld [vmem:[#allocation3 + $0xf8] ss:$0 sps:$4 sm:$0x11]   ;;  %v10818_v6 = vor.u32 %v10817_v51, %v10813_v55 }
 0x79f   : > { %v10820_v53 = vshll.u32 %v17344_v52, 16 }
 0x7a1   : > { %v10822_v35 = vrot.slane %v10820_v53, 1  ;;  %v10885_v53 = vshrl.u32 %v14708_v16, 16 }
 0x7a3   : > { %v10823_v25 = vsel %vm2310_vm1, %v10818_v6, %v10822_v35  ;;  %v17356_v6 = vld [vmem:[#allocation3 + $0x140] ss:$0 sps:$4 sm:$0x11]  }
 0x7a4   : > { %12792 = vmatmul.mubr.bf16.gmra.mrb[92].mxu1 %v14693_v15  ;;  %v8374_v15 = vld [vmem:[#allocation3 + $0xb4] sm:$0xf] }
 0x7a5   : > { %12799 = vmatprep.mubr.bf16.mxu1 %v10727_v31  ;;  %v14699_v19 = vcombine.low %v8374_v15, %v17335_v32  ;;  %v10834_v32 = vrot.slane %v10832_v44, 1 }
 0x7a7   : > { %v10779_v8 = vshll.u32 %v14699_v19, 16  ;;  %v10777_v60 = vshrl.u32 %v14699_v19, 16 }
 0x7a9   : > { %v10781_v49 = vrot.slane %v10779_v8, 1  ;;  %v10844_v8 = vshll.u32 %v17348_v40, 16 }
 0x7ab   : > { %v10782_v38 = vor.u32 %v10781_v49, %v10777_v60 }
 0x7ac   : > { %12800 = vmatmul.mubr.bf16.gmra.mrb[96].mxu1 %v14694_v13  ;;  %v8376_v13 = vld [vmem:[#allocation3 + $0xc0] sm:$0xf] }
 0x7ad   : > { %12807 = vmatprep.mubr.bf16.mxu1 %v10739_v36  ;;  %v14700_v41 = vcombine.low %v8376_v13, %v17337_v0  ;;  %v10787_v50 = vsel %vm2310_vm1, %v10782_v38, %v10786_v1  ;;  %v8382_v36 = vld [vmem:[#allocation3 + $0xfc] sm:$0xf]  ;;  %v10846_v0 = vrot.slane %v10844_v8, 1  ;;  %v8390_v1 = vld [vmem:[#allocation3 + $0x12c] sm:$0xf] }
 0x7ae   : > { %v14703_v48 = vcombine.low %v8382_v36, %v17343_v39  ;;  %v8394_v39 = vld [vmem:[#allocation3 + $0x144] sm:$0xf] }
 0x7af   : > { %v10791_v29 = vshll.u32 %v14700_v41, 16  ;;  %v10789_v58 = vshrl.u32 %v14700_v41, 16 }
 0x7b0   : > { %v10827_v20 = vshll.u32 %v14703_v48, 16  ;;  %v10825_v11 = vshrl.u32 %v14703_v48, 16 }
 0x7b1   : > { %v10793_v17 = vrot.slane %v10791_v29, 1 }
 0x7b2   : > { %v10829_v24 = vrot.slane %v10827_v20, 1  ;;  %v10892_v20 = vshll.u32 %v17356_v6, 16 }
 0x7b3   : > { %v10794_v5 = vor.u32 %v10793_v17, %v10789_v58 }
 0x7b4   : > { %12808 = vmatmul.mubr.bf16.gmra.mrb[100].mxu1 %v14695_v30  ;;  %v17339_v30 = vld [vmem:[#allocation3 + $0xd0] sm:$0xf]  ;;  %v10830_v26 = vor.u32 %v10829_v24, %v10825_v11 }
 0x7b5   : > { %12815 = vmatprep.mubr.bf16.mxu1 %v10751_v2  ;;  %v14701_v12 = vcombine.low %v8378_v9, %v17339_v30  ;;  %v10799_v61 = vsel %vm2310_vm1, %v10794_v5, %v10798_v21  ;;  %v17345_v2 = vld [vmem:[#allocation3 + $0x10c] sm:$0xf]  ;;  %v17350_v9 = vld [vmem:[#allocation3 + $0x11c] ss:$0 sps:$4 sm:$0x11]  }
 0x7b6   : > { %v10835_v34 = vsel %vm2310_vm1, %v10830_v26, %v10834_v32  ;;  %v10856_v38 = vshll.u32 %v17350_v9, 16  ;;  %v17358_v26 = vld [vmem:[#allocation3 + $0x14c] ss:$0 sps:$4 sm:$0x11]  }
 0x7b7   : > { %v10803_v47 = vshll.u32 %v14701_v12, 16 }
 0x7b9   : > { %v10805_v31 = vrot.slane %v10803_v47, 1  ;;  %v17352_v47 = vld [vmem:[#allocation3 + $0x128] ss:$0 sps:$4 sm:$0x11]  }
 0x7ba   : > { %v10868_v5 = vshll.u32 %v17352_v47, 16 }
 0x7bc   : > { %12816 = vmatmul.mubr.bf16.gmra.mrb[104].mxu1 %v14696_v42  ;;  %v10801_v42 = vshrl.u32 %v14701_v12, 16 }
 0x7bd   : > { %12823 = vmatprep.mubr.bf16.mxu1 %v10763_v63  ;;  %v17347_v63 = vld [vmem:[#allocation3 + $0x118] sm:$0xf] }
 0x7be   : > { %v10806_v7 = vor.u32 %v10805_v31, %v10801_v42  ;;  %v10870_v31 = vrot.slane %v10868_v5, 1 }
 0x7c4   : > { %12824 = vmatmul.mubr.bf16.gmra.mrb[108].mxu1 %v14697_v23  ;;  %v10811_v23 = vsel %vm2310_vm1, %v10806_v7, %v10810_v43  ;;  %v17354_v7 = vld [vmem:[#allocation3 + $0x134] ss:$0 sps:$4 sm:$0x11]  }
 0x7c5   : > { %12831 = vmatprep.mubr.bf16.mxu1 %v10775_v57  ;;  %v17349_v57 = vld [vmem:[#allocation3 + $0x124] sm:$0xf]  ;;  %v10880_v43 = vshll.u32 %v17354_v7, 16 }
 0x7c7   : > { %v10882_v36 = vrot.slane %v10880_v43, 1 }
 0x7cc   : > { %12832 = vmatmul.mubr.bf16.gmra.mrb[112].mxu1 %v14698_v4  ;;  %v8384_v4 = vld [vmem:[#allocation3 + $0x108] sm:$0xf] }
 0x7cd   : > { %12839 = vmatprep.mubr.bf16.mxu1 %v10787_v50  ;;  %v14704_v22 = vcombine.low %v8384_v4, %v17345_v2  ;;  %v17351_v50 = vld [vmem:[#allocation3 + $0x130] sm:$0xf]  ;;  %v10894_v2 = vrot.slane %v10892_v20, 1 }
 0x7ce   : > { %v14707_v17 = vcombine.low %v8390_v1, %v17351_v50 }
 0x7cf   : > { %v10839_v15 = vshll.u32 %v14704_v22, 16  ;;  %v10837_v18 = vshrl.u32 %v14704_v22, 16 }
 0x7d0   : > { %v10875_v42 = vshll.u32 %v14707_v17, 16 }
 0x7d1   : > { %v10841_v27 = vrot.slane %v10839_v15, 1  ;;  %v10904_v15 = vshll.u32 %v17358_v26, 16 }
 0x7d3   : > { %v10842_v62 = vor.u32 %v10841_v27, %v10837_v18 }
 0x7d4   : > { %12840 = vmatmul.mubr.bf16.gmra.mrb[116].mxu1 %v14699_v19  ;;  %v8386_v19 = vld [vmem:[#allocation3 + $0x114] sm:$0xf] }
 0x7d5   : > { %12847 = vmatprep.mubr.bf16.mxu1 %v10799_v61  ;;  %v14705_v56 = vcombine.low %v8386_v19, %v17347_v63  ;;  %v10847_v60 = vsel %vm2310_vm1, %v10842_v62, %v10846_v0  ;;  %v10873_v61 = vshrl.u32 %v14707_v17, 16  ;;  %v10906_v63 = vrot.slane %v10904_v15, 1  ;;  %v17360_v62 = vld [vmem:[#allocation3 + $0x158] ss:$0 sps:$4 sm:$0x11]  }
 0x7d6   : > { %v20758_v15 = vld [vmem:[#allocation3 + $0x19c] sm:$0xf] }
 0x7d7   : > { %v10851_v13 = vshll.u32 %v14705_v56, 16  ;;  %v10849_v14 = vshrl.u32 %v14705_v56, 16 }
 0x7d9   : > { %v10853_v46 = vrot.slane %v10851_v13, 1  ;;  %v10916_v13 = vshll.u32 %v17360_v62, 16  ;;  %v8408_v62 = vld [vmem:[#allocation3 + $0x198] sm:$0xf] }
 0x7db   : > { %v10854_v29 = vor.u32 %v10853_v46, %v10849_v14 }
 0x7dc   : > { %12848 = vmatmul.mubr.bf16.gmra.mrb[120].mxu1 %v14700_v41  ;;  %v8388_v41 = vld [vmem:[#allocation3 + $0x120] sm:$0xf] }
 0x7dd   : > { %12855 = vmatprep.mubr.bf16.mxu1 %v10811_v23  ;;  %v14706_v49 = vcombine.low %v8388_v41, %v17349_v57  ;;  %v10887_v23 = vshll.u32 %v14708_v16, 16  ;;  %v10918_v57 = vrot.slane %v10916_v13, 1 }
 0x7df   : > { %v10863_v30 = vshll.u32 %v14706_v49, 16  ;;  %v10861_v10 = vshrl.u32 %v14706_v49, 16  ;;  %v10889_v52 = vrot.slane %v10887_v23, 1 }
 0x7e1   : > { %v10865_v45 = vrot.slane %v10863_v30, 1  ;;  %v10890_v35 = vor.u32 %v10889_v52, %v10885_v53  ;;  %v8406_v52 = vld [vmem:[#allocation3 + $0x18c] sm:$0xf] }
 0x7e3   : > { %v10866_v21 = vor.u32 %v10865_v45, %v10861_v10  ;;  %v10895_v11 = vsel %vm2310_vm1, %v10890_v35, %v10894_v2 }
 0x7e4   : > { %12856 = vmatmul.mubr.bf16.gmra.mrb[124].mxu1 %v14701_v12  ;;  %v10858_v12 = vrot.slane %v10856_v38, 1 }
 0x7e5   : > { %12863 = vmatprep.mubr.bf16.mxu1 %v10823_v25  ;;  %v10871_v37 = vsel %vm2310_vm1, %v10866_v21, %v10870_v31  ;;  %v17357_v25 = vld [vmem:[#allocation3 + $0x154] sm:$0xf]  ;;  %v17364_v21 = vld [vmem:[#allocation3 + $0x170] ss:$0 sps:$4 sm:$0x11]  }
 0x7e6   : > { %v10859_v58 = vsel %vm2310_vm1, %v10854_v29, %v10858_v12  ;;  %v17362_v29 = vld [vmem:[#allocation3 + $0x164] ss:$0 sps:$4 sm:$0x11]  }
 0x7e7   : > { %v10928_v30 = vshll.u32 %v17362_v29, 16  ;;  %v15340_v29 = vld [vmem:[%s17484_s19 + $0x8] sm:$0xff]  }
 0x7e9   : > { %v10930_v50 = vrot.slane %v10928_v30, 1  ;;  %v8410_v30 = vld [vmem:[#allocation3 + $0x1a4] sm:$0xf] }
 0x7ec   : > { %12864 = vmatmul.mubr.bf16.gmra.mrb[128].mxu1 %v14702_v28  ;;  %v10877_v28 = vrot.slane %v10875_v42, 1  ;;  %v10940_v42 = vshll.u32 %v17364_v21, 16  ;;  %v15058_v21 = vunpack.c.l.bf16 %v15340_v29 }
 0x7ed   : > { %12871 = vmatprep.mubr.bf16.mxu1 %v10835_v34  ;;  %v17359_v34 = vld [vmem:[#allocation3 + $0x160] sm:$0xf] }
 0x7ee   : > { %v10878_v33 = vor.u32 %v10877_v28, %v10873_v61 }
 0x7f0   : > { %v10883_v55 = vsel %vm2310_vm1, %v10878_v33, %v10882_v36  ;;  %v17365_v33 = vld [vmem:[#allocation3 + $0x17c] ss:$0 sps:$4 sm:$0x11]  }
 0x7f1   : > { %v10952_v23 = vshll.u32 %v17365_v33, 16 }
 0x7f4   : > { %12872 = vmatmul.mubr.bf16.gmra.mrb[132].mxu1 %v14703_v48  ;;  %v17355_v48 = vld [vmem:[#allocation3 + $0x148] sm:$0xf] }
 0x7f5   : > { %12879 = vmatprep.mubr.bf16.mxu1 %v10847_v60  ;;  %v14709_v51 = vcombine.low %v8394_v39, %v17355_v48  ;;  %v17361_v60 = vld [vmem:[#allocation3 + $0x16c] sm:$0xf]  ;;  %v20740_v48 = vld [vmem:[#allocation3 + $0x190] sm:$0xf] }
 0x7f6   : > { %v20745_v53 = vcombine.low %v8406_v52, %v20740_v48 }
 0x7f7   : > { %v10899_v4 = vshll.u32 %v14709_v51, 16  ;;  %v10897_v44 = vshrl.u32 %v14709_v51, 16 }
 0x7f9   : > { %v10901_v54 = vrot.slane %v10899_v4, 1 }
 0x7fb   : > { %v10902_v32 = vor.u32 %v10901_v54, %v10897_v44 }
 0x7fc   : > { %12880 = vmatmul.mubr.bf16.gmra.mrb[136].mxu1 %v14704_v22  ;;  %v8396_v22 = vld [vmem:[#allocation3 + $0x150] sm:$0xf] }
 0x7fd   : > { %12887 = vmatprep.mubr.bf16.mxu1 %v10859_v58  ;;  %v14710_v24 = vcombine.low %v8396_v22, %v17357_v25  ;;  %v10907_v18 = vsel %vm2310_vm1, %v10902_v32, %v10906_v63  ;;  %v17363_v58 = vld [vmem:[#allocation3 + $0x178] sm:$0xf]  ;;  %v15053_v22 = vld [vmem:[%s17484_s19] sm:$0xff]  }
 0x7fe   : > { %v20754_v25 = vld [vmem:[%s21078_s5] ss:$0 sm:$0xff]  ;;  %v20765_v63 = vld [vmem:[#allocation3 + $0x194] ss:$0 sps:$4 sm:$0x11]  }
 0x7ff   : > { %v10911_v19 = vshll.u32 %v14710_v24, 16  ;;  %v10909_v8 = vshrl.u32 %v14710_v24, 16  ;;  %v20763_v32 = vld [vmem:[%s21079_s6] ss:$0 sm:$0xff] }
 0x801   : > { %v10913_v40 = vrot.slane %v10911_v19, 1 }
 0x803   : > { %v10914_v0 = vor.u32 %v10913_v40, %v10909_v8 }
 0x804   : > { %12888 = vmatmul.mubr.bf16.gmra.mrb[140].mxu1 %v14705_v56  ;;  %v8398_v56 = vld [vmem:[#allocation3 + $0x15c] sm:$0xf] }
 0x805   : > { %12895 = vmatprep.mubr.bf16.mxu1 %v10871_v37  ;;  %v14711_v27 = vcombine.low %v8398_v56, %v17359_v34  ;;  %v10919_v14 = vsel %vm2310_vm1, %v10914_v0, %v10918_v57  ;;  %v8404_v37 = vld [vmem:[#allocation3 + $0x180] sm:$0xf]  ;;  %v15054_v56 = vunpack.c.l.bf16 %v15053_v22  ;;  %v20770_v0 = vcombine.low %v8408_v62, %v20758_v15 }
 0x806   : > { %v20737_v7 = vcombine.low %v8404_v37, %v20733_v3  ;;  %v15055_v57 = vunpack.c.h.bf16 %v15053_v22 }
 0x807   : > { %v10923_v41 = vshll.u32 %v14711_v27, 16  ;;  %v10921_v38 = vshrl.u32 %v14711_v27, 16 }
 0x808   : > { %v10959_v39 = vshll.u32 %v20737_v7, 16  ;;  %v10957_v35 = vshrl.u32 %v20737_v7, 16 }
 0x809   : > { %v10925_v9 = vrot.slane %v10923_v41, 1 }
 0x80a   : > { %v10961_v20 = vrot.slane %v10959_v39, 1 }
 0x80b   : > { %v10926_v12 = vor.u32 %v10925_v9, %v10921_v38 }
 0x80c   : > { %12896 = vmatmul.mubr.bf16.gmra.mrb[144].mxu1 %v14706_v49  ;;  %v8400_v49 = vld [vmem:[#allocation3 + $0x168] sm:$0xf]  ;;  %v10962_v26 = vor.u32 %v10961_v20, %v10957_v35  ;;  %v10981_v35 = vshrl.u32 %v20770_v0, 16 }
 0x80d   : > { %12903 = vmatprep.mubr.bf16.mxu1 %v10883_v55  ;;  %v14712_v46 = vcombine.low %v8400_v49, %v17361_v60  ;;  %v10931_v10 = vsel %vm2310_vm1, %v10926_v12, %v10930_v50  ;;  %v20742_v55 = vld [vmem:[#allocation3 + $0x188] ss:$0 sps:$4 sm:$0x11]  }
 0x80e   : > { %v10964_v4 = vshll.u32 %v20742_v55, 16  ;;  %v20779_v12 = vld [vmem:[#allocation3 + $0x1a8] sm:$0xf] }
 0x80f   : > { %v10935_v1 = vshll.u32 %v14712_v46, 16  ;;  %v10933_v5 = vshrl.u32 %v14712_v46, 16 }
 0x810   : > { %v10966_v8 = vrot.slane %v10964_v4, 1  ;;  %v20803_v4 = vld [vmem:[#allocation3 + $0x1ac] ss:$0 sps:$4 sm:$0x11]  }
 0x811   : > { %v10937_v47 = vrot.slane %v10935_v1, 1  ;;  %v11000_v62 = vshll.u32 %v20803_v4, 16 }
 0x812   : > { %v10967_v60 = vsel %vm2310_vm1, %v10962_v26, %v10966_v8 }
 0x813   : > { %v10938_v31 = vor.u32 %v10937_v47, %v10933_v5 }
 0x814   : > { %12904 = vmatmul.mubr.bf16.gmra.mrb[148].mxu1 %v14707_v17  ;;  %v8402_v17 = vld [vmem:[#allocation3 + $0x174] sm:$0xf] }
 0x815   : > { %12911 = vmatprep.mubr.bf16.mxu1 %v10895_v11  ;;  %v14713_v45 = vcombine.low %v8402_v17, %v17363_v58  ;;  %v21255_v11 = vld [vmem:[#allocation4_spill] sm:$0xff]  ;;  %v20781_v17 = vld [vmem:[#allocation3 + $0x1a0] ss:$0 sps:$4 sm:$0x11]   ;;  %v10983_v58 = vshll.u32 %v20770_v0, 16 }
 0x816   : > { %v10988_v39 = vshll.u32 %v20781_v17, 16 }
 0x817   : > { %v10947_v59 = vshll.u32 %v14713_v45, 16  ;;  %v10945_v43 = vshrl.u32 %v14713_v45, 16 }
 0x819   : > { %v10949_v61 = vrot.slane %v10947_v59, 1  ;;  %v20786_v59 = vcombine.low %v8410_v30, %v20779_v12 }
 0x81b   : > { %v10950_v36 = vor.u32 %v10949_v61, %v10945_v43  ;;  %v21258_v61 = vld [vmem:[#allocation5_spill] sm:$0xff] }
 0x81c   : > { %12912 = vmatmul.mubr.bf16.gmra.mrb[152].mxu1 %v14708_v16  ;;  %v10942_v16 = vrot.slane %v10940_v42, 1 }
 0x81d   : > { %12919 = vmatprep.mubr.bf16.mxu1 %v10907_v18 }
 0x81e   : > { %v10943_v28 = vsel %vm2310_vm1, %v10938_v31, %v10942_v16 }
 0x824   : > { %12920 = vmatmul.mubr.bf16.gmra.mrb[156].mxu1 %v14709_v51  ;;  %v10954_v51 = vrot.slane %v10952_v23, 1 }
 0x825   : > { %12927 = vmatprep.mubr.bf16.mxu1 %v10919_v14  ;;  %v10976_v14 = vshll.u32 %v20765_v63, 16 }
 0x826   : > { %v10955_v6 = vsel %vm2310_vm1, %v10950_v36, %v10954_v51  ;;  %v10985_v36 = vrot.slane %v10983_v58, 1 }
 0x827   : > { %v10978_v31 = vrot.slane %v10976_v14, 1 }
 0x82c   : > { %12928 = vmatmul.mubr.bf16.gmra.mrb[160].mxu1 %v14710_v24  ;;  %v10971_v24 = vshll.u32 %v20745_v53, 16 }
 0x82d   : > { %12935 = vmatprep.mubr.bf16.mxu1 %v10931_v10  ;;  %v21257_v10 = vld [vmem:[#allocation11_spill] sm:$0xff] }
 0x82e   : > { %v10973_v13 = vrot.slane %v10971_v24, 1 }
 0x834   : > { %12936 = vmatmul.mubr.bf16.gmra.mrb[164].mxu1 %v14711_v27  ;;  %v21256_v27 = vld [vmem:[#allocation6_spill] sm:$0xff] }
 0x835   : > { %12943 = vmatprep.mubr.bf16.mxu1 %v10943_v28 }
 0x83c   : > { %12944 = vmatmul.mubr.bf16.gmra.mrb[168].mxu1 %v14712_v46  ;;  %v10969_v46 = vshrl.u32 %v20745_v53, 16 }
 0x83d   : > { %12951 = vmatprep.mubr.bf16.mxu1 %v10955_v6  ;;  %v15059_v6 = vunpack.c.h.bf16 %v15340_v29 }
 0x83e   : > { %v10974_v50 = vor.u32 %v10973_v13, %v10969_v46 }
 0x83f   : > { %v12737_v2 = vpop.f32.mrb[64].mxu1 }
 0x840   : > { %v13027_v54 = vadd.f32 %v21255_v11, %v12737_v2  ;;  %v12739_v44 = vpop.f32.mrb[65].mxu1  ;;  %v10979_v23 = vsel %vm2310_vm1, %v10974_v50, %v10978_v31  ;;  %v10995_v2 = vshll.u32 %v20786_v59, 16  ;;  %v15341_v11 = vld [vmem:[%s17484_s19 + $0x10] sm:$0xff]   ;;  %v11002_v50 = vrot.slane %v11000_v62, 1 }
 0x841   : > { %v12740_v19 = vpop.f32.mrb[66].mxu1  ;;  %v10986_v44 = vor.u32 %v10985_v36, %v10981_v35  ;;  %v15063_v29 = vunpack.c.h.bf16 %v15341_v11 }
 0x842   : > { %v13416_v34 = vmul.f32 %v20754_v25, %v13027_v54  ;;  %v13030_v18 = vadd.f32 %v21256_v27, %v12740_v19  ;;  %v12742_v40 = vpop.f32.mrb[67].mxu1  ;;  %v21259_v19 = vld [vmem:[#allocation8_spill] sm:$0xff]  ;;  %v10990_v27 = vrot.slane %v10988_v39, 1  ;;  %v10997_v8 = vrot.slane %v10995_v2, 1  ;;  %v8472_v39 = vld [vmem:[#allocation3 + $0x180] sm:$0xe] }
 0x843   : > { %v10993_v40 = vshrl.u32 %v20786_v59, 16 }
 0x844   : > { %v13487_v41 = vadd.f32 %v20763_v32, %v13416_v34  ;;  %v13417_v49 = vmul.f32 %v20754_v25, %v13030_v18  ;;  %12952 = vmatmul.mubr.bf16.gmra.mrb[172].mxu1 %v14713_v45  ;;  %v10991_v14 = vsel %vm2310_vm1, %v10986_v44, %v10990_v27  ;;  %v11217_v44 = vrot.slane %v20742_v55, 1 }
 0x845   : > { %12959 = vmatprep.mubr.bf16.mxu1 %v10967_v60 }
 0x846   : > { %v13551_v9 = vadd.f32 %v15054_v56, %v13487_v41  ;;  %v13488_v38 = vadd.f32 %v20763_v32, %v13417_v49  ;;  %v21260_v49 = vld [vmem:[#allocation10_spill] sm:$0xff] }
 0x847   : > { %v12745_v1 = vpop.f32.mrb[68].mxu1 }
 0x848   : > { %v13552_v45 = vadd.f32 %v15055_v57, %v13488_v38  ;;  %v13035_v47 = vadd.f32 %v21257_v10, %v12745_v1  ;;  %v12747_v5 = vpop.f32.mrb[69].mxu1  ;;  %v13615_v16 = vmax.f32 %v13551_v9, 0.0  ;;  %v10998_v1 = vor.u32 %v10997_v8, %v10993_v40  ;;  %v15342_v10 = vld [vmem:[%s17484_s19 + $0x18] sm:$0xff]  }
 0x849   : > { %v12748_v42 = vpop.f32.mrb[70].mxu1  ;;  %v21264_v8 = vld [vmem:[#allocation15_spill] sm:$0xff] }
 0x84a   : > { %v13616_v37 = vmax.f32 %v13552_v45, 0.0  ;;  %v13418_v28 = vmul.f32 %v20754_v25, %v13035_v47  ;;  %v13038_v43 = vadd.f32 %v21258_v61, %v12748_v42  ;;  %v12750_v33 = vpop.f32.mrb[71].mxu1 }
 0x84b   : > { %v21262_v33 = vld [vmem:[#allocation9_spill] sm:$0xff] }
 0x84c   : > { %v15183_v51 = vpack.c.bf16 %v13616_v37, %v13615_v16  ;;  %v13489_v52 = vadd.f32 %v20763_v32, %v13418_v28  ;;  %v13419_v20 = vmul.f32 %v20754_v25, %v13038_v43  ;;  %12960 = vmatmul.mubr.bf16.gmra.mrb[176].mxu1 %v20737_v7  ;;  %v15062_v7 = vunpack.c.l.bf16 %v15341_v11 }
 0x84d   : > { %12967 = vmatprep.mubr.bf16.mxu1 %v10979_v23  ;;  %v15066_v16 = vunpack.c.l.bf16 %v15342_v10  ;;  %v11003_v28 = vsel %vm2310_vm1, %v10998_v1, %v11002_v50  ;;  %v8475_v1 = vld [vmem:[#allocation3 + $0x1a4] sm:$0xe] }
 0x84e   : > { %15184 = vst [vmem:[%s20795_s9] sm:$0xff] %v15183_v51   ;;  %v13553_v22 = vadd.f32 %v15058_v21, %v13489_v52  ;;  %v13490_v24 = vadd.f32 %v20763_v32, %v13419_v20  ;;  %v21261_v21 = vld [vmem:[#allocation7_spill] sm:$0xff]  ;;  %v14778_v51 = vcombine.low %v8472_v39, %v20733_v3  ;;  %v15067_v20 = vunpack.c.h.bf16 %v15342_v10  ;;  %v21263_v3 = vld [vmem:[#allocation13_spill] sm:$0xff] }
 0x84f   : > { %v12753_v54 = vpop.f32.mrb[72].mxu1 }
 0x850   : > { %v13554_v26 = vadd.f32 %v15059_v6, %v13490_v24  ;;  %v13043_v56 = vadd.f32 %v21259_v19, %v12753_v54  ;;  %v12755_v34 = vpop.f32.mrb[73].mxu1  ;;  %v13617_v13 = vmax.f32 %v13553_v22, 0.0  ;;  %v15343_v24 = vld [vmem:[%s17484_s19 + $0x20] sm:$0xff]   ;;  %v11216_v54 = vrot.slane %v14778_v51, 1 }
 0x851   : > { %v12756_v18 = vpop.f32.mrb[74].mxu1  ;;  %v15070_v34 = vunpack.c.l.bf16 %v15343_v24  ;;  %v11226_v51 = vrot.slane %v20803_v4, 1 }
 0x852   : > { %v13618_v41 = vmax.f32 %v13554_v26, 0.0  ;;  %v13420_v57 = vmul.f32 %v20754_v25, %v13043_v56  ;;  %v13046_v60 = vadd.f32 %v21260_v49, %v12756_v18  ;;  %v12758_v46 = vpop.f32.mrb[75].mxu1 }
 0x854   : > { %v15188_v9 = vpack.c.bf16 %v13618_v41, %v13617_v13  ;;  %v13491_v38 = vadd.f32 %v20763_v32, %v13420_v57  ;;  %v13421_v30 = vmul.f32 %v20754_v25, %v13046_v60  ;;  %12968 = vmatmul.mubr.bf16.gmra.mrb[180].mxu1 %v20745_v53  ;;  %v8474_v41 = vld [vmem:[#allocation3 + $0x198] sm:$0xe]  ;;  %v11218_v57 = vsel %vm2823_vm10, %v11216_v54, %v11217_v44 }
 0x855   : > { %12975 = vmatprep.mubr.bf16.mxu1 %v10991_v14  ;;  %v14780_v49 = vcombine.low %v8474_v41, %v20758_v15  ;;  %v15071_v14 = vunpack.c.h.bf16 %v15343_v24 }
 0x856   : > { %15371 = vst [vmem:[%s20795_s9 + $0x8] sm:$0xff] %v15188_v9   ;;  %v13555_v58 = vadd.f32 %v15062_v7, %v13491_v38  ;;  %v13492_v45 = vadd.f32 %v20763_v32, %v13421_v30  ;;  %v8473_v7 = vld [vmem:[#allocation3 + $0x18c] sm:$0xe]  ;;  %v15344_v30 = vld [vmem:[%s17484_s19 + $0x28] sm:$0xff]  }
 0x857   : > { %v12761_v47 = vpop.f32.mrb[76].mxu1  ;;  %v14779_v55 = vcombine.low %v8473_v7, %v20740_v48  ;;  %v11220_v48 = vrot.slane %v20765_v63, 1  ;;  %v11222_v15 = vrot.slane %v14780_v49, 1 }
 0x858   : > { %v13556_v5 = vadd.f32 %v15063_v29, %v13492_v45  ;;  %v13051_v42 = vadd.f32 %v21261_v21, %v12761_v47  ;;  %v12763_v31 = vpop.f32.mrb[77].mxu1  ;;  %v13619_v61 = vmax.f32 %v13555_v58, 0.0  ;;  %v11223_v45 = vrot.slane %v20781_v17, 1  ;;  %v21265_v47 = vld [vmem:[#allocation12_spill] sm:$0xff] }
 0x859   : > { %v12764_v37 = vpop.f32.mrb[78].mxu1  ;;  %v11219_v58 = vrot.slane %v14779_v55, 1  ;;  %v14781_v31 = vcombine.low %v8475_v1, %v20779_v12  ;;  %v21269_v55 = vld [vmem:[#allocation16_spill] sm:$0xff] }
 0x85a   : > { %v13620_v53 = vmax.f32 %v13556_v5, 0.0  ;;  %v13422_v43 = vmul.f32 %v20754_v25, %v13051_v42  ;;  %v13054_v23 = vadd.f32 %v21262_v33, %v12764_v37  ;;  %v12766_v36 = vpop.f32.mrb[79].mxu1  ;;  %v15074_v42 = vunpack.c.l.bf16 %v15344_v30 }
 0x85b   : > { %v11224_v17 = vsel %vm2823_vm10, %v11222_v15, %v11223_v45  ;;  %v15075_v36 = vunpack.c.h.bf16 %v15344_v30  ;;  %v11225_v12 = vrot.slane %v14781_v31, 1  ;;  %v21270_v30 = vld [vmem:[#allocation18_spill] sm:$0xff] }
 0x85c   : > { %v15193_v52 = vpack.c.bf16 %v13620_v53, %v13619_v61  ;;  %v13493_v6 = vadd.f32 %v20763_v32, %v13422_v43  ;;  %v13423_v35 = vmul.f32 %v20754_v25, %v13054_v23  ;;  %12976 = vmatmul.mubr.bf16.gmra.mrb[184].mxu1 %v20770_v0  ;;  %v21266_v61 = vld [vmem:[#allocation14_spill] sm:$0xff]  ;;  %v11221_v43 = vsel %vm2823_vm10, %v11219_v58, %v11220_v48 }
 0x85d   : > { %12983 = vmatprep.mubr.bf16.mxu1 %v11003_v28 }
 0x85e   : > { %15372 = vst [vmem:[%s20795_s9 + $0x10] sm:$0xff] %v15193_v52   ;;  %v13557_v2 = vadd.f32 %v15066_v16, %v13493_v6  ;;  %v13494_v22 = vadd.f32 %v20763_v32, %v13423_v35 }
 0x85f   : > { %v12769_v11 = vpop.f32.mrb[80].mxu1 }
 0x860   : > { %v13558_v26 = vadd.f32 %v15067_v20, %v13494_v22  ;;  %v13059_v19 = vadd.f32 %v21263_v3, %v12769_v11  ;;  %v12771_v56 = vpop.f32.mrb[81].mxu1  ;;  %v13621_v18 = vmax.f32 %v13557_v2, 0.0  ;;  %v15345_v20 = vld [vmem:[%s17484_s19 + $0x30] sm:$0xff]   ;;  %v21267_v22 = vld [vmem:[#allocation17_spill] sm:$0xff] }
 0x861   : > { %v12772_v27 = vpop.f32.mrb[82].mxu1  ;;  %v15078_v54 = vunpack.c.l.bf16 %v15345_v20  ;;  %v21268_v56 = vld [vmem:[#allocation19_spill] sm:$0xff] }
 0x862   : > { %v13622_v0 = vmax.f32 %v13558_v26, 0.0  ;;  %v13424_v40 = vmul.f32 %v20754_v25, %v13059_v19  ;;  %v13062_v62 = vadd.f32 %v21264_v8, %v12772_v27  ;;  %v12774_v13 = vpop.f32.mrb[83].mxu1  ;;  %v11227_v26 = vsel %vm2823_vm10, %v11225_v12, %v11226_v51 }
 0x863   : > { %v15346_v13 = vld [vmem:[%s17484_s19 + $0x38] sm:$0xff]  }
 0x864   : > { %v15198_v60 = vpack.c.bf16 %v13622_v0, %v13621_v18  ;;  %v13495_v46 = vadd.f32 %v20763_v32, %v13424_v40  ;;  %v13425_v9 = vmul.f32 %v20754_v25, %v13062_v62  ;;  %12984 = vmatmul.mubr.bf16.gmra.mrb[188].mxu1 %v20786_v59  ;;  %v15079_v0 = vunpack.c.h.bf16 %v15345_v20 }
 0x865   : > { %15634 = vmatprep.mubr.bf16.mxu1 %v11218_v57  ;;  %v15083_v15 = vunpack.c.h.bf16 %v15346_v13 }
 0x866   : > { %15373 = vst [vmem:[%s20795_s9 + $0x18] sm:$0xff] %v15198_v60   ;;  %v13559_v38 = vadd.f32 %v15070_v34, %v13495_v46  ;;  %v13496_v29 = vadd.f32 %v20763_v32, %v13425_v9  ;;  %v15082_v46 = vunpack.c.l.bf16 %v15346_v13 }
 0x867   : > { %v12777_v50 = vpop.f32.mrb[84].mxu1 }
 0x868   : > { %v13560_v10 = vadd.f32 %v15071_v14, %v13496_v29  ;;  %v13067_v5 = vadd.f32 %v21265_v47, %v12777_v50  ;;  %v12779_v21 = vpop.f32.mrb[85].mxu1  ;;  %v13623_v16 = vmax.f32 %v13559_v38, 0.0 }
 0x869   : > { %v12780_v59 = vpop.f32.mrb[86].mxu1 }
 0x86a   : > { %v13624_v37 = vmax.f32 %v13560_v10, 0.0  ;;  %v13426_v28 = vmul.f32 %v20754_v25, %v13067_v5  ;;  %v13070_v53 = vadd.f32 %v21266_v61, %v12780_v59  ;;  %v12782_v63 = vpop.f32.mrb[87].mxu1  ;;  %v15347_v5 = vld [vmem:[%s17484_s19 + $0x40] sm:$0xff]   ;;  %v21271_v59 = vld [vmem:[#allocation21_spill] sm:$0xff] }
 0x86c   : > { %v15203_v33 = vpack.c.bf16 %v13624_v37, %v13623_v16  ;;  %v13497_v23 = vadd.f32 %v20763_v32, %v13426_v28  ;;  %v13427_v39 = vmul.f32 %v20754_v25, %v13070_v53  ;;  %15635 = vmatmul.mubr.bf16.vlgmr.msra.gmra.mrb[192].mxu1 %v11221_v43  ;;  %v15086_v37 = vunpack.c.l.bf16 %v15347_v5  ;;  %v21272_v43 = vld [vmem:[#allocation23_spill] sm:$0xff] }
 0x86d   : > { %15638 = vmatprep.mubr.bf16.mxu1 %v11224_v17 }
 0x86e   : > { %15374 = vst [vmem:[%s20795_s9 + $0x20] sm:$0xff] %v15203_v33   ;;  %v13561_v52 = vadd.f32 %v15074_v42, %v13497_v23  ;;  %v13498_v6 = vadd.f32 %v20763_v32, %v13427_v39  ;;  %v15087_v39 = vunpack.c.h.bf16 %v15347_v5 }
 0x86f   : > { %v12785_v35 = vpop.f32.mrb[88].mxu1 }
 0x870   : > { %v13562_v2 = vadd.f32 %v15075_v36, %v13498_v6  ;;  %v13075_v24 = vadd.f32 %v21267_v22, %v12785_v35  ;;  %v12787_v11 = vpop.f32.mrb[89].mxu1  ;;  %v13625_v3 = vmax.f32 %v13561_v52, 0.0  ;;  %v15348_v6 = vld [vmem:[%s17484_s19 + $0x48] sm:$0xff]  }
 0x871   : > { %v12788_v44 = vpop.f32.mrb[90].mxu1  ;;  %v15090_v11 = vunpack.c.l.bf16 %v15348_v6 }
 0x872   : > { %v13626_v19 = vmax.f32 %v13562_v2, 0.0  ;;  %v13428_v4 = vmul.f32 %v20754_v25, %v13075_v24  ;;  %v13078_v34 = vadd.f32 %v21268_v56, %v12788_v44  ;;  %v12790_v27 = vpop.f32.mrb[91].mxu1  ;;  %v21273_v2 = vld [vmem:[#allocation20_spill] sm:$0xff] }
 0x874   : > { %v15208_v7 = vpack.c.bf16 %v13626_v19, %v13625_v3  ;;  %v13499_v18 = vadd.f32 %v20763_v32, %v13428_v4  ;;  %v13429_v40 = vmul.f32 %v20754_v25, %v13078_v34  ;;  %15639 = vmatmul.mubr.bf16.gmra.mrb[196].mxu1 %v11227_v26  ;;  %v21274_v19 = vld [vmem:[#allocation22_spill] sm:$0xff] }
 0x876   : > { %15375 = vst [vmem:[%s20795_s9 + $0x28] sm:$0xff] %v15208_v7   ;;  %v13563_v8 = vadd.f32 %v15078_v54, %v13499_v18  ;;  %v13500_v62 = vadd.f32 %v20763_v32, %v13429_v40  ;;  %v15091_v7 = vunpack.c.h.bf16 %v15348_v6 }
 0x877   : > { %v12793_v41 = vpop.f32.mrb[92].mxu1 }
 0x878   : > { %v13564_v57 = vadd.f32 %v15079_v0, %v13500_v62  ;;  %v13083_v49 = vadd.f32 %v21269_v55, %v12793_v41  ;;  %v12795_v60 = vpop.f32.mrb[93].mxu1  ;;  %v13627_v9 = vmax.f32 %v13563_v8, 0.0  ;;  %v15349_v8 = vld [vmem:[%s17484_s19 + $0x50] sm:$0xff]   ;;  %v21275_v41 = vld [vmem:[#allocation25_spill] sm:$0xff] }
 0x879   : > { %v12796_v14 = vpop.f32.mrb[94].mxu1 }
 0x87a   : > { %v13628_v38 = vmax.f32 %v13564_v57, 0.0  ;;  %v13430_v29 = vmul.f32 %v20754_v25, %v13083_v49  ;;  %v13086_v1 = vadd.f32 %v21270_v30, %v12796_v14  ;;  %v12798_v50 = vpop.f32.mrb[95].mxu1  ;;  %v15094_v49 = vunpack.c.l.bf16 %v15349_v8 }
 0x87c   : > { %v15213_v58 = vpack.c.bf16 %v13628_v38, %v13627_v9  ;;  %v13501_v48 = vadd.f32 %v20763_v32, %v13430_v29  ;;  %v13431_v45 = vmul.f32 %v20754_v25, %v13086_v1  ;;  %v21276_v38 = vld [vmem:[#allocation27_spill] sm:$0xff] }
 0x87e   : > { %15376 = vst [vmem:[%s20795_s9 + $0x30] sm:$0xff] %v15213_v58   ;;  %v13565_v10 = vadd.f32 %v15082_v46, %v13501_v48  ;;  %v13502_v47 = vadd.f32 %v20763_v32, %v13431_v45  ;;  %v15095_v58 = vunpack.c.h.bf16 %v15349_v8 }
 0x87f   : > { %v12801_v21 = vpop.f32.mrb[96].mxu1 }
 0x880   : > { %v13566_v42 = vadd.f32 %v15083_v15, %v13502_v47  ;;  %v13091_v31 = vadd.f32 %v21271_v59, %v12801_v21  ;;  %v12803_v16 = vpop.f32.mrb[97].mxu1  ;;  %v13629_v61 = vmax.f32 %v13565_v10, 0.0  ;;  %v15350_v10 = vld [vmem:[%s17484_s19 + $0x58] sm:$0xff]   ;;  %v21277_v21 = vld [vmem:[#allocation24_spill] sm:$0xff] }
 0x881   : > { %v12804_v28 = vpop.f32.mrb[98].mxu1 }
 0x882   : > { %v13630_v53 = vmax.f32 %v13566_v42, 0.0  ;;  %v13432_v63 = vmul.f32 %v20754_v25, %v13091_v31  ;;  %v13094_v17 = vadd.f32 %v21272_v43, %v12804_v28  ;;  %v12806_v33 = vpop.f32.mrb[99].mxu1  ;;  %v15098_v31 = vunpack.c.l.bf16 %v15350_v10 }
 0x884   : > { %v15218_v23 = vpack.c.bf16 %v13630_v53, %v13629_v61  ;;  %v13503_v36 = vadd.f32 %v20763_v32, %v13432_v63  ;;  %v13433_v12 = vmul.f32 %v20754_v25, %v13094_v17  ;;  %v21278_v53 = vld [vmem:[#allocation26_spill] sm:$0xff] }
 0x886   : > { %15377 = vst [vmem:[%s20795_s9 + $0x38] sm:$0xff] %v15218_v23   ;;  %v13567_v51 = vadd.f32 %v15086_v37, %v13503_v36  ;;  %v13504_v52 = vadd.f32 %v20763_v32, %v13433_v12  ;;  %v15099_v23 = vunpack.c.h.bf16 %v15350_v10 }
 0x887   : > { %v12809_v20 = vpop.f32.mrb[100].mxu1 }
 0x888   : > { %v13568_v35 = vadd.f32 %v15087_v39, %v13504_v52  ;;  %v13099_v22 = vadd.f32 %v21273_v2, %v12809_v20  ;;  %v12811_v24 = vpop.f32.mrb[101].mxu1  ;;  %v13631_v44 = vmax.f32 %v13567_v51, 0.0  ;;  %v15351_v51 = vld [vmem:[%s17484_s19 + $0x60] sm:$0xff]   ;;  %v21279_v20 = vld [vmem:[#allocation29_spill] sm:$0xff] }
 0x889   : > { %v12812_v54 = vpop.f32.mrb[102].mxu1 }
 0x88a   : > { %v13632_v26 = vmax.f32 %v13568_v35, 0.0  ;;  %v13434_v3 = vmul.f32 %v20754_v25, %v13099_v22  ;;  %v13102_v4 = vadd.f32 %v21274_v19, %v12812_v54  ;;  %v12814_v56 = vpop.f32.mrb[103].mxu1  ;;  %v15102_v22 = vunpack.c.l.bf16 %v15351_v51 }
 0x88c   : > { %v15223_v34 = vpack.c.bf16 %v13632_v26, %v13631_v44  ;;  %v13505_v27 = vadd.f32 %v20763_v32, %v13434_v3  ;;  %v13435_v18 = vmul.f32 %v20754_v25, %v13102_v4  ;;  %v21280_v26 = vld [vmem:[#allocation31_spill] sm:$0xff] }
 0x88e   : > { %15378 = vst [vmem:[%s20795_s9 + $0x40] sm:$0xff] %v15223_v34   ;;  %v13569_v0 = vadd.f32 %v15090_v11, %v13505_v27  ;;  %v13506_v40 = vadd.f32 %v20763_v32, %v13435_v18  ;;  %v15103_v34 = vunpack.c.h.bf16 %v15351_v51 }
 0x88f   : > { %v12817_v62 = vpop.f32.mrb[104].mxu1 }
 0x890   : > { %v13570_v13 = vadd.f32 %v15091_v7, %v13506_v40  ;;  %v13107_v57 = vadd.f32 %v21275_v41, %v12817_v62  ;;  %v12819_v55 = vpop.f32.mrb[105].mxu1  ;;  %v13633_v46 = vmax.f32 %v13569_v0, 0.0  ;;  %v15352_v0 = vld [vmem:[%s17484_s19 + $0x68] sm:$0xff]   ;;  %v21281_v62 = vld [vmem:[#allocation28_spill] sm:$0xff] }
 0x891   : > { %v12820_v60 = vpop.f32.mrb[106].mxu1 }
 0x892   : > { %v13634_v14 = vmax.f32 %v13570_v13, 0.0  ;;  %v13436_v9 = vmul.f32 %v20754_v25, %v13107_v57  ;;  %v13110_v29 = vadd.f32 %v21276_v38, %v12820_v60  ;;  %v12822_v30 = vpop.f32.mrb[107].mxu1  ;;  %v15106_v57 = vunpack.c.l.bf16 %v15352_v0 }
 0x894   : > { %v15228_v1 = vpack.c.bf16 %v13634_v14, %v13633_v46  ;;  %v13507_v50 = vadd.f32 %v20763_v32, %v13436_v9  ;;  %v13437_v48 = vmul.f32 %v20754_v25, %v13110_v29  ;;  %v21282_v14 = vld [vmem:[#allocation30_spill] sm:$0xff] }
 0x896   : > { %15379 = vst [vmem:[%s20795_s9 + $0x48] sm:$0xff] %v15228_v1   ;;  %v13571_v15 = vadd.f32 %v15094_v49, %v13507_v50  ;;  %v13508_v45 = vadd.f32 %v20763_v32, %v13437_v48  ;;  %v15107_v1 = vunpack.c.h.bf16 %v15352_v0 }
 0x897   : > { %v12825_v47 = vpop.f32.mrb[108].mxu1 }
 0x898   : > { %v13572_v5 = vadd.f32 %v15095_v58, %v13508_v45  ;;  %v13115_v42 = vadd.f32 %v21277_v21, %v12825_v47  ;;  %v12827_v59 = vpop.f32.mrb[109].mxu1  ;;  %v13635_v37 = vmax.f32 %v13571_v15, 0.0  ;;  %v15353_v15 = vld [vmem:[%s17484_s19 + $0x70] sm:$0xff]   ;;  %v21283_v47 = vld [vmem:[#allocation33_spill] sm:$0xff] }
 0x899   : > { %v12828_v16 = vpop.f32.mrb[110].mxu1 }
 0x89a   : > { %v13636_v28 = vmax.f32 %v13572_v5, 0.0  ;;  %v13438_v61 = vmul.f32 %v20754_v25, %v13115_v42  ;;  %v13118_v63 = vadd.f32 %v21278_v53, %v12828_v16  ;;  %v12830_v43 = vpop.f32.mrb[111].mxu1  ;;  %v15110_v42 = vunpack.c.l.bf16 %v15353_v15 }
 0x89c   : > { %v15233_v17 = vpack.c.bf16 %v13636_v28, %v13635_v37  ;;  %v13509_v33 = vadd.f32 %v20763_v32, %v13438_v61  ;;  %v13439_v36 = vmul.f32 %v20754_v25, %v13118_v63  ;;  %v21284_v28 = vld [vmem:[#allocation35_spill] sm:$0xff] }
 0x89e   : > { %15380 = vst [vmem:[%s20795_s9 + $0x50] sm:$0xff] %v15233_v17   ;;  %v13573_v39 = vadd.f32 %v15098_v31, %v13509_v33  ;;  %v13510_v12 = vadd.f32 %v20763_v32, %v13439_v36  ;;  %v15111_v17 = vunpack.c.h.bf16 %v15353_v15 }
 0x89f   : > { %v12833_v52 = vpop.f32.mrb[112].mxu1 }
 0x8a0   : > { %v13574_v6 = vadd.f32 %v15099_v23, %v13510_v12  ;;  %v13123_v35 = vadd.f32 %v21279_v20, %v12833_v52  ;;  %v12835_v2 = vpop.f32.mrb[113].mxu1  ;;  %v13637_v11 = vmax.f32 %v13573_v39, 0.0  ;;  %v15354_v39 = vld [vmem:[%s17484_s19 + $0x78] sm:$0xff]   ;;  %v21285_v52 = vld [vmem:[#allocation32_spill] sm:$0xff] }
 0x8a1   : > { %v12836_v24 = vpop.f32.mrb[114].mxu1 }
 0x8a2   : > { %v13638_v54 = vmax.f32 %v13574_v6, 0.0  ;;  %v13440_v44 = vmul.f32 %v20754_v25, %v13123_v35  ;;  %v13126_v3 = vadd.f32 %v21280_v26, %v12836_v24  ;;  %v12838_v19 = vpop.f32.mrb[115].mxu1  ;;  %v15114_v35 = vunpack.c.l.bf16 %v15354_v39 }
 0x8a4   : > { %v15238_v4 = vpack.c.bf16 %v13638_v54, %v13637_v11  ;;  %v13511_v56 = vadd.f32 %v20763_v32, %v13440_v44  ;;  %v13441_v27 = vmul.f32 %v20754_v25, %v13126_v3  ;;  %v21286_v54 = vld [vmem:[#allocation34_spill] sm:$0xff] }
 0x8a6   : > { %15381 = vst [vmem:[%s20795_s9 + $0x58] sm:$0xff] %v15238_v4   ;;  %v13575_v7 = vadd.f32 %v15102_v22, %v13511_v56  ;;  %v13512_v18 = vadd.f32 %v20763_v32, %v13441_v27  ;;  %v15115_v4 = vunpack.c.h.bf16 %v15354_v39 }
 0x8a7   : > { %v12841_v40 = vpop.f32.mrb[116].mxu1 }
 0x8a8   : > { %v13576_v8 = vadd.f32 %v15103_v34, %v13512_v18  ;;  %v13131_v13 = vadd.f32 %v21281_v62, %v12841_v40  ;;  %v12843_v41 = vpop.f32.mrb[117].mxu1  ;;  %v13639_v49 = vmax.f32 %v13575_v7, 0.0  ;;  %v15355_v7 = vld [vmem:[%s17484_s19 + $0x80] sm:$0xff]   ;;  %v21287_v40 = vld [vmem:[#allocation37_spill] sm:$0xff] }
 0x8a9   : > { %v12844_v55 = vpop.f32.mrb[118].mxu1 }
 0x8aa   : > { %v13640_v60 = vmax.f32 %v13576_v8, 0.0  ;;  %v13442_v46 = vmul.f32 %v20754_v25, %v13131_v13  ;;  %v13134_v9 = vadd.f32 %v21282_v14, %v12844_v55  ;;  %v12846_v38 = vpop.f32.mrb[119].mxu1  ;;  %v15118_v13 = vunpack.c.l.bf16 %v15355_v7 }
 0x8ac   : > { %v15243_v29 = vpack.c.bf16 %v13640_v60, %v13639_v49  ;;  %v13513_v30 = vadd.f32 %v20763_v32, %v13442_v46  ;;  %v13443_v50 = vmul.f32 %v20754_v25, %v13134_v9  ;;  %v21288_v60 = vld [vmem:[#allocation39_spill] sm:$0xff] }
 0x8ae   : > { %15382 = vst [vmem:[%s20795_s9 + $0x60] sm:$0xff] %v15243_v29   ;;  %v13577_v58 = vadd.f32 %v15106_v57, %v13513_v30  ;;  %v13514_v48 = vadd.f32 %v20763_v32, %v13443_v50  ;;  %v15119_v29 = vunpack.c.h.bf16 %v15355_v7 }
 0x8af   : > { %v12849_v45 = vpop.f32.mrb[120].mxu1 }
 0x8b0   : > { %v13578_v10 = vadd.f32 %v15107_v1, %v13514_v48  ;;  %v13139_v5 = vadd.f32 %v21283_v47, %v12849_v45  ;;  %v12851_v21 = vpop.f32.mrb[121].mxu1  ;;  %v13641_v31 = vmax.f32 %v13577_v58, 0.0  ;;  %v15356_v58 = vld [vmem:[%s17484_s19 + $0x88] sm:$0xff]   ;;  %v21289_v45 = vld [vmem:[#allocation36_spill] sm:$0xff] }
 0x8b1   : > { %v12852_v59 = vpop.f32.mrb[122].mxu1 }
 0x8b2   : > { %v13642_v16 = vmax.f32 %v13578_v10, 0.0  ;;  %v13444_v37 = vmul.f32 %v20754_v25, %v13139_v5  ;;  %v13142_v61 = vadd.f32 %v21284_v28, %v12852_v59  ;;  %v12854_v53 = vpop.f32.mrb[123].mxu1  ;;  %v15122_v5 = vunpack.c.l.bf16 %v15356_v58 }
 0x8b4   : > { %v15248_v63 = vpack.c.bf16 %v13642_v16, %v13641_v31  ;;  %v13515_v43 = vadd.f32 %v20763_v32, %v13444_v37  ;;  %v13445_v33 = vmul.f32 %v20754_v25, %v13142_v61  ;;  %v21290_v16 = vld [vmem:[#allocation38_spill] sm:$0xff] }
 0x8b6   : > { %15383 = vst [vmem:[%s20795_s9 + $0x68] sm:$0xff] %v15248_v63   ;;  %v13579_v23 = vadd.f32 %v15110_v42, %v13515_v43  ;;  %v13516_v36 = vadd.f32 %v20763_v32, %v13445_v33  ;;  %v15123_v63 = vunpack.c.h.bf16 %v15356_v58 }
 0x8b7   : > { %v12857_v12 = vpop.f32.mrb[124].mxu1 }
 0x8b8   : > { %v13580_v51 = vadd.f32 %v15111_v17, %v13516_v36  ;;  %v13147_v6 = vadd.f32 %v21285_v52, %v12857_v12  ;;  %v12859_v20 = vpop.f32.mrb[125].mxu1  ;;  %v13643_v22 = vmax.f32 %v13579_v23, 0.0  ;;  %v15357_v23 = vld [vmem:[%s17484_s19 + $0x90] sm:$0xff]   ;;  %v21291_v12 = vld [vmem:[#allocation41_spill] sm:$0xff] }
 0x8b9   : > { %v12860_v2 = vpop.f32.mrb[126].mxu1 }
 0x8ba   : > { %v13644_v24 = vmax.f32 %v13580_v51, 0.0  ;;  %v13446_v11 = vmul.f32 %v20754_v25, %v13147_v6  ;;  %v13150_v44 = vadd.f32 %v21286_v54, %v12860_v2  ;;  %v12862_v26 = vpop.f32.mrb[127].mxu1  ;;  %v15126_v6 = vunpack.c.l.bf16 %v15357_v23 }
 0x8bc   : > { %v15253_v3 = vpack.c.bf16 %v13644_v24, %v13643_v22  ;;  %v13517_v19 = vadd.f32 %v20763_v32, %v13446_v11  ;;  %v13447_v56 = vmul.f32 %v20754_v25, %v13150_v44  ;;  %v21292_v24 = vld [vmem:[#allocation43_spill] sm:$0xff] }
 0x8be   : > { %15384 = vst [vmem:[%s20795_s9 + $0x70] sm:$0xff] %v15253_v3   ;;  %v13581_v34 = vadd.f32 %v15114_v35, %v13517_v19  ;;  %v13518_v27 = vadd.f32 %v20763_v32, %v13447_v56  ;;  %v15127_v3 = vunpack.c.h.bf16 %v15357_v23 }
 0x8bf   : > { %v12865_v18 = vpop.f32.mrb[128].mxu1 }
 0x8c0   : > { %v13582_v0 = vadd.f32 %v15115_v4, %v13518_v27  ;;  %v13155_v8 = vadd.f32 %v21287_v40, %v12865_v18  ;;  %v12867_v62 = vpop.f32.mrb[129].mxu1  ;;  %v13645_v57 = vmax.f32 %v13581_v34, 0.0  ;;  %v15358_v34 = vld [vmem:[%s17484_s19 + $0x98] sm:$0xff]   ;;  %v21293_v18 = vld [vmem:[#allocation40_spill] sm:$0xff] }
 0x8c1   : > { %v12868_v41 = vpop.f32.mrb[130].mxu1 }
 0x8c2   : > { %v13646_v55 = vmax.f32 %v13582_v0, 0.0  ;;  %v13448_v49 = vmul.f32 %v20754_v25, %v13155_v8  ;;  %v13158_v46 = vadd.f32 %v21288_v60, %v12868_v41  ;;  %v12870_v14 = vpop.f32.mrb[131].mxu1  ;;  %v15130_v8 = vunpack.c.l.bf16 %v15358_v34 }
 0x8c4   : > { %v15258_v9 = vpack.c.bf16 %v13646_v55, %v13645_v57  ;;  %v13519_v38 = vadd.f32 %v20763_v32, %v13448_v49  ;;  %v13449_v30 = vmul.f32 %v20754_v25, %v13158_v46  ;;  %v21294_v55 = vld [vmem:[#allocation42_spill] sm:$0xff] }
 0x8c6   : > { %15385 = vst [vmem:[%s20795_s9 + $0x78] sm:$0xff] %v15258_v9   ;;  %v13583_v1 = vadd.f32 %v15118_v13, %v13519_v38  ;;  %v13520_v50 = vadd.f32 %v20763_v32, %v13449_v30  ;;  %v15131_v9 = vunpack.c.h.bf16 %v15358_v34 }
 0x8c7   : > { %v12873_v48 = vpop.f32.mrb[132].mxu1 }
 0x8c8   : > { %v13584_v15 = vadd.f32 %v15119_v29, %v13520_v50  ;;  %v13163_v10 = vadd.f32 %v21289_v45, %v12873_v48  ;;  %v12875_v47 = vpop.f32.mrb[133].mxu1  ;;  %v13647_v42 = vmax.f32 %v13583_v1, 0.0  ;;  %v15359_v1 = vld [vmem:[%s17484_s19 + $0xa0] sm:$0xff]   ;;  %v21295_v48 = vld [vmem:[#allocation45_spill] sm:$0xff] }
 0x8c9   : > { %v12876_v21 = vpop.f32.mrb[134].mxu1 }
 0x8ca   : > { %v13648_v59 = vmax.f32 %v13584_v15, 0.0  ;;  %v13450_v31 = vmul.f32 %v20754_v25, %v13163_v10  ;;  %v13166_v37 = vadd.f32 %v21290_v16, %v12876_v21  ;;  %v12878_v28 = vpop.f32.mrb[135].mxu1  ;;  %v15134_v10 = vunpack.c.l.bf16 %v15359_v1 }
 0x8cc   : > { %v15263_v61 = vpack.c.bf16 %v13648_v59, %v13647_v42  ;;  %v13521_v53 = vadd.f32 %v20763_v32, %v13450_v31  ;;  %v13451_v43 = vmul.f32 %v20754_v25, %v13166_v37  ;;  %v21296_v59 = vld [vmem:[#allocation47_spill] sm:$0xff] }
 0x8ce   : > { %15386 = vst [vmem:[%s20795_s9 + $0x80] sm:$0xff] %v15263_v61   ;;  %v13585_v17 = vadd.f32 %v15122_v5, %v13521_v53  ;;  %v13522_v33 = vadd.f32 %v20763_v32, %v13451_v43  ;;  %v15135_v61 = vunpack.c.h.bf16 %v15359_v1 }
 0x8cf   : > { %v12881_v36 = vpop.f32.mrb[136].mxu1 }
 0x8d0   : > { %v13586_v39 = vadd.f32 %v15123_v63, %v13522_v33  ;;  %v13171_v51 = vadd.f32 %v21291_v12, %v12881_v36  ;;  %v12883_v52 = vpop.f32.mrb[137].mxu1  ;;  %v13649_v35 = vmax.f32 %v13585_v17, 0.0  ;;  %v15360_v17 = vld [vmem:[%s17484_s19 + $0xa8] sm:$0xff]   ;;  %v21297_v36 = vld [vmem:[#allocation44_spill] sm:$0xff] }
 0x8d1   : > { %v12884_v20 = vpop.f32.mrb[138].mxu1 }
 0x8d2   : > { %v13650_v2 = vmax.f32 %v13586_v39, 0.0  ;;  %v13452_v22 = vmul.f32 %v20754_v25, %v13171_v51  ;;  %v13174_v11 = vadd.f32 %v21292_v24, %v12884_v20  ;;  %v12886_v54 = vpop.f32.mrb[139].mxu1  ;;  %v15138_v51 = vunpack.c.l.bf16 %v15360_v17 }
 0x8d4   : > { %v15268_v44 = vpack.c.bf16 %v13650_v2, %v13649_v35  ;;  %v13523_v26 = vadd.f32 %v20763_v32, %v13452_v22  ;;  %v13453_v19 = vmul.f32 %v20754_v25, %v13174_v11  ;;  %v21298_v2 = vld [vmem:[#allocation46_spill] sm:$0xff] }
 0x8d6   : > { %15387 = vst [vmem:[%s20795_s9 + $0x88] sm:$0xff] %v15268_v44   ;;  %v13587_v4 = vadd.f32 %v15126_v6, %v13523_v26  ;;  %v13524_v56 = vadd.f32 %v20763_v32, %v13453_v19  ;;  %v15139_v44 = vunpack.c.h.bf16 %v15360_v17 }
 0x8d7   : > { %v12889_v27 = vpop.f32.mrb[140].mxu1 }
 0x8d8   : > { %v13588_v7 = vadd.f32 %v15127_v3, %v13524_v56  ;;  %v13179_v0 = vadd.f32 %v21293_v18, %v12889_v27  ;;  %v12891_v40 = vpop.f32.mrb[141].mxu1  ;;  %v13651_v13 = vmax.f32 %v13587_v4, 0.0  ;;  %v15361_v4 = vld [vmem:[%s17484_s19 + $0xb0] sm:$0xff]  }
 0x8d9   : > { %v12892_v62 = vpop.f32.mrb[142].mxu1  ;;  %v21299_v27 = vld [vmem:[#allocation50_spill] sm:$0xff] }
 0x8da   : > { %v13652_v41 = vmax.f32 %v13588_v7, 0.0  ;;  %v13454_v57 = vmul.f32 %v20754_v25, %v13179_v0  ;;  %v13182_v49 = vadd.f32 %v21294_v55, %v12892_v62  ;;  %v12894_v60 = vpop.f32.mrb[143].mxu1  ;;  %v15142_v0 = vunpack.c.l.bf16 %v15361_v4 }
 0x8dc   : > { %v15273_v46 = vpack.c.bf16 %v13652_v41, %v13651_v13  ;;  %v13525_v14 = vadd.f32 %v20763_v32, %v13454_v57  ;;  %v13455_v38 = vmul.f32 %v20754_v25, %v13182_v49  ;;  %v21300_v41 = vld [vmem:[#allocation52_spill] sm:$0xff] }
 0x8de   : > { %15388 = vst [vmem:[%s20795_s9 + $0x90] sm:$0xff] %v15273_v46   ;;  %v13589_v29 = vadd.f32 %v15130_v8, %v13525_v14  ;;  %v13526_v30 = vadd.f32 %v20763_v32, %v13455_v38  ;;  %v15143_v46 = vunpack.c.h.bf16 %v15361_v4 }
 0x8df   : > { %v12897_v50 = vpop.f32.mrb[144].mxu1 }
 0x8e0   : > { %v13590_v58 = vadd.f32 %v15131_v9, %v13526_v30  ;;  %v13187_v15 = vadd.f32 %v21295_v48, %v12897_v50  ;;  %v12899_v45 = vpop.f32.mrb[145].mxu1  ;;  %v13653_v5 = vmax.f32 %v13589_v29, 0.0  ;;  %v15362_v29 = vld [vmem:[%s17484_s19 + $0xb8] sm:$0xff]   ;;  %v21301_v50 = vld [vmem:[#allocation48_spill] sm:$0xff] }
 0x8e1   : > { %v12900_v47 = vpop.f32.mrb[146].mxu1 }
 0x8e2   : > { %v13654_v21 = vmax.f32 %v13590_v58, 0.0  ;;  %v13456_v42 = vmul.f32 %v20754_v25, %v13187_v15  ;;  %v13190_v31 = vadd.f32 %v21296_v59, %v12900_v47  ;;  %v12902_v16 = vpop.f32.mrb[147].mxu1  ;;  %v15146_v15 = vunpack.c.l.bf16 %v15362_v29 }
 0x8e4   : > { %v15278_v37 = vpack.c.bf16 %v13654_v21, %v13653_v5  ;;  %v13527_v28 = vadd.f32 %v20763_v32, %v13456_v42  ;;  %v13457_v53 = vmul.f32 %v20754_v25, %v13190_v31  ;;  %v21302_v21 = vld [vmem:[#allocation51_spill] sm:$0xff] }
 0x8e6   : > { %15389 = vst [vmem:[%s20795_s9 + $0x98] sm:$0xff] %v15278_v37   ;;  %v13591_v63 = vadd.f32 %v15134_v10, %v13527_v28  ;;  %v13528_v43 = vadd.f32 %v20763_v32, %v13457_v53  ;;  %v15147_v37 = vunpack.c.h.bf16 %v15362_v29  ;;  %v21003_v28 = vld [vmem:[%s21078_s5] ss:$0 sm:$0xff] }
 0x8e7   : > { %v12905_v33 = vpop.f32.mrb[148].mxu1 }
 0x8e8   : > { %v13592_v23 = vadd.f32 %v15135_v61, %v13528_v43  ;;  %v13195_v39 = vadd.f32 %v21297_v36, %v12905_v33  ;;  %v12907_v12 = vpop.f32.mrb[149].mxu1  ;;  %v13655_v6 = vmax.f32 %v13591_v63, 0.0  ;;  %v15363_v43 = vld [vmem:[%s17484_s19 + $0xc0] sm:$0xff]   ;;  %v21303_v33 = vld [vmem:[#allocation58_spill] sm:$0xff] }
 0x8e9   : > { %v12908_v52 = vpop.f32.mrb[150].mxu1 }
 0x8ea   : > { %v13656_v20 = vmax.f32 %v13592_v23, 0.0  ;;  %v13458_v35 = vmul.f32 %v20754_v25, %v13195_v39  ;;  %v13198_v22 = vadd.f32 %v21298_v2, %v12908_v52  ;;  %v12910_v24 = vpop.f32.mrb[151].mxu1  ;;  %v15150_v39 = vunpack.c.l.bf16 %v15363_v43 }
 0x8ec   : > { %v15283_v11 = vpack.c.bf16 %v13656_v20, %v13655_v6  ;;  %v13529_v54 = vadd.f32 %v20763_v32, %v13458_v35  ;;  %v13459_v26 = vmul.f32 %v20754_v25, %v13198_v22  ;;  %v21304_v20 = vld [vmem:[#allocation61_spill] sm:$0xff] }
 0x8ee   : > { %15390 = vst [vmem:[%s20795_s9 + $0xa0] sm:$0xff] %v15283_v11   ;;  %v13593_v3 = vadd.f32 %v15138_v51, %v13529_v54  ;;  %v13530_v19 = vadd.f32 %v20763_v32, %v13459_v26  ;;  %v15151_v11 = vunpack.c.h.bf16 %v15363_v43 }
 0x8ef   : > { %v12913_v56 = vpop.f32.mrb[152].mxu1 }
 0x8f0   : > { %v13594_v34 = vadd.f32 %v15139_v44, %v13530_v19  ;;  %v13203_v7 = vadd.f32 %v21299_v27, %v12913_v56  ;;  %v12915_v18 = vpop.f32.mrb[153].mxu1  ;;  %v13657_v8 = vmax.f32 %v13593_v3, 0.0  ;;  %v15364_v3 = vld [vmem:[%s17484_s19 + $0xc8] sm:$0xff]  }
 0x8f1   : > { %v12916_v40 = vpop.f32.mrb[154].mxu1  ;;  %v21305_v56 = vld [vmem:[#allocation57_spill] sm:$0xff] }
 0x8f2   : > { %v13658_v62 = vmax.f32 %v13594_v34, 0.0  ;;  %v13460_v13 = vmul.f32 %v20754_v25, %v13203_v7  ;;  %v13206_v57 = vadd.f32 %v21300_v41, %v12916_v40  ;;  %v12918_v55 = vpop.f32.mrb[155].mxu1  ;;  %v15154_v7 = vunpack.c.l.bf16 %v15364_v3 }
 0x8f4   : > { %v15288_v49 = vpack.c.bf16 %v13658_v62, %v13657_v8  ;;  %v13531_v60 = vadd.f32 %v20763_v32, %v13460_v13  ;;  %v13461_v14 = vmul.f32 %v20754_v25, %v13206_v57  ;;  %v21306_v62 = vld [vmem:[#allocation59_spill] sm:$0xff] }
 0x8f6   : > { %15391 = vst [vmem:[%s20795_s9 + $0xa8] sm:$0xff] %v15288_v49   ;;  %v13595_v9 = vadd.f32 %v15142_v0, %v13531_v60  ;;  %v13532_v38 = vadd.f32 %v20763_v32, %v13461_v14  ;;  %v15155_v49 = vunpack.c.h.bf16 %v15364_v3 }
 0x8f7   : > { %v12921_v30 = vpop.f32.mrb[156].mxu1 }
 0x8f8   : > { %v13596_v1 = vadd.f32 %v15143_v46, %v13532_v38  ;;  %v13211_v58 = vadd.f32 %v21301_v50, %v12921_v30  ;;  %v12923_v48 = vpop.f32.mrb[157].mxu1  ;;  %v13659_v10 = vmax.f32 %v13595_v9, 0.0  ;;  %v15365_v9 = vld [vmem:[%s17484_s19 + $0xd0] sm:$0xff]  }
 0x8f9   : > { %v12924_v45 = vpop.f32.mrb[158].mxu1  ;;  %v21307_v30 = vld [vmem:[#allocation66_spill] sm:$0xff] }
 0x8fa   : > { %v13660_v47 = vmax.f32 %v13596_v1, 0.0  ;;  %v13462_v5 = vmul.f32 %v20754_v25, %v13211_v58  ;;  %v13214_v42 = vadd.f32 %v21302_v21, %v12924_v45  ;;  %v12926_v59 = vpop.f32.mrb[159].mxu1  ;;  %v15158_v58 = vunpack.c.l.bf16 %v15365_v9 }
 0x8fc   : > { %v15293_v31 = vpack.c.bf16 %v13660_v47, %v13659_v10  ;;  %v13533_v16 = vadd.f32 %v20763_v32, %v13462_v5  ;;  %v13463_v61 = vmul.f32 %v21003_v28, %v13214_v42  ;;  %v21308_v47 = vld [vmem:[#allocation69_spill] sm:$0xff] }
 0x8fe   : > { %15392 = vst [vmem:[%s20795_s9 + $0xb0] sm:$0xff] %v15293_v31   ;;  %v13597_v53 = vadd.f32 %v15146_v15, %v13533_v16  ;;  %v13534_v63 = vadd.f32 %v20763_v32, %v13463_v61  ;;  %v21015_v32 = vld [vmem:[%s21079_s6] ss:$0 sm:$0xff]  ;;  %v15159_v31 = vunpack.c.h.bf16 %v15365_v9 }
 0x8ff   : > { %v12929_v25 = vpop.f32.mrb[160].mxu1 }
 0x900   : > { %v13598_v17 = vadd.f32 %v15147_v37, %v13534_v63  ;;  %v13219_v23 = vadd.f32 %v21303_v33, %v12929_v25  ;;  %v12931_v36 = vpop.f32.mrb[161].mxu1  ;;  %v13661_v51 = vmax.f32 %v13597_v53, 0.0  ;;  %v15366_v53 = vld [vmem:[%s17484_s19 + $0xd8] sm:$0xff]   ;;  %v21309_v25 = vld [vmem:[#allocation65_spill] sm:$0xff] }
 0x901   : > { %v12932_v12 = vpop.f32.mrb[162].mxu1 }
 0x902   : > { %v13662_v52 = vmax.f32 %v13598_v17, 0.0  ;;  %v13464_v6 = vmul.f32 %v21003_v28, %v13219_v23  ;;  %v13222_v35 = vadd.f32 %v21304_v20, %v12932_v12  ;;  %v12934_v2 = vpop.f32.mrb[163].mxu1  ;;  %v15162_v23 = vunpack.c.l.bf16 %v15366_v53 }
 0x904   : > { %v15298_v22 = vpack.c.bf16 %v13662_v52, %v13661_v51  ;;  %v13535_v24 = vadd.f32 %v21015_v32, %v13464_v6  ;;  %v13465_v54 = vmul.f32 %v21003_v28, %v13222_v35  ;;  %v21310_v52 = vld [vmem:[#allocation67_spill] sm:$0xff] }
 0x906   : > { %15393 = vst [vmem:[%s20795_s9 + $0xb8] sm:$0xff] %v15298_v22   ;;  %v13599_v44 = vadd.f32 %v15150_v39, %v13535_v24  ;;  %v13536_v26 = vadd.f32 %v21015_v32, %v13465_v54  ;;  %v15163_v22 = vunpack.c.h.bf16 %v15366_v53  ;;  %v15370_v53 = vld [vmem:[%s17484_s19 + $0xf8] sm:$0xff]  }
 0x907   : > { %v12937_v19 = vpop.f32.mrb[164].mxu1 }
 0x908   : > { %v13600_v4 = vadd.f32 %v15151_v11, %v13536_v26  ;;  %v13227_v34 = vadd.f32 %v21305_v56, %v12937_v19  ;;  %v12939_v27 = vpop.f32.mrb[165].mxu1  ;;  %v13663_v0 = vmax.f32 %v13599_v44, 0.0 }
 0x909   : > { %v12940_v18 = vpop.f32.mrb[166].mxu1 }
 0x90a   : > { %v13664_v40 = vmax.f32 %v13600_v4, 0.0  ;;  %v13466_v8 = vmul.f32 %v21003_v28, %v13227_v34  ;;  %v13230_v13 = vadd.f32 %v21306_v62, %v12940_v18  ;;  %v12942_v41 = vpop.f32.mrb[167].mxu1 }
 0x90c   : > { %v15303_v57 = vpack.c.bf16 %v13664_v40, %v13663_v0  ;;  %v13537_v55 = vadd.f32 %v21015_v32, %v13466_v8  ;;  %v13467_v60 = vmul.f32 %v21003_v28, %v13230_v13 }
 0x90e   : > { %15394 = vst [vmem:[%s20795_s9 + $0xc0] sm:$0xff] %v15303_v57   ;;  %v13601_v46 = vadd.f32 %v15154_v7, %v13537_v55  ;;  %v13538_v14 = vadd.f32 %v21015_v32, %v13467_v60 }
 0x90f   : > { %v12945_v38 = vpop.f32.mrb[168].mxu1 }
 0x910   : > { %v13602_v29 = vadd.f32 %v15155_v49, %v13538_v14  ;;  %v13235_v1 = vadd.f32 %v21307_v30, %v12945_v38  ;;  %v12947_v50 = vpop.f32.mrb[169].mxu1  ;;  %v13665_v15 = vmax.f32 %v13601_v46, 0.0  ;;  %v15368_v14 = vld [vmem:[%s17484_s19 + $0xe8] sm:$0xff]  }
 0x911   : > { %v12948_v48 = vpop.f32.mrb[170].mxu1  ;;  %v15170_v50 = vunpack.c.l.bf16 %v15368_v14 }
 0x912   : > { %v13666_v45 = vmax.f32 %v13602_v29, 0.0  ;;  %v13468_v10 = vmul.f32 %v21003_v28, %v13235_v1  ;;  %v13238_v5 = vadd.f32 %v21308_v47, %v12948_v48  ;;  %v12950_v21 = vpop.f32.mrb[171].mxu1  ;;  %v15367_v29 = vld [vmem:[%s17484_s19 + $0xe0] sm:$0xff]  }
 0x913   : > { %v15171_v21 = vunpack.c.h.bf16 %v15368_v14 }
 0x914   : > { %v15308_v42 = vpack.c.bf16 %v13666_v45, %v13665_v15  ;;  %v13539_v59 = vadd.f32 %v21015_v32, %v13468_v10  ;;  %v13469_v16 = vmul.f32 %v21003_v28, %v13238_v5  ;;  %v15166_v45 = vunpack.c.l.bf16 %v15367_v29 }
 0x916   : > { %15395 = vst [vmem:[%s20795_s9 + $0xc8] sm:$0xff] %v15308_v42   ;;  %v13603_v37 = vadd.f32 %v15158_v58, %v13539_v59  ;;  %v13540_v61 = vadd.f32 %v21015_v32, %v13469_v16 }
 0x917   : > { %v12953_v63 = vpop.f32.mrb[172].mxu1 }
 0x918   : > { %v13604_v43 = vadd.f32 %v15159_v31, %v13540_v61  ;;  %v13243_v17 = vadd.f32 %v21309_v25, %v12953_v63  ;;  %v12955_v33 = vpop.f32.mrb[173].mxu1  ;;  %v13667_v39 = vmax.f32 %v13603_v37, 0.0  ;;  %v15167_v31 = vunpack.c.h.bf16 %v15367_v29  ;;  %v15369_v63 = vld [vmem:[%s17484_s19 + $0xf0] sm:$0xff]  }
 0x919   : > { %v12956_v36 = vpop.f32.mrb[174].mxu1 }
 0x91a   : > { %v13668_v12 = vmax.f32 %v13604_v43, 0.0  ;;  %v13470_v51 = vmul.f32 %v21003_v28, %v13243_v17  ;;  %v13246_v6 = vadd.f32 %v21310_v52, %v12956_v36  ;;  %v12958_v20 = vpop.f32.mrb[175].mxu1  ;;  %v15174_v52 = vunpack.c.l.bf16 %v15369_v63 }
 0x91c   : > { %v15313_v35 = vpack.c.bf16 %v13668_v12, %v13667_v39  ;;  %v13541_v2 = vadd.f32 %v21015_v32, %v13470_v51  ;;  %v13471_v24 = vmul.f32 %v21003_v28, %v13246_v6  ;;  %v15178_v12 = vunpack.c.l.bf16 %v15370_v53 }
 0x91e   : > { %15396 = vst [vmem:[%s20795_s9 + $0xd0] sm:$0xff] %v15313_v35   ;;  %v13605_v11 = vadd.f32 %v15162_v23, %v13541_v2  ;;  %v13542_v54 = vadd.f32 %v21015_v32, %v13471_v24 }
 0x91f   : > { %v12961_v44 = vpop.f32.mrb[176].mxu1 }
 0x920   : > { %v13606_v26 = vadd.f32 %v15163_v22, %v13542_v54  ;;  %v12963_v3 = vpop.f32.mrb[177].mxu1  ;;  %v13669_v4 = vmax.f32 %v13605_v11, 0.0 }
 0x921   : > { %v12964_v19 = vpop.f32.mrb[178].mxu1 }
 0x922   : > { %v13670_v56 = vmax.f32 %v13606_v26, 0.0  ;;  %v12966_v34 = vpop.f32.mrb[179].mxu1 }
 0x924   : > { %v15318_v27 = vpack.c.bf16 %v13670_v56, %v13669_v4  ;;  %v15179_v4 = vunpack.c.h.bf16 %v15370_v53 }
 0x926   : > { %15397 = vst [vmem:[%s20795_s9 + $0xd8] sm:$0xff] %v15318_v27  }
 0x927   : > { %v12969_v7 = vpop.f32.mrb[180].mxu1 }
 0x928   : > { %v12971_v18 = vpop.f32.mrb[181].mxu1 }
 0x929   : > { %v12972_v0 = vpop.f32.mrb[182].mxu1 }
 0x92a   : > { %v12974_v40 = vpop.f32.mrb[183].mxu1 }
 0x92f   : > { %v12977_v8 = vpop.f32.mrb[184].mxu1 }
 0x930   : > { %v12979_v62 = vpop.f32.mrb[185].mxu1 }
 0x931   : > { %v12980_v13 = vpop.f32.mrb[186].mxu1 }
 0x932   : > { %v12982_v41 = vpop.f32.mrb[187].mxu1 }
 0x937   : > { %v12985_v57 = vpop.f32.mrb[188].mxu1 }
 0x938   : > { %v12987_v55 = vpop.f32.mrb[189].mxu1 }
 0x939   : > { %v12988_v49 = vpop.f32.mrb[190].mxu1 }
 0x93a   : > { %v12990_v60 = vpop.f32.mrb[191].mxu1 }
 0x93f   : > { %v15636_v46 = vpop.f32.mrb[192].mxu1 }
 0x940   : > { %v13259_v9 = vadd.f32 %v15636_v46, %v12969_v7  ;;  %v13250_v38 = vpop.f32.mrb[193].mxu1  ;;  %v15175_v7 = vunpack.c.h.bf16 %v15369_v63 }
 0x941   : > { %v13251_v30 = vadd.f32 %v13250_v38, %v12961_v44  ;;  %v15637_v1 = vpop.f32.mrb[194].mxu1 }
 0x942   : > { %v13474_v58 = vmul.f32 %v21003_v28, %v13259_v9  ;;  %v13262_v48 = vadd.f32 %v15637_v1, %v12972_v0  ;;  %v13253_v15 = vpop.f32.mrb[195].mxu1 }
 0x943   : > { %v13472_v10 = vmul.f32 %v21003_v28, %v13251_v30  ;;  %v13254_v47 = vadd.f32 %v13253_v15, %v12964_v19 }
 0x944   : > { %v13545_v5 = vadd.f32 %v21015_v32, %v13474_v58  ;;  %v13475_v42 = vmul.f32 %v21003_v28, %v13262_v48 }
 0x945   : > { %v13543_v59 = vadd.f32 %v21015_v32, %v13472_v10  ;;  %v13473_v16 = vmul.f32 %v21003_v28, %v13254_v47 }
 0x946   : > { %v13609_v37 = vadd.f32 %v15170_v50, %v13545_v5  ;;  %v13546_v61 = vadd.f32 %v21015_v32, %v13475_v42 }
 0x947   : > { %v13607_v43 = vadd.f32 %v15166_v45, %v13543_v59  ;;  %v13544_v25 = vadd.f32 %v21015_v32, %v13473_v16  ;;  %v15640_v17 = vpop.f32.mrb[196].mxu1 }
 0x948   : > { %v13610_v33 = vadd.f32 %v15171_v21, %v13546_v61  ;;  %v13275_v23 = vadd.f32 %v15640_v17, %v12985_v57  ;;  %v13266_v36 = vpop.f32.mrb[197].mxu1  ;;  %v13673_v20 = vmax.f32 %v13609_v37, 0.0 }
 0x949   : > { %v13608_v39 = vadd.f32 %v15167_v31, %v13544_v25  ;;  %v13267_v51 = vadd.f32 %v13266_v36, %v12977_v8  ;;  %v15641_v6 = vpop.f32.mrb[198].mxu1  ;;  %v13671_v11 = vmax.f32 %v13607_v43, 0.0 }
 0x94a   : > { %v13674_v35 = vmax.f32 %v13610_v33, 0.0  ;;  %v13478_v2 = vmul.f32 %v21003_v28, %v13275_v23  ;;  %v13278_v22 = vadd.f32 %v15641_v6, %v12988_v49  ;;  %v13269_v24 = vpop.f32.mrb[199].mxu1 }
 0x94b   : > { %v13672_v54 = vmax.f32 %v13608_v39, 0.0  ;;  %v13476_v44 = vmul.f32 %v21003_v28, %v13267_v51  ;;  %v13270_v26 = vadd.f32 %v13269_v24, %v12980_v13 }
 0x94c   : > { %v15328_v3 = vpack.c.bf16 %v13674_v35, %v13673_v20  ;;  %v13549_v19 = vadd.f32 %v21015_v32, %v13478_v2  ;;  %v13479_v56 = vmul.f32 %v21003_v28, %v13278_v22 }
 0x94d   : > { %v15323_v34 = vpack.c.bf16 %v13672_v54, %v13671_v11  ;;  %v13547_v27 = vadd.f32 %v21015_v32, %v13476_v44  ;;  %v13477_v18 = vmul.f32 %v21003_v28, %v13270_v26 }
 0x94e   : > { %15399 = vst [vmem:[%s20795_s9 + $0xe8] sm:$0xff] %v15328_v3   ;;  %v13613_v0 = vadd.f32 %v15178_v12, %v13549_v19  ;;  %v13550_v40 = vadd.f32 %v21015_v32, %v13479_v56 }
 0x94f   : > { %15398 = vst [vmem:[%s20795_s9 + $0xe0] sm:$0xff] %v15323_v34   ;;  %v13611_v8 = vadd.f32 %v15174_v52, %v13547_v27  ;;  %v13548_v62 = vadd.f32 %v21015_v32, %v13477_v18 }
 0x950   : > { %v13614_v13 = vadd.f32 %v15179_v4, %v13550_v40  ;;  %v13677_v57 = vmax.f32 %v13613_v0, 0.0 }
 0x951   : > { %v13612_v41 = vadd.f32 %v15175_v7, %v13548_v62  ;;  %v13675_v49 = vmax.f32 %v13611_v8, 0.0 }
 0x952   : > { %v13678_v55 = vmax.f32 %v13614_v13, 0.0 }
 0x953   : > { %v13676_v60 = vmax.f32 %v13612_v41, 0.0 }
 0x954   : > { %v15338_v46 = vpack.c.bf16 %v13678_v55, %v13677_v57 }
 0x955   : > { %v15333_v14 = vpack.c.bf16 %v13676_v60, %v13675_v49 }
 0x956   : > { %15401 = vst [vmem:[%s20795_s9 + $0xf8] sm:$0xff] %v15338_v46  }
 0x957   : > { %15400 = vst [vmem:[%s20795_s9 + $0xf0] sm:$0xff] %v15333_v14  }
 0x958 PF: > { %s17_s24 = sadd.s32 1, %s17374_s24  }
 0x959   : > { %p14_p4 = scmp.ge.s32.totalorder %s17_s24, 6  }
 0x95b   :  { %16 = sbr.rel (!%p14_p4) target bundleno = 1 (0x1), region = 84 }

</bundles_post_ra>
